<compile_context>
chip_gen: v7x
topology: tpu7x:2x2x1
jax: 0.10.0
libtpu: 0.0.40
codegen_flags: <defaults>
</compile_context>

<pallas_src>
import jax
import jax.numpy as jnp
from jax.experimental import pallas as pl
from jax.experimental.pallas import tpu as pltpu


_CHUNK = 4      # timesteps per input-projection chunk (bounded xp VMEM)


# ---------------------------------------------------------------------------
# Kernel factory: one fused (fwd + bwd) bidirectional LSTM layer.
# ---------------------------------------------------------------------------
def _make_bilstm_layer_kernel(T, B, H, C, n_in):
    """Builds the fused fwd+bwd LSTM-layer kernel.

    Positional refs (in order):
      x_0..x_{n-1}            (T*B, D_i)   bf16  flattened layer inputs
      mask                    (T, B, 1)    f32   1.0 where t < length[b]
      w_in_f_0..w_in_f_{n-1}  (D_i, 4H)    bf16  input weights, forward dir
      w_in_b_0..w_in_b_{n-1}  (D_i, 4H)    bf16  input weights, backward dir
      w_hh_f, w_hh_b          (H, 4H)      bf16  recurrent weights
      b_f, b_b                (1, 4H)      f32   fused b_ih + b_hh
      out_f, out_b            (T, B, H)    bf16  per-step hidden (0 on padding)
      hfin_f, hfin_b          (B, H)       f32   final hidden state
      xp_f, xp_b              (2*C*B, 4H)  f32   double-buffered x-projection
    """
    nch = T // C
    CB = C * B
    TH = 3 * H

    def kernel(*refs):
        p = 0
        x_refs = refs[p:p + n_in]; p += n_in
        mask_ref = refs[p]; p += 1
        wf_refs = refs[p:p + n_in]; p += n_in
        wb_refs = refs[p:p + n_in]; p += n_in
        whf_ref, whb_ref, bf_ref, bb_ref = refs[p:p + 4]; p += 4
        outf_ref, outb_ref, hff_ref, hfb_ref = refs[p:p + 4]; p += 4
        xpf_sc, xpb_sc = refs[p:p + 2]

        # Loop-invariant loads: once per layer, not per step.
        w_hh_f = whf_ref[...]                       # (H, 4H) bf16
        w_hh_b = whb_ref[...]
        bias_f = bf_ref[...]                        # (1, 4H) f32
        bias_b = bb_ref[...]

        def project_chunk(k, slot):
            # Hoisted input projection for time-chunk k, both directions.
            # Forward consumes times [k*C, (k+1)*C); at the same combined step
            # indices the backward direction consumes times [T-(k+1)*C, T-k*C).
            rf = k * CB
            rb = (nch - 1 - k) * CB
            acc_f = bias_f
            acc_b = bias_b
            for x_ref, wf_ref, wb_ref in zip(x_refs, wf_refs, wb_refs):
                acc_f = acc_f + jnp.dot(x_ref[pl.ds(rf, CB), :], wf_ref[...],
                                        preferred_element_type=jnp.float32)
                acc_b = acc_b + jnp.dot(x_ref[pl.ds(rb, CB), :], wb_ref[...],
                                        preferred_element_type=jnp.float32)
            dst = slot * CB
            xpf_sc[pl.ds(dst, CB), :] = acc_f
            xpb_sc[pl.ds(dst, CB), :] = acc_b

        def step_fn(s, carry, k, slot):
            h_f, c_f, h_b, c_b = carry
            t = k * C + s                           # forward time index
            tb = T - 1 - t                          # backward time index

            off_f = pl.multiple_of(slot * CB + s * B, B)
            off_b = pl.multiple_of(slot * CB + (C - 1 - s) * B, B)

            # Only the two independent (B,H)@(H,4H) bf16 matmuls stay on the
            # serial critical path; fwd/bwd interleave on the MXU.
            gates_f = (xpf_sc[pl.ds(off_f, B), :]
                       + jnp.dot(h_f.astype(jnp.bfloat16), w_hh_f,
                                 preferred_element_type=jnp.float32))
            gates_b = (xpb_sc[pl.ds(off_b, B), :]
                       + jnp.dot(h_b.astype(jnp.bfloat16), w_hh_b,
                                 preferred_element_type=jnp.float32))

            # Gate order [i, f, o, g]: one wide sigmoid + one tanh per dir.
            sg_f = jax.nn.sigmoid(gates_f[:, :TH])
            sg_b = jax.nn.sigmoid(gates_b[:, :TH])
            gg_f = jnp.tanh(gates_f[:, TH:])
            gg_b = jnp.tanh(gates_b[:, TH:])

            c_nf = sg_f[:, H:2 * H] * c_f + sg_f[:, :H] * gg_f
            c_nb = sg_b[:, H:2 * H] * c_b + sg_b[:, :H] * gg_b
            h_nf = sg_f[:, 2 * H:] * jnp.tanh(c_nf)
            h_nb = sg_b[:, 2 * H:] * jnp.tanh(c_nb)

            # Packed-sequence semantics via precomputed 0/1 mask: freeze the
            # state and zero the output at padded positions.
            m_f = mask_ref[t]                       # (B, 1) f32
            m_b = mask_ref[tb]
            outf_ref[t] = (m_f * h_nf).astype(outf_ref.dtype)
            outb_ref[tb] = (m_b * h_nb).astype(outb_ref.dtype)

            h_f = h_f + m_f * (h_nf - h_f)
            c_f = c_f + m_f * (c_nf - c_f)
            h_b = h_b + m_b * (h_nb - h_b)
            c_b = c_b + m_b * (c_nb - c_b)
            return h_f, c_f, h_b, c_b

        def chunk_body(k, carry):
            # Issue chunk k+1's projection GEMMs before consuming chunk k so
            # they hide behind the latency-bound recurrence.
            @pl.when(k + 1 < nch)
            def _():
                project_chunk(k + 1, (k + 1) % 2)

            slot = k % 2
            return jax.lax.fori_loop(
                0, C, lambda s, c: step_fn(s, c, k, slot), carry, unroll=True)

        zeros = jnp.zeros((B, H), jnp.float32)
        project_chunk(0, 0)                         # prologue: chunk 0, slot 0
        h_f, _, h_b, _ = jax.lax.fori_loop(
            0, nch, chunk_body, (zeros, zeros, zeros, zeros))

        # Final hidden states written exactly once; cell state never leaves
        # registers/VMEM.
        hff_ref[...] = h_f
        hfb_ref[...] = h_b

    return kernel


# ---------------------------------------------------------------------------
# Wrapper: one pallas_call per bidirectional layer (both directions fused).
# ---------------------------------------------------------------------------
def bilstm_layer(inputs, mask, lp):
    """inputs: tuple of 1 or 2 arrays (T,B,D_i) bf16; mask: (T,B,1) f32.

    Returns (out_f, out_b) bf16 (T,B,H) and (h_f, h_b) f32 (B,H).
    """
    T, B, _ = inputs[0].shape
    H = lp["w_hh_f"].shape[0]
    G = 4 * H
    n_in = len(inputs)
    C = min(_CHUNK, T)
    assert T % C == 0, "sequence length must be a multiple of the chunk size"
    assert B % 8 == 0 and H % 128 == 0, "need sublane/lane aligned shapes"
    for x in inputs:
        assert x.shape[-1] % 128 == 0, "input feature dim must be lane aligned"

    x_flat = tuple(x.reshape(T * B, x.shape[-1]) for x in inputs)

    kernel = _make_bilstm_layer_kernel(T=T, B=B, H=H, C=C, n_in=n_in)

    in_specs = (
        [pl.BlockSpec((T * B, x.shape[-1]), lambda i: (0, 0)) for x in x_flat]
        + [pl.BlockSpec((T, B, 1), lambda i: (0, 0, 0))]
        + [pl.BlockSpec(w.shape, lambda i: (0, 0)) for w in lp["w_in_f"]]
        + [pl.BlockSpec(w.shape, lambda i: (0, 0)) for w in lp["w_in_b"]]
        + [pl.BlockSpec((H, G), lambda i: (0, 0)),
           pl.BlockSpec((H, G), lambda i: (0, 0)),
           pl.BlockSpec((1, G), lambda i: (0, 0)),
           pl.BlockSpec((1, G), lambda i: (0, 0))]
    )
    out_shape = (jax.ShapeDtypeStruct((T, B, H), jnp.bfloat16),
                 jax.ShapeDtypeStruct((T, B, H), jnp.bfloat16),
                 jax.ShapeDtypeStruct((B, H), jnp.float32),
                 jax.ShapeDtypeStruct((B, H), jnp.float32))
    out_specs = (pl.BlockSpec((T, B, H), lambda i: (0, 0, 0)),
                 pl.BlockSpec((T, B, H), lambda i: (0, 0, 0)),
                 pl.BlockSpec((B, H), lambda i: (0, 0)),
                 pl.BlockSpec((B, H), lambda i: (0, 0)))

    out_f, out_b, h_f, h_b = pl.pallas_call(
        kernel,
        out_shape=out_shape,
        grid=(1,),
        in_specs=in_specs,
        out_specs=out_specs,
        scratch_shapes=[pltpu.VMEM((2 * C * B, G), jnp.float32),   # xp fwd
                        pltpu.VMEM((2 * C * B, G), jnp.float32)],  # xp bwd
        compiler_params=pltpu.CompilerParams(
            dimension_semantics=("arbitrary",)),
    )(*x_flat, mask, *lp["w_in_f"], *lp["w_in_b"],
      lp["w_hh_f"], lp["w_hh_b"], lp["b_f"], lp["b_b"])
    return out_f, out_b, h_f, h_b


# ---------------------------------------------------------------------------
# Full model forward (embedding gather / final fc glue left to XLA).
# ---------------------------------------------------------------------------
def bilstm_forward(params, text, text_lengths):
    T, B = text.shape
    # Embedding lookup (padding_idx row is zero); cast to bf16 for the MXU.
    x = params["embedding"][text].astype(jnp.bfloat16)             # (T, B, E)
    # TODO(synk): embedding / inter-layer / pre-fc dropout = identity (eval).
    lengths = text_lengths.astype(jnp.int32)
    # Packed-sequence validity mask precomputed once, reused by every layer.
    mask = (jnp.arange(T, dtype=jnp.int32)[:, None] < lengths[None, :]
            ).astype(jnp.float32)[:, :, None]                      # (T, B, 1)

    inputs = (x,)
    h_f = h_b = None
    for lp in params["lstm"]:
        out_f, out_b, h_f, h_b = bilstm_layer(inputs, mask, lp)
        # Next layer consumes the two direction outputs as separate operands
        # (no (T,B,2H) concat round trip through HBM).
        inputs = (out_f, out_b)

    # cat(hidden[-2], hidden[-1]) = last layer fwd + bwd final states.
    hidden = jnp.concatenate([h_f, h_b], axis=-1)                  # (B, 2H)
    # Tiny (B,2H)@(2H,O) fc stays in plain JAX (a kernel would be pure
    # launch/DMA overhead).
    return hidden @ params["fc_w_t"] + params["fc_b"]              # (B, O)


# ---------------------------------------------------------------------------
# Pure-JAX reference (same bf16-operand / f32-state math) for correctness.
# ---------------------------------------------------------------------------
def _lstm_dir_ref(xs, lengths, w_in_list, w_hh, bias, reverse):
    T, B, _ = xs[0].shape
    H = w_hh.shape[0]
    ts = jnp.arange(T)
    if reverse:
        ts = ts[::-1]

    def step(carry, t):
        h, c = carry
        g = bias
        for x, w in zip(xs, w_in_list):
            g = g + jnp.dot(x[t], w, preferred_element_type=jnp.float32)
        g = g + jnp.dot(h.astype(jnp.bfloat16), w_hh,
                        preferred_element_type=jnp.float32)
        sg = jax.nn.sigmoid(g[:, :3 * H])
        gg = jnp.tanh(g[:, 3 * H:])
        c_new = sg[:, H:2 * H] * c + sg[:, :H] * gg
        h_new = sg[:, 2 * H:] * jnp.tanh(c_new)
        valid = (t < lengths)[:, None]
        h = jnp.where(valid, h_new, h)
        c = jnp.where(valid, c_new, c)
        return (h, c), jnp.where(valid, h_new, 0.0)

    init = (jnp.zeros((B, H), jnp.float32), jnp.zeros((B, H), jnp.float32))
    (h_fin, _), outs = jax.lax.scan(step, init, ts)
    out_seq = outs[::-1] if reverse else outs
    return out_seq, h_fin


def bilstm_forward_ref(params, text, text_lengths):
    x = params["embedding"][text].astype(jnp.bfloat16)
    lengths = text_lengths.astype(jnp.int32)
    inputs = (x,)
    hf = hb = None
    for lp in params["lstm"]:
        of, hf = _lstm_dir_ref(inputs, lengths, lp["w_in_f"], lp["w_hh_f"],
                               lp["b_f"], reverse=False)
        ob, hb = _lstm_dir_ref(inputs, lengths, lp["w_in_b"], lp["w_hh_b"],
                               lp["b_b"], reverse=True)
        inputs = (of.astype(jnp.bfloat16), ob.astype(jnp.bfloat16))
    hidden = jnp.concatenate([hf, hb], axis=-1)
    return hidden @ params["fc_w_t"] + params["fc_b"]


# ---------------------------------------------------------------------------
# Deterministic parameter initialization (shapes match the PyTorch module).
# Gate columns are packed [i, f, o, g] (a permutation of PyTorch's [i, f, g, o]
# weight row order — pure convention for randomly initialized weights).
# ---------------------------------------------------------------------------
def init_params(key, vocab_size, embedding_dim, hidden_dim, output_dim,
                n_layers, pad_idx):
    H = hidden_dim
    G = 4 * H
    scale = 1.0 / float(H) ** 0.5
    keys = iter(jax.random.split(key, 3 + n_layers * 2 * 8))

    def unif(shape):
        return jax.random.uniform(next(keys), shape, jnp.float32, -scale, scale)

    emb = jax.random.normal(next(keys), (vocab_size, embedding_dim),
                            jnp.float32) * 0.1
    emb = emb.at[pad_idx].set(0.0)

    lstm = []
    for layer in range(n_layers):
        # Layer > 0 input is the previous layer's (fwd, bwd) outputs, kept as
        # two separate operands, so its W_ih is split into two (H,4H) halves.
        in_dims = (embedding_dim,) if layer == 0 else (H, H)
        lp = {}
        for dname in ("f", "b"):
            w_in = tuple(unif((d, G)).astype(jnp.bfloat16) for d in in_dims)
            w_hh = unif((H, G)).astype(jnp.bfloat16)
            bias = (unif((G,)) + unif((G,)))[None, :]        # b_ih + b_hh, f32
            lp["w_in_" + dname] = w_in
            lp["w_hh_" + dname] = w_hh
            lp["b_" + dname] = bias
        lstm.append(lp)

    # fc: Linear(hidden_dim * n_layers, output_dim) — with n_layers=2 this
    # matches the cat(h_fwd, h_bwd) width of 2*H (as in the PyTorch spec).
    fc_in = hidden_dim * n_layers
    fc_scale = 1.0 / float(fc_in) ** 0.5
    fc_w = jax.random.uniform(next(keys), (output_dim, fc_in),
                              jnp.float32, -fc_scale, fc_scale)
    fc_b = jax.random.uniform(next(keys), (output_dim,),
                              jnp.float32, -fc_scale, fc_scale)

    return {"embedding": emb, "lstm": lstm,
            "fc_w_t": fc_w.T, "fc_b": fc_b[None, :]}


if __name__ == "__main__":
    VOCAB, EMB, HID, OUT = 100, 128, 128, 4
    N_LAYERS, PAD_IDX = 2, 0
    T, B = 8, 8          # B multiple of 8, H = 128 -> lane-dense (8,128) tiles

    key = jax.random.PRNGKey(0)
    k_par, k_txt = jax.random.split(key)
    params = init_params(k_par, VOCAB, EMB, HID, OUT, N_LAYERS, PAD_IDX)

    # text: [T, B] token ids; lengths sorted descending (enforce_sorted=True).
    text_lengths = jnp.array([8, 7, 6, 5, 5, 3, 2, 1], dtype=jnp.int32)
    text = jax.random.randint(k_txt, (T, B), 1, VOCAB, dtype=jnp.int32)
    pad_mask = jnp.arange(T, dtype=jnp.int32)[:, None] < text_lengths[None, :]
    text = jnp.where(pad_mask, text, PAD_IDX)

    fwd = jax.jit(bilstm_forward)
    out = jax.block_until_ready(fwd(params, text, text_lengths))
    assert out.shape == (B, OUT)
    assert bool(jnp.all(jnp.isfinite(out)))

    ref = jax.block_until_ready(jax.jit(bilstm_forward_ref)(params, text,
                                                            text_lengths))
    assert jnp.allclose(out, ref, atol=1e-2, rtol=1e-2), (out, ref)

    print("KERNEL_OK")
</pallas_src>

<mosaic_0001>
module attributes {stable_mosaic.version = 11 : i64} {
  func.func @kernel(%arg0: i32, %arg1: memref<64x128xbf16, #tpu.memory_space<vmem>>, %arg2: memref<8x8x1xf32, #tpu.memory_space<vmem>>, %arg3: memref<128x512xbf16, #tpu.memory_space<vmem>>, %arg4: memref<128x512xbf16, #tpu.memory_space<vmem>>, %arg5: memref<128x512xbf16, #tpu.memory_space<vmem>>, %arg6: memref<128x512xbf16, #tpu.memory_space<vmem>>, %arg7: memref<1x512xf32, #tpu.memory_space<vmem>>, %arg8: memref<1x512xf32, #tpu.memory_space<vmem>>, %arg9: memref<8x8x128xbf16, #tpu.memory_space<vmem>>, %arg10: memref<8x8x128xbf16, #tpu.memory_space<vmem>>, %arg11: memref<8x128xf32, #tpu.memory_space<vmem>>, %arg12: memref<8x128xf32, #tpu.memory_space<vmem>>, %arg13: memref<64x512xf32, #tpu.memory_space<vmem>>, %arg14: memref<64x512xf32, #tpu.memory_space<vmem>>) attributes {dimension_semantics = [#tpu.dimension_semantics<arbitrary>], iteration_bounds = array<i64: 1>, scalar_prefetch = 0 : i64, scratch_operands = 2 : i64, tpu.core_type = #tpu.core_type<tc>, window_params = [{pipeline_mode = #tpu.pipeline_mode<synchronous>, transform_indices = @transform_0, window_bounds = array<i64: 64, 128>}, {pipeline_mode = #tpu.pipeline_mode<synchronous>, transform_indices = @transform_1, window_bounds = array<i64: 8, 8, 1>}, {pipeline_mode = #tpu.pipeline_mode<synchronous>, transform_indices = @transform_2, window_bounds = array<i64: 128, 512>}, {pipeline_mode = #tpu.pipeline_mode<synchronous>, transform_indices = @transform_3, window_bounds = array<i64: 128, 512>}, {pipeline_mode = #tpu.pipeline_mode<synchronous>, transform_indices = @transform_4, window_bounds = array<i64: 128, 512>}, {pipeline_mode = #tpu.pipeline_mode<synchronous>, transform_indices = @transform_5, window_bounds = array<i64: 128, 512>}, {pipeline_mode = #tpu.pipeline_mode<synchronous>, transform_indices = @transform_6, window_bounds = array<i64: 1, 512>}, {pipeline_mode = #tpu.pipeline_mode<synchronous>, transform_indices = @transform_7, window_bounds = array<i64: 1, 512>}, {pipeline_mode = #tpu.pipeline_mode<synchronous>, transform_indices = @transform_8, window_bounds = array<i64: 8, 8, 128>}, {pipeline_mode = #tpu.pipeline_mode<synchronous>, transform_indices = @transform_9, window_bounds = array<i64: 8, 8, 128>}, {pipeline_mode = #tpu.pipeline_mode<synchronous>, transform_indices = @transform_10, window_bounds = array<i64: 8, 128>}, {pipeline_mode = #tpu.pipeline_mode<synchronous>, transform_indices = @transform_11, window_bounds = array<i64: 8, 128>}]} {
    %c0 = arith.constant 0 : index
    %c0_0 = arith.constant 0 : index
    %0 = vector.load %arg5[%c0, %c0_0] : memref<128x512xbf16, #tpu.memory_space<vmem>>, vector<128x512xbf16>
    %c0_1 = arith.constant 0 : index
    %c0_2 = arith.constant 0 : index
    %1 = vector.load %arg6[%c0_1, %c0_2] : memref<128x512xbf16, #tpu.memory_space<vmem>>, vector<128x512xbf16>
    %c0_3 = arith.constant 0 : index
    %c0_4 = arith.constant 0 : index
    %2 = vector.load %arg7[%c0_3, %c0_4] : memref<1x512xf32, #tpu.memory_space<vmem>>, vector<1x512xf32>
    %c0_5 = arith.constant 0 : index
    %c0_6 = arith.constant 0 : index
    %3 = vector.load %arg8[%c0_5, %c0_6] : memref<1x512xf32, #tpu.memory_space<vmem>>, vector<1x512xf32>
    %cst = arith.constant 0.000000e+00 : f32
    %4 = vector.broadcast %cst : f32 to vector<8x128xf32>
    %c0_7 = arith.constant 0 : index
    %c0_8 = arith.constant 0 : index
    %5 = vector.load %arg1[%c0_7, %c0_8] : memref<64x128xbf16, #tpu.memory_space<vmem>>, vector<32x128xbf16>
    %c0_9 = arith.constant 0 : index
    %c0_10 = arith.constant 0 : index
    %6 = vector.load %arg3[%c0_9, %c0_10] : memref<128x512xbf16, #tpu.memory_space<vmem>>, vector<128x512xbf16>
    %cst_11 = arith.constant dense<0.000000e+00> : vector<32x512xf32>
    %7 = tpu.matmul %5, %6, %cst_11 {dimension_numbers = #tpu.dot_dimension_numbers<[1], [0], [0], [1], [0, 0, 1, 1], [], []>} : vector<32x128xbf16>, vector<128x512xbf16>, vector<32x512xf32> -> vector<32x512xf32>
    %8 = vector.broadcast %2 : vector<1x512xf32> to vector<32x512xf32>
    %9 = arith.addf %8, %7 : vector<32x512xf32>
    %c32 = arith.constant 32 : index
    %c0_12 = arith.constant 0 : index
    %10 = vector.load %arg1[%c32, %c0_12] : memref<64x128xbf16, #tpu.memory_space<vmem>>, vector<32x128xbf16>
    %c0_13 = arith.constant 0 : index
    %c0_14 = arith.constant 0 : index
    %11 = vector.load %arg4[%c0_13, %c0_14] : memref<128x512xbf16, #tpu.memory_space<vmem>>, vector<128x512xbf16>
    %cst_15 = arith.constant dense<0.000000e+00> : vector<32x512xf32>
    %12 = tpu.matmul %10, %11, %cst_15 {dimension_numbers = #tpu.dot_dimension_numbers<[1], [0], [0], [1], [0, 0, 1, 1], [], []>} : vector<32x128xbf16>, vector<128x512xbf16>, vector<32x512xf32> -> vector<32x512xf32>
    %13 = vector.broadcast %3 : vector<1x512xf32> to vector<32x512xf32>
    %14 = arith.addf %13, %12 : vector<32x512xf32>
    %c0_16 = arith.constant 0 : index
    %c0_17 = arith.constant 0 : index
    %15 = vector.load %arg13[%c0_16, %c0_17] : memref<64x512xf32, #tpu.memory_space<vmem>>, vector<32x512xf32>
    tpu.vector_store %arg13[%c0_16, %c0_17], %9 {strides = array<i32>} : memref<64x512xf32, #tpu.memory_space<vmem>>, vector<32x512xf32>,
    %c0_18 = arith.constant 0 : index
    %c0_19 = arith.constant 0 : index
    %16 = vector.load %arg14[%c0_18, %c0_19] : memref<64x512xf32, #tpu.memory_space<vmem>>, vector<32x512xf32>
    tpu.vector_store %arg14[%c0_18, %c0_19], %14 {strides = array<i32>} : memref<64x512xf32, #tpu.memory_space<vmem>>, vector<32x512xf32>,
    %c0_i32 = arith.constant 0 : i32
    %c2_i32 = arith.constant 2 : i32
    %17 = arith.addi %c0_i32, %c2_i32 : i32
    %c1_i32 = arith.constant 1 : i32
    %18:4 = scf.for %arg15 = %c0_i32 to %17 step %c1_i32 iter_args(%arg16 = %4, %arg17 = %4, %arg18 = %4, %arg19 = %4) -> (vector<8x128xf32>, vector<8x128xf32>, vector<8x128xf32>, vector<8x128xf32>)  : i32 {
      %c1_i32_25 = arith.constant 1 : i32
      %21 = arith.addi %arg15, %c1_i32_25 : i32
      %c2_i32_26 = arith.constant 2 : i32
      %22 = arith.cmpi slt, %21, %c2_i32_26 : i32
      %23 = arith.extui %22 : i1 to i32
      %c0_i32_27 = arith.constant 0 : i32
      %24 = arith.cmpi ne, %23, %c0_i32_27 : i32
      scf.if %24 {
        %c1_i32_118 = arith.constant 1 : i32
        %395 = arith.addi %arg15, %c1_i32_118 : i32
        %c1_i32_119 = arith.constant 1 : i32
        %396 = arith.addi %arg15, %c1_i32_119 : i32
        %c2_i32_120 = arith.constant 2 : i32
        %c0_i32_121 = arith.constant 0 : i32
        %397 = arith.cmpi eq, %c2_i32_120, %c0_i32_121 : i32
        %c1_i32_122 = arith.constant 1 : i32
        %398 = arith.select %397, %c1_i32_122, %c2_i32_120 : i32
        %399 = arith.remsi %396, %398 : i32
        %c0_i32_123 = arith.constant 0 : i32
        %400 = arith.cmpi ne, %399, %c0_i32_123 : i32
        %c0_i32_124 = arith.constant 0 : i32
        %401 = arith.cmpi slt, %399, %c0_i32_124 : i32
        %c0_i32_125 = arith.constant 0 : i32
        %402 = arith.cmpi slt, %398, %c0_i32_125 : i32
        %403 = arith.xori %401, %402 : i1
        %404 = arith.andi %403, %400 : i1
        %405 = arith.addi %399, %398 : i32
        %406 = arith.select %404, %405, %399 : i32
        %c32_i32_126 = arith.constant 32 : i32
        %407 = arith.muli %395, %c32_i32_126 : i32
        %c1_i32_127 = arith.constant 1 : i32
        %408 = arith.subi %c1_i32_127, %395 : i32
        %c32_i32_128 = arith.constant 32 : i32
        %409 = arith.muli %408, %c32_i32_128 : i32
        %410 = arith.index_cast %407 : i32 to index
        %c0_129 = arith.constant 0 : index
        %411 = vector.load %arg1[%410, %c0_129] : memref<64x128xbf16, #tpu.memory_space<vmem>>, vector<32x128xbf16>
        %c0_130 = arith.constant 0 : index
        %c0_131 = arith.constant 0 : index
        %412 = vector.load %arg3[%c0_130, %c0_131] : memref<128x512xbf16, #tpu.memory_space<vmem>>, vector<128x512xbf16>
        %cst_132 = arith.constant dense<0.000000e+00> : vector<32x512xf32>
        %413 = tpu.matmul %411, %412, %cst_132 {dimension_numbers = #tpu.dot_dimension_numbers<[1], [0], [0], [1], [0, 0, 1, 1], [], []>} : vector<32x128xbf16>, vector<128x512xbf16>, vector<32x512xf32> -> vector<32x512xf32>
        %414 = vector.broadcast %2 : vector<1x512xf32> to vector<32x512xf32>
        %415 = arith.addf %414, %413 : vector<32x512xf32>
        %416 = arith.index_cast %409 : i32 to index
        %c0_133 = arith.constant 0 : index
        %417 = vector.load %arg1[%416, %c0_133] : memref<64x128xbf16, #tpu.memory_space<vmem>>, vector<32x128xbf16>
        %c0_134 = arith.constant 0 : index
        %c0_135 = arith.constant 0 : index
        %418 = vector.load %arg4[%c0_134, %c0_135] : memref<128x512xbf16, #tpu.memory_space<vmem>>, vector<128x512xbf16>
        %cst_136 = arith.constant dense<0.000000e+00> : vector<32x512xf32>
        %419 = tpu.matmul %417, %418, %cst_136 {dimension_numbers = #tpu.dot_dimension_numbers<[1], [0], [0], [1], [0, 0, 1, 1], [], []>} : vector<32x128xbf16>, vector<128x512xbf16>, vector<32x512xf32> -> vector<32x512xf32>
        %420 = vector.broadcast %3 : vector<1x512xf32> to vector<32x512xf32>
        %421 = arith.addf %420, %419 : vector<32x512xf32>
        %c32_i32_137 = arith.constant 32 : i32
        %422 = arith.muli %406, %c32_i32_137 : i32
        %423 = arith.index_cast %422 : i32 to index
        %c0_138 = arith.constant 0 : index
        %424 = vector.load %arg13[%423, %c0_138] : memref<64x512xf32, #tpu.memory_space<vmem>>, vector<32x512xf32>
        tpu.vector_store %arg13[%423, %c0_138], %415 {strides = array<i32>} : memref<64x512xf32, #tpu.memory_space<vmem>>, vector<32x512xf32>,
        %425 = arith.index_cast %422 : i32 to index
        %c0_139 = arith.constant 0 : index
        %426 = vector.load %arg14[%425, %c0_139] : memref<64x512xf32, #tpu.memory_space<vmem>>, vector<32x512xf32>
        tpu.vector_store %arg14[%425, %c0_139], %421 {strides = array<i32>} : memref<64x512xf32, #tpu.memory_space<vmem>>, vector<32x512xf32>,
      } else {
      }
      %c2_i32_28 = arith.constant 2 : i32
      %c0_i32_29 = arith.constant 0 : i32
      %25 = arith.cmpi eq, %c2_i32_28, %c0_i32_29 : i32
      %c1_i32_30 = arith.constant 1 : i32
      %26 = arith.select %25, %c1_i32_30, %c2_i32_28 : i32
      %27 = arith.remsi %arg15, %26 : i32
      %c0_i32_31 = arith.constant 0 : i32
      %28 = arith.cmpi ne, %27, %c0_i32_31 : i32
      %c0_i32_32 = arith.constant 0 : i32
      %29 = arith.cmpi slt, %27, %c0_i32_32 : i32
      %c0_i32_33 = arith.constant 0 : i32
      %30 = arith.cmpi slt, %26, %c0_i32_33 : i32
      %31 = arith.xori %29, %30 : i1
      %32 = arith.andi %31, %28 : i1
      %33 = arith.addi %27, %26 : i32
      %34 = arith.select %32, %33, %27 : i32
      %c0_i32_34 = arith.constant 0 : i32
      %c4_i32 = arith.constant 4 : i32
      %35 = arith.muli %arg15, %c4_i32 : i32
      %36 = arith.addi %35, %c0_i32_34 : i32
      %c7_i32 = arith.constant 7 : i32
      %37 = arith.subi %c7_i32, %36 : i32
      %c32_i32 = arith.constant 32 : i32
      %38 = arith.muli %34, %c32_i32 : i32
      %c8_i32 = arith.constant 8 : i32
      %39 = arith.muli %c0_i32_34, %c8_i32 : i32
      %40 = arith.addi %38, %39 : i32
      %41 = tpu.assume_multiple %40, 8 : i32
      %c32_i32_35 = arith.constant 32 : i32
      %42 = arith.muli %34, %c32_i32_35 : i32
      %c3_i32 = arith.constant 3 : i32
      %43 = arith.subi %c3_i32, %c0_i32_34 : i32
      %c8_i32_36 = arith.constant 8 : i32
      %44 = arith.muli %43, %c8_i32_36 : i32
      %45 = arith.addi %42, %44 : i32
      %46 = tpu.assume_multiple %45, 8 : i32
      %47 = arith.index_cast %41 : i32 to index
      %c0_37 = arith.constant 0 : index
      %48 = vector.load %arg13[%47, %c0_37] : memref<64x512xf32, #tpu.memory_space<vmem>>, vector<8x512xf32>
      %49 = arith.truncf %arg16 : vector<8x128xf32> to vector<8x128xbf16>
      %cst_38 = arith.constant dense<0.000000e+00> : vector<8x512xf32>
      %50 = tpu.matmul %49, %0, %cst_38 {dimension_numbers = #tpu.dot_dimension_numbers<[1], [0], [0], [1], [0, 0, 1, 1], [], []>} : vector<8x128xbf16>, vector<128x512xbf16>, vector<8x512xf32> -> vector<8x512xf32>
      %51 = arith.addf %48, %50 : vector<8x512xf32>
      %52 = arith.index_cast %46 : i32 to index
      %c0_39 = arith.constant 0 : index
      %53 = vector.load %arg14[%52, %c0_39] : memref<64x512xf32, #tpu.memory_space<vmem>>, vector<8x512xf32>
      %54 = arith.truncf %arg18 : vector<8x128xf32> to vector<8x128xbf16>
      %cst_40 = arith.constant dense<0.000000e+00> : vector<8x512xf32>
      %55 = tpu.matmul %54, %1, %cst_40 {dimension_numbers = #tpu.dot_dimension_numbers<[1], [0], [0], [1], [0, 0, 1, 1], [], []>} : vector<8x128xbf16>, vector<128x512xbf16>, vector<8x512xf32> -> vector<8x512xf32>
      %56 = arith.addf %53, %55 : vector<8x512xf32>
      %57 = vector.extract_strided_slice %51 {offsets = [0, 0], sizes = [8, 384], strides = [1, 1]} : vector<8x512xf32> to vector<8x384xf32>
      %58 = arith.negf %57 : vector<8x384xf32>
      %59 = math.exp %58 : vector<8x384xf32>
      %cst_41 = arith.constant 1.000000e+00 : f32
      %60 = vector.broadcast %cst_41 : f32 to vector<8x384xf32>
      %61 = arith.addf %60, %59 : vector<8x384xf32>
      %62 = arith.divf %60, %61 : vector<8x384xf32>
      %63 = vector.extract_strided_slice %56 {offsets = [0, 0], sizes = [8, 384], strides = [1, 1]} : vector<8x512xf32> to vector<8x384xf32>
      %64 = arith.negf %63 : vector<8x384xf32>
      %65 = math.exp %64 : vector<8x384xf32>
      %cst_42 = arith.constant 1.000000e+00 : f32
      %66 = vector.broadcast %cst_42 : f32 to vector<8x384xf32>
      %67 = arith.addf %66, %65 : vector<8x384xf32>
      %68 = arith.divf %66, %67 : vector<8x384xf32>
      %69 = vector.extract_strided_slice %51 {offsets = [0, 384], sizes = [8, 128], strides = [1, 1]} : vector<8x512xf32> to vector<8x128xf32>
      %70 = math.tanh %69 : vector<8x128xf32>
      %71 = vector.extract_strided_slice %56 {offsets = [0, 384], sizes = [8, 128], strides = [1, 1]} : vector<8x512xf32> to vector<8x128xf32>
      %72 = math.tanh %71 : vector<8x128xf32>
      %73 = vector.extract_strided_slice %62 {offsets = [0, 128], sizes = [8, 128], strides = [1, 1]} : vector<8x384xf32> to vector<8x128xf32>
      %74 = arith.mulf %73, %arg17 : vector<8x128xf32>
      %75 = vector.extract_strided_slice %62 {offsets = [0, 0], sizes = [8, 128], strides = [1, 1]} : vector<8x384xf32> to vector<8x128xf32>
      %76 = arith.mulf %75, %70 : vector<8x128xf32>
      %77 = arith.addf %74, %76 : vector<8x128xf32>
      %78 = vector.extract_strided_slice %68 {offsets = [0, 128], sizes = [8, 128], strides = [1, 1]} : vector<8x384xf32> to vector<8x128xf32>
      %79 = arith.mulf %78, %arg19 : vector<8x128xf32>
      %80 = vector.extract_strided_slice %68 {offsets = [0, 0], sizes = [8, 128], strides = [1, 1]} : vector<8x384xf32> to vector<8x128xf32>
      %81 = arith.mulf %80, %72 : vector<8x128xf32>
      %82 = arith.addf %79, %81 : vector<8x128xf32>
      %83 = vector.extract_strided_slice %62 {offsets = [0, 256], sizes = [8, 128], strides = [1, 1]} : vector<8x384xf32> to vector<8x128xf32>
      %84 = math.tanh %77 : vector<8x128xf32>
      %85 = arith.mulf %83, %84 : vector<8x128xf32>
      %86 = vector.extract_strided_slice %68 {offsets = [0, 256], sizes = [8, 128], strides = [1, 1]} : vector<8x384xf32> to vector<8x128xf32>
      %87 = math.tanh %82 : vector<8x128xf32>
      %88 = arith.mulf %86, %87 : vector<8x128xf32>
      %89 = arith.index_cast %36 : i32 to index
      %c0_43 = arith.constant 0 : index
      %c0_44 = arith.constant 0 : index
      %90 = vector.load %arg2[%89, %c0_43, %c0_44] : memref<8x8x1xf32, #tpu.memory_space<vmem>>, vector<1x8x1xf32>
      %91 = vector.shape_cast %90 : vector<1x8x1xf32> to vector<8x1xf32>
      %92 = arith.index_cast %37 : i32 to index
      %c0_45 = arith.constant 0 : index
      %c0_46 = arith.constant 0 : index
      %93 = vector.load %arg2[%92, %c0_45, %c0_46] : memref<8x8x1xf32, #tpu.memory_space<vmem>>, vector<1x8x1xf32>
      %94 = vector.shape_cast %93 : vector<1x8x1xf32> to vector<8x1xf32>
      %95 = vector.broadcast %91 : vector<8x1xf32> to vector<8x128xf32>
      %96 = arith.mulf %95, %85 : vector<8x128xf32>
      %97 = arith.truncf %96 : vector<8x128xf32> to vector<8x128xbf16>
      %98 = arith.index_cast %36 : i32 to index
      %c0_47 = arith.constant 0 : index
      %c0_48 = arith.constant 0 : index
      %99 = vector.load %arg9[%98, %c0_47, %c0_48] : memref<8x8x128xbf16, #tpu.memory_space<vmem>>, vector<1x8x128xbf16>
      %100 = vector.shape_cast %99 : vector<1x8x128xbf16> to vector<8x128xbf16>
      %101 = vector.shape_cast %97 : vector<8x128xbf16> to vector<1x8x128xbf16>
      tpu.vector_store %arg9[%98, %c0_47, %c0_48], %101 {strides = array<i32>} : memref<8x8x128xbf16, #tpu.memory_space<vmem>>, vector<1x8x128xbf16>,
      %102 = vector.broadcast %94 : vector<8x1xf32> to vector<8x128xf32>
      %103 = arith.mulf %102, %88 : vector<8x128xf32>
      %104 = arith.truncf %103 : vector<8x128xf32> to vector<8x128xbf16>
      %105 = arith.index_cast %37 : i32 to index
      %c0_49 = arith.constant 0 : index
      %c0_50 = arith.constant 0 : index
      %106 = vector.load %arg10[%105, %c0_49, %c0_50] : memref<8x8x128xbf16, #tpu.memory_space<vmem>>, vector<1x8x128xbf16>
      %107 = vector.shape_cast %106 : vector<1x8x128xbf16> to vector<8x128xbf16>
      %108 = vector.shape_cast %104 : vector<8x128xbf16> to vector<1x8x128xbf16>
      tpu.vector_store %arg10[%105, %c0_49, %c0_50], %108 {strides = array<i32>} : memref<8x8x128xbf16, #tpu.memory_space<vmem>>, vector<1x8x128xbf16>,
      %109 = arith.subf %85, %arg16 : vector<8x128xf32>
      %110 = vector.broadcast %91 : vector<8x1xf32> to vector<8x128xf32>
      %111 = arith.mulf %110, %109 : vector<8x128xf32>
      %112 = arith.addf %arg16, %111 : vector<8x128xf32>
      %113 = arith.subf %77, %arg17 : vector<8x128xf32>
      %114 = vector.broadcast %91 : vector<8x1xf32> to vector<8x128xf32>
      %115 = arith.mulf %114, %113 : vector<8x128xf32>
      %116 = arith.addf %arg17, %115 : vector<8x128xf32>
      %117 = arith.subf %88, %arg18 : vector<8x128xf32>
      %118 = vector.broadcast %94 : vector<8x1xf32> to vector<8x128xf32>
      %119 = arith.mulf %118, %117 : vector<8x128xf32>
      %120 = arith.addf %arg18, %119 : vector<8x128xf32>
      %121 = arith.subf %82, %arg19 : vector<8x128xf32>
      %122 = vector.broadcast %94 : vector<8x1xf32> to vector<8x128xf32>
      %123 = arith.mulf %122, %121 : vector<8x128xf32>
      %124 = arith.addf %arg19, %123 : vector<8x128xf32>
      %c1_i32_51 = arith.constant 1 : i32
      %c4_i32_52 = arith.constant 4 : i32
      %125 = arith.muli %arg15, %c4_i32_52 : i32
      %126 = arith.addi %125, %c1_i32_51 : i32
      %c7_i32_53 = arith.constant 7 : i32
      %127 = arith.subi %c7_i32_53, %126 : i32
      %c32_i32_54 = arith.constant 32 : i32
      %128 = arith.muli %34, %c32_i32_54 : i32
      %c8_i32_55 = arith.constant 8 : i32
      %129 = arith.muli %c1_i32_51, %c8_i32_55 : i32
      %130 = arith.addi %128, %129 : i32
      %131 = tpu.assume_multiple %130, 8 : i32
      %c32_i32_56 = arith.constant 32 : i32
      %132 = arith.muli %34, %c32_i32_56 : i32
      %c3_i32_57 = arith.constant 3 : i32
      %133 = arith.subi %c3_i32_57, %c1_i32_51 : i32
      %c8_i32_58 = arith.constant 8 : i32
      %134 = arith.muli %133, %c8_i32_58 : i32
      %135 = arith.addi %132, %134 : i32
      %136 = tpu.assume_multiple %135, 8 : i32
      %137 = arith.index_cast %131 : i32 to index
      %c0_59 = arith.constant 0 : index
      %138 = vector.load %arg13[%137, %c0_59] : memref<64x512xf32, #tpu.memory_space<vmem>>, vector<8x512xf32>
      %139 = arith.truncf %112 : vector<8x128xf32> to vector<8x128xbf16>
      %cst_60 = arith.constant dense<0.000000e+00> : vector<8x512xf32>
      %140 = tpu.matmul %139, %0, %cst_60 {dimension_numbers = #tpu.dot_dimension_numbers<[1], [0], [0], [1], [0, 0, 1, 1], [], []>} : vector<8x128xbf16>, vector<128x512xbf16>, vector<8x512xf32> -> vector<8x512xf32>
      %141 = arith.addf %138, %140 : vector<8x512xf32>
      %142 = arith.index_cast %136 : i32 to index
      %c0_61 = arith.constant 0 : index
      %143 = vector.load %arg14[%142, %c0_61] : memref<64x512xf32, #tpu.memory_space<vmem>>, vector<8x512xf32>
      %144 = arith.truncf %120 : vector<8x128xf32> to vector<8x128xbf16>
      %cst_62 = arith.constant dense<0.000000e+00> : vector<8x512xf32>
      %145 = tpu.matmul %144, %1, %cst_62 {dimension_numbers = #tpu.dot_dimension_numbers<[1], [0], [0], [1], [0, 0, 1, 1], [], []>} : vector<8x128xbf16>, vector<128x512xbf16>, vector<8x512xf32> -> vector<8x512xf32>
      %146 = arith.addf %143, %145 : vector<8x512xf32>
      %147 = vector.extract_strided_slice %141 {offsets = [0, 0], sizes = [8, 384], strides = [1, 1]} : vector<8x512xf32> to vector<8x384xf32>
      %148 = arith.negf %147 : vector<8x384xf32>
      %149 = math.exp %148 : vector<8x384xf32>
      %cst_63 = arith.constant 1.000000e+00 : f32
      %150 = vector.broadcast %cst_63 : f32 to vector<8x384xf32>
      %151 = arith.addf %150, %149 : vector<8x384xf32>
      %152 = arith.divf %150, %151 : vector<8x384xf32>
      %153 = vector.extract_strided_slice %146 {offsets = [0, 0], sizes = [8, 384], strides = [1, 1]} : vector<8x512xf32> to vector<8x384xf32>
      %154 = arith.negf %153 : vector<8x384xf32>
      %155 = math.exp %154 : vector<8x384xf32>
      %cst_64 = arith.constant 1.000000e+00 : f32
      %156 = vector.broadcast %cst_64 : f32 to vector<8x384xf32>
      %157 = arith.addf %156, %155 : vector<8x384xf32>
      %158 = arith.divf %156, %157 : vector<8x384xf32>
      %159 = vector.extract_strided_slice %141 {offsets = [0, 384], sizes = [8, 128], strides = [1, 1]} : vector<8x512xf32> to vector<8x128xf32>
      %160 = math.tanh %159 : vector<8x128xf32>
      %161 = vector.extract_strided_slice %146 {offsets = [0, 384], sizes = [8, 128], strides = [1, 1]} : vector<8x512xf32> to vector<8x128xf32>
      %162 = math.tanh %161 : vector<8x128xf32>
      %163 = vector.extract_strided_slice %152 {offsets = [0, 128], sizes = [8, 128], strides = [1, 1]} : vector<8x384xf32> to vector<8x128xf32>
      %164 = arith.mulf %163, %116 : vector<8x128xf32>
      %165 = vector.extract_strided_slice %152 {offsets = [0, 0], sizes = [8, 128], strides = [1, 1]} : vector<8x384xf32> to vector<8x128xf32>
      %166 = arith.mulf %165, %160 : vector<8x128xf32>
      %167 = arith.addf %164, %166 : vector<8x128xf32>
      %168 = vector.extract_strided_slice %158 {offsets = [0, 128], sizes = [8, 128], strides = [1, 1]} : vector<8x384xf32> to vector<8x128xf32>
      %169 = arith.mulf %168, %124 : vector<8x128xf32>
      %170 = vector.extract_strided_slice %158 {offsets = [0, 0], sizes = [8, 128], strides = [1, 1]} : vector<8x384xf32> to vector<8x128xf32>
      %171 = arith.mulf %170, %162 : vector<8x128xf32>
      %172 = arith.addf %169, %171 : vector<8x128xf32>
      %173 = vector.extract_strided_slice %152 {offsets = [0, 256], sizes = [8, 128], strides = [1, 1]} : vector<8x384xf32> to vector<8x128xf32>
      %174 = math.tanh %167 : vector<8x128xf32>
      %175 = arith.mulf %173, %174 : vector<8x128xf32>
      %176 = vector.extract_strided_slice %158 {offsets = [0, 256], sizes = [8, 128], strides = [1, 1]} : vector<8x384xf32> to vector<8x128xf32>
      %177 = math.tanh %172 : vector<8x128xf32>
      %178 = arith.mulf %176, %177 : vector<8x128xf32>
      %179 = arith.index_cast %126 : i32 to index
      %c0_65 = arith.constant 0 : index
      %c0_66 = arith.constant 0 : index
      %180 = vector.load %arg2[%179, %c0_65, %c0_66] : memref<8x8x1xf32, #tpu.memory_space<vmem>>, vector<1x8x1xf32>
      %181 = vector.shape_cast %180 : vector<1x8x1xf32> to vector<8x1xf32>
      %182 = arith.index_cast %127 : i32 to index
      %c0_67 = arith.constant 0 : index
      %c0_68 = arith.constant 0 : index
      %183 = vector.load %arg2[%182, %c0_67, %c0_68] : memref<8x8x1xf32, #tpu.memory_space<vmem>>, vector<1x8x1xf32>
      %184 = vector.shape_cast %183 : vector<1x8x1xf32> to vector<8x1xf32>
      %185 = vector.broadcast %181 : vector<8x1xf32> to vector<8x128xf32>
      %186 = arith.mulf %185, %175 : vector<8x128xf32>
      %187 = arith.truncf %186 : vector<8x128xf32> to vector<8x128xbf16>
      %188 = arith.index_cast %126 : i32 to index
      %c0_69 = arith.constant 0 : index
      %c0_70 = arith.constant 0 : index
      %189 = vector.load %arg9[%188, %c0_69, %c0_70] : memref<8x8x128xbf16, #tpu.memory_space<vmem>>, vector<1x8x128xbf16>
      %190 = vector.shape_cast %189 : vector<1x8x128xbf16> to vector<8x128xbf16>
      %191 = vector.shape_cast %187 : vector<8x128xbf16> to vector<1x8x128xbf16>
      tpu.vector_store %arg9[%188, %c0_69, %c0_70], %191 {strides = array<i32>} : memref<8x8x128xbf16, #tpu.memory_space<vmem>>, vector<1x8x128xbf16>,
      %192 = vector.broadcast %184 : vector<8x1xf32> to vector<8x128xf32>
      %193 = arith.mulf %192, %178 : vector<8x128xf32>
      %194 = arith.truncf %193 : vector<8x128xf32> to vector<8x128xbf16>
      %195 = arith.index_cast %127 : i32 to index
      %c0_71 = arith.constant 0 : index
      %c0_72 = arith.constant 0 : index
      %196 = vector.load %arg10[%195, %c0_71, %c0_72] : memref<8x8x128xbf16, #tpu.memory_space<vmem>>, vector<1x8x128xbf16>
      %197 = vector.shape_cast %196 : vector<1x8x128xbf16> to vector<8x128xbf16>
      %198 = vector.shape_cast %194 : vector<8x128xbf16> to vector<1x8x128xbf16>
      tpu.vector_store %arg10[%195, %c0_71, %c0_72], %198 {strides = array<i32>} : memref<8x8x128xbf16, #tpu.memory_space<vmem>>, vector<1x8x128xbf16>,
      %199 = arith.subf %175, %112 : vector<8x128xf32>
      %200 = vector.broadcast %181 : vector<8x1xf32> to vector<8x128xf32>
      %201 = arith.mulf %200, %199 : vector<8x128xf32>
      %202 = arith.addf %112, %201 : vector<8x128xf32>
      %203 = arith.subf %167, %116 : vector<8x128xf32>
      %204 = vector.broadcast %181 : vector<8x1xf32> to vector<8x128xf32>
      %205 = arith.mulf %204, %203 : vector<8x128xf32>
      %206 = arith.addf %116, %205 : vector<8x128xf32>
      %207 = arith.subf %178, %120 : vector<8x128xf32>
      %208 = vector.broadcast %184 : vector<8x1xf32> to vector<8x128xf32>
      %209 = arith.mulf %208, %207 : vector<8x128xf32>
      %210 = arith.addf %120, %209 : vector<8x128xf32>
      %211 = arith.subf %172, %124 : vector<8x128xf32>
      %212 = vector.broadcast %184 : vector<8x1xf32> to vector<8x128xf32>
      %213 = arith.mulf %212, %211 : vector<8x128xf32>
      %214 = arith.addf %124, %213 : vector<8x128xf32>
      %c2_i32_73 = arith.constant 2 : i32
      %c4_i32_74 = arith.constant 4 : i32
      %215 = arith.muli %arg15, %c4_i32_74 : i32
      %216 = arith.addi %215, %c2_i32_73 : i32
      %c7_i32_75 = arith.constant 7 : i32
      %217 = arith.subi %c7_i32_75, %216 : i32
      %c32_i32_76 = arith.constant 32 : i32
      %218 = arith.muli %34, %c32_i32_76 : i32
      %c8_i32_77 = arith.constant 8 : i32
      %219 = arith.muli %c2_i32_73, %c8_i32_77 : i32
      %220 = arith.addi %218, %219 : i32
      %221 = tpu.assume_multiple %220, 8 : i32
      %c32_i32_78 = arith.constant 32 : i32
      %222 = arith.muli %34, %c32_i32_78 : i32
      %c3_i32_79 = arith.constant 3 : i32
      %223 = arith.subi %c3_i32_79, %c2_i32_73 : i32
      %c8_i32_80 = arith.constant 8 : i32
      %224 = arith.muli %223, %c8_i32_80 : i32
      %225 = arith.addi %222, %224 : i32
      %226 = tpu.assume_multiple %225, 8 : i32
      %227 = arith.index_cast %221 : i32 to index
      %c0_81 = arith.constant 0 : index
      %228 = vector.load %arg13[%227, %c0_81] : memref<64x512xf32, #tpu.memory_space<vmem>>, vector<8x512xf32>
      %229 = arith.truncf %202 : vector<8x128xf32> to vector<8x128xbf16>
      %cst_82 = arith.constant dense<0.000000e+00> : vector<8x512xf32>
      %230 = tpu.matmul %229, %0, %cst_82 {dimension_numbers = #tpu.dot_dimension_numbers<[1], [0], [0], [1], [0, 0, 1, 1], [], []>} : vector<8x128xbf16>, vector<128x512xbf16>, vector<8x512xf32> -> vector<8x512xf32>
      %231 = arith.addf %228, %230 : vector<8x512xf32>
      %232 = arith.index_cast %226 : i32 to index
      %c0_83 = arith.constant 0 : index
      %233 = vector.load %arg14[%232, %c0_83] : memref<64x512xf32, #tpu.memory_space<vmem>>, vector<8x512xf32>
      %234 = arith.truncf %210 : vector<8x128xf32> to vector<8x128xbf16>
      %cst_84 = arith.constant dense<0.000000e+00> : vector<8x512xf32>
      %235 = tpu.matmul %234, %1, %cst_84 {dimension_numbers = #tpu.dot_dimension_numbers<[1], [0], [0], [1], [0, 0, 1, 1], [], []>} : vector<8x128xbf16>, vector<128x512xbf16>, vector<8x512xf32> -> vector<8x512xf32>
      %236 = arith.addf %233, %235 : vector<8x512xf32>
      %237 = vector.extract_strided_slice %231 {offsets = [0, 0], sizes = [8, 384], strides = [1, 1]} : vector<8x512xf32> to vector<8x384xf32>
      %238 = arith.negf %237 : vector<8x384xf32>
      %239 = math.exp %238 : vector<8x384xf32>
      %cst_85 = arith.constant 1.000000e+00 : f32
      %240 = vector.broadcast %cst_85 : f32 to vector<8x384xf32>
      %241 = arith.addf %240, %239 : vector<8x384xf32>
      %242 = arith.divf %240, %241 : vector<8x384xf32>
      %243 = vector.extract_strided_slice %236 {offsets = [0, 0], sizes = [8, 384], strides = [1, 1]} : vector<8x512xf32> to vector<8x384xf32>
      %244 = arith.negf %243 : vector<8x384xf32>
      %245 = math.exp %244 : vector<8x384xf32>
      %cst_86 = arith.constant 1.000000e+00 : f32
      %246 = vector.broadcast %cst_86 : f32 to vector<8x384xf32>
      %247 = arith.addf %246, %245 : vector<8x384xf32>
      %248 = arith.divf %246, %247 : vector<8x384xf32>
      %249 = vector.extract_strided_slice %231 {offsets = [0, 384], sizes = [8, 128], strides = [1, 1]} : vector<8x512xf32> to vector<8x128xf32>
      %250 = math.tanh %249 : vector<8x128xf32>
      %251 = vector.extract_strided_slice %236 {offsets = [0, 384], sizes = [8, 128], strides = [1, 1]} : vector<8x512xf32> to vector<8x128xf32>
      %252 = math.tanh %251 : vector<8x128xf32>
      %253 = vector.extract_strided_slice %242 {offsets = [0, 128], sizes = [8, 128], strides = [1, 1]} : vector<8x384xf32> to vector<8x128xf32>
      %254 = arith.mulf %253, %206 : vector<8x128xf32>
      %255 = vector.extract_strided_slice %242 {offsets = [0, 0], sizes = [8, 128], strides = [1, 1]} : vector<8x384xf32> to vector<8x128xf32>
      %256 = arith.mulf %255, %250 : vector<8x128xf32>
      %257 = arith.addf %254, %256 : vector<8x128xf32>
      %258 = vector.extract_strided_slice %248 {offsets = [0, 128], sizes = [8, 128], strides = [1, 1]} : vector<8x384xf32> to vector<8x128xf32>
      %259 = arith.mulf %258, %214 : vector<8x128xf32>
      %260 = vector.extract_strided_slice %248 {offsets = [0, 0], sizes = [8, 128], strides = [1, 1]} : vector<8x384xf32> to vector<8x128xf32>
      %261 = arith.mulf %260, %252 : vector<8x128xf32>
      %262 = arith.addf %259, %261 : vector<8x128xf32>
      %263 = vector.extract_strided_slice %242 {offsets = [0, 256], sizes = [8, 128], strides = [1, 1]} : vector<8x384xf32> to vector<8x128xf32>
      %264 = math.tanh %257 : vector<8x128xf32>
      %265 = arith.mulf %263, %264 : vector<8x128xf32>
      %266 = vector.extract_strided_slice %248 {offsets = [0, 256], sizes = [8, 128], strides = [1, 1]} : vector<8x384xf32> to vector<8x128xf32>
      %267 = math.tanh %262 : vector<8x128xf32>
      %268 = arith.mulf %266, %267 : vector<8x128xf32>
      %269 = arith.index_cast %216 : i32 to index
      %c0_87 = arith.constant 0 : index
      %c0_88 = arith.constant 0 : index
      %270 = vector.load %arg2[%269, %c0_87, %c0_88] : memref<8x8x1xf32, #tpu.memory_space<vmem>>, vector<1x8x1xf32>
      %271 = vector.shape_cast %270 : vector<1x8x1xf32> to vector<8x1xf32>
      %272 = arith.index_cast %217 : i32 to index
      %c0_89 = arith.constant 0 : index
      %c0_90 = arith.constant 0 : index
      %273 = vector.load %arg2[%272, %c0_89, %c0_90] : memref<8x8x1xf32, #tpu.memory_space<vmem>>, vector<1x8x1xf32>
      %274 = vector.shape_cast %273 : vector<1x8x1xf32> to vector<8x1xf32>
      %275 = vector.broadcast %271 : vector<8x1xf32> to vector<8x128xf32>
      %276 = arith.mulf %275, %265 : vector<8x128xf32>
      %277 = arith.truncf %276 : vector<8x128xf32> to vector<8x128xbf16>
      %278 = arith.index_cast %216 : i32 to index
      %c0_91 = arith.constant 0 : index
      %c0_92 = arith.constant 0 : index
      %279 = vector.load %arg9[%278, %c0_91, %c0_92] : memref<8x8x128xbf16, #tpu.memory_space<vmem>>, vector<1x8x128xbf16>
      %280 = vector.shape_cast %279 : vector<1x8x128xbf16> to vector<8x128xbf16>
      %281 = vector.shape_cast %277 : vector<8x128xbf16> to vector<1x8x128xbf16>
      tpu.vector_store %arg9[%278, %c0_91, %c0_92], %281 {strides = array<i32>} : memref<8x8x128xbf16, #tpu.memory_space<vmem>>, vector<1x8x128xbf16>,
      %282 = vector.broadcast %274 : vector<8x1xf32> to vector<8x128xf32>
      %283 = arith.mulf %282, %268 : vector<8x128xf32>
      %284 = arith.truncf %283 : vector<8x128xf32> to vector<8x128xbf16>
      %285 = arith.index_cast %217 : i32 to index
      %c0_93 = arith.constant 0 : index
      %c0_94 = arith.constant 0 : index
      %286 = vector.load %arg10[%285, %c0_93, %c0_94] : memref<8x8x128xbf16, #tpu.memory_space<vmem>>, vector<1x8x128xbf16>
      %287 = vector.shape_cast %286 : vector<1x8x128xbf16> to vector<8x128xbf16>
      %288 = vector.shape_cast %284 : vector<8x128xbf16> to vector<1x8x128xbf16>
      tpu.vector_store %arg10[%285, %c0_93, %c0_94], %288 {strides = array<i32>} : memref<8x8x128xbf16, #tpu.memory_space<vmem>>, vector<1x8x128xbf16>,
      %289 = arith.subf %265, %202 : vector<8x128xf32>
      %290 = vector.broadcast %271 : vector<8x1xf32> to vector<8x128xf32>
      %291 = arith.mulf %290, %289 : vector<8x128xf32>
      %292 = arith.addf %202, %291 : vector<8x128xf32>
      %293 = arith.subf %257, %206 : vector<8x128xf32>
      %294 = vector.broadcast %271 : vector<8x1xf32> to vector<8x128xf32>
      %295 = arith.mulf %294, %293 : vector<8x128xf32>
      %296 = arith.addf %206, %295 : vector<8x128xf32>
      %297 = arith.subf %268, %210 : vector<8x128xf32>
      %298 = vector.broadcast %274 : vector<8x1xf32> to vector<8x128xf32>
      %299 = arith.mulf %298, %297 : vector<8x128xf32>
      %300 = arith.addf %210, %299 : vector<8x128xf32>
      %301 = arith.subf %262, %214 : vector<8x128xf32>
      %302 = vector.broadcast %274 : vector<8x1xf32> to vector<8x128xf32>
      %303 = arith.mulf %302, %301 : vector<8x128xf32>
      %304 = arith.addf %214, %303 : vector<8x128xf32>
      %c3_i32_95 = arith.constant 3 : i32
      %c4_i32_96 = arith.constant 4 : i32
      %305 = arith.muli %arg15, %c4_i32_96 : i32
      %306 = arith.addi %305, %c3_i32_95 : i32
      %c7_i32_97 = arith.constant 7 : i32
      %307 = arith.subi %c7_i32_97, %306 : i32
      %c32_i32_98 = arith.constant 32 : i32
      %308 = arith.muli %34, %c32_i32_98 : i32
      %c8_i32_99 = arith.constant 8 : i32
      %309 = arith.muli %c3_i32_95, %c8_i32_99 : i32
      %310 = arith.addi %308, %309 : i32
      %311 = tpu.assume_multiple %310, 8 : i32
      %c32_i32_100 = arith.constant 32 : i32
      %312 = arith.muli %34, %c32_i32_100 : i32
      %c3_i32_101 = arith.constant 3 : i32
      %313 = arith.subi %c3_i32_101, %c3_i32_95 : i32
      %c8_i32_102 = arith.constant 8 : i32
      %314 = arith.muli %313, %c8_i32_102 : i32
      %315 = arith.addi %312, %314 : i32
      %316 = tpu.assume_multiple %315, 8 : i32
      %317 = arith.index_cast %311 : i32 to index
      %c0_103 = arith.constant 0 : index
      %318 = vector.load %arg13[%317, %c0_103] : memref<64x512xf32, #tpu.memory_space<vmem>>, vector<8x512xf32>
      %319 = arith.truncf %292 : vector<8x128xf32> to vector<8x128xbf16>
      %cst_104 = arith.constant dense<0.000000e+00> : vector<8x512xf32>
      %320 = tpu.matmul %319, %0, %cst_104 {dimension_numbers = #tpu.dot_dimension_numbers<[1], [0], [0], [1], [0, 0, 1, 1], [], []>} : vector<8x128xbf16>, vector<128x512xbf16>, vector<8x512xf32> -> vector<8x512xf32>
      %321 = arith.addf %318, %320 : vector<8x512xf32>
      %322 = arith.index_cast %316 : i32 to index
      %c0_105 = arith.constant 0 : index
      %323 = vector.load %arg14[%322, %c0_105] : memref<64x512xf32, #tpu.memory_space<vmem>>, vector<8x512xf32>
      %324 = arith.truncf %300 : vector<8x128xf32> to vector<8x128xbf16>
      %cst_106 = arith.constant dense<0.000000e+00> : vector<8x512xf32>
      %325 = tpu.matmul %324, %1, %cst_106 {dimension_numbers = #tpu.dot_dimension_numbers<[1], [0], [0], [1], [0, 0, 1, 1], [], []>} : vector<8x128xbf16>, vector<128x512xbf16>, vector<8x512xf32> -> vector<8x512xf32>
      %326 = arith.addf %323, %325 : vector<8x512xf32>
      %327 = vector.extract_strided_slice %321 {offsets = [0, 0], sizes = [8, 384], strides = [1, 1]} : vector<8x512xf32> to vector<8x384xf32>
      %328 = arith.negf %327 : vector<8x384xf32>
      %329 = math.exp %328 : vector<8x384xf32>
      %cst_107 = arith.constant 1.000000e+00 : f32
      %330 = vector.broadcast %cst_107 : f32 to vector<8x384xf32>
      %331 = arith.addf %330, %329 : vector<8x384xf32>
      %332 = arith.divf %330, %331 : vector<8x384xf32>
      %333 = vector.extract_strided_slice %326 {offsets = [0, 0], sizes = [8, 384], strides = [1, 1]} : vector<8x512xf32> to vector<8x384xf32>
      %334 = arith.negf %333 : vector<8x384xf32>
      %335 = math.exp %334 : vector<8x384xf32>
      %cst_108 = arith.constant 1.000000e+00 : f32
      %336 = vector.broadcast %cst_108 : f32 to vector<8x384xf32>
      %337 = arith.addf %336, %335 : vector<8x384xf32>
      %338 = arith.divf %336, %337 : vector<8x384xf32>
      %339 = vector.extract_strided_slice %321 {offsets = [0, 384], sizes = [8, 128], strides = [1, 1]} : vector<8x512xf32> to vector<8x128xf32>
      %340 = math.tanh %339 : vector<8x128xf32>
      %341 = vector.extract_strided_slice %326 {offsets = [0, 384], sizes = [8, 128], strides = [1, 1]} : vector<8x512xf32> to vector<8x128xf32>
      %342 = math.tanh %341 : vector<8x128xf32>
      %343 = vector.extract_strided_slice %332 {offsets = [0, 128], sizes = [8, 128], strides = [1, 1]} : vector<8x384xf32> to vector<8x128xf32>
      %344 = arith.mulf %343, %296 : vector<8x128xf32>
      %345 = vector.extract_strided_slice %332 {offsets = [0, 0], sizes = [8, 128], strides = [1, 1]} : vector<8x384xf32> to vector<8x128xf32>
      %346 = arith.mulf %345, %340 : vector<8x128xf32>
      %347 = arith.addf %344, %346 : vector<8x128xf32>
      %348 = vector.extract_strided_slice %338 {offsets = [0, 128], sizes = [8, 128], strides = [1, 1]} : vector<8x384xf32> to vector<8x128xf32>
      %349 = arith.mulf %348, %304 : vector<8x128xf32>
      %350 = vector.extract_strided_slice %338 {offsets = [0, 0], sizes = [8, 128], strides = [1, 1]} : vector<8x384xf32> to vector<8x128xf32>
      %351 = arith.mulf %350, %342 : vector<8x128xf32>
      %352 = arith.addf %349, %351 : vector<8x128xf32>
      %353 = vector.extract_strided_slice %332 {offsets = [0, 256], sizes = [8, 128], strides = [1, 1]} : vector<8x384xf32> to vector<8x128xf32>
      %354 = math.tanh %347 : vector<8x128xf32>
      %355 = arith.mulf %353, %354 : vector<8x128xf32>
      %356 = vector.extract_strided_slice %338 {offsets = [0, 256], sizes = [8, 128], strides = [1, 1]} : vector<8x384xf32> to vector<8x128xf32>
      %357 = math.tanh %352 : vector<8x128xf32>
      %358 = arith.mulf %356, %357 : vector<8x128xf32>
      %359 = arith.index_cast %306 : i32 to index
      %c0_109 = arith.constant 0 : index
      %c0_110 = arith.constant 0 : index
      %360 = vector.load %arg2[%359, %c0_109, %c0_110] : memref<8x8x1xf32, #tpu.memory_space<vmem>>, vector<1x8x1xf32>
      %361 = vector.shape_cast %360 : vector<1x8x1xf32> to vector<8x1xf32>
      %362 = arith.index_cast %307 : i32 to index
      %c0_111 = arith.constant 0 : index
      %c0_112 = arith.constant 0 : index
      %363 = vector.load %arg2[%362, %c0_111, %c0_112] : memref<8x8x1xf32, #tpu.memory_space<vmem>>, vector<1x8x1xf32>
      %364 = vector.shape_cast %363 : vector<1x8x1xf32> to vector<8x1xf32>
      %365 = vector.broadcast %361 : vector<8x1xf32> to vector<8x128xf32>
      %366 = arith.mulf %365, %355 : vector<8x128xf32>
      %367 = arith.truncf %366 : vector<8x128xf32> to vector<8x128xbf16>
      %368 = arith.index_cast %306 : i32 to index
      %c0_113 = arith.constant 0 : index
      %c0_114 = arith.constant 0 : index
      %369 = vector.load %arg9[%368, %c0_113, %c0_114] : memref<8x8x128xbf16, #tpu.memory_space<vmem>>, vector<1x8x128xbf16>
      %370 = vector.shape_cast %369 : vector<1x8x128xbf16> to vector<8x128xbf16>
      %371 = vector.shape_cast %367 : vector<8x128xbf16> to vector<1x8x128xbf16>
      tpu.vector_store %arg9[%368, %c0_113, %c0_114], %371 {strides = array<i32>} : memref<8x8x128xbf16, #tpu.memory_space<vmem>>, vector<1x8x128xbf16>,
      %372 = vector.broadcast %364 : vector<8x1xf32> to vector<8x128xf32>
      %373 = arith.mulf %372, %358 : vector<8x128xf32>
      %374 = arith.truncf %373 : vector<8x128xf32> to vector<8x128xbf16>
      %375 = arith.index_cast %307 : i32 to index
      %c0_115 = arith.constant 0 : index
      %c0_116 = arith.constant 0 : index
      %376 = vector.load %arg10[%375, %c0_115, %c0_116] : memref<8x8x128xbf16, #tpu.memory_space<vmem>>, vector<1x8x128xbf16>
      %377 = vector.shape_cast %376 : vector<1x8x128xbf16> to vector<8x128xbf16>
      %378 = vector.shape_cast %374 : vector<8x128xbf16> to vector<1x8x128xbf16>
      tpu.vector_store %arg10[%375, %c0_115, %c0_116], %378 {strides = array<i32>} : memref<8x8x128xbf16, #tpu.memory_space<vmem>>, vector<1x8x128xbf16>,
      %379 = arith.subf %355, %292 : vector<8x128xf32>
      %380 = vector.broadcast %361 : vector<8x1xf32> to vector<8x128xf32>
      %381 = arith.mulf %380, %379 : vector<8x128xf32>
      %382 = arith.addf %292, %381 : vector<8x128xf32>
      %383 = arith.subf %347, %296 : vector<8x128xf32>
      %384 = vector.broadcast %361 : vector<8x1xf32> to vector<8x128xf32>
      %385 = arith.mulf %384, %383 : vector<8x128xf32>
      %386 = arith.addf %296, %385 : vector<8x128xf32>
      %387 = arith.subf %358, %300 : vector<8x128xf32>
      %388 = vector.broadcast %364 : vector<8x1xf32> to vector<8x128xf32>
      %389 = arith.mulf %388, %387 : vector<8x128xf32>
      %390 = arith.addf %300, %389 : vector<8x128xf32>
      %391 = arith.subf %352, %304 : vector<8x128xf32>
      %392 = vector.broadcast %364 : vector<8x1xf32> to vector<8x128xf32>
      %393 = arith.mulf %392, %391 : vector<8x128xf32>
      %394 = arith.addf %304, %393 : vector<8x128xf32>
      %c4_i32_117 = arith.constant 4 : i32
      scf.yield %382, %386, %390, %394 : vector<8x128xf32>, vector<8x128xf32>, vector<8x128xf32>, vector<8x128xf32>
    }
    %c2_i32_20 = arith.constant 2 : i32
    %c0_21 = arith.constant 0 : index
    %c0_22 = arith.constant 0 : index
    %19 = vector.load %arg11[%c0_21, %c0_22] : memref<8x128xf32, #tpu.memory_space<vmem>>, vector<8x128xf32>
    tpu.vector_store %arg11[%c0_21, %c0_22], %18#0 {strides = array<i32>} : memref<8x128xf32, #tpu.memory_space<vmem>>, vector<8x128xf32>,
    %c0_23 = arith.constant 0 : index
    %c0_24 = arith.constant 0 : index
    %20 = vector.load %arg12[%c0_23, %c0_24] : memref<8x128xf32, #tpu.memory_space<vmem>>, vector<8x128xf32>
    tpu.vector_store %arg12[%c0_23, %c0_24], %18#2 {strides = array<i32>} : memref<8x128xf32, #tpu.memory_space<vmem>>, vector<8x128xf32>,
    return
  }
  func.func @transform_0(%arg0: i32) -> (i32, i32) {
    %c0_i32 = arith.constant 0 : i32
    %c0_i32_0 = arith.constant 0 : i32
    %c0_i32_1 = arith.constant 0 : i32
    return %c0_i32, %c0_i32_0 : i32, i32
  }
  func.func @transform_1(%arg0: i32) -> (i32, i32, i32) {
    %c0_i32 = arith.constant 0 : i32
    %c0_i32_0 = arith.constant 0 : i32
    %c0_i32_1 = arith.constant 0 : i32
    %c0_i32_2 = arith.constant 0 : i32
    return %c0_i32, %c0_i32_0, %c0_i32_1 : i32, i32, i32
  }
  func.func @transform_2(%arg0: i32) -> (i32, i32) {
    %c0_i32 = arith.constant 0 : i32
    %c0_i32_0 = arith.constant 0 : i32
    %c0_i32_1 = arith.constant 0 : i32
    return %c0_i32, %c0_i32_0 : i32, i32
  }
  func.func @transform_3(%arg0: i32) -> (i32, i32) {
    %c0_i32 = arith.constant 0 : i32
    %c0_i32_0 = arith.constant 0 : i32
    %c0_i32_1 = arith.constant 0 : i32
    return %c0_i32, %c0_i32_0 : i32, i32
  }
  func.func @transform_4(%arg0: i32) -> (i32, i32) {
    %c0_i32 = arith.constant 0 : i32
    %c0_i32_0 = arith.constant 0 : i32
    %c0_i32_1 = arith.constant 0 : i32
    return %c0_i32, %c0_i32_0 : i32, i32
  }
  func.func @transform_5(%arg0: i32) -> (i32, i32) {
    %c0_i32 = arith.constant 0 : i32
    %c0_i32_0 = arith.constant 0 : i32
    %c0_i32_1 = arith.constant 0 : i32
    return %c0_i32, %c0_i32_0 : i32, i32
  }
  func.func @transform_6(%arg0: i32) -> (i32, i32) {
    %c0_i32 = arith.constant 0 : i32
    %c0_i32_0 = arith.constant 0 : i32
    %c0_i32_1 = arith.constant 0 : i32
    return %c0_i32, %c0_i32_0 : i32, i32
  }
  func.func @transform_7(%arg0: i32) -> (i32, i32) {
    %c0_i32 = arith.constant 0 : i32
    %c0_i32_0 = arith.constant 0 : i32
    %c0_i32_1 = arith.constant 0 : i32
    return %c0_i32, %c0_i32_0 : i32, i32
  }
  func.func @transform_8(%arg0: i32) -> (i32, i32, i32) {
    %c0_i32 = arith.constant 0 : i32
    %c0_i32_0 = arith.constant 0 : i32
    %c0_i32_1 = arith.constant 0 : i32
    %c0_i32_2 = arith.constant 0 : i32
    return %c0_i32, %c0_i32_0, %c0_i32_1 : i32, i32, i32
  }
  func.func @transform_9(%arg0: i32) -> (i32, i32, i32) {
    %c0_i32 = arith.constant 0 : i32
    %c0_i32_0 = arith.constant 0 : i32
    %c0_i32_1 = arith.constant 0 : i32
    %c0_i32_2 = arith.constant 0 : i32
    return %c0_i32, %c0_i32_0, %c0_i32_1 : i32, i32, i32
  }
  func.func @transform_10(%arg0: i32) -> (i32, i32) {
    %c0_i32 = arith.constant 0 : i32
    %c0_i32_0 = arith.constant 0 : i32
    %c0_i32_1 = arith.constant 0 : i32
    return %c0_i32, %c0_i32_0 : i32, i32
  }
  func.func @transform_11(%arg0: i32) -> (i32, i32) {
    %c0_i32 = arith.constant 0 : i32
    %c0_i32_0 = arith.constant 0 : i32
    %c0_i32_1 = arith.constant 0 : i32
    return %c0_i32, %c0_i32_0 : i32, i32
  }
}

module attributes {stable_mosaic.version = 11 : i64} {
  func.func @kernel(%arg0: i32, %arg1: memref<64x128xbf16, #tpu.memory_space<vmem>>, %arg2: memref<64x128xbf16, #tpu.memory_space<vmem>>, %arg3: memref<8x8x1xf32, #tpu.memory_space<vmem>>, %arg4: memref<128x512xbf16, #tpu.memory_space<vmem>>, %arg5: memref<128x512xbf16, #tpu.memory_space<vmem>>, %arg6: memref<128x512xbf16, #tpu.memory_space<vmem>>, %arg7: memref<128x512xbf16, #tpu.memory_space<vmem>>, %arg8: memref<128x512xbf16, #tpu.memory_space<vmem>>, %arg9: memref<128x512xbf16, #tpu.memory_space<vmem>>, %arg10: memref<1x512xf32, #tpu.memory_space<vmem>>, %arg11: memref<1x512xf32, #tpu.memory_space<vmem>>, %arg12: memref<8x8x128xbf16, #tpu.memory_space<vmem>>, %arg13: memref<8x8x128xbf16, #tpu.memory_space<vmem>>, %arg14: memref<8x128xf32, #tpu.memory_space<vmem>>, %arg15: memref<8x128xf32, #tpu.memory_space<vmem>>, %arg16: memref<64x512xf32, #tpu.memory_space<vmem>>, %arg17: memref<64x512xf32, #tpu.memory_space<vmem>>) attributes {dimension_semantics = [#tpu.dimension_semantics<arbitrary>], iteration_bounds = array<i64: 1>, scalar_prefetch = 0 : i64, scratch_operands = 2 : i64, tpu.core_type = #tpu.core_type<tc>, window_params = [{pipeline_mode = #tpu.pipeline_mode<synchronous>, transform_indices = @transform_0, window_bounds = array<i64: 64, 128>}, {pipeline_mode = #tpu.pipeline_mode<synchronous>, transform_indices = @transform_1, window_bounds = array<i64: 64, 128>}, {pipeline_mode = #tpu.pipeline_mode<synchronous>, transform_indices = @transform_2, window_bounds = array<i64: 8, 8, 1>}, {pipeline_mode = #tpu.pipeline_mode<synchronous>, transform_indices = @transform_3, window_bounds = array<i64: 128, 512>}, {pipeline_mode = #tpu.pipeline_mode<synchronous>, transform_indices = @transform_4, window_bounds = array<i64: 128, 512>}, {pipeline_mode = #tpu.pipeline_mode<synchronous>, transform_indices = @transform_5, window_bounds = array<i64: 128, 512>}, {pipeline_mode = #tpu.pipeline_mode<synchronous>, transform_indices = @transform_6, window_bounds = array<i64: 128, 512>}, {pipeline_mode = #tpu.pipeline_mode<synchronous>, transform_indices = @transform_7, window_bounds = array<i64: 128, 512>}, {pipeline_mode = #tpu.pipeline_mode<synchronous>, transform_indices = @transform_8, window_bounds = array<i64: 128, 512>}, {pipeline_mode = #tpu.pipeline_mode<synchronous>, transform_indices = @transform_9, window_bounds = array<i64: 1, 512>}, {pipeline_mode = #tpu.pipeline_mode<synchronous>, transform_indices = @transform_10, window_bounds = array<i64: 1, 512>}, {pipeline_mode = #tpu.pipeline_mode<synchronous>, transform_indices = @transform_11, window_bounds = array<i64: 8, 8, 128>}, {pipeline_mode = #tpu.pipeline_mode<synchronous>, transform_indices = @transform_12, window_bounds = array<i64: 8, 8, 128>}, {pipeline_mode = #tpu.pipeline_mode<synchronous>, transform_indices = @transform_13, window_bounds = array<i64: 8, 128>}, {pipeline_mode = #tpu.pipeline_mode<synchronous>, transform_indices = @transform_14, window_bounds = array<i64: 8, 128>}]} {
    %c0 = arith.constant 0 : index
    %c0_0 = arith.constant 0 : index
    %0 = vector.load %arg8[%c0, %c0_0] : memref<128x512xbf16, #tpu.memory_space<vmem>>, vector<128x512xbf16>
    %c0_1 = arith.constant 0 : index
    %c0_2 = arith.constant 0 : index
    %1 = vector.load %arg9[%c0_1, %c0_2] : memref<128x512xbf16, #tpu.memory_space<vmem>>, vector<128x512xbf16>
    %c0_3 = arith.constant 0 : index
    %c0_4 = arith.constant 0 : index
    %2 = vector.load %arg10[%c0_3, %c0_4] : memref<1x512xf32, #tpu.memory_space<vmem>>, vector<1x512xf32>
    %c0_5 = arith.constant 0 : index
    %c0_6 = arith.constant 0 : index
    %3 = vector.load %arg11[%c0_5, %c0_6] : memref<1x512xf32, #tpu.memory_space<vmem>>, vector<1x512xf32>
    %cst = arith.constant 0.000000e+00 : f32
    %4 = vector.broadcast %cst : f32 to vector<8x128xf32>
    %c0_7 = arith.constant 0 : index
    %c0_8 = arith.constant 0 : index
    %5 = vector.load %arg1[%c0_7, %c0_8] : memref<64x128xbf16, #tpu.memory_space<vmem>>, vector<32x128xbf16>
    %c0_9 = arith.constant 0 : index
    %c0_10 = arith.constant 0 : index
    %6 = vector.load %arg4[%c0_9, %c0_10] : memref<128x512xbf16, #tpu.memory_space<vmem>>, vector<128x512xbf16>
    %cst_11 = arith.constant dense<0.000000e+00> : vector<32x512xf32>
    %7 = tpu.matmul %5, %6, %cst_11 {dimension_numbers = #tpu.dot_dimension_numbers<[1], [0], [0], [1], [0, 0, 1, 1], [], []>} : vector<32x128xbf16>, vector<128x512xbf16>, vector<32x512xf32> -> vector<32x512xf32>
    %8 = vector.broadcast %2 : vector<1x512xf32> to vector<32x512xf32>
    %9 = arith.addf %8, %7 : vector<32x512xf32>
    %c32 = arith.constant 32 : index
    %c0_12 = arith.constant 0 : index
    %10 = vector.load %arg1[%c32, %c0_12] : memref<64x128xbf16, #tpu.memory_space<vmem>>, vector<32x128xbf16>
    %c0_13 = arith.constant 0 : index
    %c0_14 = arith.constant 0 : index
    %11 = vector.load %arg6[%c0_13, %c0_14] : memref<128x512xbf16, #tpu.memory_space<vmem>>, vector<128x512xbf16>
    %cst_15 = arith.constant dense<0.000000e+00> : vector<32x512xf32>
    %12 = tpu.matmul %10, %11, %cst_15 {dimension_numbers = #tpu.dot_dimension_numbers<[1], [0], [0], [1], [0, 0, 1, 1], [], []>} : vector<32x128xbf16>, vector<128x512xbf16>, vector<32x512xf32> -> vector<32x512xf32>
    %13 = vector.broadcast %3 : vector<1x512xf32> to vector<32x512xf32>
    %14 = arith.addf %13, %12 : vector<32x512xf32>
    %c0_16 = arith.constant 0 : index
    %c0_17 = arith.constant 0 : index
    %15 = vector.load %arg2[%c0_16, %c0_17] : memref<64x128xbf16, #tpu.memory_space<vmem>>, vector<32x128xbf16>
    %c0_18 = arith.constant 0 : index
    %c0_19 = arith.constant 0 : index
    %16 = vector.load %arg5[%c0_18, %c0_19] : memref<128x512xbf16, #tpu.memory_space<vmem>>, vector<128x512xbf16>
    %cst_20 = arith.constant dense<0.000000e+00> : vector<32x512xf32>
    %17 = tpu.matmul %15, %16, %cst_20 {dimension_numbers = #tpu.dot_dimension_numbers<[1], [0], [0], [1], [0, 0, 1, 1], [], []>} : vector<32x128xbf16>, vector<128x512xbf16>, vector<32x512xf32> -> vector<32x512xf32>
    %18 = arith.addf %9, %17 : vector<32x512xf32>
    %c32_21 = arith.constant 32 : index
    %c0_22 = arith.constant 0 : index
    %19 = vector.load %arg2[%c32_21, %c0_22] : memref<64x128xbf16, #tpu.memory_space<vmem>>, vector<32x128xbf16>
    %c0_23 = arith.constant 0 : index
    %c0_24 = arith.constant 0 : index
    %20 = vector.load %arg7[%c0_23, %c0_24] : memref<128x512xbf16, #tpu.memory_space<vmem>>, vector<128x512xbf16>
    %cst_25 = arith.constant dense<0.000000e+00> : vector<32x512xf32>
    %21 = tpu.matmul %19, %20, %cst_25 {dimension_numbers = #tpu.dot_dimension_numbers<[1], [0], [0], [1], [0, 0, 1, 1], [], []>} : vector<32x128xbf16>, vector<128x512xbf16>, vector<32x512xf32> -> vector<32x512xf32>
    %22 = arith.addf %14, %21 : vector<32x512xf32>
    %c0_26 = arith.constant 0 : index
    %c0_27 = arith.constant 0 : index
    %23 = vector.load %arg16[%c0_26, %c0_27] : memref<64x512xf32, #tpu.memory_space<vmem>>, vector<32x512xf32>
    tpu.vector_store %arg16[%c0_26, %c0_27], %18 {strides = array<i32>} : memref<64x512xf32, #tpu.memory_space<vmem>>, vector<32x512xf32>,
    %c0_28 = arith.constant 0 : index
    %c0_29 = arith.constant 0 : index
    %24 = vector.load %arg17[%c0_28, %c0_29] : memref<64x512xf32, #tpu.memory_space<vmem>>, vector<32x512xf32>
    tpu.vector_store %arg17[%c0_28, %c0_29], %22 {strides = array<i32>} : memref<64x512xf32, #tpu.memory_space<vmem>>, vector<32x512xf32>,
    %c0_i32 = arith.constant 0 : i32
    %c2_i32 = arith.constant 2 : i32
    %25 = arith.addi %c0_i32, %c2_i32 : i32
    %c1_i32 = arith.constant 1 : i32
    %26:4 = scf.for %arg18 = %c0_i32 to %25 step %c1_i32 iter_args(%arg19 = %4, %arg20 = %4, %arg21 = %4, %arg22 = %4) -> (vector<8x128xf32>, vector<8x128xf32>, vector<8x128xf32>, vector<8x128xf32>)  : i32 {
      %c1_i32_35 = arith.constant 1 : i32
      %29 = arith.addi %arg18, %c1_i32_35 : i32
      %c2_i32_36 = arith.constant 2 : i32
      %30 = arith.cmpi slt, %29, %c2_i32_36 : i32
      %31 = arith.extui %30 : i1 to i32
      %c0_i32_37 = arith.constant 0 : i32
      %32 = arith.cmpi ne, %31, %c0_i32_37 : i32
      scf.if %32 {
        %c1_i32_128 = arith.constant 1 : i32
        %403 = arith.addi %arg18, %c1_i32_128 : i32
        %c1_i32_129 = arith.constant 1 : i32
        %404 = arith.addi %arg18, %c1_i32_129 : i32
        %c2_i32_130 = arith.constant 2 : i32
        %c0_i32_131 = arith.constant 0 : i32
        %405 = arith.cmpi eq, %c2_i32_130, %c0_i32_131 : i32
        %c1_i32_132 = arith.constant 1 : i32
        %406 = arith.select %405, %c1_i32_132, %c2_i32_130 : i32
        %407 = arith.remsi %404, %406 : i32
        %c0_i32_133 = arith.constant 0 : i32
        %408 = arith.cmpi ne, %407, %c0_i32_133 : i32
        %c0_i32_134 = arith.constant 0 : i32
        %409 = arith.cmpi slt, %407, %c0_i32_134 : i32
        %c0_i32_135 = arith.constant 0 : i32
        %410 = arith.cmpi slt, %406, %c0_i32_135 : i32
        %411 = arith.xori %409, %410 : i1
        %412 = arith.andi %411, %408 : i1
        %413 = arith.addi %407, %406 : i32
        %414 = arith.select %412, %413, %407 : i32
        %c32_i32_136 = arith.constant 32 : i32
        %415 = arith.muli %403, %c32_i32_136 : i32
        %c1_i32_137 = arith.constant 1 : i32
        %416 = arith.subi %c1_i32_137, %403 : i32
        %c32_i32_138 = arith.constant 32 : i32
        %417 = arith.muli %416, %c32_i32_138 : i32
        %418 = arith.index_cast %415 : i32 to index
        %c0_139 = arith.constant 0 : index
        %419 = vector.load %arg1[%418, %c0_139] : memref<64x128xbf16, #tpu.memory_space<vmem>>, vector<32x128xbf16>
        %c0_140 = arith.constant 0 : index
        %c0_141 = arith.constant 0 : index
        %420 = vector.load %arg4[%c0_140, %c0_141] : memref<128x512xbf16, #tpu.memory_space<vmem>>, vector<128x512xbf16>
        %cst_142 = arith.constant dense<0.000000e+00> : vector<32x512xf32>
        %421 = tpu.matmul %419, %420, %cst_142 {dimension_numbers = #tpu.dot_dimension_numbers<[1], [0], [0], [1], [0, 0, 1, 1], [], []>} : vector<32x128xbf16>, vector<128x512xbf16>, vector<32x512xf32> -> vector<32x512xf32>
        %422 = vector.broadcast %2 : vector<1x512xf32> to vector<32x512xf32>
        %423 = arith.addf %422, %421 : vector<32x512xf32>
        %424 = arith.index_cast %417 : i32 to index
        %c0_143 = arith.constant 0 : index
        %425 = vector.load %arg1[%424, %c0_143] : memref<64x128xbf16, #tpu.memory_space<vmem>>, vector<32x128xbf16>
        %c0_144 = arith.constant 0 : index
        %c0_145 = arith.constant 0 : index
        %426 = vector.load %arg6[%c0_144, %c0_145] : memref<128x512xbf16, #tpu.memory_space<vmem>>, vector<128x512xbf16>
        %cst_146 = arith.constant dense<0.000000e+00> : vector<32x512xf32>
        %427 = tpu.matmul %425, %426, %cst_146 {dimension_numbers = #tpu.dot_dimension_numbers<[1], [0], [0], [1], [0, 0, 1, 1], [], []>} : vector<32x128xbf16>, vector<128x512xbf16>, vector<32x512xf32> -> vector<32x512xf32>
        %428 = vector.broadcast %3 : vector<1x512xf32> to vector<32x512xf32>
        %429 = arith.addf %428, %427 : vector<32x512xf32>
        %430 = arith.index_cast %415 : i32 to index
        %c0_147 = arith.constant 0 : index
        %431 = vector.load %arg2[%430, %c0_147] : memref<64x128xbf16, #tpu.memory_space<vmem>>, vector<32x128xbf16>
        %c0_148 = arith.constant 0 : index
        %c0_149 = arith.constant 0 : index
        %432 = vector.load %arg5[%c0_148, %c0_149] : memref<128x512xbf16, #tpu.memory_space<vmem>>, vector<128x512xbf16>
        %cst_150 = arith.constant dense<0.000000e+00> : vector<32x512xf32>
        %433 = tpu.matmul %431, %432, %cst_150 {dimension_numbers = #tpu.dot_dimension_numbers<[1], [0], [0], [1], [0, 0, 1, 1], [], []>} : vector<32x128xbf16>, vector<128x512xbf16>, vector<32x512xf32> -> vector<32x512xf32>
        %434 = arith.addf %423, %433 : vector<32x512xf32>
        %435 = arith.index_cast %417 : i32 to index
        %c0_151 = arith.constant 0 : index
        %436 = vector.load %arg2[%435, %c0_151] : memref<64x128xbf16, #tpu.memory_space<vmem>>, vector<32x128xbf16>
        %c0_152 = arith.constant 0 : index
        %c0_153 = arith.constant 0 : index
        %437 = vector.load %arg7[%c0_152, %c0_153] : memref<128x512xbf16, #tpu.memory_space<vmem>>, vector<128x512xbf16>
        %cst_154 = arith.constant dense<0.000000e+00> : vector<32x512xf32>
        %438 = tpu.matmul %436, %437, %cst_154 {dimension_numbers = #tpu.dot_dimension_numbers<[1], [0], [0], [1], [0, 0, 1, 1], [], []>} : vector<32x128xbf16>, vector<128x512xbf16>, vector<32x512xf32> -> vector<32x512xf32>
        %439 = arith.addf %429, %438 : vector<32x512xf32>
        %c32_i32_155 = arith.constant 32 : i32
        %440 = arith.muli %414, %c32_i32_155 : i32
        %441 = arith.index_cast %440 : i32 to index
        %c0_156 = arith.constant 0 : index
        %442 = vector.load %arg16[%441, %c0_156] : memref<64x512xf32, #tpu.memory_space<vmem>>, vector<32x512xf32>
        tpu.vector_store %arg16[%441, %c0_156], %434 {strides = array<i32>} : memref<64x512xf32, #tpu.memory_space<vmem>>, vector<32x512xf32>,
        %443 = arith.index_cast %440 : i32 to index
        %c0_157 = arith.constant 0 : index
        %444 = vector.load %arg17[%443, %c0_157] : memref<64x512xf32, #tpu.memory_space<vmem>>, vector<32x512xf32>
        tpu.vector_store %arg17[%443, %c0_157], %439 {strides = array<i32>} : memref<64x512xf32, #tpu.memory_space<vmem>>, vector<32x512xf32>,
      } else {
      }
      %c2_i32_38 = arith.constant 2 : i32
      %c0_i32_39 = arith.constant 0 : i32
      %33 = arith.cmpi eq, %c2_i32_38, %c0_i32_39 : i32
      %c1_i32_40 = arith.constant 1 : i32
      %34 = arith.select %33, %c1_i32_40, %c2_i32_38 : i32
      %35 = arith.remsi %arg18, %34 : i32
      %c0_i32_41 = arith.constant 0 : i32
      %36 = arith.cmpi ne, %35, %c0_i32_41 : i32
      %c0_i32_42 = arith.constant 0 : i32
      %37 = arith.cmpi slt, %35, %c0_i32_42 : i32
      %c0_i32_43 = arith.constant 0 : i32
      %38 = arith.cmpi slt, %34, %c0_i32_43 : i32
      %39 = arith.xori %37, %38 : i1
      %40 = arith.andi %39, %36 : i1
      %41 = arith.addi %35, %34 : i32
      %42 = arith.select %40, %41, %35 : i32
      %c0_i32_44 = arith.constant 0 : i32
      %c4_i32 = arith.constant 4 : i32
      %43 = arith.muli %arg18, %c4_i32 : i32
      %44 = arith.addi %43, %c0_i32_44 : i32
      %c7_i32 = arith.constant 7 : i32
      %45 = arith.subi %c7_i32, %44 : i32
      %c32_i32 = arith.constant 32 : i32
      %46 = arith.muli %42, %c32_i32 : i32
      %c8_i32 = arith.constant 8 : i32
      %47 = arith.muli %c0_i32_44, %c8_i32 : i32
      %48 = arith.addi %46, %47 : i32
      %49 = tpu.assume_multiple %48, 8 : i32
      %c32_i32_45 = arith.constant 32 : i32
      %50 = arith.muli %42, %c32_i32_45 : i32
      %c3_i32 = arith.constant 3 : i32
      %51 = arith.subi %c3_i32, %c0_i32_44 : i32
      %c8_i32_46 = arith.constant 8 : i32
      %52 = arith.muli %51, %c8_i32_46 : i32
      %53 = arith.addi %50, %52 : i32
      %54 = tpu.assume_multiple %53, 8 : i32
      %55 = arith.index_cast %49 : i32 to index
      %c0_47 = arith.constant 0 : index
      %56 = vector.load %arg16[%55, %c0_47] : memref<64x512xf32, #tpu.memory_space<vmem>>, vector<8x512xf32>
      %57 = arith.truncf %arg19 : vector<8x128xf32> to vector<8x128xbf16>
      %cst_48 = arith.constant dense<0.000000e+00> : vector<8x512xf32>
      %58 = tpu.matmul %57, %0, %cst_48 {dimension_numbers = #tpu.dot_dimension_numbers<[1], [0], [0], [1], [0, 0, 1, 1], [], []>} : vector<8x128xbf16>, vector<128x512xbf16>, vector<8x512xf32> -> vector<8x512xf32>
      %59 = arith.addf %56, %58 : vector<8x512xf32>
      %60 = arith.index_cast %54 : i32 to index
      %c0_49 = arith.constant 0 : index
      %61 = vector.load %arg17[%60, %c0_49] : memref<64x512xf32, #tpu.memory_space<vmem>>, vector<8x512xf32>
      %62 = arith.truncf %arg21 : vector<8x128xf32> to vector<8x128xbf16>
      %cst_50 = arith.constant dense<0.000000e+00> : vector<8x512xf32>
      %63 = tpu.matmul %62, %1, %cst_50 {dimension_numbers = #tpu.dot_dimension_numbers<[1], [0], [0], [1], [0, 0, 1, 1], [], []>} : vector<8x128xbf16>, vector<128x512xbf16>, vector<8x512xf32> -> vector<8x512xf32>
      %64 = arith.addf %61, %63 : vector<8x512xf32>
      %65 = vector.extract_strided_slice %59 {offsets = [0, 0], sizes = [8, 384], strides = [1, 1]} : vector<8x512xf32> to vector<8x384xf32>
      %66 = arith.negf %65 : vector<8x384xf32>
      %67 = math.exp %66 : vector<8x384xf32>
      %cst_51 = arith.constant 1.000000e+00 : f32
      %68 = vector.broadcast %cst_51 : f32 to vector<8x384xf32>
      %69 = arith.addf %68, %67 : vector<8x384xf32>
      %70 = arith.divf %68, %69 : vector<8x384xf32>
      %71 = vector.extract_strided_slice %64 {offsets = [0, 0], sizes = [8, 384], strides = [1, 1]} : vector<8x512xf32> to vector<8x384xf32>
      %72 = arith.negf %71 : vector<8x384xf32>
      %73 = math.exp %72 : vector<8x384xf32>
      %cst_52 = arith.constant 1.000000e+00 : f32
      %74 = vector.broadcast %cst_52 : f32 to vector<8x384xf32>
      %75 = arith.addf %74, %73 : vector<8x384xf32>
      %76 = arith.divf %74, %75 : vector<8x384xf32>
      %77 = vector.extract_strided_slice %59 {offsets = [0, 384], sizes = [8, 128], strides = [1, 1]} : vector<8x512xf32> to vector<8x128xf32>
      %78 = math.tanh %77 : vector<8x128xf32>
      %79 = vector.extract_strided_slice %64 {offsets = [0, 384], sizes = [8, 128], strides = [1, 1]} : vector<8x512xf32> to vector<8x128xf32>
      %80 = math.tanh %79 : vector<8x128xf32>
      %81 = vector.extract_strided_slice %70 {offsets = [0, 128], sizes = [8, 128], strides = [1, 1]} : vector<8x384xf32> to vector<8x128xf32>
      %82 = arith.mulf %81, %arg20 : vector<8x128xf32>
      %83 = vector.extract_strided_slice %70 {offsets = [0, 0], sizes = [8, 128], strides = [1, 1]} : vector<8x384xf32> to vector<8x128xf32>
      %84 = arith.mulf %83, %78 : vector<8x128xf32>
      %85 = arith.addf %82, %84 : vector<8x128xf32>
      %86 = vector.extract_strided_slice %76 {offsets = [0, 128], sizes = [8, 128], strides = [1, 1]} : vector<8x384xf32> to vector<8x128xf32>
      %87 = arith.mulf %86, %arg22 : vector<8x128xf32>
      %88 = vector.extract_strided_slice %76 {offsets = [0, 0], sizes = [8, 128], strides = [1, 1]} : vector<8x384xf32> to vector<8x128xf32>
      %89 = arith.mulf %88, %80 : vector<8x128xf32>
      %90 = arith.addf %87, %89 : vector<8x128xf32>
      %91 = vector.extract_strided_slice %70 {offsets = [0, 256], sizes = [8, 128], strides = [1, 1]} : vector<8x384xf32> to vector<8x128xf32>
      %92 = math.tanh %85 : vector<8x128xf32>
      %93 = arith.mulf %91, %92 : vector<8x128xf32>
      %94 = vector.extract_strided_slice %76 {offsets = [0, 256], sizes = [8, 128], strides = [1, 1]} : vector<8x384xf32> to vector<8x128xf32>
      %95 = math.tanh %90 : vector<8x128xf32>
      %96 = arith.mulf %94, %95 : vector<8x128xf32>
      %97 = arith.index_cast %44 : i32 to index
      %c0_53 = arith.constant 0 : index
      %c0_54 = arith.constant 0 : index
      %98 = vector.load %arg3[%97, %c0_53, %c0_54] : memref<8x8x1xf32, #tpu.memory_space<vmem>>, vector<1x8x1xf32>
      %99 = vector.shape_cast %98 : vector<1x8x1xf32> to vector<8x1xf32>
      %100 = arith.index_cast %45 : i32 to index
      %c0_55 = arith.constant 0 : index
      %c0_56 = arith.constant 0 : index
      %101 = vector.load %arg3[%100, %c0_55, %c0_56] : memref<8x8x1xf32, #tpu.memory_space<vmem>>, vector<1x8x1xf32>
      %102 = vector.shape_cast %101 : vector<1x8x1xf32> to vector<8x1xf32>
      %103 = vector.broadcast %99 : vector<8x1xf32> to vector<8x128xf32>
      %104 = arith.mulf %103, %93 : vector<8x128xf32>
      %105 = arith.truncf %104 : vector<8x128xf32> to vector<8x128xbf16>
      %106 = arith.index_cast %44 : i32 to index
      %c0_57 = arith.constant 0 : index
      %c0_58 = arith.constant 0 : index
      %107 = vector.load %arg12[%106, %c0_57, %c0_58] : memref<8x8x128xbf16, #tpu.memory_space<vmem>>, vector<1x8x128xbf16>
      %108 = vector.shape_cast %107 : vector<1x8x128xbf16> to vector<8x128xbf16>
      %109 = vector.shape_cast %105 : vector<8x128xbf16> to vector<1x8x128xbf16>
      tpu.vector_store %arg12[%106, %c0_57, %c0_58], %109 {strides = array<i32>} : memref<8x8x128xbf16, #tpu.memory_space<vmem>>, vector<1x8x128xbf16>,
      %110 = vector.broadcast %102 : vector<8x1xf32> to vector<8x128xf32>
      %111 = arith.mulf %110, %96 : vector<8x128xf32>
      %112 = arith.truncf %111 : vector<8x128xf32> to vector<8x128xbf16>
      %113 = arith.index_cast %45 : i32 to index
      %c0_59 = arith.constant 0 : index
      %c0_60 = arith.constant 0 : index
      %114 = vector.load %arg13[%113, %c0_59, %c0_60] : memref<8x8x128xbf16, #tpu.memory_space<vmem>>, vector<1x8x128xbf16>
      %115 = vector.shape_cast %114 : vector<1x8x128xbf16> to vector<8x128xbf16>
      %116 = vector.shape_cast %112 : vector<8x128xbf16> to vector<1x8x128xbf16>
      tpu.vector_store %arg13[%113, %c0_59, %c0_60], %116 {strides = array<i32>} : memref<8x8x128xbf16, #tpu.memory_space<vmem>>, vector<1x8x128xbf16>,
      %117 = arith.subf %93, %arg19 : vector<8x128xf32>
      %118 = vector.broadcast %99 : vector<8x1xf32> to vector<8x128xf32>
      %119 = arith.mulf %118, %117 : vector<8x128xf32>
      %120 = arith.addf %arg19, %119 : vector<8x128xf32>
      %121 = arith.subf %85, %arg20 : vector<8x128xf32>
      %122 = vector.broadcast %99 : vector<8x1xf32> to vector<8x128xf32>
      %123 = arith.mulf %122, %121 : vector<8x128xf32>
      %124 = arith.addf %arg20, %123 : vector<8x128xf32>
      %125 = arith.subf %96, %arg21 : vector<8x128xf32>
      %126 = vector.broadcast %102 : vector<8x1xf32> to vector<8x128xf32>
      %127 = arith.mulf %126, %125 : vector<8x128xf32>
      %128 = arith.addf %arg21, %127 : vector<8x128xf32>
      %129 = arith.subf %90, %arg22 : vector<8x128xf32>
      %130 = vector.broadcast %102 : vector<8x1xf32> to vector<8x128xf32>
      %131 = arith.mulf %130, %129 : vector<8x128xf32>
      %132 = arith.addf %arg22, %131 : vector<8x128xf32>
      %c1_i32_61 = arith.constant 1 : i32
      %c4_i32_62 = arith.constant 4 : i32
      %133 = arith.muli %arg18, %c4_i32_62 : i32
      %134 = arith.addi %133, %c1_i32_61 : i32
      %c7_i32_63 = arith.constant 7 : i32
      %135 = arith.subi %c7_i32_63, %134 : i32
      %c32_i32_64 = arith.constant 32 : i32
      %136 = arith.muli %42, %c32_i32_64 : i32
      %c8_i32_65 = arith.constant 8 : i32
      %137 = arith.muli %c1_i32_61, %c8_i32_65 : i32
      %138 = arith.addi %136, %137 : i32
      %139 = tpu.assume_multiple %138, 8 : i32
      %c32_i32_66 = arith.constant 32 : i32
      %140 = arith.muli %42, %c32_i32_66 : i32
      %c3_i32_67 = arith.constant 3 : i32
      %141 = arith.subi %c3_i32_67, %c1_i32_61 : i32
      %c8_i32_68 = arith.constant 8 : i32
      %142 = arith.muli %141, %c8_i32_68 : i32
      %143 = arith.addi %140, %142 : i32
      %144 = tpu.assume_multiple %143, 8 : i32
      %145 = arith.index_cast %139 : i32 to index
      %c0_69 = arith.constant 0 : index
      %146 = vector.load %arg16[%145, %c0_69] : memref<64x512xf32, #tpu.memory_space<vmem>>, vector<8x512xf32>
      %147 = arith.truncf %120 : vector<8x128xf32> to vector<8x128xbf16>
      %cst_70 = arith.constant dense<0.000000e+00> : vector<8x512xf32>
      %148 = tpu.matmul %147, %0, %cst_70 {dimension_numbers = #tpu.dot_dimension_numbers<[1], [0], [0], [1], [0, 0, 1, 1], [], []>} : vector<8x128xbf16>, vector<128x512xbf16>, vector<8x512xf32> -> vector<8x512xf32>
      %149 = arith.addf %146, %148 : vector<8x512xf32>
      %150 = arith.index_cast %144 : i32 to index
      %c0_71 = arith.constant 0 : index
      %151 = vector.load %arg17[%150, %c0_71] : memref<64x512xf32, #tpu.memory_space<vmem>>, vector<8x512xf32>
      %152 = arith.truncf %128 : vector<8x128xf32> to vector<8x128xbf16>
      %cst_72 = arith.constant dense<0.000000e+00> : vector<8x512xf32>
      %153 = tpu.matmul %152, %1, %cst_72 {dimension_numbers = #tpu.dot_dimension_numbers<[1], [0], [0], [1], [0, 0, 1, 1], [], []>} : vector<8x128xbf16>, vector<128x512xbf16>, vector<8x512xf32> -> vector<8x512xf32>
      %154 = arith.addf %151, %153 : vector<8x512xf32>
      %155 = vector.extract_strided_slice %149 {offsets = [0, 0], sizes = [8, 384], strides = [1, 1]} : vector<8x512xf32> to vector<8x384xf32>
      %156 = arith.negf %155 : vector<8x384xf32>
      %157 = math.exp %156 : vector<8x384xf32>
      %cst_73 = arith.constant 1.000000e+00 : f32
      %158 = vector.broadcast %cst_73 : f32 to vector<8x384xf32>
      %159 = arith.addf %158, %157 : vector<8x384xf32>
      %160 = arith.divf %158, %159 : vector<8x384xf32>
      %161 = vector.extract_strided_slice %154 {offsets = [0, 0], sizes = [8, 384], strides = [1, 1]} : vector<8x512xf32> to vector<8x384xf32>
      %162 = arith.negf %161 : vector<8x384xf32>
      %163 = math.exp %162 : vector<8x384xf32>
      %cst_74 = arith.constant 1.000000e+00 : f32
      %164 = vector.broadcast %cst_74 : f32 to vector<8x384xf32>
      %165 = arith.addf %164, %163 : vector<8x384xf32>
      %166 = arith.divf %164, %165 : vector<8x384xf32>
      %167 = vector.extract_strided_slice %149 {offsets = [0, 384], sizes = [8, 128], strides = [1, 1]} : vector<8x512xf32> to vector<8x128xf32>
      %168 = math.tanh %167 : vector<8x128xf32>
      %169 = vector.extract_strided_slice %154 {offsets = [0, 384], sizes = [8, 128], strides = [1, 1]} : vector<8x512xf32> to vector<8x128xf32>
      %170 = math.tanh %169 : vector<8x128xf32>
      %171 = vector.extract_strided_slice %160 {offsets = [0, 128], sizes = [8, 128], strides = [1, 1]} : vector<8x384xf32> to vector<8x128xf32>
      %172 = arith.mulf %171, %124 : vector<8x128xf32>
      %173 = vector.extract_strided_slice %160 {offsets = [0, 0], sizes = [8, 128], strides = [1, 1]} : vector<8x384xf32> to vector<8x128xf32>
      %174 = arith.mulf %173, %168 : vector<8x128xf32>
      %175 = arith.addf %172, %174 : vector<8x128xf32>
      %176 = vector.extract_strided_slice %166 {offsets = [0, 128], sizes = [8, 128], strides = [1, 1]} : vector<8x384xf32> to vector<8x128xf32>
      %177 = arith.mulf %176, %132 : vector<8x128xf32>
      %178 = vector.extract_strided_slice %166 {offsets = [0, 0], sizes = [8, 128], strides = [1, 1]} : vector<8x384xf32> to vector<8x128xf32>
      %179 = arith.mulf %178, %170 : vector<8x128xf32>
      %180 = arith.addf %177, %179 : vector<8x128xf32>
      %181 = vector.extract_strided_slice %160 {offsets = [0, 256], sizes = [8, 128], strides = [1, 1]} : vector<8x384xf32> to vector<8x128xf32>
      %182 = math.tanh %175 : vector<8x128xf32>
      %183 = arith.mulf %181, %182 : vector<8x128xf32>
      %184 = vector.extract_strided_slice %166 {offsets = [0, 256], sizes = [8, 128], strides = [1, 1]} : vector<8x384xf32> to vector<8x128xf32>
      %185 = math.tanh %180 : vector<8x128xf32>
      %186 = arith.mulf %184, %185 : vector<8x128xf32>
      %187 = arith.index_cast %134 : i32 to index
      %c0_75 = arith.constant 0 : index
      %c0_76 = arith.constant 0 : index
      %188 = vector.load %arg3[%187, %c0_75, %c0_76] : memref<8x8x1xf32, #tpu.memory_space<vmem>>, vector<1x8x1xf32>
      %189 = vector.shape_cast %188 : vector<1x8x1xf32> to vector<8x1xf32>
      %190 = arith.index_cast %135 : i32 to index
      %c0_77 = arith.constant 0 : index
      %c0_78 = arith.constant 0 : index
      %191 = vector.load %arg3[%190, %c0_77, %c0_78] : memref<8x8x1xf32, #tpu.memory_space<vmem>>, vector<1x8x1xf32>
      %192 = vector.shape_cast %191 : vector<1x8x1xf32> to vector<8x1xf32>
      %193 = vector.broadcast %189 : vector<8x1xf32> to vector<8x128xf32>
      %194 = arith.mulf %193, %183 : vector<8x128xf32>
      %195 = arith.truncf %194 : vector<8x128xf32> to vector<8x128xbf16>
      %196 = arith.index_cast %134 : i32 to index
      %c0_79 = arith.constant 0 : index
      %c0_80 = arith.constant 0 : index
      %197 = vector.load %arg12[%196, %c0_79, %c0_80] : memref<8x8x128xbf16, #tpu.memory_space<vmem>>, vector<1x8x128xbf16>
      %198 = vector.shape_cast %197 : vector<1x8x128xbf16> to vector<8x128xbf16>
      %199 = vector.shape_cast %195 : vector<8x128xbf16> to vector<1x8x128xbf16>
      tpu.vector_store %arg12[%196, %c0_79, %c0_80], %199 {strides = array<i32>} : memref<8x8x128xbf16, #tpu.memory_space<vmem>>, vector<1x8x128xbf16>,
      %200 = vector.broadcast %192 : vector<8x1xf32> to vector<8x128xf32>
      %201 = arith.mulf %200, %186 : vector<8x128xf32>
      %202 = arith.truncf %201 : vector<8x128xf32> to vector<8x128xbf16>
      %203 = arith.index_cast %135 : i32 to index
      %c0_81 = arith.constant 0 : index
      %c0_82 = arith.constant 0 : index
      %204 = vector.load %arg13[%203, %c0_81, %c0_82] : memref<8x8x128xbf16, #tpu.memory_space<vmem>>, vector<1x8x128xbf16>
      %205 = vector.shape_cast %204 : vector<1x8x128xbf16> to vector<8x128xbf16>
      %206 = vector.shape_cast %202 : vector<8x128xbf16> to vector<1x8x128xbf16>
      tpu.vector_store %arg13[%203, %c0_81, %c0_82], %206 {strides = array<i32>} : memref<8x8x128xbf16, #tpu.memory_space<vmem>>, vector<1x8x128xbf16>,
      %207 = arith.subf %183, %120 : vector<8x128xf32>
      %208 = vector.broadcast %189 : vector<8x1xf32> to vector<8x128xf32>
      %209 = arith.mulf %208, %207 : vector<8x128xf32>
      %210 = arith.addf %120, %209 : vector<8x128xf32>
      %211 = arith.subf %175, %124 : vector<8x128xf32>
      %212 = vector.broadcast %189 : vector<8x1xf32> to vector<8x128xf32>
      %213 = arith.mulf %212, %211 : vector<8x128xf32>
      %214 = arith.addf %124, %213 : vector<8x128xf32>
      %215 = arith.subf %186, %128 : vector<8x128xf32>
      %216 = vector.broadcast %192 : vector<8x1xf32> to vector<8x128xf32>
      %217 = arith.mulf %216, %215 : vector<8x128xf32>
      %218 = arith.addf %128, %217 : vector<8x128xf32>
      %219 = arith.subf %180, %132 : vector<8x128xf32>
      %220 = vector.broadcast %192 : vector<8x1xf32> to vector<8x128xf32>
      %221 = arith.mulf %220, %219 : vector<8x128xf32>
      %222 = arith.addf %132, %221 : vector<8x128xf32>
      %c2_i32_83 = arith.constant 2 : i32
      %c4_i32_84 = arith.constant 4 : i32
      %223 = arith.muli %arg18, %c4_i32_84 : i32
      %224 = arith.addi %223, %c2_i32_83 : i32
      %c7_i32_85 = arith.constant 7 : i32
      %225 = arith.subi %c7_i32_85, %224 : i32
      %c32_i32_86 = arith.constant 32 : i32
      %226 = arith.muli %42, %c32_i32_86 : i32
      %c8_i32_87 = arith.constant 8 : i32
      %227 = arith.muli %c2_i32_83, %c8_i32_87 : i32
      %228 = arith.addi %226, %227 : i32
      %229 = tpu.assume_multiple %228, 8 : i32
      %c32_i32_88 = arith.constant 32 : i32
      %230 = arith.muli %42, %c32_i32_88 : i32
      %c3_i32_89 = arith.constant 3 : i32
      %231 = arith.subi %c3_i32_89, %c2_i32_83 : i32
      %c8_i32_90 = arith.constant 8 : i32
      %232 = arith.muli %231, %c8_i32_90 : i32
      %233 = arith.addi %230, %232 : i32
      %234 = tpu.assume_multiple %233, 8 : i32
      %235 = arith.index_cast %229 : i32 to index
      %c0_91 = arith.constant 0 : index
      %236 = vector.load %arg16[%235, %c0_91] : memref<64x512xf32, #tpu.memory_space<vmem>>, vector<8x512xf32>
      %237 = arith.truncf %210 : vector<8x128xf32> to vector<8x128xbf16>
      %cst_92 = arith.constant dense<0.000000e+00> : vector<8x512xf32>
      %238 = tpu.matmul %237, %0, %cst_92 {dimension_numbers = #tpu.dot_dimension_numbers<[1], [0], [0], [1], [0, 0, 1, 1], [], []>} : vector<8x128xbf16>, vector<128x512xbf16>, vector<8x512xf32> -> vector<8x512xf32>
      %239 = arith.addf %236, %238 : vector<8x512xf32>
      %240 = arith.index_cast %234 : i32 to index
      %c0_93 = arith.constant 0 : index
      %241 = vector.load %arg17[%240, %c0_93] : memref<64x512xf32, #tpu.memory_space<vmem>>, vector<8x512xf32>
      %242 = arith.truncf %218 : vector<8x128xf32> to vector<8x128xbf16>
      %cst_94 = arith.constant dense<0.000000e+00> : vector<8x512xf32>
      %243 = tpu.matmul %242, %1, %cst_94 {dimension_numbers = #tpu.dot_dimension_numbers<[1], [0], [0], [1], [0, 0, 1, 1], [], []>} : vector<8x128xbf16>, vector<128x512xbf16>, vector<8x512xf32> -> vector<8x512xf32>
      %244 = arith.addf %241, %243 : vector<8x512xf32>
      %245 = vector.extract_strided_slice %239 {offsets = [0, 0], sizes = [8, 384], strides = [1, 1]} : vector<8x512xf32> to vector<8x384xf32>
      %246 = arith.negf %245 : vector<8x384xf32>
      %247 = math.exp %246 : vector<8x384xf32>
      %cst_95 = arith.constant 1.000000e+00 : f32
      %248 = vector.broadcast %cst_95 : f32 to vector<8x384xf32>
      %249 = arith.addf %248, %247 : vector<8x384xf32>
      %250 = arith.divf %248, %249 : vector<8x384xf32>
      %251 = vector.extract_strided_slice %244 {offsets = [0, 0], sizes = [8, 384], strides = [1, 1]} : vector<8x512xf32> to vector<8x384xf32>
      %252 = arith.negf %251 : vector<8x384xf32>
      %253 = math.exp %252 : vector<8x384xf32>
      %cst_96 = arith.constant 1.000000e+00 : f32
      %254 = vector.broadcast %cst_96 : f32 to vector<8x384xf32>
      %255 = arith.addf %254, %253 : vector<8x384xf32>
      %256 = arith.divf %254, %255 : vector<8x384xf32>
      %257 = vector.extract_strided_slice %239 {offsets = [0, 384], sizes = [8, 128], strides = [1, 1]} : vector<8x512xf32> to vector<8x128xf32>
      %258 = math.tanh %257 : vector<8x128xf32>
      %259 = vector.extract_strided_slice %244 {offsets = [0, 384], sizes = [8, 128], strides = [1, 1]} : vector<8x512xf32> to vector<8x128xf32>
      %260 = math.tanh %259 : vector<8x128xf32>
      %261 = vector.extract_strided_slice %250 {offsets = [0, 128], sizes = [8, 128], strides = [1, 1]} : vector<8x384xf32> to vector<8x128xf32>
      %262 = arith.mulf %261, %214 : vector<8x128xf32>
      %263 = vector.extract_strided_slice %250 {offsets = [0, 0], sizes = [8, 128], strides = [1, 1]} : vector<8x384xf32> to vector<8x128xf32>
      %264 = arith.mulf %263, %258 : vector<8x128xf32>
      %265 = arith.addf %262, %264 : vector<8x128xf32>
      %266 = vector.extract_strided_slice %256 {offsets = [0, 128], sizes = [8, 128], strides = [1, 1]} : vector<8x384xf32> to vector<8x128xf32>
      %267 = arith.mulf %266, %222 : vector<8x128xf32>
      %268 = vector.extract_strided_slice %256 {offsets = [0, 0], sizes = [8, 128], strides = [1, 1]} : vector<8x384xf32> to vector<8x128xf32>
      %269 = arith.mulf %268, %260 : vector<8x128xf32>
      %270 = arith.addf %267, %269 : vector<8x128xf32>
      %271 = vector.extract_strided_slice %250 {offsets = [0, 256], sizes = [8, 128], strides = [1, 1]} : vector<8x384xf32> to vector<8x128xf32>
      %272 = math.tanh %265 : vector<8x128xf32>
      %273 = arith.mulf %271, %272 : vector<8x128xf32>
      %274 = vector.extract_strided_slice %256 {offsets = [0, 256], sizes = [8, 128], strides = [1, 1]} : vector<8x384xf32> to vector<8x128xf32>
      %275 = math.tanh %270 : vector<8x128xf32>
      %276 = arith.mulf %274, %275 : vector<8x128xf32>
      %277 = arith.index_cast %224 : i32 to index
      %c0_97 = arith.constant 0 : index
      %c0_98 = arith.constant 0 : index
      %278 = vector.load %arg3[%277, %c0_97, %c0_98] : memref<8x8x1xf32, #tpu.memory_space<vmem>>, vector<1x8x1xf32>
      %279 = vector.shape_cast %278 : vector<1x8x1xf32> to vector<8x1xf32>
      %280 = arith.index_cast %225 : i32 to index
      %c0_99 = arith.constant 0 : index
      %c0_100 = arith.constant 0 : index
      %281 = vector.load %arg3[%280, %c0_99, %c0_100] : memref<8x8x1xf32, #tpu.memory_space<vmem>>, vector<1x8x1xf32>
      %282 = vector.shape_cast %281 : vector<1x8x1xf32> to vector<8x1xf32>
      %283 = vector.broadcast %279 : vector<8x1xf32> to vector<8x128xf32>
      %284 = arith.mulf %283, %273 : vector<8x128xf32>
      %285 = arith.truncf %284 : vector<8x128xf32> to vector<8x128xbf16>
      %286 = arith.index_cast %224 : i32 to index
      %c0_101 = arith.constant 0 : index
      %c0_102 = arith.constant 0 : index
      %287 = vector.load %arg12[%286, %c0_101, %c0_102] : memref<8x8x128xbf16, #tpu.memory_space<vmem>>, vector<1x8x128xbf16>
      %288 = vector.shape_cast %287 : vector<1x8x128xbf16> to vector<8x128xbf16>
      %289 = vector.shape_cast %285 : vector<8x128xbf16> to vector<1x8x128xbf16>
      tpu.vector_store %arg12[%286, %c0_101, %c0_102], %289 {strides = array<i32>} : memref<8x8x128xbf16, #tpu.memory_space<vmem>>, vector<1x8x128xbf16>,
      %290 = vector.broadcast %282 : vector<8x1xf32> to vector<8x128xf32>
      %291 = arith.mulf %290, %276 : vector<8x128xf32>
      %292 = arith.truncf %291 : vector<8x128xf32> to vector<8x128xbf16>
      %293 = arith.index_cast %225 : i32 to index
      %c0_103 = arith.constant 0 : index
      %c0_104 = arith.constant 0 : index
      %294 = vector.load %arg13[%293, %c0_103, %c0_104] : memref<8x8x128xbf16, #tpu.memory_space<vmem>>, vector<1x8x128xbf16>
      %295 = vector.shape_cast %294 : vector<1x8x128xbf16> to vector<8x128xbf16>
      %296 = vector.shape_cast %292 : vector<8x128xbf16> to vector<1x8x128xbf16>
      tpu.vector_store %arg13[%293, %c0_103, %c0_104], %296 {strides = array<i32>} : memref<8x8x128xbf16, #tpu.memory_space<vmem>>, vector<1x8x128xbf16>,
      %297 = arith.subf %273, %210 : vector<8x128xf32>
      %298 = vector.broadcast %279 : vector<8x1xf32> to vector<8x128xf32>
      %299 = arith.mulf %298, %297 : vector<8x128xf32>
      %300 = arith.addf %210, %299 : vector<8x128xf32>
      %301 = arith.subf %265, %214 : vector<8x128xf32>
      %302 = vector.broadcast %279 : vector<8x1xf32> to vector<8x128xf32>
      %303 = arith.mulf %302, %301 : vector<8x128xf32>
      %304 = arith.addf %214, %303 : vector<8x128xf32>
      %305 = arith.subf %276, %218 : vector<8x128xf32>
      %306 = vector.broadcast %282 : vector<8x1xf32> to vector<8x128xf32>
      %307 = arith.mulf %306, %305 : vector<8x128xf32>
      %308 = arith.addf %218, %307 : vector<8x128xf32>
      %309 = arith.subf %270, %222 : vector<8x128xf32>
      %310 = vector.broadcast %282 : vector<8x1xf32> to vector<8x128xf32>
      %311 = arith.mulf %310, %309 : vector<8x128xf32>
      %312 = arith.addf %222, %311 : vector<8x128xf32>
      %c3_i32_105 = arith.constant 3 : i32
      %c4_i32_106 = arith.constant 4 : i32
      %313 = arith.muli %arg18, %c4_i32_106 : i32
      %314 = arith.addi %313, %c3_i32_105 : i32
      %c7_i32_107 = arith.constant 7 : i32
      %315 = arith.subi %c7_i32_107, %314 : i32
      %c32_i32_108 = arith.constant 32 : i32
      %316 = arith.muli %42, %c32_i32_108 : i32
      %c8_i32_109 = arith.constant 8 : i32
      %317 = arith.muli %c3_i32_105, %c8_i32_109 : i32
      %318 = arith.addi %316, %317 : i32
      %319 = tpu.assume_multiple %318, 8 : i32
      %c32_i32_110 = arith.constant 32 : i32
      %320 = arith.muli %42, %c32_i32_110 : i32
      %c3_i32_111 = arith.constant 3 : i32
      %321 = arith.subi %c3_i32_111, %c3_i32_105 : i32
      %c8_i32_112 = arith.constant 8 : i32
      %322 = arith.muli %321, %c8_i32_112 : i32
      %323 = arith.addi %320, %322 : i32
      %324 = tpu.assume_multiple %323, 8 : i32
      %325 = arith.index_cast %319 : i32 to index
      %c0_113 = arith.constant 0 : index
      %326 = vector.load %arg16[%325, %c0_113] : memref<64x512xf32, #tpu.memory_space<vmem>>, vector<8x512xf32>
      %327 = arith.truncf %300 : vector<8x128xf32> to vector<8x128xbf16>
      %cst_114 = arith.constant dense<0.000000e+00> : vector<8x512xf32>
      %328 = tpu.matmul %327, %0, %cst_114 {dimension_numbers = #tpu.dot_dimension_numbers<[1], [0], [0], [1], [0, 0, 1, 1], [], []>} : vector<8x128xbf16>, vector<128x512xbf16>, vector<8x512xf32> -> vector<8x512xf32>
      %329 = arith.addf %326, %328 : vector<8x512xf32>
      %330 = arith.index_cast %324 : i32 to index
      %c0_115 = arith.constant 0 : index
      %331 = vector.load %arg17[%330, %c0_115] : memref<64x512xf32, #tpu.memory_space<vmem>>, vector<8x512xf32>
      %332 = arith.truncf %308 : vector<8x128xf32> to vector<8x128xbf16>
      %cst_116 = arith.constant dense<0.000000e+00> : vector<8x512xf32>
      %333 = tpu.matmul %332, %1, %cst_116 {dimension_numbers = #tpu.dot_dimension_numbers<[1], [0], [0], [1], [0, 0, 1, 1], [], []>} : vector<8x128xbf16>, vector<128x512xbf16>, vector<8x512xf32> -> vector<8x512xf32>
      %334 = arith.addf %331, %333 : vector<8x512xf32>
      %335 = vector.extract_strided_slice %329 {offsets = [0, 0], sizes = [8, 384], strides = [1, 1]} : vector<8x512xf32> to vector<8x384xf32>
      %336 = arith.negf %335 : vector<8x384xf32>
      %337 = math.exp %336 : vector<8x384xf32>
      %cst_117 = arith.constant 1.000000e+00 : f32
      %338 = vector.broadcast %cst_117 : f32 to vector<8x384xf32>
      %339 = arith.addf %338, %337 : vector<8x384xf32>
      %340 = arith.divf %338, %339 : vector<8x384xf32>
      %341 = vector.extract_strided_slice %334 {offsets = [0, 0], sizes = [8, 384], strides = [1, 1]} : vector<8x512xf32> to vector<8x384xf32>
      %342 = arith.negf %341 : vector<8x384xf32>
      %343 = math.exp %342 : vector<8x384xf32>
      %cst_118 = arith.constant 1.000000e+00 : f32
      %344 = vector.broadcast %cst_118 : f32 to vector<8x384xf32>
      %345 = arith.addf %344, %343 : vector<8x384xf32>
      %346 = arith.divf %344, %345 : vector<8x384xf32>
      %347 = vector.extract_strided_slice %329 {offsets = [0, 384], sizes = [8, 128], strides = [1, 1]} : vector<8x512xf32> to vector<8x128xf32>
      %348 = math.tanh %347 : vector<8x128xf32>
      %349 = vector.extract_strided_slice %334 {offsets = [0, 384], sizes = [8, 128], strides = [1, 1]} : vector<8x512xf32> to vector<8x128xf32>
      %350 = math.tanh %349 : vector<8x128xf32>
      %351 = vector.extract_strided_slice %340 {offsets = [0, 128], sizes = [8, 128], strides = [1, 1]} : vector<8x384xf32> to vector<8x128xf32>
      %352 = arith.mulf %351, %304 : vector<8x128xf32>
      %353 = vector.extract_strided_slice %340 {offsets = [0, 0], sizes = [8, 128], strides = [1, 1]} : vector<8x384xf32> to vector<8x128xf32>
      %354 = arith.mulf %353, %348 : vector<8x128xf32>
      %355 = arith.addf %352, %354 : vector<8x128xf32>
      %356 = vector.extract_strided_slice %346 {offsets = [0, 128], sizes = [8, 128], strides = [1, 1]} : vector<8x384xf32> to vector<8x128xf32>
      %357 = arith.mulf %356, %312 : vector<8x128xf32>
      %358 = vector.extract_strided_slice %346 {offsets = [0, 0], sizes = [8, 128], strides = [1, 1]} : vector<8x384xf32> to vector<8x128xf32>
      %359 = arith.mulf %358, %350 : vector<8x128xf32>
      %360 = arith.addf %357, %359 : vector<8x128xf32>
      %361 = vector.extract_strided_slice %340 {offsets = [0, 256], sizes = [8, 128], strides = [1, 1]} : vector<8x384xf32> to vector<8x128xf32>
      %362 = math.tanh %355 : vector<8x128xf32>
      %363 = arith.mulf %361, %362 : vector<8x128xf32>
      %364 = vector.extract_strided_slice %346 {offsets = [0, 256], sizes = [8, 128], strides = [1, 1]} : vector<8x384xf32> to vector<8x128xf32>
      %365 = math.tanh %360 : vector<8x128xf32>
      %366 = arith.mulf %364, %365 : vector<8x128xf32>
      %367 = arith.index_cast %314 : i32 to index
      %c0_119 = arith.constant 0 : index
      %c0_120 = arith.constant 0 : index
      %368 = vector.load %arg3[%367, %c0_119, %c0_120] : memref<8x8x1xf32, #tpu.memory_space<vmem>>, vector<1x8x1xf32>
      %369 = vector.shape_cast %368 : vector<1x8x1xf32> to vector<8x1xf32>
      %370 = arith.index_cast %315 : i32 to index
      %c0_121 = arith.constant 0 : index
      %c0_122 = arith.constant 0 : index
      %371 = vector.load %arg3[%370, %c0_121, %c0_122] : memref<8x8x1xf32, #tpu.memory_space<vmem>>, vector<1x8x1xf32>
      %372 = vector.shape_cast %371 : vector<1x8x1xf32> to vector<8x1xf32>
      %373 = vector.broadcast %369 : vector<8x1xf32> to vector<8x128xf32>
      %374 = arith.mulf %373, %363 : vector<8x128xf32>
      %375 = arith.truncf %374 : vector<8x128xf32> to vector<8x128xbf16>
      %376 = arith.index_cast %314 : i32 to index
      %c0_123 = arith.constant 0 : index
      %c0_124 = arith.constant 0 : index
      %377 = vector.load %arg12[%376, %c0_123, %c0_124] : memref<8x8x128xbf16, #tpu.memory_space<vmem>>, vector<1x8x128xbf16>
      %378 = vector.shape_cast %377 : vector<1x8x128xbf16> to vector<8x128xbf16>
      %379 = vector.shape_cast %375 : vector<8x128xbf16> to vector<1x8x128xbf16>
      tpu.vector_store %arg12[%376, %c0_123, %c0_124], %379 {strides = array<i32>} : memref<8x8x128xbf16, #tpu.memory_space<vmem>>, vector<1x8x128xbf16>,
      %380 = vector.broadcast %372 : vector<8x1xf32> to vector<8x128xf32>
      %381 = arith.mulf %380, %366 : vector<8x128xf32>
      %382 = arith.truncf %381 : vector<8x128xf32> to vector<8x128xbf16>
      %383 = arith.index_cast %315 : i32 to index
      %c0_125 = arith.constant 0 : index
      %c0_126 = arith.constant 0 : index
      %384 = vector.load %arg13[%383, %c0_125, %c0_126] : memref<8x8x128xbf16, #tpu.memory_space<vmem>>, vector<1x8x128xbf16>
      %385 = vector.shape_cast %384 : vector<1x8x128xbf16> to vector<8x128xbf16>
      %386 = vector.shape_cast %382 : vector<8x128xbf16> to vector<1x8x128xbf16>
      tpu.vector_store %arg13[%383, %c0_125, %c0_126], %386 {strides = array<i32>} : memref<8x8x128xbf16, #tpu.memory_space<vmem>>, vector<1x8x128xbf16>,
      %387 = arith.subf %363, %300 : vector<8x128xf32>
      %388 = vector.broadcast %369 : vector<8x1xf32> to vector<8x128xf32>
      %389 = arith.mulf %388, %387 : vector<8x128xf32>
      %390 = arith.addf %300, %389 : vector<8x128xf32>
      %391 = arith.subf %355, %304 : vector<8x128xf32>
      %392 = vector.broadcast %369 : vector<8x1xf32> to vector<8x128xf32>
      %393 = arith.mulf %392, %391 : vector<8x128xf32>
      %394 = arith.addf %304, %393 : vector<8x128xf32>
      %395 = arith.subf %366, %308 : vector<8x128xf32>
      %396 = vector.broadcast %372 : vector<8x1xf32> to vector<8x128xf32>
      %397 = arith.mulf %396, %395 : vector<8x128xf32>
      %398 = arith.addf %308, %397 : vector<8x128xf32>
      %399 = arith.subf %360, %312 : vector<8x128xf32>
      %400 = vector.broadcast %372 : vector<8x1xf32> to vector<8x128xf32>
      %401 = arith.mulf %400, %399 : vector<8x128xf32>
      %402 = arith.addf %312, %401 : vector<8x128xf32>
      %c4_i32_127 = arith.constant 4 : i32
      scf.yield %390, %394, %398, %402 : vector<8x128xf32>, vector<8x128xf32>, vector<8x128xf32>, vector<8x128xf32>
    }
    %c2_i32_30 = arith.constant 2 : i32
    %c0_31 = arith.constant 0 : index
    %c0_32 = arith.constant 0 : index
    %27 = vector.load %arg14[%c0_31, %c0_32] : memref<8x128xf32, #tpu.memory_space<vmem>>, vector<8x128xf32>
    tpu.vector_store %arg14[%c0_31, %c0_32], %26#0 {strides = array<i32>} : memref<8x128xf32, #tpu.memory_space<vmem>>, vector<8x128xf32>,
    %c0_33 = arith.constant 0 : index
    %c0_34 = arith.constant 0 : index
    %28 = vector.load %arg15[%c0_33, %c0_34] : memref<8x128xf32, #tpu.memory_space<vmem>>, vector<8x128xf32>
    tpu.vector_store %arg15[%c0_33, %c0_34], %26#2 {strides = array<i32>} : memref<8x128xf32, #tpu.memory_space<vmem>>, vector<8x128xf32>,
    return
  }
  func.func @transform_0(%arg0: i32) -> (i32, i32) {
    %c0_i32 = arith.constant 0 : i32
    %c0_i32_0 = arith.constant 0 : i32
    %c0_i32_1 = arith.constant 0 : i32
    return %c0_i32, %c0_i32_0 : i32, i32
  }
  func.func @transform_1(%arg0: i32) -> (i32, i32) {
    %c0_i32 = arith.constant 0 : i32
    %c0_i32_0 = arith.constant 0 : i32
    %c0_i32_1 = arith.constant 0 : i32
    return %c0_i32, %c0_i32_0 : i32, i32
  }
  func.func @transform_2(%arg0: i32) -> (i32, i32, i32) {
    %c0_i32 = arith.constant 0 : i32
    %c0_i32_0 = arith.constant 0 : i32
    %c0_i32_1 = arith.constant 0 : i32
    %c0_i32_2 = arith.constant 0 : i32
    return %c0_i32, %c0_i32_0, %c0_i32_1 : i32, i32, i32
  }
  func.func @transform_3(%arg0: i32) -> (i32, i32) {
    %c0_i32 = arith.constant 0 : i32
    %c0_i32_0 = arith.constant 0 : i32
    %c0_i32_1 = arith.constant 0 : i32
    return %c0_i32, %c0_i32_0 : i32, i32
  }
  func.func @transform_4(%arg0: i32) -> (i32, i32) {
    %c0_i32 = arith.constant 0 : i32
    %c0_i32_0 = arith.constant 0 : i32
    %c0_i32_1 = arith.constant 0 : i32
    return %c0_i32, %c0_i32_0 : i32, i32
  }
  func.func @transform_5(%arg0: i32) -> (i32, i32) {
    %c0_i32 = arith.constant 0 : i32
    %c0_i32_0 = arith.constant 0 : i32
    %c0_i32_1 = arith.constant 0 : i32
    return %c0_i32, %c0_i32_0 : i32, i32
  }
  func.func @transform_6(%arg0: i32) -> (i32, i32) {
    %c0_i32 = arith.constant 0 : i32
    %c0_i32_0 = arith.constant 0 : i32
    %c0_i32_1 = arith.constant 0 : i32
    return %c0_i32, %c0_i32_0 : i32, i32
  }
  func.func @transform_7(%arg0: i32) -> (i32, i32) {
    %c0_i32 = arith.constant 0 : i32
    %c0_i32_0 = arith.constant 0 : i32
    %c0_i32_1 = arith.constant 0 : i32
    return %c0_i32, %c0_i32_0 : i32, i32
  }
  func.func @transform_8(%arg0: i32) -> (i32, i32) {
    %c0_i32 = arith.constant 0 : i32
    %c0_i32_0 = arith.constant 0 : i32
    %c0_i32_1 = arith.constant 0 : i32
    return %c0_i32, %c0_i32_0 : i32, i32
  }
  func.func @transform_9(%arg0: i32) -> (i32, i32) {
    %c0_i32 = arith.constant 0 : i32
    %c0_i32_0 = arith.constant 0 : i32
    %c0_i32_1 = arith.constant 0 : i32
    return %c0_i32, %c0_i32_0 : i32, i32
  }
  func.func @transform_10(%arg0: i32) -> (i32, i32) {
    %c0_i32 = arith.constant 0 : i32
    %c0_i32_0 = arith.constant 0 : i32
    %c0_i32_1 = arith.constant 0 : i32
    return %c0_i32, %c0_i32_0 : i32, i32
  }
  func.func @transform_11(%arg0: i32) -> (i32, i32, i32) {
    %c0_i32 = arith.constant 0 : i32
    %c0_i32_0 = arith.constant 0 : i32
    %c0_i32_1 = arith.constant 0 : i32
    %c0_i32_2 = arith.constant 0 : i32
    return %c0_i32, %c0_i32_0, %c0_i32_1 : i32, i32, i32
  }
  func.func @transform_12(%arg0: i32) -> (i32, i32, i32) {
    %c0_i32 = arith.constant 0 : i32
    %c0_i32_0 = arith.constant 0 : i32
    %c0_i32_1 = arith.constant 0 : i32
    %c0_i32_2 = arith.constant 0 : i32
    return %c0_i32, %c0_i32_0, %c0_i32_1 : i32, i32, i32
  }
  func.func @transform_13(%arg0: i32) -> (i32, i32) {
    %c0_i32 = arith.constant 0 : i32
    %c0_i32_0 = arith.constant 0 : i32
    %c0_i32_1 = arith.constant 0 : i32
    return %c0_i32, %c0_i32_0 : i32, i32
  }
  func.func @transform_14(%arg0: i32) -> (i32, i32) {
    %c0_i32 = arith.constant 0 : i32
    %c0_i32_0 = arith.constant 0 : i32
    %c0_i32_1 = arith.constant 0 : i32
    return %c0_i32, %c0_i32_0 : i32, i32
  }
}

</mosaic_0001>

<bundles_post_ra>
// kernel: bilstm_forward.2
= control target key start
LH: loop header
LB: loop body
LE: loop exit
PB: predicated region body
PF: predicated region fallthrough
CT: control target
= control target key end

     0   :  { %17 = vsyncpa [#allocation5], 0  ;;  %s5434_s0 = inlined_call_operand.vmem [shape: bf16[64,128], index: 0, kind: input, shape index: {}]   ;;  %s5435_s1 = inlined_call_operand.vmem [shape: f32[8,8,1], index: 1, kind: input, shape index: {}]   ;;  %s5436_s2 = inlined_call_operand.vmem [shape: bf16[128,512], index: 2, kind: input, shape index: {}]   ;;  %s5437_s3 = inlined_call_operand.hbm [shape: bf16[128,512], index: 3, kind: input, shape index: {}]   ;;  %s5438_s4 = inlined_call_operand.hbm [shape: bf16[128,512], index: 4, kind: input, shape index: {}]   ;;  %s5439_s5 = inlined_call_operand.hbm [shape: bf16[128,512], index: 5, kind: input, shape index: {}]   ;;  %s5440_s6 = inlined_call_operand.vmem [shape: f32[1,512], index: 6, kind: input, shape index: {}]   ;;  %s5441_s7 = inlined_call_operand.vmem [shape: f32[1,512], index: 7, kind: input, shape index: {}]   ;;  %s5442_s8 = inlined_call_operand.vmem [shape: bf16[8,8,128], index: 8, kind: output, shape index: {0}]   ;;  %s5443_s9 = inlined_call_operand.vmem [shape: bf16[8,8,128], index: 9, kind: output, shape index: {1}]   ;;  %s5444_s10 = inlined_call_operand.hbm [shape: f32[8,128], index: 10, kind: output, shape index: {2}]   ;;  %s5445_s11 = inlined_call_operand.hbm [shape: f32[8,128], index: 11, kind: output, shape index: {3}]  }
   0x1   :  { %18 = vsyncpa [#allocation8], 0 }
   0x2   :  { %19 = vsyncpa [#allocation6], 0 }
   0x3   :  { %20 = vsyncpa [#allocation12], 0  ;;  %s4023_s17 = smov [#allocation7]   ;;  %s4024_s19 = smov [#allocation4]  }
   0x4   :  { %s44_s18 = sshll.u32 %s4023_s17, 4  ;;  %s32_s20 = sshll.u32 %s4024_s19, 4  ;;  %s45_s18 = int_to_ptr.vmem [resolvable:$true] %s44_s18  ;;  %s4093_s20 = int_to_ptr.vmem [resolvable:$true] %s32_s20 }
   0x5   :  { %s3865_s23 = scalar_lea.hbm %s5438_s4, 4096 }
   0x6   :  { %p3866_p0 = scmp.ne.s32.totalorder %s5438_s4, %s3865_s23  ;;  %p3869_p1 = scmp.lt.u32.totalorder %s3865_s23, %s5438_s4 }
   0x8   :  { %p3871_p2 = pnand %p3869_p1, %p3866_p0 }
   0xa   :  { %3874 = shalt.err (!%p3871_p2)
}
   0xb   :  { %s3875_s28 = scalar_lea.vmem %s45_s18, 4096  ;;  %p3880_p4 = scmp.lt.s32.totalorder %s45_s18, %s45_s18 }
   0xc   :  { %p3876_p3 = scmp.ne.s32.totalorder %s45_s18, %s3875_s28  ;;  %p3881_p5 = scmp.lt.s32.totalorder %s3875_s28, %s3875_s28 }
   0xe   :  { %p3882_p6 = por %p3881_p5, %p3880_p4 }
  0x10   :  { %p3883_p7 = pnand %p3882_p6, %p3876_p3 }
  0x12   :  { %3886 = shalt.err (!%p3883_p7)
}
  0x13   :  { %s4025_s29 = smov 256   ;;  %s4026_s30 = smov 16  }
  0x14   :  { %50 = dma.hbm_to_vmem [thread:$0]  %s5438_s4, 4096, %s45_s18, [#allocation8], %s4025_s29, %s4025_s29, %s4026_s30  }
  0x15   :  { %s3887_s16 = scalar_lea.hbm %s5437_s3, 4096 }
  0x16   :  { %p3888_p8 = scmp.ne.s32.totalorder %s5437_s3, %s3887_s16  ;;  %p3891_p9 = scmp.lt.u32.totalorder %s3887_s16, %s5437_s3 }
  0x18   :  { %p3893_p10 = pnand %p3891_p9, %p3888_p8 }
  0x1a   :  { %3896 = shalt.err (!%p3893_p10)
}
  0x1b   :  { %s3897_s23 = scalar_lea.vmem %s4093_s20, 4096  ;;  %p3902_p12 = scmp.lt.s32.totalorder %s4093_s20, %s4093_s20 }
  0x1c   :  { %p3898_p11 = scmp.ne.s32.totalorder %s4093_s20, %s3897_s23  ;;  %p3903_p13 = scmp.lt.s32.totalorder %s3897_s23, %s3897_s23 }
  0x1e   :  { %p3904_p0 = por %p3903_p13, %p3902_p12 }
  0x20   :  { %p3905_p1 = pnand %p3904_p0, %p3898_p11 }
  0x22   :  { %3908 = shalt.err (!%p3905_p1)
}
  0x23   :  { %38 = dma.hbm_to_vmem [thread:$0]  %s5437_s3, 4096, %s4093_s20, [#allocation5], %s4025_s29, %s4025_s29, %s4026_s30  }
  0x24   :  { %s4027_s24 = smov [#allocation9]   ;;  %s3909_s28 = scalar_lea.hbm %s5439_s5, 4096 }
  0x25   :  { %s56_s25 = sshll.u32 %s4027_s24, 4  ;;  %p3910_p2 = scmp.ne.s32.totalorder %s5439_s5, %s3909_s28  ;;  %s57_s25 = int_to_ptr.vmem [resolvable:$true] %s56_s25 }
  0x26   :  { %p3913_p3 = scmp.lt.u32.totalorder %s3909_s28, %s5439_s5 }
  0x28   :  { %p3915_p4 = pnand %p3913_p3, %p3910_p2 }
  0x2a   :  { %3918 = shalt.err (!%p3915_p4)
}
  0x2b   :  { %s3919_s16 = scalar_lea.vmem %s57_s25, 4096  ;;  %p3924_p6 = scmp.lt.s32.totalorder %s57_s25, %s57_s25 }
  0x2c   :  { %p3920_p5 = scmp.ne.s32.totalorder %s57_s25, %s3919_s16  ;;  %p3925_p7 = scmp.lt.s32.totalorder %s3919_s16, %s3919_s16 }
  0x2e   :  { %p3926_p8 = por %p3925_p7, %p3924_p6 }
  0x30   :  { %p3927_p9 = pnand %p3926_p8, %p3920_p5 }
  0x32   :  { %3930 = shalt.err (!%p3927_p9)
}
  0x33   :  { %62 = dma.hbm_to_vmem [thread:$0]  %s5439_s5, 4096, %s57_s25, [#allocation8], %s4025_s29, %s4025_s29, %s4026_s30  }
  0x34   :  { %3995 = dma.done.wait [#allocation5], 4096  }
  0x35   :  { %3996 = vsyncadd [#allocation5], 4294963200 }
  0x36   :  { %3997 = dma.done.wait [#allocation8], 8192  }
  0x37   :  { %3998 = vsyncadd [#allocation8], 4294959104  ;;  %v5446_v0 = vmov 0   ;;  %v4147_v1 = vld [vmem:[#allocation7] sm:$0xff]  ;;  %v4149_v2 = vld [vmem:[#allocation7 + $0x8] sm:$0xff] }
  0x38   :  { %383 = vmatprep.mubr.bf16.mxu0 %v5446_v0  ;;  %436 = vmatprep.mubr.bf16.mxu1 %v5446_v0  ;;  %5620 = vst [vmem:[#allocation17_spill] sm:$0xff] %v4147_v1  ;;  %5621 = vst [vmem:[#allocation18_spill] sm:$0xff] %v4149_v2  ;;  %v4151_v3 = vld [vmem:[#allocation7 + $0x10] sm:$0xff]  ;;  %v4153_v4 = vld [vmem:[#allocation7 + $0x18] sm:$0xff] }
  0x39   :  { %5622 = vst [vmem:[#allocation19_spill] sm:$0xff] %v4151_v3  ;;  %5623 = vst [vmem:[#allocation20_spill] sm:$0xff] %v4153_v4  ;;  %v4155_v5 = vld [vmem:[#allocation7 + $0x20] sm:$0xff]  ;;  %v4157_v6 = vld [vmem:[#allocation7 + $0x28] sm:$0xff] }
  0x3a   :  { %5624 = vst [vmem:[#allocation21_spill] sm:$0xff] %v4155_v5  ;;  %5625 = vst [vmem:[#allocation22_spill] sm:$0xff] %v4157_v6  ;;  %v4159_v7 = vld [vmem:[#allocation7 + $0x30] sm:$0xff]  ;;  %v4161_v8 = vld [vmem:[#allocation7 + $0x38] sm:$0xff] }
  0x3b   :  { %5626 = vst [vmem:[#allocation23_spill] sm:$0xff] %v4159_v7  ;;  %5627 = vst [vmem:[#allocation24_spill] sm:$0xff] %v4161_v8  ;;  %v4163_v9 = vld [vmem:[#allocation7 + $0x40] sm:$0xff]  ;;  %v4165_v10 = vld [vmem:[#allocation7 + $0x48] sm:$0xff] }
  0x3c   :  { %5628 = vst [vmem:[#allocation25_spill] sm:$0xff] %v4163_v9  ;;  %5629 = vst [vmem:[#allocation26_spill] sm:$0xff] %v4165_v10  ;;  %v4167_v11 = vld [vmem:[#allocation7 + $0x50] sm:$0xff]  ;;  %v4169_v12 = vld [vmem:[#allocation7 + $0x58] sm:$0xff] }
  0x3d   :  { %5630 = vst [vmem:[#allocation27_spill] sm:$0xff] %v4167_v11  ;;  %5631 = vst [vmem:[#allocation28_spill] sm:$0xff] %v4169_v12  ;;  %v4171_v13 = vld [vmem:[#allocation7 + $0x60] sm:$0xff]  ;;  %v4173_v14 = vld [vmem:[#allocation7 + $0x68] sm:$0xff] }
  0x3e   :  { %5632 = vst [vmem:[#allocation29_spill] sm:$0xff] %v4171_v13  ;;  %5633 = vst [vmem:[#allocation30_spill] sm:$0xff] %v4173_v14  ;;  %v4175_v15 = vld [vmem:[#allocation7 + $0x70] sm:$0xff]  ;;  %v4177_v16 = vld [vmem:[#allocation7 + $0x78] sm:$0xff] }
  0x3f   :  { %5634 = vst [vmem:[#allocation31_spill] sm:$0xff] %v4175_v15  ;;  %5635 = vst [vmem:[#allocation32_spill] sm:$0xff] %v4177_v16  ;;  %v4179_v17 = vld [vmem:[#allocation7 + $0x80] sm:$0xff]  ;;  %v4181_v18 = vld [vmem:[#allocation7 + $0x88] sm:$0xff] }
  0x40   :  { %5636 = vst [vmem:[#allocation33_spill] sm:$0xff] %v4179_v17  ;;  %5637 = vst [vmem:[#allocation34_spill] sm:$0xff] %v4181_v18  ;;  %v4183_v19 = vld [vmem:[#allocation7 + $0x90] sm:$0xff]  ;;  %v4185_v20 = vld [vmem:[#allocation7 + $0x98] sm:$0xff] }
  0x41   :  { %5638 = vst [vmem:[#allocation35_spill] sm:$0xff] %v4183_v19  ;;  %5639 = vst [vmem:[#allocation36_spill] sm:$0xff] %v4185_v20  ;;  %v4187_v21 = vld [vmem:[#allocation7 + $0xa0] sm:$0xff]  ;;  %v4189_v22 = vld [vmem:[#allocation7 + $0xa8] sm:$0xff] }
  0x42   :  { %5640 = vst [vmem:[#allocation37_spill] sm:$0xff] %v4187_v21  ;;  %5641 = vst [vmem:[#allocation38_spill] sm:$0xff] %v4189_v22  ;;  %v4191_v23 = vld [vmem:[#allocation7 + $0xb0] sm:$0xff]  ;;  %v4193_v24 = vld [vmem:[#allocation7 + $0xb8] sm:$0xff] }
  0x43   :  { %5642 = vst [vmem:[#allocation39_spill] sm:$0xff] %v4191_v23  ;;  %5643 = vst [vmem:[#allocation40_spill] sm:$0xff] %v4193_v24  ;;  %v4195_v25 = vld [vmem:[#allocation7 + $0xc0] sm:$0xff]  ;;  %v4197_v26 = vld [vmem:[#allocation7 + $0xc8] sm:$0xff] }
  0x44   :  { %5644 = vst [vmem:[#allocation41_spill] sm:$0xff] %v4195_v25  ;;  %5645 = vst [vmem:[#allocation42_spill] sm:$0xff] %v4197_v26  ;;  %v4199_v27 = vld [vmem:[#allocation7 + $0xd0] sm:$0xff]  ;;  %v4201_v28 = vld [vmem:[#allocation7 + $0xd8] sm:$0xff] }
  0x45   :  { %5646 = vst [vmem:[#allocation43_spill] sm:$0xff] %v4199_v27  ;;  %5647 = vst [vmem:[#allocation44_spill] sm:$0xff] %v4201_v28  ;;  %v4203_v29 = vld [vmem:[#allocation7 + $0xe0] sm:$0xff]  ;;  %v4205_v30 = vld [vmem:[#allocation7 + $0xe8] sm:$0xff] }
  0x46   :  { %5648 = vst [vmem:[#allocation45_spill] sm:$0xff] %v4203_v29  ;;  %5649 = vst [vmem:[#allocation46_spill] sm:$0xff] %v4205_v30  ;;  %v4207_v31 = vld [vmem:[#allocation7 + $0xf0] sm:$0xff]  ;;  %v4209_v32 = vld [vmem:[#allocation7 + $0xf8] sm:$0xff] }
  0x47   :  { %5650 = vst [vmem:[#allocation47_spill] sm:$0xff] %v4207_v31  ;;  %5651 = vst [vmem:[#allocation48_spill] sm:$0xff] %v4209_v32  ;;  %v4211_v33 = vld [vmem:[#allocation9] sm:$0xff]  ;;  %v4213_v34 = vld [vmem:[#allocation9 + $0x8] sm:$0xff] }
  0x48   :  { %5652 = vst [vmem:[#allocation49_spill] sm:$0xff] %v4211_v33  ;;  %5653 = vst [vmem:[#allocation50_spill] sm:$0xff] %v4213_v34  ;;  %v4215_v35 = vld [vmem:[#allocation9 + $0x10] sm:$0xff]  ;;  %v4217_v36 = vld [vmem:[#allocation9 + $0x18] sm:$0xff] }
  0x49   :  { %5654 = vst [vmem:[#allocation51_spill] sm:$0xff] %v4215_v35  ;;  %5655 = vst [vmem:[#allocation52_spill] sm:$0xff] %v4217_v36  ;;  %v4219_v37 = vld [vmem:[#allocation9 + $0x20] sm:$0xff]  ;;  %v4221_v38 = vld [vmem:[#allocation9 + $0x28] sm:$0xff] }
  0x4a   :  { %5656 = vst [vmem:[#allocation53_spill] sm:$0xff] %v4219_v37  ;;  %5657 = vst [vmem:[#allocation54_spill] sm:$0xff] %v4221_v38  ;;  %v4223_v39 = vld [vmem:[#allocation9 + $0x30] sm:$0xff]  ;;  %v4225_v40 = vld [vmem:[#allocation9 + $0x38] sm:$0xff] }
  0x4b   :  { %5658 = vst [vmem:[#allocation55_spill] sm:$0xff] %v4223_v39  ;;  %5659 = vst [vmem:[#allocation56_spill] sm:$0xff] %v4225_v40  ;;  %v4227_v41 = vld [vmem:[#allocation9 + $0x40] sm:$0xff]  ;;  %v4229_v42 = vld [vmem:[#allocation9 + $0x48] sm:$0xff] }
  0x4c   :  { %5660 = vst [vmem:[#allocation57_spill] sm:$0xff] %v4227_v41  ;;  %5661 = vst [vmem:[#allocation58_spill] sm:$0xff] %v4229_v42  ;;  %v4231_v43 = vld [vmem:[#allocation9 + $0x50] sm:$0xff]  ;;  %v4233_v44 = vld [vmem:[#allocation9 + $0x58] sm:$0xff] }
  0x4d   :  { %5662 = vst [vmem:[#allocation59_spill] sm:$0xff] %v4231_v43  ;;  %5663 = vst [vmem:[#allocation60_spill] sm:$0xff] %v4233_v44  ;;  %v4235_v45 = vld [vmem:[#allocation9 + $0x60] sm:$0xff]  ;;  %v4237_v46 = vld [vmem:[#allocation9 + $0x68] sm:$0xff] }
  0x4e   :  { %5664 = vst [vmem:[#allocation61_spill] sm:$0xff] %v4235_v45  ;;  %5665 = vst [vmem:[#allocation62_spill] sm:$0xff] %v4237_v46  ;;  %v4239_v47 = vld [vmem:[#allocation9 + $0x70] sm:$0xff]  ;;  %v4241_v48 = vld [vmem:[#allocation9 + $0x78] sm:$0xff] }
  0x4f   :  { %5666 = vst [vmem:[#allocation63_spill] sm:$0xff] %v4239_v47  ;;  %5667 = vst [vmem:[#allocation64_spill] sm:$0xff] %v4241_v48  ;;  %v4243_v49 = vld [vmem:[#allocation9 + $0x80] sm:$0xff]  ;;  %v4245_v50 = vld [vmem:[#allocation9 + $0x88] sm:$0xff] }
  0x50   :  { %5668 = vst [vmem:[#allocation65_spill] sm:$0xff] %v4243_v49  ;;  %5669 = vst [vmem:[#allocation66_spill] sm:$0xff] %v4245_v50  ;;  %v4247_v51 = vld [vmem:[#allocation9 + $0x90] sm:$0xff]  ;;  %v4249_v52 = vld [vmem:[#allocation9 + $0x98] sm:$0xff] }
  0x51   :  { %5670 = vst [vmem:[#allocation67_spill] sm:$0xff] %v4247_v51  ;;  %5671 = vst [vmem:[#allocation68_spill] sm:$0xff] %v4249_v52  ;;  %v4251_v53 = vld [vmem:[#allocation9 + $0xa0] sm:$0xff]  ;;  %v4253_v54 = vld [vmem:[#allocation9 + $0xa8] sm:$0xff]  ;;  %v5684_v52 = vmov 0  }
  0x52   :  { %5672 = vst [vmem:[#allocation69_spill] sm:$0xff] %v4251_v53  ;;  %5673 = vst [vmem:[#allocation70_spill] sm:$0xff] %v4253_v54  ;;  %v4255_v55 = vld [vmem:[#allocation9 + $0xb0] sm:$0xff]  ;;  %v4257_v56 = vld [vmem:[#allocation9 + $0xb8] sm:$0xff] }
  0x53   :  { %5674 = vst [vmem:[#allocation71_spill] sm:$0xff] %v4255_v55  ;;  %5675 = vst [vmem:[#allocation72_spill] sm:$0xff] %v4257_v56  ;;  %v4259_v57 = vld [vmem:[#allocation9 + $0xc0] sm:$0xff]  ;;  %v4261_v58 = vld [vmem:[#allocation9 + $0xc8] sm:$0xff] }
  0x54   :  { %5676 = vst [vmem:[#allocation73_spill] sm:$0xff] %v4259_v57  ;;  %5677 = vst [vmem:[#allocation74_spill] sm:$0xff] %v4261_v58  ;;  %v4263_v59 = vld [vmem:[#allocation9 + $0xd0] sm:$0xff]  ;;  %v4265_v60 = vld [vmem:[#allocation9 + $0xd8] sm:$0xff] }
  0x55   :  { %5678 = vst [vmem:[#allocation75_spill] sm:$0xff] %v4263_v59  ;;  %5679 = vst [vmem:[#allocation76_spill] sm:$0xff] %v4265_v60  ;;  %v4267_v61 = vld [vmem:[#allocation9 + $0xe0] sm:$0xff]  ;;  %v4269_v62 = vld [vmem:[#allocation9 + $0xe8] sm:$0xff] }
  0x56   :  { %5680 = vst [vmem:[#allocation77_spill] sm:$0xff] %v4267_v61  ;;  %5681 = vst [vmem:[#allocation78_spill] sm:$0xff] %v4269_v62  ;;  %v4271_v63 = vld [vmem:[#allocation9 + $0xf0] sm:$0xff]  ;;  %v4273_v0 = vld [vmem:[#allocation9 + $0xf8] sm:$0xff] }
  0x57   :  { %5682 = vst [vmem:[#allocation79_spill] sm:$0xff] %v4271_v63  ;;  %5683 = vst [vmem:[#allocation80_spill] sm:$0xff] %v4273_v0  ;;  %v3535_v54 = vld [vmem:[%s5436_s2 + $0x4] ss:$16 sps:$4 sm:$0xff]   ;;  %v3537_v58 = vld [vmem:[%s5436_s2 + $0xc] ss:$16 sps:$4 sm:$0xff]  }
  0x58   :  { %v3539_v60 = vld [vmem:[%s5436_s2] ss:$16 sps:$4 sm:$0xff]   ;;  %v3540_v62 = vld [vmem:[%s5436_s2 + $0x8] ss:$16 sps:$4 sm:$0xff]   ;;  %351 = vmatprep.subr.bf16.mxu0 %v3535_v54  ;;  %v3541_v0 = vld [vmem:[%s5436_s2 + $0x24] ss:$16 sps:$4 sm:$0xff]   ;;  %404 = vmatprep.subr.bf16.mxu1 %v3537_v58 }
  0x59   :  { %352 = vmatpush1.bf16.msra.mxu0 %v3539_v60  ;;  %v3543_v61 = vld [vmem:[%s5436_s2 + $0x2c] ss:$16 sps:$4 sm:$0xff]   ;;  %405 = vmatpush1.bf16.msra.mxu1 %v3540_v62  ;;  %v3545_v63 = vld [vmem:[%s5436_s2 + $0x20] ss:$16 sps:$4 sm:$0xff]   ;;  %v3546_v54 = vld [vmem:[%s5436_s2 + $0x28] ss:$16 sps:$4 sm:$0xff]  }
  0x5a   :  { %353 = vmatprep.subr.bf16.mxu0 %v3541_v0  ;;  %406 = vmatprep.subr.bf16.mxu1 %v3543_v61  ;;  %v3547_v58 = vld [vmem:[%s5436_s2 + $0x44] ss:$16 sps:$4 sm:$0xff]   ;;  %v3549_v60 = vld [vmem:[%s5436_s2 + $0x4c] ss:$16 sps:$4 sm:$0xff]   ;;  %v3551_v0 = vld [vmem:[%s5436_s2 + $0x40] ss:$16 sps:$4 sm:$0xff]  }
  0x5b   :  { %v3552_v62 = vld [vmem:[%s5436_s2 + $0x48] ss:$16 sps:$4 sm:$0xff]   ;;  %v3553_v61 = vld [vmem:[%s5436_s2 + $0x64] ss:$16 sps:$4 sm:$0xff]   ;;  %v3555_v57 = vld [vmem:[%s5436_s2 + $0x6c] ss:$16 sps:$4 sm:$0xff]  }
  0x5c   :  { %v3581_v59 = vld [vmem:[%s5436_s2 + $0xe0] ss:$16 sps:$4 sm:$0xff]   ;;  %v3587_v53 = vld [vmem:[#allocation4 + $0x8] ss:$16 sps:$4 sm:$0xff]   ;;  %v3592_v55 = vld [vmem:[#allocation4 + $0x24] ss:$16 sps:$4 sm:$0xff]  }
  0x5d   :  { %354 = vmatpush1.bf16.msra.mxu0 %v3545_v63  ;;  %407 = vmatpush1.bf16.msra.mxu1 %v3546_v54  ;;  %v3557_v63 = vld [vmem:[%s5436_s2 + $0x60] ss:$16 sps:$4 sm:$0xff]   ;;  %v3558_v54 = vld [vmem:[%s5436_s2 + $0x68] ss:$16 sps:$4 sm:$0xff]   ;;  %v3629_v49 = vld [vmem:[#allocation4 + $0xe4] ss:$16 sps:$4 sm:$0xff]  }
  0x5e   :  { %355 = vmatprep.subr.bf16.mxu0 %v3547_v58  ;;  %408 = vmatprep.subr.bf16.mxu1 %v3549_v60  ;;  %v3559_v58 = vld [vmem:[%s5436_s2 + $0x84] ss:$16 sps:$4 sm:$0xff]   ;;  %v3561_v60 = vld [vmem:[%s5436_s2 + $0x8c] ss:$16 sps:$4 sm:$0xff]   ;;  %v3584_v56 = vld [vmem:[#allocation4] ss:$16 sps:$4 sm:$0xff]  }
  0x5f   :  { %v3590_v50 = vld [vmem:[#allocation4 + $0x20] ss:$16 sps:$4 sm:$0xff]  }
  0x61   :  { %356 = vmatpush1.bf16.msra.mxu0 %v3551_v0  ;;  %409 = vmatpush1.bf16.msra.mxu1 %v3552_v62  ;;  %v3563_v0 = vld [vmem:[%s5436_s2 + $0x80] ss:$16 sps:$4 sm:$0xff]   ;;  %v3564_v62 = vld [vmem:[%s5436_s2 + $0x88] ss:$16 sps:$4 sm:$0xff]  }
  0x62   :  { %357 = vmatprep.subr.bf16.mxu0 %v3553_v61  ;;  %410 = vmatprep.subr.bf16.mxu1 %v3555_v57  ;;  %v3565_v61 = vld [vmem:[%s5436_s2 + $0xa4] ss:$16 sps:$4 sm:$0xff]   ;;  %v3567_v57 = vld [vmem:[%s5436_s2 + $0xac] ss:$16 sps:$4 sm:$0xff]  }
  0x65   :  { %358 = vmatpush1.bf16.msra.mxu0 %v3557_v63  ;;  %411 = vmatpush1.bf16.msra.mxu1 %v3558_v54  ;;  %v3569_v63 = vld [vmem:[%s5436_s2 + $0xa0] ss:$16 sps:$4 sm:$0xff]   ;;  %v3570_v54 = vld [vmem:[%s5436_s2 + $0xa8] ss:$16 sps:$4 sm:$0xff]  }
  0x66   :  { %359 = vmatprep.subr.bf16.mxu0 %v3559_v58  ;;  %412 = vmatprep.subr.bf16.mxu1 %v3561_v60  ;;  %v3571_v58 = vld [vmem:[%s5436_s2 + $0xc4] ss:$16 sps:$4 sm:$0xff]   ;;  %v3573_v60 = vld [vmem:[%s5436_s2 + $0xcc] ss:$16 sps:$4 sm:$0xff]  }
  0x69   :  { %360 = vmatpush1.bf16.msra.mxu0 %v3563_v0  ;;  %413 = vmatpush1.bf16.msra.mxu1 %v3564_v62  ;;  %v3575_v0 = vld [vmem:[%s5436_s2 + $0xc0] ss:$16 sps:$4 sm:$0xff]   ;;  %v3576_v62 = vld [vmem:[%s5436_s2 + $0xc8] ss:$16 sps:$4 sm:$0xff]  }
  0x6a   :  { %361 = vmatprep.subr.bf16.mxu0 %v3565_v61  ;;  %414 = vmatprep.subr.bf16.mxu1 %v3567_v57  ;;  %v3577_v61 = vld [vmem:[%s5436_s2 + $0xe4] ss:$16 sps:$4 sm:$0xff]   ;;  %v3579_v57 = vld [vmem:[%s5436_s2 + $0xec] ss:$16 sps:$4 sm:$0xff]  }
  0x6d   :  { %362 = vmatpush1.bf16.msra.mxu0 %v3569_v63  ;;  %415 = vmatpush1.bf16.msra.mxu1 %v3570_v54  ;;  %v3582_v63 = vld [vmem:[%s5436_s2 + $0xe8] ss:$16 sps:$4 sm:$0xff]   ;;  %v3586_v54 = vld [vmem:[#allocation4 + $0x4] ss:$16 sps:$4 sm:$0xff]  }
  0x6e   :  { %363 = vmatprep.subr.bf16.mxu0 %v3571_v58  ;;  %416 = vmatprep.subr.bf16.mxu1 %v3573_v60  ;;  %v3589_v58 = vld [vmem:[#allocation4 + $0xc] ss:$16 sps:$4 sm:$0xff]   ;;  %v3583_v60 = vld [vmem:[%s5434_s0] sm:$0xff]  }
  0x71   :  { %364 = vmatpush1.bf16.msra.mxu0 %v3575_v0  ;;  %417 = vmatpush1.bf16.msra.mxu1 %v3576_v62  ;;  %v3595_v0 = vld [vmem:[#allocation4 + $0x2c] ss:$16 sps:$4 sm:$0xff]   ;;  %v3593_v62 = vld [vmem:[#allocation4 + $0x28] ss:$16 sps:$4 sm:$0xff]  }
  0x72   :  { %365 = vmatprep.subr.bf16.mxu0 %v3577_v61  ;;  %418 = vmatprep.subr.bf16.mxu1 %v3579_v57  ;;  %v3598_v61 = vld [vmem:[#allocation4 + $0x44] ss:$16 sps:$4 sm:$0xff]   ;;  %v3601_v57 = vld [vmem:[#allocation4 + $0x4c] ss:$16 sps:$4 sm:$0xff]  }
  0x75   :  { %366 = vmatpush1.bf16.msra.mxu0 %v3581_v59  ;;  %419 = vmatpush1.bf16.msra.mxu1 %v3582_v63  ;;  %v3620_v59 = vld [vmem:[%s5434_s0 + $0x8] sm:$0xff]   ;;  %v3596_v63 = vld [vmem:[#allocation4 + $0x40] ss:$16 sps:$4 sm:$0xff]  }
  0x76   :  { %702 = vmatprep.subr.bf16.mxu0 %v3586_v54  ;;  %755 = vmatprep.subr.bf16.mxu1 %v3589_v58  ;;  %v3599_v54 = vld [vmem:[#allocation4 + $0x48] ss:$16 sps:$4 sm:$0xff]  }
  0x77   :  { %v3605_v58 = vld [vmem:[#allocation4 + $0x68] ss:$16 sps:$4 sm:$0xff]  }
  0x78   :  { %384 = vmatmul.mubr.bf16.vlgmr.msra.gmra.mrb[0].mxu0 %v3583_v60  ;;  %437 = vmatmul.mubr.bf16.vlgmr.msra.gmra.mrb[0].mxu1 %v3583_v60  ;;  %v3610_v60 = vld [vmem:[#allocation4 + $0x84] ss:$16 sps:$4 sm:$0xff]  }
  0x79   :  { %703 = vmatpush1.bf16.msra.mxu0 %v3584_v56  ;;  %756 = vmatpush1.bf16.msra.mxu1 %v3587_v53  ;;  %v3604_v56 = vld [vmem:[#allocation4 + $0x64] ss:$16 sps:$4 sm:$0xff]   ;;  %v3607_v53 = vld [vmem:[#allocation4 + $0x6c] ss:$16 sps:$4 sm:$0xff]  }
  0x7a   :  { %704 = vmatprep.subr.bf16.mxu0 %v3592_v55  ;;  %757 = vmatprep.subr.bf16.mxu1 %v3595_v0  ;;  %v3602_v55 = vld [vmem:[#allocation4 + $0x60] ss:$16 sps:$4 sm:$0xff]   ;;  %v3613_v0 = vld [vmem:[#allocation4 + $0x8c] ss:$16 sps:$4 sm:$0xff]  }
  0x7b   :  { %393 = vmatprep.mubr.bf16.mxu0 %v5684_v52  ;;  %446 = vmatprep.mubr.bf16.mxu1 %v5684_v52 }
  0x7d   :  { %705 = vmatpush1.bf16.msra.mxu0 %v3590_v50  ;;  %758 = vmatpush1.bf16.msra.mxu1 %v3593_v62  ;;  %v3608_v50 = vld [vmem:[#allocation4 + $0x80] ss:$16 sps:$4 sm:$0xff]   ;;  %v3611_v62 = vld [vmem:[#allocation4 + $0x88] ss:$16 sps:$4 sm:$0xff]  }
  0x7e   :  { %706 = vmatprep.subr.bf16.mxu0 %v3598_v61  ;;  %759 = vmatprep.subr.bf16.mxu1 %v3601_v57  ;;  %v3616_v61 = vld [vmem:[#allocation4 + $0xa4] ss:$16 sps:$4 sm:$0xff]   ;;  %v3619_v57 = vld [vmem:[#allocation4 + $0xac] ss:$16 sps:$4 sm:$0xff]  }
  0x80   :  { %394 = vmatmul.mubr.bf16.gmra.mrb[4].mxu0 %v3620_v59  ;;  %447 = vmatmul.mubr.bf16.gmra.mrb[4].mxu1 %v3620_v59  ;;  %v3617_v59 = vld [vmem:[#allocation4 + $0xa8] ss:$16 sps:$4 sm:$0xff]  }
  0x81   :  { %707 = vmatpush1.bf16.msra.mxu0 %v3596_v63  ;;  %760 = vmatpush1.bf16.msra.mxu1 %v3599_v54  ;;  %v3614_v63 = vld [vmem:[#allocation4 + $0xa0] ss:$16 sps:$4 sm:$0xff]   ;;  %v3623_v54 = vld [vmem:[#allocation4 + $0xc4] ss:$16 sps:$4 sm:$0xff]  }
  0x82   :  { %708 = vmatprep.subr.bf16.mxu0 %v3604_v56  ;;  %761 = vmatprep.subr.bf16.mxu1 %v3607_v53  ;;  %v3626_v56 = vld [vmem:[#allocation4 + $0xcc] ss:$16 sps:$4 sm:$0xff]   ;;  %v3621_v53 = vld [vmem:[#allocation4 + $0xc0] ss:$16 sps:$4 sm:$0xff]  }
  0x83   :  { %734 = vmatprep.mubr.bf16.mxu0 %v5684_v52  ;;  %787 = vmatprep.mubr.bf16.mxu1 %v5684_v52 }
  0x85   :  { %709 = vmatpush1.bf16.msra.mxu0 %v3602_v55  ;;  %762 = vmatpush1.bf16.msra.mxu1 %v3605_v58  ;;  %v3624_v55 = vld [vmem:[#allocation4 + $0xc8] ss:$16 sps:$4 sm:$0xff]   ;;  %v3632_v58 = vld [vmem:[#allocation4 + $0xec] ss:$16 sps:$4 sm:$0xff]  }
  0x86   :  { %710 = vmatprep.subr.bf16.mxu0 %v3610_v60  ;;  %763 = vmatprep.subr.bf16.mxu1 %v3613_v0  ;;  %v3627_v60 = vld [vmem:[#allocation4 + $0xe0] ss:$16 sps:$4 sm:$0xff]   ;;  %v3630_v0 = vld [vmem:[#allocation4 + $0xe8] ss:$16 sps:$4 sm:$0xff]  }
  0x89   :  { %711 = vmatpush1.bf16.msra.mxu0 %v3608_v50  ;;  %764 = vmatpush1.bf16.msra.mxu1 %v3611_v62  ;;  %v3633_v50 = vld [vmem:[%s5434_s0 + $0x10] sm:$0xff]   ;;  %v3634_v62 = vld [vmem:[%s5434_s0 + $0x18] sm:$0xff]  }
  0x8a   :  { %712 = vmatprep.subr.bf16.mxu0 %v3616_v61  ;;  %765 = vmatprep.subr.bf16.mxu1 %v3619_v57 }
  0x8d   :  { %713 = vmatpush1.bf16.msra.mxu0 %v3614_v63  ;;  %766 = vmatpush1.bf16.msra.mxu1 %v3617_v59  ;;  %v141_v63 = vld [vmem:[%s5440_s6] sm:$0xf] }
  0x8e   :  { %714 = vmatprep.subr.bf16.mxu0 %v3623_v54  ;;  %767 = vmatprep.subr.bf16.mxu1 %v3626_v56 }
  0x91   :  { %715 = vmatpush1.bf16.msra.mxu0 %v3621_v53  ;;  %768 = vmatpush1.bf16.msra.mxu1 %v3624_v55 }
  0x92   :  { %716 = vmatprep.subr.bf16.mxu0 %v3629_v49  ;;  %769 = vmatprep.subr.bf16.mxu1 %v3632_v58  ;;  %v458_v49 = vlaneseq }
  0x94   :  { %v4389_v61 = vshrl.u32 %v458_v49, 7 }
  0x95   :  { %717 = vmatpush1.bf16.msra.mxu0 %v3627_v60  ;;  %770 = vmatpush1.bf16.msra.mxu1 %v3630_v0 }
  0x96   :  { %v460_v57 = vsub.s32 0, %v4389_v61  ;;  %v468_v59 = vsub.s32 2, %v4389_v61  ;;  %v464_v54 = vsub.s32 1, %v4389_v61 }
  0x98   :  { %735 = vmatmul.mubr.bf16.vlgmr.msra.gmra.mrb[8].mxu0 %v3633_v50  ;;  %788 = vmatmul.mubr.bf16.vlgmr.msra.gmra.mrb[8].mxu1 %v3633_v50  ;;  %v4398_v56 = vrot.slane %v141_v63, %v460_v57  ;;  %v4400_v53 = vrot.slane %v141_v63, %v468_v59  ;;  %v4402_v55 = vrot.slane %v141_v63, %v464_v54 }
  0x99   :  { %744 = vmatprep.mubr.bf16.mxu0 %v5684_v52  ;;  %797 = vmatprep.mubr.bf16.mxu1 %v5684_v52  ;;  %v472_v52 = vsub.s32 3, %v4389_v61 }
  0x9a   :  { %5685 = vst [vmem:[#allocation81_spill] sm:$0xff] %v4398_v56  ;;  %5686 = vst [vmem:[#allocation82_spill] sm:$0xff] %v4400_v53 }
  0x9b   :  { %5687 = vst [vmem:[#allocation83_spill] sm:$0xff] %v4402_v55  ;;  %v4404_v58 = vrot.slane %v141_v63, %v472_v52 }
  0x9d   :  { %5688 = vst [vmem:[#allocation84_spill] sm:$0xff] %v4404_v58 }
  0xa0   :  { %745 = vmatmul.mubr.bf16.gmra.mrb[12].mxu0 %v3634_v62  ;;  %798 = vmatmul.mubr.bf16.gmra.mrb[12].mxu1 %v3634_v62 }
 0x14b   :  { %v385_v60 = vpop.f32.mrb[0].mxu0  ;;  %v438_v50 = vpop.f32.mrb[0].mxu1 }
 0x14c   :  { %v478_v0 = vadd.f32 %v4398_v56, %v385_v60  ;;  %v387_v62 = vpop.f32.mrb[1].mxu0  ;;  %v480_v49 = vadd.f32 %v4400_v53, %v438_v50  ;;  %v440_v46 = vpop.f32.mrb[1].mxu1 }
 0x14d   :  { %v479_v51 = vadd.f32 %v4402_v55, %v387_v62  ;;  %v389_v48 = vpop.f32.mrb[2].mxu0  ;;  %v481_v61 = vadd.f32 %v4404_v58, %v440_v46  ;;  %v442_v47 = vpop.f32.mrb[2].mxu1 }
 0x14e   :  { %845 = vst [vmem:[#allocation2] sm:$0xff] %v478_v0  ;;  %v482_v45 = vadd.f32 %v4398_v56, %v389_v48  ;;  %v391_v42 = vpop.f32.mrb[3].mxu0  ;;  %847 = vst [vmem:[#allocation2 + $0x10] sm:$0xff] %v480_v49  ;;  %v484_v63 = vadd.f32 %v4400_v53, %v442_v47  ;;  %v444_v44 = vpop.f32.mrb[3].mxu1 }
 0x14f   :  { %846 = vst [vmem:[#allocation2 + $0x8] sm:$0xff] %v479_v51  ;;  %v483_v60 = vadd.f32 %v4402_v55, %v391_v42  ;;  %848 = vst [vmem:[#allocation2 + $0x18] sm:$0xff] %v481_v61  ;;  %v485_v50 = vadd.f32 %v4404_v58, %v444_v44 }
 0x150   :  { %849 = vst [vmem:[#allocation2 + $0x20] sm:$0xff] %v482_v45  ;;  %851 = vst [vmem:[#allocation2 + $0x30] sm:$0xff] %v484_v63 }
 0x151   :  { %850 = vst [vmem:[#allocation2 + $0x28] sm:$0xff] %v483_v60  ;;  %852 = vst [vmem:[#allocation2 + $0x38] sm:$0xff] %v485_v50 }
 0x153   :  { %v395_v0 = vpop.f32.mrb[4].mxu0  ;;  %v448_v48 = vpop.f32.mrb[4].mxu1 }
 0x154   :  { %v486_v46 = vadd.f32 %v4398_v56, %v395_v0  ;;  %v397_v62 = vpop.f32.mrb[5].mxu0  ;;  %v488_v49 = vadd.f32 %v4400_v53, %v448_v48  ;;  %v450_v47 = vpop.f32.mrb[5].mxu1 }
 0x155   :  { %v487_v51 = vadd.f32 %v4402_v55, %v397_v62  ;;  %v399_v41 = vpop.f32.mrb[6].mxu0  ;;  %v489_v42 = vadd.f32 %v4404_v58, %v450_v47  ;;  %v452_v44 = vpop.f32.mrb[6].mxu1 }
 0x156   :  { %853 = vst [vmem:[#allocation2 + $0x40] sm:$0xff] %v486_v46  ;;  %v490_v45 = vadd.f32 %v4398_v56, %v399_v41  ;;  %v401_v61 = vpop.f32.mrb[7].mxu0  ;;  %855 = vst [vmem:[#allocation2 + $0x50] sm:$0xff] %v488_v49  ;;  %v492_v63 = vadd.f32 %v4400_v53, %v452_v44  ;;  %v454_v50 = vpop.f32.mrb[7].mxu1  ;;  %v142_v41 = vld [vmem:[%s5441_s7] sm:$0xf] }
 0x157   :  { %854 = vst [vmem:[#allocation2 + $0x48] sm:$0xff] %v487_v51  ;;  %v491_v60 = vadd.f32 %v4402_v55, %v401_v61  ;;  %856 = vst [vmem:[#allocation2 + $0x58] sm:$0xff] %v489_v42  ;;  %v493_v0 = vadd.f32 %v4404_v58, %v454_v50  ;;  %v4425_v46 = vrot.slane %v142_v41, %v460_v57  ;;  %s4457_s7 = smov 0  }
 0x158   :  { %857 = vst [vmem:[#allocation2 + $0x60] sm:$0xff] %v490_v45  ;;  %859 = vst [vmem:[#allocation2 + $0x70] sm:$0xff] %v492_v63  ;;  %v4427_v48 = vrot.slane %v142_v41, %v468_v59  ;;  %v4429_v62 = vrot.slane %v142_v41, %v464_v54  ;;  %v4431_v49 = vrot.slane %v142_v41, %v472_v52 }
 0x159   :  { %858 = vst [vmem:[#allocation2 + $0x68] sm:$0xff] %v491_v60  ;;  %860 = vst [vmem:[#allocation2 + $0x78] sm:$0xff] %v493_v0 }
 0x15a   :  { %5689 = vst [vmem:[#allocation85_spill] sm:$0xff] %v4425_v46  ;;  %5690 = vst [vmem:[#allocation86_spill] sm:$0xff] %v4427_v48 }
 0x15b   :  { %5691 = vst [vmem:[#allocation87_spill] sm:$0xff] %v4429_v62  ;;  %5692 = vst [vmem:[#allocation88_spill] sm:$0xff] %v4431_v49 }
 0x16b   :  { %v736_v51 = vpop.f32.mrb[8].mxu0  ;;  %v789_v42 = vpop.f32.mrb[8].mxu1 }
 0x16c   :  { %v829_v47 = vadd.f32 %v4425_v46, %v736_v51  ;;  %v738_v45 = vpop.f32.mrb[9].mxu0  ;;  %v831_v44 = vadd.f32 %v4427_v48, %v789_v42  ;;  %v791_v63 = vpop.f32.mrb[9].mxu1 }
 0x16d   :  { %v830_v61 = vadd.f32 %v4429_v62, %v738_v45  ;;  %v740_v60 = vpop.f32.mrb[10].mxu0  ;;  %v832_v57 = vadd.f32 %v4431_v49, %v791_v63  ;;  %v793_v54 = vpop.f32.mrb[10].mxu1 }
 0x16e   :  { %861 = vst [vmem:[#allocation3] sm:$0xff] %v829_v47  ;;  %v833_v59 = vadd.f32 %v4425_v46, %v740_v60  ;;  %v742_v50 = vpop.f32.mrb[11].mxu0  ;;  %863 = vst [vmem:[#allocation3 + $0x10] sm:$0xff] %v831_v44  ;;  %v835_v52 = vadd.f32 %v4427_v48, %v793_v54  ;;  %v795_v41 = vpop.f32.mrb[11].mxu1 }
 0x16f   :  { %862 = vst [vmem:[#allocation3 + $0x8] sm:$0xff] %v830_v61  ;;  %v834_v0 = vadd.f32 %v4429_v62, %v742_v50  ;;  %864 = vst [vmem:[#allocation3 + $0x18] sm:$0xff] %v832_v57  ;;  %v836_v51 = vadd.f32 %v4431_v49, %v795_v41 }
 0x170   :  { %865 = vst [vmem:[#allocation3 + $0x20] sm:$0xff] %v833_v59  ;;  %867 = vst [vmem:[#allocation3 + $0x30] sm:$0xff] %v835_v52 }
 0x171   :  { %866 = vst [vmem:[#allocation3 + $0x28] sm:$0xff] %v834_v0  ;;  %868 = vst [vmem:[#allocation3 + $0x38] sm:$0xff] %v836_v51 }
 0x173   :  { %v746_v47 = vpop.f32.mrb[12].mxu0  ;;  %v799_v45 = vpop.f32.mrb[12].mxu1 }
 0x174   :  { %v837_v42 = vadd.f32 %v4425_v46, %v746_v47  ;;  %v748_v63 = vpop.f32.mrb[13].mxu0  ;;  %v839_v44 = vadd.f32 %v4427_v48, %v799_v45  ;;  %v801_v60 = vpop.f32.mrb[13].mxu1  ;;  %v4451_v45 = vmov 0.0  }
 0x175   :  { %v838_v61 = vadd.f32 %v4429_v62, %v748_v63  ;;  %v750_v54 = vpop.f32.mrb[14].mxu0  ;;  %v840_v57 = vadd.f32 %v4431_v49, %v801_v60  ;;  %v803_v50 = vpop.f32.mrb[14].mxu1  ;;  %v4453_v63 = vmov 0.0  }
 0x176   :  { %869 = vst [vmem:[#allocation3 + $0x40] sm:$0xff] %v837_v42  ;;  %v841_v59 = vadd.f32 %v4425_v46, %v750_v54  ;;  %v752_v52 = vpop.f32.mrb[15].mxu0  ;;  %871 = vst [vmem:[#allocation3 + $0x50] sm:$0xff] %v839_v44  ;;  %v843_v0 = vadd.f32 %v4427_v48, %v803_v50  ;;  %v805_v51 = vpop.f32.mrb[15].mxu1  ;;  %v4449_v42 = vmov 0.0   ;;  %v4455_v44 = vmov 0.0  }
 0x177   :  { %870 = vst [vmem:[#allocation3 + $0x48] sm:$0xff] %v838_v61  ;;  %v842_v41 = vadd.f32 %v4429_v62, %v752_v52  ;;  %872 = vst [vmem:[#allocation3 + $0x58] sm:$0xff] %v840_v57  ;;  %v844_v47 = vadd.f32 %v4431_v49, %v805_v51 }
 0x178   :  { %873 = vst [vmem:[#allocation3 + $0x60] sm:$0xff] %v841_v59  ;;  %875 = vst [vmem:[#allocation3 + $0x70] sm:$0xff] %v843_v0 }
 0x179   :  { %874 = vst [vmem:[#allocation3 + $0x68] sm:$0xff] %v842_v41  ;;  %876 = vst [vmem:[#allocation3 + $0x78] sm:$0xff] %v844_v47 }
 0x17a LB: > { %v5693_v62 = vld [vmem:[#allocation87_spill] sm:$0xff]  ;;  %v5694_v58 = vld [vmem:[#allocation84_spill] sm:$0xff]  ;;  %v5695_v56 = vld [vmem:[#allocation81_spill] sm:$0xff]  ;;  %5742 = vst [vmem:[#allocation89_spill] sm:$0xff] %v4005_v42  ;;  %s4475_s18 = sadd.s32 1, %s4021_s7   ;;  %v4017_v44 = vphi %v4455_v44, %v5868_v44   ;;  %v4013_v63 = vphi %v4453_v63, %v3052_v63   ;;  %v4009_v45 = vphi %v4451_v45, %v5867_v45   ;;  %v4005_v42 = vphi %v4449_v42, %v3058_v42   ;;  %s4021_s7 = sphi %s4457_s7, %s5869_s7  }
 0x17b   : > { %v5696_v55 = vld [vmem:[#allocation83_spill] sm:$0xff]  ;;  %v5697_v49 = vld [vmem:[#allocation88_spill] sm:$0xff]  ;;  %v5698_v48 = vld [vmem:[#allocation86_spill] sm:$0xff]  ;;  %5743 = vst [vmem:[#allocation90_spill] sm:$0xff] %v4009_v45  ;;  %p3252_p10 = scmp.ge.s32.totalorder %s4475_s18, 2 }
 0x17c   : > { %v5699_v46 = vld [vmem:[#allocation85_spill] sm:$0xff]  ;;  %v5700_v43 = vld [vmem:[#allocation59_spill] sm:$0xff]  ;;  %v5701_v40 = vld [vmem:[#allocation56_spill] sm:$0xff]  ;;  %5744 = vst [vmem:[#allocation91_spill] sm:$0xff] %v4013_v63  ;;  %v5471_v54 = vmov (!%p3252_p10), 0   ;;  %s3465_s28 = sshll.u32 (!%p3252_p10), %s4021_s7, 5 }
 0x17d   : > { %v5702_v39 = vld [vmem:[#allocation55_spill] sm:$0xff]  ;;  %v5703_v38 = vld [vmem:[#allocation54_spill] sm:$0xff]  ;;  %v5704_v37 = vld [vmem:[#allocation53_spill] sm:$0xff]  ;;  %1151 = vmatprep.mubr.bf16.mxu0 (!%p3252_p10), %v5471_v54  ;;  %1204 = vmatprep.mubr.bf16.mxu1 (!%p3252_p10), %v5471_v54  ;;  %s3466_s16 = sadd.s32 (!%p3252_p10), 32, %s3465_s28  ;;  %s905_s12 = ssub.s32 (!%p3252_p10), 0, %s4021_s7 }
 0x17e   : > { %v5705_v36 = vld [vmem:[#allocation52_spill] sm:$0xff]  ;;  %v5706_v35 = vld [vmem:[#allocation51_spill] sm:$0xff]  ;;  %v5707_v34 = vld [vmem:[#allocation50_spill] sm:$0xff]  ;;  %s907_s19 = sshra.s32 (!%p3252_p10), %s3466_s16, 3  ;;  %s3257_s13 = sshll.u32 (!%p3252_p10), %s905_s12, 5 }
 0x17f   : > { %v5708_v33 = vld [vmem:[#allocation49_spill] sm:$0xff]  ;;  %v5709_v32 = vld [vmem:[#allocation48_spill] sm:$0xff]  ;;  %v5710_v31 = vld [vmem:[#allocation47_spill] sm:$0xff]  ;;  %s3258_s27 = sshll.u32 (!%p3252_p10), %s907_s19, 2  ;;  %s1241_s14 = sshra.s32 (!%p3252_p10), %s3257_s13, 3 }
 0x180   : > { %v5711_v30 = vld [vmem:[#allocation46_spill] sm:$0xff]  ;;  %v5712_v29 = vld [vmem:[#allocation45_spill] sm:$0xff]  ;;  %v5713_v28 = vld [vmem:[#allocation44_spill] sm:$0xff]  ;;  %s4561_s5 = scalar_lea.vmem (!%p3252_p10), %s5434_s0, %s3258_s27  ;;  %s3293_s15 = sshll.u32 (!%p3252_p10), %s1241_s14, 2 }
 0x181   : > { %v5714_v27 = vld [vmem:[#allocation43_spill] sm:$0xff]  ;;  %v5715_v26 = vld [vmem:[#allocation42_spill] sm:$0xff]  ;;  %v5716_v25 = vld [vmem:[#allocation41_spill] sm:$0xff]  ;;  %s4592_s20 = scalar_lea.vmem (!%p3252_p10), %s5434_s0, %s3293_s15  ;;  %p892_p11 = scmp.lt.s32.totalorder (!%p3252_p10), %s4475_s18, 0 }
 0x182   : > { %v5717_v24 = vld [vmem:[#allocation40_spill] sm:$0xff]  ;;  %v5718_v23 = vld [vmem:[#allocation39_spill] sm:$0xff]  ;;  %v5719_v22 = vld [vmem:[#allocation38_spill] sm:$0xff] }
 0x183   : > { %v5720_v21 = vld [vmem:[#allocation37_spill] sm:$0xff]  ;;  %v5721_v20 = vld [vmem:[#allocation36_spill] sm:$0xff]  ;;  %v5722_v19 = vld [vmem:[#allocation35_spill] sm:$0xff] }
 0x184   : > { %v5723_v18 = vld [vmem:[#allocation34_spill] sm:$0xff]  ;;  %v5724_v17 = vld [vmem:[#allocation33_spill] sm:$0xff]  ;;  %v5725_v16 = vld [vmem:[#allocation32_spill] sm:$0xff]  ;;  %891 = sbr.rel (%p3252_p10) target bundleno = 686 (0x2ae), region = 56 }
 0x185   : > { %v5726_v15 = vld [vmem:[#allocation31_spill] sm:$0xff]  ;;  %v5727_v14 = vld [vmem:[#allocation30_spill] sm:$0xff]  ;;  %v5728_v13 = vld [vmem:[#allocation29_spill] sm:$0xff] }
 0x186   : > { %v5729_v12 = vld [vmem:[#allocation28_spill] sm:$0xff]  ;;  %v5730_v11 = vld [vmem:[#allocation27_spill] sm:$0xff]  ;;  %v5731_v10 = vld [vmem:[#allocation26_spill] sm:$0xff] }
 0x187   : > { %v5732_v9 = vld [vmem:[#allocation25_spill] sm:$0xff]  ;;  %v5733_v8 = vld [vmem:[#allocation24_spill] sm:$0xff]  ;;  %v5734_v7 = vld [vmem:[#allocation23_spill] sm:$0xff] }
 0x188   : > { %v5735_v6 = vld [vmem:[#allocation22_spill] sm:$0xff]  ;;  %v5736_v5 = vld [vmem:[#allocation21_spill] sm:$0xff]  ;;  %v5737_v4 = vld [vmem:[#allocation20_spill] sm:$0xff] }
 0x189   : > { %v5738_v3 = vld [vmem:[#allocation19_spill] sm:$0xff]  ;;  %v5739_v2 = vld [vmem:[#allocation18_spill] sm:$0xff]  ;;  %v5740_v1 = vld [vmem:[#allocation17_spill] sm:$0xff] }
 0x18a   : > { %v5741_v53 = vld [vmem:[#allocation82_spill] sm:$0xff]  ;;  %v3635_v61 = vld [vmem:[%s5436_s2 + $0x4] ss:$16 sps:$4 sm:$0xff] (!%p3252_p10)   ;;  %v3639_v57 = vld [vmem:[%s5436_s2] ss:$16 sps:$4 sm:$0xff] (!%p3252_p10)  }
 0x18b   : > { %v3637_v60 = vld [vmem:[%s5436_s2 + $0xc] ss:$16 sps:$4 sm:$0xff]   ;;  %1119 = vmatprep.subr.bf16.mxu0 %v3635_v61  ;;  %v3640_v59 = vld [vmem:[%s5436_s2 + $0x8] ss:$16 sps:$4 sm:$0xff]   ;;  %v3641_v50 = vld [vmem:[%s5436_s2 + $0x24] ss:$16 sps:$4 sm:$0xff]  }
 0x18c   : > { %1172 = vmatprep.subr.bf16.mxu1 %v3637_v60  ;;  %1120 = vmatpush1.bf16.msra.mxu0 %v3639_v57  ;;  %v3643_v52 = vld [vmem:[%s5436_s2 + $0x2c] ss:$16 sps:$4 sm:$0xff]   ;;  %v3645_v0 = vld [vmem:[%s5436_s2 + $0x20] ss:$16 sps:$4 sm:$0xff]   ;;  %v3646_v41 = vld [vmem:[%s5436_s2 + $0x28] ss:$16 sps:$4 sm:$0xff]  }
 0x18d   : > { %1173 = vmatpush1.bf16.msra.mxu1 %v3640_v59  ;;  %1121 = vmatprep.subr.bf16.mxu0 %v3641_v50  ;;  %v3647_v51 = vld [vmem:[%s5436_s2 + $0x44] ss:$16 sps:$4 sm:$0xff]   ;;  %v3649_v47 = vld [vmem:[%s5436_s2 + $0x4c] ss:$16 sps:$4 sm:$0xff]   ;;  %v3651_v61 = vld [vmem:[%s5436_s2 + $0x40] ss:$16 sps:$4 sm:$0xff]  }
 0x18e   : > { %1174 = vmatprep.subr.bf16.mxu1 %v3643_v52  ;;  %v3652_v60 = vld [vmem:[%s5436_s2 + $0x48] ss:$16 sps:$4 sm:$0xff]   ;;  %v3653_v57 = vld [vmem:[%s5436_s2 + $0x64] ss:$16 sps:$4 sm:$0xff]   ;;  %v3655_v59 = vld [vmem:[%s5436_s2 + $0x6c] ss:$16 sps:$4 sm:$0xff]  }
 0x18f   : > { %v3657_v50 = vld [vmem:[%s5436_s2 + $0x60] ss:$16 sps:$4 sm:$0xff]   ;;  %v3658_v52 = vld [vmem:[%s5436_s2 + $0x68] ss:$16 sps:$4 sm:$0xff]   ;;  %v3692_v42 = vld [vmem:[#allocation4 + $0x24] ss:$16 sps:$4 sm:$0xff]  }
 0x190   : > { %1122 = vmatpush1.bf16.msra.mxu0 %v3645_v0  ;;  %v3659_v0 = vld [vmem:[%s5436_s2 + $0x84] ss:$16 sps:$4 sm:$0xff]   ;;  %v3687_v54 = vld [vmem:[#allocation4 + $0x8] ss:$16 sps:$4 sm:$0xff]   ;;  %v3701_v63 = vld [vmem:[#allocation4 + $0x4c] ss:$16 sps:$4 sm:$0xff]  }
 0x191   : > { %1175 = vmatpush1.bf16.msra.mxu1 %v3646_v41  ;;  %1123 = vmatprep.subr.bf16.mxu0 %v3647_v51  ;;  %v3661_v41 = vld [vmem:[%s5436_s2 + $0x8c] ss:$16 sps:$4 sm:$0xff]   ;;  %v3663_v51 = vld [vmem:[%s5436_s2 + $0x80] ss:$16 sps:$4 sm:$0xff]  }
 0x192   : > { %1176 = vmatprep.subr.bf16.mxu1 %v3649_v47  ;;  %v3664_v47 = vld [vmem:[%s5436_s2 + $0x88] ss:$16 sps:$4 sm:$0xff]   ;;  %v3721_v45 = vld [vmem:[#allocation4 + $0xc0] ss:$16 sps:$4 sm:$0xff]  }
 0x194   : > { %1124 = vmatpush1.bf16.msra.mxu0 %v3651_v61  ;;  %v3665_v61 = vld [vmem:[%s5436_s2 + $0xa4] ss:$16 sps:$4 sm:$0xff]  }
 0x195   : > { %1177 = vmatpush1.bf16.msra.mxu1 %v3652_v60  ;;  %1125 = vmatprep.subr.bf16.mxu0 %v3653_v57  ;;  %v3667_v60 = vld [vmem:[%s5436_s2 + $0xac] ss:$16 sps:$4 sm:$0xff]   ;;  %v3669_v57 = vld [vmem:[%s5436_s2 + $0xa0] ss:$16 sps:$4 sm:$0xff]  }
 0x196   : > { %1178 = vmatprep.subr.bf16.mxu1 %v3655_v59  ;;  %v3670_v59 = vld [vmem:[%s5436_s2 + $0xa8] ss:$16 sps:$4 sm:$0xff]  }
 0x198   : > { %1126 = vmatpush1.bf16.msra.mxu0 %v3657_v50  ;;  %v3671_v50 = vld [vmem:[%s5436_s2 + $0xc4] ss:$16 sps:$4 sm:$0xff]  }
 0x199   : > { %1179 = vmatpush1.bf16.msra.mxu1 %v3658_v52  ;;  %1127 = vmatprep.subr.bf16.mxu0 %v3659_v0  ;;  %v3673_v52 = vld [vmem:[%s5436_s2 + $0xcc] ss:$16 sps:$4 sm:$0xff]   ;;  %v3675_v0 = vld [vmem:[%s5436_s2 + $0xc0] ss:$16 sps:$4 sm:$0xff]  }
 0x19a   : > { %1180 = vmatprep.subr.bf16.mxu1 %v3661_v41  ;;  %v3676_v41 = vld [vmem:[%s5436_s2 + $0xc8] ss:$16 sps:$4 sm:$0xff]  }
 0x19c   : > { %1128 = vmatpush1.bf16.msra.mxu0 %v3663_v51  ;;  %v3677_v51 = vld [vmem:[%s5436_s2 + $0xe4] ss:$16 sps:$4 sm:$0xff]  }
 0x19d   : > { %1181 = vmatpush1.bf16.msra.mxu1 %v3664_v47  ;;  %1129 = vmatprep.subr.bf16.mxu0 %v3665_v61  ;;  %v3679_v47 = vld [vmem:[%s5436_s2 + $0xec] ss:$16 sps:$4 sm:$0xff]   ;;  %v3681_v61 = vld [vmem:[%s5436_s2 + $0xe0] ss:$16 sps:$4 sm:$0xff]  }
 0x19e   : > { %1182 = vmatprep.subr.bf16.mxu1 %v3667_v60  ;;  %v3682_v60 = vld [vmem:[%s5436_s2 + $0xe8] ss:$16 sps:$4 sm:$0xff]  }
 0x1a0   : > { %1130 = vmatpush1.bf16.msra.mxu0 %v3669_v57  ;;  %v3686_v57 = vld [vmem:[#allocation4 + $0x4] ss:$16 sps:$4 sm:$0xff]  }
 0x1a1   : > { %1183 = vmatpush1.bf16.msra.mxu1 %v3670_v59  ;;  %1131 = vmatprep.subr.bf16.mxu0 %v3671_v50  ;;  %v3689_v59 = vld [vmem:[#allocation4 + $0xc] ss:$16 sps:$4 sm:$0xff]   ;;  %v3683_v50 = vld [vmem:[%s4561_s5] sm:$0xff]  }
 0x1a2   : > { %1184 = vmatprep.subr.bf16.mxu1 %v3673_v52  ;;  %v3684_v52 = vld [vmem:[#allocation4] ss:$16 sps:$4 sm:$0xff]  }
 0x1a4   : > { %1132 = vmatpush1.bf16.msra.mxu0 %v3675_v0  ;;  %v3695_v0 = vld [vmem:[#allocation4 + $0x2c] ss:$16 sps:$4 sm:$0xff]  }
 0x1a5   : > { %1185 = vmatpush1.bf16.msra.mxu1 %v3676_v41  ;;  %1133 = vmatprep.subr.bf16.mxu0 %v3677_v51  ;;  %v3690_v41 = vld [vmem:[#allocation4 + $0x20] ss:$16 sps:$4 sm:$0xff]   ;;  %v3693_v51 = vld [vmem:[#allocation4 + $0x28] ss:$16 sps:$4 sm:$0xff]  }
 0x1a6   : > { %1186 = vmatprep.subr.bf16.mxu1 %v3679_v47  ;;  %v3698_v47 = vld [vmem:[#allocation4 + $0x44] ss:$16 sps:$4 sm:$0xff]  }
 0x1a8   : > { %1134 = vmatpush1.bf16.msra.mxu0 %v3681_v61  ;;  %v5745_v61 = vmov 0  }
 0x1a9   : > { %1187 = vmatpush1.bf16.msra.mxu1 %v3682_v60  ;;  %1453 = vmatprep.subr.bf16.mxu0 %v3686_v57  ;;  %v3720_v60 = vld [vmem:[%s4561_s5 + $0x8] sm:$0xff]   ;;  %v3696_v57 = vld [vmem:[#allocation4 + $0x40] ss:$16 sps:$4 sm:$0xff]   ;;  %s893_s5 = ssub.s32 0, %s4475_s18 }
 0x1aa   : > { %1506 = vmatprep.subr.bf16.mxu1 %v3689_v59  ;;  %v3699_v59 = vld [vmem:[#allocation4 + $0x48] ss:$16 sps:$4 sm:$0xff]   ;;  %s3253_s29 = smin.u32 %s893_s5, %s4475_s18 }
 0x1ab   : > { %1152 = vmatmul.mubr.bf16.vlgmr.msra.gmra.mrb[0].mxu0 %v3683_v50  ;;  %s895_s30 = sand.u32 1, %s3253_s29  }
 0x1ac   : > { %1205 = vmatmul.mubr.bf16.vlgmr.msra.gmra.mrb[0].mxu1 %v3683_v50  ;;  %1454 = vmatpush1.bf16.msra.mxu0 %v3684_v52  ;;  %v3704_v50 = vld [vmem:[#allocation4 + $0x64] ss:$16 sps:$4 sm:$0xff]   ;;  %v3702_v52 = vld [vmem:[#allocation4 + $0x60] ss:$16 sps:$4 sm:$0xff]   ;;  %s896_s17 = ssub.s32 0, %s895_s30 }
 0x1ad   : > { %1507 = vmatpush1.bf16.msra.mxu1 %v3687_v54  ;;  %1455 = vmatprep.subr.bf16.mxu0 %v3692_v42  ;;  %v3707_v54 = vld [vmem:[#allocation4 + $0x6c] ss:$16 sps:$4 sm:$0xff]   ;;  %v3705_v42 = vld [vmem:[#allocation4 + $0x68] ss:$16 sps:$4 sm:$0xff]   ;;  %s5871_s17 = smov (!%p892_p11, %s896_s17), %s895_s30 }
 0x1ae   : > { %1508 = vmatprep.subr.bf16.mxu1 %v3695_v0  ;;  %1161 = vmatprep.mubr.bf16.mxu0 %v5745_v61  ;;  %v3710_v0 = vld [vmem:[#allocation4 + $0x84] ss:$16 sps:$4 sm:$0xff]   ;;  %p3255_p12 = scmp.lt.s32.totalorder %s5871_s17, 0  ;;  %s902_s19 = sadd.s32 2, %s5871_s17 }
 0x1af   : > { %1214 = vmatprep.mubr.bf16.mxu1 %v5745_v61 }
 0x1b0   : > { %1456 = vmatpush1.bf16.msra.mxu0 %v3690_v41  ;;  %v3713_v41 = vld [vmem:[#allocation4 + $0x8c] ss:$16 sps:$4 sm:$0xff]   ;;  %s5873_s19 = smov (!%p3255_p12, %s902_s19), %s5871_s17 }
 0x1b1   : > { %1509 = vmatpush1.bf16.msra.mxu1 %v3693_v51  ;;  %1457 = vmatprep.subr.bf16.mxu0 %v3698_v47  ;;  %v3711_v51 = vld [vmem:[#allocation4 + $0x88] ss:$16 sps:$4 sm:$0xff]   ;;  %v3716_v47 = vld [vmem:[#allocation4 + $0xa4] ss:$16 sps:$4 sm:$0xff]   ;;  %s3328_s21 = sshll.u32 %s5873_s19, 5 }
 0x1b2   : > { %1510 = vmatprep.subr.bf16.mxu1 %v3701_v63  ;;  %v3708_v63 = vld [vmem:[#allocation4 + $0x80] ss:$16 sps:$4 sm:$0xff]   ;;  %s4603_s22 = sshra.s32 %s3328_s21, 3 }
 0x1b3   : > { %1162 = vmatmul.mubr.bf16.gmra.mrb[4].mxu0 %v3720_v60  ;;  %s3467_s23 = sshll.u32 %s4603_s22, 5 }
 0x1b4   : > { %1215 = vmatmul.mubr.bf16.gmra.mrb[4].mxu1 %v3720_v60  ;;  %1458 = vmatpush1.bf16.msra.mxu0 %v3696_v57  ;;  %v3719_v60 = vld [vmem:[#allocation4 + $0xac] ss:$16 sps:$4 sm:$0xff]   ;;  %v3714_v57 = vld [vmem:[#allocation4 + $0xa0] ss:$16 sps:$4 sm:$0xff]   ;;  %s4612_s6 = scalar_lea.vmem [#allocation2], %s3467_s23  ;;  %s4648_s4 = scalar_lea.vmem [#allocation3], %s3467_s23 }
 0x1b5   : > { %1511 = vmatpush1.bf16.msra.mxu1 %v3699_v59  ;;  %1459 = vmatprep.subr.bf16.mxu0 %v3704_v50  ;;  %v3717_v59 = vld [vmem:[#allocation4 + $0xa8] ss:$16 sps:$4 sm:$0xff]   ;;  %v3723_v50 = vld [vmem:[#allocation4 + $0xc4] ss:$16 sps:$4 sm:$0xff]  }
 0x1b6   : > { %1512 = vmatprep.subr.bf16.mxu1 %v3707_v54  ;;  %1485 = vmatprep.mubr.bf16.mxu0 %v5745_v61  ;;  %v3726_v54 = vld [vmem:[#allocation4 + $0xcc] ss:$16 sps:$4 sm:$0xff]  }
 0x1b7   : > { %1538 = vmatprep.mubr.bf16.mxu1 %v5745_v61 }
 0x1b8   : > { %1460 = vmatpush1.bf16.msra.mxu0 %v3702_v52  ;;  %v3724_v52 = vld [vmem:[#allocation4 + $0xc8] ss:$16 sps:$4 sm:$0xff]  }
 0x1b9   : > { %1513 = vmatpush1.bf16.msra.mxu1 %v3705_v42  ;;  %1461 = vmatprep.subr.bf16.mxu0 %v3710_v0  ;;  %v3729_v42 = vld [vmem:[#allocation4 + $0xe4] ss:$16 sps:$4 sm:$0xff]   ;;  %v3732_v0 = vld [vmem:[#allocation4 + $0xec] ss:$16 sps:$4 sm:$0xff]  }
 0x1ba   : > { %1514 = vmatprep.subr.bf16.mxu1 %v3713_v41  ;;  %v3727_v41 = vld [vmem:[#allocation4 + $0xe0] ss:$16 sps:$4 sm:$0xff]  }
 0x1bc   : > { %1462 = vmatpush1.bf16.msra.mxu0 %v3708_v63  ;;  %v3730_v63 = vld [vmem:[#allocation4 + $0xe8] ss:$16 sps:$4 sm:$0xff]  }
 0x1bd   : > { %1515 = vmatpush1.bf16.msra.mxu1 %v3711_v51  ;;  %1463 = vmatprep.subr.bf16.mxu0 %v3716_v47  ;;  %v3733_v51 = vld [vmem:[%s4592_s20] sm:$0xff]   ;;  %v3734_v47 = vld [vmem:[%s4592_s20 + $0x8] sm:$0xff]  }
 0x1be   : > { %1516 = vmatprep.subr.bf16.mxu1 %v3719_v60 }
 0x1c0   : > { %1464 = vmatpush1.bf16.msra.mxu0 %v3714_v57 }
 0x1c1   : > { %1517 = vmatpush1.bf16.msra.mxu1 %v3717_v59  ;;  %1465 = vmatprep.subr.bf16.mxu0 %v3723_v50 }
 0x1c2   : > { %1518 = vmatprep.subr.bf16.mxu1 %v3726_v54 }
 0x1c4   : > { %1466 = vmatpush1.bf16.msra.mxu0 %v3721_v45 }
 0x1c5   : > { %1519 = vmatpush1.bf16.msra.mxu1 %v3724_v52  ;;  %1467 = vmatprep.subr.bf16.mxu0 %v3729_v42 }
 0x1c6   : > { %1520 = vmatprep.subr.bf16.mxu1 %v3732_v0 }
 0x1c8   : > { %1468 = vmatpush1.bf16.msra.mxu0 %v3727_v41 }
 0x1c9   : > { %1521 = vmatpush1.bf16.msra.mxu1 %v3730_v63 }
 0x1cb   : > { %1486 = vmatmul.mubr.bf16.vlgmr.msra.gmra.mrb[8].mxu0 %v3733_v51 }
 0x1cc   : > { %1539 = vmatmul.mubr.bf16.vlgmr.msra.gmra.mrb[8].mxu1 %v3733_v51  ;;  %1495 = vmatprep.mubr.bf16.mxu0 %v5745_v61 }
 0x1cd   : > { %1548 = vmatprep.mubr.bf16.mxu1 %v5745_v61 }
 0x1d3   : > { %1496 = vmatmul.mubr.bf16.gmra.mrb[12].mxu0 %v3734_v47 }
 0x1d4   : > { %1549 = vmatmul.mubr.bf16.gmra.mrb[12].mxu1 %v3734_v47 }
 0x27e   : > { %v1153_v45 = vpop.f32.mrb[0].mxu0 }
 0x27f   : > { %v1206_v61 = vpop.f32.mrb[0].mxu1  ;;  %v1225_v60 = vadd.f32 %v1153_v45, %v5695_v56  ;;  %v1155_v59 = vpop.f32.mrb[1].mxu0 }
 0x280   : > { %v1227_v57 = vadd.f32 %v1206_v61, %v5741_v53  ;;  %v1208_v50 = vpop.f32.mrb[1].mxu1  ;;  %v1226_v54 = vadd.f32 %v1155_v59, %v5696_v55  ;;  %v1157_v42 = vpop.f32.mrb[2].mxu0 }
 0x281   : > { %v1228_v52 = vadd.f32 %v1208_v50, %v5694_v58  ;;  %v1210_v0 = vpop.f32.mrb[2].mxu1  ;;  %1581 = vst [vmem:[%s4612_s6] sm:$0xff] %v1225_v60  ;;  %v1229_v41 = vadd.f32 %v1157_v42, %v5695_v56  ;;  %v1159_v51 = vpop.f32.mrb[3].mxu0 }
 0x282   : > { %1583 = vst [vmem:[%s4612_s6 + $0x10] sm:$0xff] %v1227_v57  ;;  %v1231_v63 = vadd.f32 %v1210_v0, %v5741_v53  ;;  %v1212_v47 = vpop.f32.mrb[3].mxu1  ;;  %1582 = vst [vmem:[%s4612_s6 + $0x8] sm:$0xff] %v1226_v54  ;;  %v1230_v45 = vadd.f32 %v1159_v51, %v5696_v55 }
 0x283   : > { %1584 = vst [vmem:[%s4612_s6 + $0x18] sm:$0xff] %v1228_v52  ;;  %v1232_v61 = vadd.f32 %v1212_v47, %v5694_v58  ;;  %1585 = vst [vmem:[%s4612_s6 + $0x20] sm:$0xff] %v1229_v41 }
 0x284   : > { %1587 = vst [vmem:[%s4612_s6 + $0x30] sm:$0xff] %v1231_v63  ;;  %1586 = vst [vmem:[%s4612_s6 + $0x28] sm:$0xff] %v1230_v45 }
 0x285   : > { %1588 = vst [vmem:[%s4612_s6 + $0x38] sm:$0xff] %v1232_v61 }
 0x286   : > { %v1163_v60 = vpop.f32.mrb[4].mxu0 }
 0x287   : > { %v1216_v57 = vpop.f32.mrb[4].mxu1  ;;  %v1233_v59 = vadd.f32 %v1163_v60, %v5695_v56  ;;  %v1165_v54 = vpop.f32.mrb[5].mxu0 }
 0x288   : > { %v1235_v50 = vadd.f32 %v1216_v57, %v5741_v53  ;;  %v1218_v52 = vpop.f32.mrb[5].mxu1  ;;  %v1234_v42 = vadd.f32 %v1165_v54, %v5696_v55  ;;  %v1167_v41 = vpop.f32.mrb[6].mxu0 }
 0x289   : > { %v1236_v0 = vadd.f32 %v1218_v52, %v5694_v58  ;;  %v1220_v63 = vpop.f32.mrb[6].mxu1  ;;  %1589 = vst [vmem:[%s4612_s6 + $0x40] sm:$0xff] %v1233_v59  ;;  %v1237_v51 = vadd.f32 %v1167_v41, %v5695_v56  ;;  %v1169_v45 = vpop.f32.mrb[7].mxu0 }
 0x28a   : > { %1591 = vst [vmem:[%s4612_s6 + $0x50] sm:$0xff] %v1235_v50  ;;  %v1239_v47 = vadd.f32 %v1220_v63, %v5741_v53  ;;  %v1222_v61 = vpop.f32.mrb[7].mxu1  ;;  %1590 = vst [vmem:[%s4612_s6 + $0x48] sm:$0xff] %v1234_v42  ;;  %v1238_v60 = vadd.f32 %v1169_v45, %v5696_v55 }
 0x28b   : > { %1592 = vst [vmem:[%s4612_s6 + $0x58] sm:$0xff] %v1236_v0  ;;  %v1240_v57 = vadd.f32 %v1222_v61, %v5694_v58  ;;  %1593 = vst [vmem:[%s4612_s6 + $0x60] sm:$0xff] %v1237_v51 }
 0x28c   : > { %1595 = vst [vmem:[%s4612_s6 + $0x70] sm:$0xff] %v1239_v47  ;;  %1594 = vst [vmem:[%s4612_s6 + $0x68] sm:$0xff] %v1238_v60 }
 0x28d   : > { %1596 = vst [vmem:[%s4612_s6 + $0x78] sm:$0xff] %v1240_v57 }
 0x29e   : > { %v1487_v54 = vpop.f32.mrb[8].mxu0 }
 0x29f   : > { %v1540_v59 = vpop.f32.mrb[8].mxu1  ;;  %v1559_v50 = vadd.f32 %v1487_v54, %v5699_v46  ;;  %v1489_v41 = vpop.f32.mrb[9].mxu0 }
 0x2a0   : > { %v1561_v52 = vadd.f32 %v1540_v59, %v5698_v48  ;;  %v1542_v63 = vpop.f32.mrb[9].mxu1  ;;  %v1560_v42 = vadd.f32 %v1489_v41, %v5693_v62  ;;  %v1491_v45 = vpop.f32.mrb[10].mxu0 }
 0x2a1   : > { %v1562_v0 = vadd.f32 %v1542_v63, %v5697_v49  ;;  %v1544_v53 = vpop.f32.mrb[10].mxu1  ;;  %1599 = vst [vmem:[%s4648_s4] sm:$0xff] %v1559_v50  ;;  %v1563_v51 = vadd.f32 %v1491_v45, %v5699_v46  ;;  %v1493_v61 = vpop.f32.mrb[11].mxu0 }
 0x2a2   : > { %1601 = vst [vmem:[%s4648_s4 + $0x10] sm:$0xff] %v1561_v52  ;;  %v1565_v47 = vadd.f32 %v1544_v53, %v5698_v48  ;;  %v1546_v60 = vpop.f32.mrb[11].mxu1  ;;  %1600 = vst [vmem:[%s4648_s4 + $0x8] sm:$0xff] %v1560_v42  ;;  %v1564_v57 = vadd.f32 %v1493_v61, %v5693_v62 }
 0x2a3   : > { %1602 = vst [vmem:[%s4648_s4 + $0x18] sm:$0xff] %v1562_v0  ;;  %v1566_v54 = vadd.f32 %v1546_v60, %v5697_v49  ;;  %1603 = vst [vmem:[%s4648_s4 + $0x20] sm:$0xff] %v1563_v51 }
 0x2a4   : > { %1605 = vst [vmem:[%s4648_s4 + $0x30] sm:$0xff] %v1565_v47  ;;  %1604 = vst [vmem:[%s4648_s4 + $0x28] sm:$0xff] %v1564_v57 }
 0x2a5   : > { %1606 = vst [vmem:[%s4648_s4 + $0x38] sm:$0xff] %v1566_v54 }
 0x2a6   : > { %v1497_v59 = vpop.f32.mrb[12].mxu0 }
 0x2a7   : > { %v1550_v50 = vpop.f32.mrb[12].mxu1  ;;  %v1567_v53 = vadd.f32 %v1497_v59, %v5699_v46  ;;  %v1499_v41 = vpop.f32.mrb[13].mxu0 }
 0x2a8   : > { %v1569_v52 = vadd.f32 %v1550_v50, %v5698_v48  ;;  %v1552_v63 = vpop.f32.mrb[13].mxu1  ;;  %v1568_v42 = vadd.f32 %v1499_v41, %v5693_v62  ;;  %v1501_v45 = vpop.f32.mrb[14].mxu0 }
 0x2a9   : > { %v1570_v0 = vadd.f32 %v1552_v63, %v5697_v49  ;;  %v1554_v51 = vpop.f32.mrb[14].mxu1  ;;  %1607 = vst [vmem:[%s4648_s4 + $0x40] sm:$0xff] %v1567_v53  ;;  %v1571_v47 = vadd.f32 %v1501_v45, %v5699_v46  ;;  %v1503_v60 = vpop.f32.mrb[15].mxu0 }
 0x2aa   : > { %1609 = vst [vmem:[%s4648_s4 + $0x50] sm:$0xff] %v1569_v52  ;;  %v1573_v61 = vadd.f32 %v1554_v51, %v5698_v48  ;;  %v1556_v57 = vpop.f32.mrb[15].mxu1  ;;  %1608 = vst [vmem:[%s4648_s4 + $0x48] sm:$0xff] %v1568_v42  ;;  %v1572_v54 = vadd.f32 %v1503_v60, %v5693_v62 }
 0x2ab   : > { %1610 = vst [vmem:[%s4648_s4 + $0x58] sm:$0xff] %v1570_v0  ;;  %v1574_v59 = vadd.f32 %v1556_v57, %v5697_v49  ;;  %1611 = vst [vmem:[%s4648_s4 + $0x60] sm:$0xff] %v1571_v47 }
 0x2ac   : > { %1613 = vst [vmem:[%s4648_s4 + $0x70] sm:$0xff] %v1573_v61  ;;  %1612 = vst [vmem:[%s4648_s4 + $0x68] sm:$0xff] %v1572_v54 }
 0x2ad   : > { %1614 = vst [vmem:[%s4648_s4 + $0x78] sm:$0xff] %v1574_v59 }
 0x2ae PF: > { %v4680_v50 = vcombine.high %v5740_v1, %v5738_v3  ;;  %v4684_v53 = vcombine.low %v5740_v1, %v5738_v3  ;;  %v4688_v52 = vcombine.high %v5736_v5, %v5734_v7  ;;  %v4692_v41 = vcombine.high %v5739_v2, %v5737_v4  ;;  %s4726_s24 = sshll.u32 %s4021_s7, 2  ;;  %s3471_s25 = sshll.u32 %s4021_s7, 5  ;;  %v5790_v48 = vld [vmem:[#allocation66_spill] sm:$0xff]  ;;  %v5794_v55 = vld [vmem:[#allocation69_spill] sm:$0xff] }
 0x2af   : > { %v4697_v63 = vcombine.low %v5739_v2, %v5737_v4  ;;  %v4701_v42 = vcombine.high %v5735_v6, %v5733_v8  ;;  %v4706_v0 = vcombine.low %v5736_v5, %v5734_v7  ;;  %v4712_v45 = vcombine.high %v5732_v9, %v5730_v11  ;;  %s1628_s26 = ssub.s32 7, %s4726_s24  ;;  %s4759_s12 = scalar_lea.vmem %s5435_s1, %s3471_s25  ;;  %v5798_v58 = vld [vmem:[#allocation70_spill] sm:$0xff] }
 0x2b0   : > { %5746 = vst [vmem:[#allocation92_spill] sm:$0xff] %v4688_v52  ;;  %1801 = vmatprep.subr.bf16.mxu0 %v4680_v50  ;;  %1842 = vmatprep.subr.bf16.mxu1 %v4692_v41  ;;  %v4717_v51 = vcombine.low %v5735_v6, %v5733_v8  ;;  %v4722_v47 = vcombine.high %v5731_v10, %v5729_v12  ;;  %v5480_v61 = vmov 0   ;;  %s3412_s13 = sshll.u32 %s1628_s26, 3  ;;  %v5761_v4 = vmov 0   ;;  %v2193_v5 = vld [vmem:[%s4759_s12] sm:$0xff]  ;;  %s2230_s3 = ssub.s32 6, %s4726_s24 }
 0x2b1   : > { %5747 = vst [vmem:[#allocation93_spill] sm:$0xff] %v4697_v63  ;;  %5748 = vst [vmem:[#allocation94_spill] sm:$0xff] %v4701_v42  ;;  %1802 = vmatpush1.bf16.msra.mxu0 %v4684_v53  ;;  %1843 = vmatpush1.bf16.msra.mxu1 %v4697_v63  ;;  %v4731_v60 = vcombine.low %v5732_v9, %v5730_v11  ;;  %v4736_v57 = vcombine.high %v5728_v13, %v5726_v15  ;;  %s2195_s16 = scalar_lea.vmem %s5435_s1, %s3412_s13  ;;  %s2512_s20 = ssub.s32 5, %s4726_s24 }
 0x2b2   : > { %5749 = vst [vmem:[#allocation95_spill] sm:$0xff] %v4706_v0  ;;  %1803 = vmatprep.subr.bf16.mxu0 %v4688_v52  ;;  %5750 = vst [vmem:[#allocation96_spill] sm:$0xff] %v4712_v45  ;;  %1844 = vmatprep.subr.bf16.mxu1 %v4701_v42  ;;  %v4741_v54 = vcombine.low %v5731_v10, %v5729_v12  ;;  %v4747_v59 = vcombine.high %v5727_v14, %v5725_v16  ;;  %v2196_v10 = vld [vmem:[%s2195_s16] sm:$0xff]  ;;  %s3428_s5 = sshll.u32 %s2230_s3, 3  ;;  %s1616_s19 = ssub.s32 0, %s4021_s7 }
 0x2b3   : > { %5751 = vst [vmem:[#allocation97_spill] sm:$0xff] %v4717_v51  ;;  %5752 = vst [vmem:[#allocation98_spill] sm:$0xff] %v4722_v47  ;;  %1833 = vmatprep.mubr.bf16.mxu0 %v5480_v61  ;;  %1874 = vmatprep.mubr.bf16.mxu1 %v5480_v61  ;;  %v4754_v1 = vcombine.low %v5728_v13, %v5726_v15  ;;  %v4764_v2 = vcombine.high %v5724_v17, %v5722_v19  ;;  %s2477_s17 = scalar_lea.vmem %s5435_s1, %s3428_s5  ;;  %s3444_s21 = sshll.u32 %s2512_s20, 3 }
 0x2b4   : > { %5753 = vst [vmem:[#allocation99_spill] sm:$0xff] %v4731_v60  ;;  %5754 = vst [vmem:[#allocation100_spill] sm:$0xff] %v4736_v57  ;;  %v4769_v61 = vcombine.low %v5727_v14, %v5725_v16  ;;  %v4776_v3 = vcombine.high %v5723_v18, %v5721_v20  ;;  %3735 = vset.pattern.permute.xlu0 %v5761_v4  ;;  %v4783_v6 = vcombine.low %v5724_v17, %v5722_v19  ;;  %v3443_v14 = vld [vmem:[%s4759_s12 + $0x10] sm:$0xff]  ;;  %s2751_s6 = scalar_lea.vmem %s5435_s1, %s3444_s21  ;;  %s2786_s4 = ssub.s32 4, %s4726_s24 }
 0x2b5   : > { %1804 = vmatpush1.bf16.msra.mxu0 %v4706_v0  ;;  %1845 = vmatpush1.bf16.msra.mxu1 %v4717_v51  ;;  %5755 = vst [vmem:[#allocation101_spill] sm:$0xff] %v4741_v54  ;;  %5756 = vst [vmem:[#allocation102_spill] sm:$0xff] %v4747_v59  ;;  %v4791_v7 = vcombine.high %v5720_v21, %v5718_v23  ;;  %v4796_v8 = vcombine.low %v5723_v18, %v5721_v20  ;;  %v3459_v18 = vld [vmem:[%s4759_s12 + $0x18] sm:$0xff]  ;;  %s3332_s25 = smin.u32 %s4021_s7, %s1616_s19  ;;  %s3460_s27 = sshll.u32 %s2786_s4, 3 }
 0x2b6   : > { %1805 = vmatprep.subr.bf16.mxu0 %v4712_v45  ;;  %1846 = vmatprep.subr.bf16.mxu1 %v4722_v47  ;;  %5757 = vst [vmem:[#allocation103_spill] sm:$0xff] %v4754_v1  ;;  %5758 = vst [vmem:[#allocation104_spill] sm:$0xff] %v4764_v2  ;;  %v4801_v9 = vcombine.high %v5719_v22, %v5717_v24  ;;  %v4807_v11 = vcombine.low %v5720_v21, %v5718_v23  ;;  %s3025_s13 = scalar_lea.vmem %s5435_s1, %s3460_s27  ;;  %s1618_s14 = sand.u32 1, %s3332_s25  }
 0x2b7   : > { %5759 = vst [vmem:[#allocation105_spill] sm:$0xff] %v4769_v61  ;;  %5760 = vst [vmem:[#allocation106_spill] sm:$0xff] %v4776_v3  ;;  %2199 = vperm.xlu0 %3735, %v2193_v5   ;;  %3736 = vset.pattern.permute.xlu1 %v5761_v4  ;;  %v4812_v12 = vcombine.high %v5716_v25, %v5714_v27  ;;  %v4817_v5 = vcombine.low %v5719_v22, %v5717_v24  ;;  %p1615_p13 = scmp.lt.s32.totalorder %s4021_s7, 0  ;;  %s1619_s15 = ssub.s32 0, %s1618_s14 }
 0x2b8   : > { %5762 = vst [vmem:[#allocation107_spill] sm:$0xff] %v4783_v6  ;;  %5763 = vst [vmem:[#allocation108_spill] sm:$0xff] %v4791_v7  ;;  %v4822_v13 = vcombine.high %v5715_v26, %v5713_v28  ;;  %v4828_v15 = vcombine.low %v5716_v25, %v5714_v27  ;;  %v4833_v16 = vcombine.high %v5712_v29, %v5710_v31  ;;  %v5778_v27 = vld [vmem:[#allocation57_spill] sm:$0xff]  ;;  %s4031_s24 = smov (%p3252_p10), [#allocation10]  }
 0x2b9   : > { %1806 = vmatpush1.bf16.msra.mxu0 %v4731_v60  ;;  %1847 = vmatpush1.bf16.msra.mxu1 %v4741_v54  ;;  %5764 = vst [vmem:[#allocation109_spill] sm:$0xff] %v4796_v8  ;;  %5765 = vst [vmem:[#allocation110_spill] sm:$0xff] %v4801_v9  ;;  %v4838_v17 = vcombine.low %v5715_v26, %v5713_v28  ;;  %v4849_v19 = vcombine.low %v5712_v29, %v5710_v31  ;;  %v5780_v31 = vld [vmem:[#allocation58_spill] sm:$0xff]  ;;  %s5875_s15 = smov (!%p1615_p13, %s1619_s15), %s1618_s14 }
 0x2ba   : > { %1807 = vmatprep.subr.bf16.mxu0 %v4736_v57  ;;  %1848 = vmatprep.subr.bf16.mxu1 %v4747_v59  ;;  %5766 = vst [vmem:[#allocation111_spill] sm:$0xff] %v4807_v11  ;;  %5767 = vst [vmem:[#allocation112_spill] sm:$0xff] %v4812_v12  ;;  %v4854_v20 = vcombine.high %v5708_v33, %v5706_v35  ;;  %v4859_v21 = vcombine.low %v5711_v30, %v5709_v32  ;;  %p3334_p0 = scmp.lt.s32.totalorder %s5875_s15, 0  ;;  %s1625_s16 = sadd.s32 2, %s5875_s15 }
 0x2bb   : > { %5768 = vst [vmem:[#allocation113_spill] sm:$0xff] %v4817_v5  ;;  %5769 = vst [vmem:[#allocation114_spill] sm:$0xff] %v4822_v13  ;;  %2209 = vperm.xlu0 %3735, %v2196_v10   ;;  %v4843_v10 = vcombine.high %v5711_v30, %v5709_v32  ;;  %v1640_v22 = vpack.c.bf16 %v4017_v44, %v4017_v44  ;;  %v4871_v23 = vcombine.low %v5708_v33, %v5706_v35  ;;  %v5779_v30 = vld [vmem:[#allocation60_spill] sm:$0xff]  ;;  %v5781_v33 = vld [vmem:[#allocation63_spill] sm:$0xff] }
 0x2bc   : > { %5770 = vst [vmem:[#allocation115_spill] sm:$0xff] %v4828_v15  ;;  %5771 = vst [vmem:[#allocation116_spill] sm:$0xff] %v4833_v16  ;;  %v4876_v24 = vcombine.high %v5704_v37, %v5702_v39  ;;  %v4886_v25 = vcombine.high %v5703_v38, %v5701_v40  ;;  %v4891_v26 = vcombine.low %v5704_v37, %v5702_v39  ;;  %v5783_v37 = vld [vmem:[#allocation64_spill] sm:$0xff]  ;;  %s5877_s16 = smov (!%p3334_p0, %s1625_s16), %s5875_s15 }
 0x2bd   : > { %1808 = vmatpush1.bf16.msra.mxu0 %v4754_v1  ;;  %1849 = vmatpush1.bf16.msra.mxu1 %v4769_v61  ;;  %5772 = vst [vmem:[#allocation117_spill] sm:$0xff] %v4838_v17  ;;  %5773 = vst [vmem:[#allocation118_spill] sm:$0xff] %v4843_v10  ;;  %v4896_v28 = vcombine.high %v5778_v27, %v5700_v43  ;;  %v4901_v29 = vcombine.low %v5703_v38, %v5701_v40  ;;  %v5784_v38 = vld [vmem:[#allocation62_spill] sm:$0xff]  ;;  %v5785_v40 = vld [vmem:[#allocation67_spill] sm:$0xff]  ;;  %s5084_s5 = sshll.u32 %s5877_s16, 5 }
 0x2be   : > { %1809 = vmatprep.subr.bf16.mxu0 %v4764_v2  ;;  %1850 = vmatprep.subr.bf16.mxu1 %v4776_v3  ;;  %5774 = vst [vmem:[#allocation119_spill] sm:$0xff] %v4849_v19  ;;  %5775 = vst [vmem:[#allocation120_spill] sm:$0xff] %v4854_v20  ;;  %v4906_v32 = vcombine.high %v5780_v31, %v5779_v30  ;;  %v4928_v39 = vcombine.high %v5784_v38, %v5783_v37  ;;  %s1631_s29 = sshra.s32 %s5084_s5, 3  ;;  %s1630_s19 = sadd.s32 24, %s5084_s5 }
 0x2bf   : > { %2755 = vperm.xlu0 %3735, %v3443_v14   ;;  %5776 = vst [vmem:[#allocation121_spill] sm:$0xff] %v4859_v21  ;;  %v4864_v14 = vcombine.high %v5707_v34, %v5705_v36  ;;  %s5087_s30 = sshll.u32 %s1631_s29, 5  ;;  %s5091_s21 = sshra.s32 %s1630_s19, 3 }
 0x2c0   : > { %s3470_s22 = sshll.u32 %s5091_s21, 5  ;;  %s2881_s21 = scalar_lea.vmem [#allocation3], %s5087_s30 }
 0x2c1   : > { %1810 = vmatpush1.bf16.msra.mxu0 %v4783_v6  ;;  %1851 = vmatpush1.bf16.msra.mxu1 %v4796_v8  ;;  %5777 = vst [vmem:[#allocation122_spill] sm:$0xff] %v4864_v14  ;;  %s1891_s23 = scalar_lea.vmem [#allocation3], %s3470_s22 }
 0x2c2   : > { %1811 = vmatprep.subr.bf16.mxu0 %v4791_v7  ;;  %1852 = vmatprep.subr.bf16.mxu1 %v4801_v9 }
 0x2c3   : > { %3029 = vperm.xlu0 %3735, %v3459_v18   ;;  %v4881_v18 = vcombine.low %v5707_v34, %v5705_v36  ;;  %v5782_v34 = vld [vmem:[#allocation61_spill] sm:$0xff]  ;;  %v4923_v36 = vcombine.low %v5780_v31, %v5779_v30  ;;  %v4943_v30 = vcombine.low %v5784_v38, %v5783_v37  ;;  %v5789_v31 = vld [vmem:[#allocation68_spill] sm:$0xff] }
 0x2c4   : > { %v4918_v35 = vcombine.high %v5782_v34, %v5781_v33  ;;  %v4948_v49 = vcombine.high %v5790_v48, %v5789_v31  ;;  %v4963_v37 = vcombine.low %v5790_v48, %v5789_v31  ;;  %v5797_v38 = vld [vmem:[#allocation72_spill] sm:$0xff] }
 0x2c5   : > { %1812 = vmatpush1.bf16.msra.mxu0 %v4807_v11  ;;  %1853 = vmatpush1.bf16.msra.mxu1 %v4817_v5  ;;  %5788 = vst [vmem:[#allocation124_spill] sm:$0xff] %v4943_v30  ;;  %v4968_v62 = vcombine.high %v5798_v58, %v5797_v38  ;;  %v4983_v31 = vcombine.low %v5798_v58, %v5797_v38  ;;  %v5803_v48 = vld [vmem:[#allocation76_spill] sm:$0xff] }
 0x2c6   : > { %1813 = vmatprep.subr.bf16.mxu0 %v4812_v12  ;;  %1854 = vmatprep.subr.bf16.mxu1 %v4822_v13  ;;  %5791 = vst [vmem:[#allocation125_spill] sm:$0xff] %v4948_v49  ;;  %5796 = vst [vmem:[#allocation128_spill] sm:$0xff] %v4963_v37  ;;  %v5807_v58 = vld [vmem:[#allocation80_spill] sm:$0xff] }
 0x2c7   : > { %5799 = vst [vmem:[#allocation129_spill] sm:$0xff] %v4968_v62 }
 0x2c9   : > { %1814 = vmatpush1.bf16.msra.mxu0 %v4828_v15  ;;  %1855 = vmatpush1.bf16.msra.mxu1 %v4838_v17 }
 0x2ca   : > { %1815 = vmatprep.subr.bf16.mxu0 %v4833_v16  ;;  %1856 = vmatprep.subr.bf16.mxu1 %v4843_v10 }
 0x2cd   : > { %1816 = vmatpush1.bf16.msra.mxu0 %v4849_v19  ;;  %1857 = vmatpush1.bf16.msra.mxu1 %v4859_v21 }
 0x2ce   : > { %2057 = vmatprep.subr.bf16.mxu0 %v4854_v20  ;;  %2098 = vmatprep.subr.bf16.mxu1 %v4864_v14 }
 0x2d0   : > { %1834 = vmatmul.mubr.bf16.vlgmr.msra.gmra.mrb[0].mxu0 %v1640_v22  ;;  %1875 = vmatmul.mubr.bf16.vlgmr.msra.gmra.mrb[0].mxu1 %v1640_v22  ;;  %v4913_v22 = vcombine.low %v5778_v27, %v5700_v43  ;;  %v4933_v27 = vcombine.low %v5782_v34, %v5781_v33  ;;  %v5786_v43 = vld [vmem:[#allocation65_spill] sm:$0xff]  ;;  %v5793_v34 = vld [vmem:[#allocation71_spill] sm:$0xff] }
 0x2d1   : > { %2058 = vmatpush1.bf16.msra.mxu0 %v4871_v23  ;;  %2099 = vmatpush1.bf16.msra.mxu1 %v4881_v18  ;;  %v4938_v46 = vcombine.high %v5786_v43, %v5785_v40  ;;  %v4953_v33 = vcombine.low %v5786_v43, %v5785_v40  ;;  %v4958_v56 = vcombine.high %v5794_v55, %v5793_v34  ;;  %v5801_v43 = vld [vmem:[#allocation75_spill] sm:$0xff] }
 0x2d2   : > { %2059 = vmatprep.subr.bf16.mxu0 %v4876_v24  ;;  %2100 = vmatprep.subr.bf16.mxu1 %v4886_v25  ;;  %v4973_v40 = vcombine.low %v5794_v55, %v5793_v34  ;;  %v5805_v55 = vld [vmem:[#allocation79_spill] sm:$0xff] }
 0x2d3   : > { %2089 = vmatprep.mubr.bf16.mxu0 %v5761_v4  ;;  %2130 = vmatprep.mubr.bf16.mxu1 %v5761_v4  ;;  %5787 = vst [vmem:[#allocation123_spill] sm:$0xff] %v4938_v46  ;;  %5792 = vst [vmem:[#allocation126_spill] sm:$0xff] %v4953_v33 }
 0x2d4   : > { %5795 = vst [vmem:[#allocation127_spill] sm:$0xff] %v4958_v56  ;;  %5800 = vst [vmem:[#allocation130_spill] sm:$0xff] %v4973_v40 }
 0x2d5   : > { %2060 = vmatpush1.bf16.msra.mxu0 %v4891_v26  ;;  %2101 = vmatpush1.bf16.msra.mxu1 %v4901_v29 }
 0x2d6   : > { %2061 = vmatprep.subr.bf16.mxu0 %v4896_v28  ;;  %2102 = vmatprep.subr.bf16.mxu1 %v4906_v32 }
 0x2d9   : > { %2062 = vmatpush1.bf16.msra.mxu0 %v4913_v22  ;;  %2103 = vmatpush1.bf16.msra.mxu1 %v4923_v36 }
 0x2da   : > { %2063 = vmatprep.subr.bf16.mxu0 %v4918_v35  ;;  %2104 = vmatprep.subr.bf16.mxu1 %v4928_v39 }
 0x2dd   : > { %2064 = vmatpush1.bf16.msra.mxu0 %v4933_v27  ;;  %2105 = vmatpush1.bf16.msra.mxu1 %v4943_v30 }
 0x2de   : > { %2065 = vmatprep.subr.bf16.mxu0 %v4938_v46  ;;  %2106 = vmatprep.subr.bf16.mxu1 %v4948_v49  ;;  %v5802_v46 = vld [vmem:[#allocation73_spill] sm:$0xff] }
 0x2df   : > { %v4978_v30 = vcombine.high %v5802_v46, %v5801_v43  ;;  %v4993_v34 = vcombine.low %v5802_v46, %v5801_v43  ;;  %v5809_v46 = vld [vmem:[#allocation90_spill] sm:$0xff] }
 0x2e1   : > { %2066 = vmatpush1.bf16.msra.mxu0 %v4953_v33  ;;  %2107 = vmatpush1.bf16.msra.mxu1 %v4963_v37  ;;  %v5804_v33 = vld [vmem:[#allocation74_spill] sm:$0xff] }
 0x2e2   : > { %2067 = vmatprep.subr.bf16.mxu0 %v4958_v56  ;;  %2108 = vmatprep.subr.bf16.mxu1 %v4968_v62  ;;  %v4988_v49 = vcombine.high %v5804_v33, %v5803_v48  ;;  %v5806_v56 = vld [vmem:[#allocation77_spill] sm:$0xff]  ;;  %v5003_v38 = vcombine.low %v5804_v33, %v5803_v48  ;;  %v1896_v48 = vpack.c.bf16 %v5809_v46, %v5809_v46 }
 0x2e3   : > { %v4998_v37 = vcombine.high %v5806_v56, %v5805_v55  ;;  %v5013_v43 = vcombine.low %v5806_v56, %v5805_v55  ;;  %v2752_v55 = vld [vmem:[%s2751_s6] sm:$0xff]  ;;  %s3472_s6 = sshll.u32 %s4021_s7, 4  ;;  %s3414_s7 = sshll.u32 %s1628_s26, 2 }
 0x2e4   : > { %s5108_s28 = scalar_lea.vmem %s5442_s8, %s3472_s6  ;;  %s2215_s14 = scalar_lea.vmem %s5443_s9, %s3414_s7 }
 0x2e5   : > { %2068 = vmatpush1.bf16.msra.mxu0 %v4973_v40  ;;  %2109 = vmatpush1.bf16.msra.mxu1 %v4983_v31  ;;  %v5808_v40 = vld [vmem:[#allocation78_spill] sm:$0xff]  ;;  %s2231_s26 = sadd.s32 8, %s5084_s5  ;;  %s3432_s6 = sshll.u32 %s2230_s3, 2 }
 0x2e6   : > { %2069 = vmatprep.subr.bf16.mxu0 %v4978_v30  ;;  %2110 = vmatprep.subr.bf16.mxu1 %v4988_v49  ;;  %v5008_v62 = vcombine.high %v5808_v40, %v5807_v58  ;;  %v5019_v33 = vcombine.low %v5808_v40, %v5807_v58  ;;  %v2478_v40 = vld [vmem:[%s2477_s17] sm:$0xff]  ;;  %s1635_s17 = scalar_lea.vmem [#allocation2], %s5087_s30  ;;  %s5205_s15 = sshra.s32 %s2231_s26, 3 }
 0x2e7   : > { %v1637_v56 = vld [vmem:[%s1635_s17 + $0x8] sm:$0xff]  ;;  %s3473_s16 = sshll.u32 %s5205_s15, 5  ;;  %s2497_s7 = scalar_lea.vmem %s5443_s9, %s3432_s6 }
 0x2e8   : > { %s2237_s29 = scalar_lea.vmem [#allocation2], %s3473_s16  ;;  %s3464_s30 = sshll.u32 %s2786_s4, 2 }
 0x2e9   : > { %2070 = vmatpush1.bf16.msra.mxu0 %v4993_v34  ;;  %2111 = vmatpush1.bf16.msra.mxu1 %v5003_v38  ;;  %s3071_s4 = sshll.u32 (%p3252_p10), %s4031_s24, 4  ;;  %s3072_s4 = int_to_ptr.vmem [resolvable:$true] %s3071_s4 }
 0x2ea   : > { %2071 = vmatprep.subr.bf16.mxu0 %v4998_v37  ;;  %2112 = vmatprep.subr.bf16.mxu1 %v5008_v62  ;;  %p3936_p2 = scmp.lt.s32.totalorder (%p3252_p10), %s3072_s4, %s3072_s4 }
 0x2ed   : > { %2072 = vmatpush1.bf16.msra.mxu0 %v5013_v43  ;;  %2113 = vmatpush1.bf16.msra.mxu1 %v5019_v33 }
 0x2ee   : > { %2243 = vmatprep.subr.bf16.mxu0 %v4680_v50  ;;  %2284 = vmatprep.subr.bf16.mxu1 %v4692_v41 }
 0x2f0   : > { %2090 = vmatmul.mubr.bf16.vlgmr.msra.gmra.mrb[4].mxu0 %v1896_v48  ;;  %2131 = vmatmul.mubr.bf16.vlgmr.msra.gmra.mrb[4].mxu1 %v1896_v48  ;;  %v3427_v48 = vld [vmem:[%s4759_s12 + $0x8] sm:$0xff]  ;;  %s2607_s12 = scalar_lea.vmem [#allocation3], %s3473_s16  ;;  %s3045_s16 = scalar_lea.vmem %s5443_s9, %s3464_s30 }
 0x2f1   : > { %2244 = vmatpush1.bf16.msra.mxu0 %v4684_v53  ;;  %2285 = vmatpush1.bf16.msra.mxu1 %v4697_v63 }
 0x2f2   : > { %2245 = vmatprep.subr.bf16.mxu0 %v4688_v52  ;;  %2286 = vmatprep.subr.bf16.mxu1 %v4701_v42 }
 0x2f3   : > { %2275 = vmatprep.mubr.bf16.mxu0 %v5761_v4  ;;  %2316 = vmatprep.mubr.bf16.mxu1 %v5761_v4 }
 0x2f4   : > { %2481 = vperm.xlu1 %3736, %v3427_v48   ;;  %v3026_v48 = vld [vmem:[%s3025_s13] sm:$0xff]  ;;  %s3448_s13 = sshll.u32 %s2512_s20, 2  ;;  %s2788_s20 = scalar_lea.vmem [#allocation2], %s3470_s22 }
 0x2f5   : > { %2246 = vmatpush1.bf16.msra.mxu0 %v4706_v0  ;;  %2287 = vmatpush1.bf16.msra.mxu1 %v4717_v51  ;;  %s2771_s15 = scalar_lea.vmem %s5443_s9, %s3448_s13 }
 0x2f6   : > { %2247 = vmatprep.subr.bf16.mxu0 %v4712_v45  ;;  %2288 = vmatprep.subr.bf16.mxu1 %v4722_v47 }
 0x2f8   : > { %2491 = vperm.xlu1 %3736, %v2478_v40   ;;  %v1636_v40 = vld [vmem:[%s1635_s17] sm:$0xff] }
 0x2f9   : > { %2248 = vmatpush1.bf16.msra.mxu0 %v4731_v60  ;;  %2289 = vmatpush1.bf16.msra.mxu1 %v4741_v54 }
 0x2fa   : > { %2249 = vmatprep.subr.bf16.mxu0 %v4736_v57  ;;  %2290 = vmatprep.subr.bf16.mxu1 %v4747_v59 }
 0x2fc   : > { %2765 = vperm.xlu1 %3736, %v2752_v55  }
 0x2fd   : > { %2250 = vmatpush1.bf16.msra.mxu0 %v4754_v1  ;;  %2291 = vmatpush1.bf16.msra.mxu1 %v4769_v61 }
 0x2fe   : > { %2251 = vmatprep.subr.bf16.mxu0 %v4764_v2  ;;  %2292 = vmatprep.subr.bf16.mxu1 %v4776_v3 }
 0x300   : > { %3039 = vperm.xlu1 %3736, %v3026_v48  }
 0x301   : > { %2252 = vmatpush1.bf16.msra.mxu0 %v4783_v6  ;;  %2293 = vmatpush1.bf16.msra.mxu1 %v4796_v8 }
 0x302   : > { %2253 = vmatprep.subr.bf16.mxu0 %v4791_v7  ;;  %2294 = vmatprep.subr.bf16.mxu1 %v4801_v9 }
 0x305   : > { %2254 = vmatpush1.bf16.msra.mxu0 %v4807_v11  ;;  %2295 = vmatpush1.bf16.msra.mxu1 %v4817_v5  ;;  %v1639_v11 = vld [vmem:[%s1635_s17 + $0x18] sm:$0xff] }
 0x306   : > { %2255 = vmatprep.subr.bf16.mxu0 %v4812_v12  ;;  %2296 = vmatprep.subr.bf16.mxu1 %v4822_v13  ;;  %v1638_v13 = vld [vmem:[%s1635_s17 + $0x10] sm:$0xff]  ;;  %s2232_s17 = sadd.s32 16, %s5084_s5 }
 0x307   : > { %s5213_s19 = sshra.s32 %s2232_s17, 3 }
 0x309   : > { %2256 = vmatpush1.bf16.msra.mxu0 %v4828_v15  ;;  %2297 = vmatpush1.bf16.msra.mxu1 %v4838_v17 }
 0x30a   : > { %2257 = vmatprep.subr.bf16.mxu0 %v4833_v16  ;;  %2298 = vmatprep.subr.bf16.mxu1 %v4843_v10 }
 0x30d   : > { %2258 = vmatpush1.bf16.msra.mxu0 %v4849_v19  ;;  %2299 = vmatpush1.bf16.msra.mxu1 %v4859_v21 }
 0x30e   : > { %2339 = vmatprep.subr.bf16.mxu0 %v4854_v20  ;;  %2380 = vmatprep.subr.bf16.mxu1 %v4864_v14 }
 0x3a3   : > { %v1835_v58 = vpop.f32.mrb[0].mxu0  ;;  %v1876_v20 = vpop.f32.mrb[0].mxu1 }
 0x3a4   : > { %v1883_v55 = vadd.f32 %v1835_v58, %v1636_v40  ;;  %v1837_v14 = vpop.f32.mrb[1].mxu0  ;;  %v1878_v19 = vpop.f32.mrb[1].mxu1  ;;  %v1885_v5 = vadd.f32 %v1876_v20, %v1638_v13 }
 0x3a5   : > { %v1884_v21 = vadd.f32 %v1837_v14, %v1637_v56  ;;  %v1839_v48 = vpop.f32.mrb[2].mxu0  ;;  %v1880_v17 = vpop.f32.mrb[2].mxu1  ;;  %v1886_v7 = vadd.f32 %v1878_v19, %v1639_v11  ;;  %v5810_v19 = vld [vmem:[#allocation91_spill] sm:$0xff] }
 0x3a6   : > { %v3405_v10 = vmul.f32 -1.442695, %v1883_v55  ;;  %v1840_v16 = vpop.f32.mrb[3].mxu0  ;;  %v1881_v12 = vpop.f32.mrb[3].mxu1  ;;  %v3407_v9 = vmul.f32 -1.442695, %v1885_v5 }
 0x3a7   : > { %v3406_v15 = vmul.f32 -1.442695, %v1884_v21 }
 0x3a8   : > { %3737 = vpow2.f32 %v3405_v10 }
 0x3a9   : > { %3739 = vpow2.f32 %v3406_v15 }
 0x3aa   : > { %3741 = vpow2.f32 %v3407_v9 }
 0x3ab   : > { %3743 = vtanh.f32 %v1886_v7  ;;  %v1892_v7 = vld [vmem:[%s1891_s23] sm:$0xff] }
 0x3b2   : > { %v3738_v8 = vpop.eup %3737 }
 0x3b3   : > { %v3740_v58 = vpop.eup %3739  ;;  %v2152_v40 = vadd.f32 1.0, %v3738_v8  ;;  %v1893_v8 = vld [vmem:[%s1891_s23 + $0x8] sm:$0xff] }
 0x3b4   : > { %v2153_v56 = vadd.f32 1.0, %v3740_v58  ;;  %v3742_v12 = vpop.eup %3741 }
 0x3b5   : > { %3745 = vrcp.f32 %v2152_v40  ;;  %v3744_v15 = vpop.eup %3743  ;;  %v2154_v16 = vadd.f32 1.0, %v3742_v12 }
 0x3b6   : > { %3747 = vrcp.f32 %v2153_v56 }
 0x3b7   : > { %3749 = vrcp.f32 %v2154_v16 }
 0x3bf   : > { %v3746_v13 = vpop.eup %3745 }
 0x3c0   : > { %v3748_v17 = vpop.eup %3747  ;;  %v2182_v11 = vmul.f32 %v3746_v13, %v3744_v15  ;;  %v1894_v13 = vld [vmem:[%s1891_s23 + $0x10] sm:$0xff] }
 0x3c1   : > { %v2181_v9 = vmul.f32 %v5810_v19, %v3748_v17 }
 0x3c3   : > { %v2091_v20 = vpop.f32.mrb[4].mxu0  ;;  %v5097_v21 = vadd.f32 %v2182_v11, %v2181_v9  ;;  %v2132_v14 = vpop.f32.mrb[4].mxu1  ;;  %v1895_v11 = vld [vmem:[%s1891_s23 + $0x18] sm:$0xff]  ;;  %s3474_s23 = sshll.u32 %s5213_s19, 5  ;;  %s3931_s19 = scalar_lea.vmem (%p3252_p10), %s3072_s4, 128 }
 0x3c4   : > { %v2139_v5 = vadd.f32 %v2091_v20, %v1892_v7  ;;  %v2093_v10 = vpop.f32.mrb[5].mxu0  ;;  %v2134_v58 = vpop.f32.mrb[5].mxu1  ;;  %v2141_v16 = vadd.f32 %v2132_v14, %v1894_v13  ;;  %s2333_s5 = scalar_lea.vmem [#allocation3], %s3474_s23  ;;  %s2514_s3 = scalar_lea.vmem [#allocation2], %s3474_s23 }
 0x3c5   : > { %v2140_v55 = vadd.f32 %v2093_v10, %v1893_v8  ;;  %v2095_v48 = vpop.f32.mrb[6].mxu0  ;;  %3751 = vtanh.f32 %v5097_v21  ;;  %v2136_v12 = vpop.f32.mrb[6].mxu1  ;;  %v2142_v19 = vadd.f32 %v2134_v58, %v1895_v11  ;;  %p3932_p1 = scmp.ne.s32.totalorder (%p3252_p10), %s3072_s4, %s3931_s19  ;;  %p3937_p3 = scmp.lt.s32.totalorder (%p3252_p10), %s3931_s19, %s3931_s19 }
 0x3c6   : > { %v3408_v40 = vmul.f32 -1.442695, %v2139_v5  ;;  %v2096_v56 = vpop.f32.mrb[7].mxu0  ;;  %v2137_v17 = vpop.f32.mrb[7].mxu1  ;;  %v3410_v7 = vmul.f32 -1.442695, %v2141_v16 }
 0x3c7   : > { %v3409_v15 = vmul.f32 -1.442695, %v2140_v55  ;;  %v3750_v9 = vpop.eup %3749  ;;  %v5101_v10 = vpop.permute.xlu0 %2199  ;;  %p3938_p4 = por (%p3252_p10), %p3937_p3, %p3936_p2 }
 0x3c8   : > { %3753 = vpow2.f32 %v3408_v40 }
 0x3c9   : > { %3755 = vpow2.f32 %v3409_v15  ;;  %p3939_p5 = pnand (%p3252_p10), %p3938_p4, %p3932_p1 }
 0x3ca   : > { %3757 = vpow2.f32 %v3410_v7  ;;  %v5811_v7 = vld [vmem:[#allocation89_spill] sm:$0xff] }
 0x3cb   : > { %3759 = vtanh.f32 %v2142_v19 }
 0x3cf   : > { %v3752_v20 = vpop.eup %3751 }
 0x3d0   : > { %v2188_v8 = vmul.f32 %v3752_v20, %v3750_v9 }
 0x3d2   : > { %v3754_v48 = vpop.eup %3753  ;;  %v2202_v5 = vmul.f32 %v5101_v10, %v2188_v8  ;;  %v2217_v56 = vsub.f32 %v2188_v8, %v4017_v44 }
 0x3d3   : > { %v3756_v55 = vpop.eup %3755  ;;  %v2170_v12 = vadd.f32 1.0, %v3754_v48  ;;  %v5812_v48 = vld [vmem:[#allocation124_spill] sm:$0xff] }
 0x3d4   : > { %v2171_v14 = vadd.f32 1.0, %v3756_v55  ;;  %v2203_v58 = vpack.c.bf16 %v2202_v5, %v2202_v5  ;;  %v2218_v40 = vmul.f32 %v2217_v56, %v5101_v10  ;;  %v3758_v19 = vpop.eup %3757  ;;  %v5813_v5 = vld [vmem:[#allocation123_spill] sm:$0xff]  ;;  %v5814_v56 = vld [vmem:[#allocation125_spill] sm:$0xff]  ;;  %v5815_v55 = vld [vmem:[#allocation126_spill] sm:$0xff] }
 0x3d5   : > { %3761 = vrcp.f32 %v2170_v12  ;;  %v3760_v17 = vpop.eup %3759  ;;  %v2172_v16 = vadd.f32 1.0, %v3758_v19  ;;  %v5816_v12 = vld [vmem:[#allocation128_spill] sm:$0xff]  ;;  %v5819_v19 = vld [vmem:[#allocation130_spill] sm:$0xff] }
 0x3d6   : > { %3763 = vrcp.f32 %v2171_v14  ;;  %2206 = vst [vmem:[%s5108_s28] sm:$0xf] %v2203_v58  ;;  %v5113_v15 = vadd.f32 %v4017_v44, %v2218_v40  ;;  %v5817_v14 = vld [vmem:[#allocation127_spill] sm:$0xff]  ;;  %v5818_v58 = vld [vmem:[#allocation129_spill] sm:$0xff] }
 0x3d7   : > { %3765 = vrcp.f32 %v2172_v16 }
 0x3d8   : > { %v2242_v13 = vpack.c.bf16 %v5113_v15, %v5113_v15 }
 0x3da   : > { %2276 = vmatmul.mubr.bf16.vlgmr.msra.gmra.mrb[8].mxu0 %v2242_v13  ;;  %2317 = vmatmul.mubr.bf16.vlgmr.msra.gmra.mrb[8].mxu1 %v2242_v13 }
 0x3db   : > { %2340 = vmatpush1.bf16.msra.mxu0 %v4871_v23  ;;  %2381 = vmatpush1.bf16.msra.mxu1 %v4881_v18 }
 0x3dc   : > { %2341 = vmatprep.subr.bf16.mxu0 %v4876_v24  ;;  %2382 = vmatprep.subr.bf16.mxu1 %v4886_v25 }
 0x3dd   : > { %2371 = vmatprep.mubr.bf16.mxu0 %v5761_v4  ;;  %2412 = vmatprep.mubr.bf16.mxu1 %v5761_v4 }
 0x3df   : > { %v3762_v44 = vpop.eup %3761  ;;  %2342 = vmatpush1.bf16.msra.mxu0 %v4891_v26  ;;  %2383 = vmatpush1.bf16.msra.mxu1 %v4901_v29 }
 0x3e0   : > { %v3764_v11 = vpop.eup %3763  ;;  %v2185_v9 = vmul.f32 %v3762_v44, %v3760_v17  ;;  %2343 = vmatprep.subr.bf16.mxu0 %v4896_v28  ;;  %2384 = vmatprep.subr.bf16.mxu1 %v4906_v32  ;;  %v5149_v44 = vpop.permute.xlu0 %2209 }
 0x3e1   : > { %v2184_v20 = vmul.f32 %v5811_v7, %v3764_v11  ;;  %v3766_v40 = vpop.eup %3765 }
 0x3e3   : > { %v5128_v8 = vadd.f32 %v2185_v9, %v2184_v20  ;;  %2344 = vmatpush1.bf16.msra.mxu0 %v4913_v22  ;;  %2385 = vmatpush1.bf16.msra.mxu1 %v4923_v36 }
 0x3e4   : > { %2345 = vmatprep.subr.bf16.mxu0 %v4918_v35  ;;  %2386 = vmatprep.subr.bf16.mxu1 %v4928_v39 }
 0x3e5   : > { %3767 = vtanh.f32 %v5128_v8 }
 0x3e7   : > { %2346 = vmatpush1.bf16.msra.mxu0 %v4933_v27  ;;  %2387 = vmatpush1.bf16.msra.mxu1 %v5812_v48 }
 0x3e8   : > { %2347 = vmatprep.subr.bf16.mxu0 %v5813_v5  ;;  %2388 = vmatprep.subr.bf16.mxu1 %v5814_v56 }
 0x3eb   : > { %2348 = vmatpush1.bf16.msra.mxu0 %v5815_v55  ;;  %2389 = vmatpush1.bf16.msra.mxu1 %v5816_v12 }
 0x3ec   : > { %2349 = vmatprep.subr.bf16.mxu0 %v5817_v14  ;;  %2390 = vmatprep.subr.bf16.mxu1 %v5818_v58 }
 0x3ef   : > { %v3768_v13 = vpop.eup %3767  ;;  %2350 = vmatpush1.bf16.msra.mxu0 %v5819_v19  ;;  %2391 = vmatpush1.bf16.msra.mxu1 %v4983_v31 }
 0x3f0   : > { %2351 = vmatprep.subr.bf16.mxu0 %v4978_v30  ;;  %2392 = vmatprep.subr.bf16.mxu1 %v4988_v49  ;;  %v2190_v17 = vmul.f32 %v3768_v13, %v3766_v40 }
 0x3f2   : > { %v2223_v16 = vsub.f32 %v2190_v17, %v5809_v46  ;;  %v2212_v11 = vmul.f32 %v5149_v44, %v2190_v17  ;;  %v5821_v17 = vld [vmem:[#allocation108_spill] sm:$0xff] }
 0x3f3   : > { %2352 = vmatpush1.bf16.msra.mxu0 %v4993_v34  ;;  %2393 = vmatpush1.bf16.msra.mxu1 %v5003_v38 }
 0x3f4   : > { %2353 = vmatprep.subr.bf16.mxu0 %v4998_v37  ;;  %2394 = vmatprep.subr.bf16.mxu1 %v5008_v62  ;;  %v2224_v9 = vmul.f32 %v2223_v16, %v5149_v44  ;;  %v2213_v20 = vpack.c.bf16 %v2212_v11, %v2212_v11  ;;  %v5822_v16 = vld [vmem:[#allocation110_spill] sm:$0xff]  ;;  %v5823_v11 = vld [vmem:[#allocation111_spill] sm:$0xff] }
 0x3f6   : > { %v5162_v40 = vadd.f32 %v5809_v46, %v2224_v9  ;;  %2216 = vst [vmem:[%s2215_s14] sm:$0xf] %v2213_v20  ;;  %v5820_v46 = vld [vmem:[#allocation109_spill] sm:$0xff]  ;;  %v5825_v20 = vld [vmem:[#allocation112_spill] sm:$0xff] }
 0x3f7   : > { %2354 = vmatpush1.bf16.msra.mxu0 %v5013_v43  ;;  %2395 = vmatpush1.bf16.msra.mxu1 %v5019_v33  ;;  %v5824_v9 = vld [vmem:[#allocation113_spill] sm:$0xff] }
 0x3f8   : > { %v2338_v13 = vpack.c.bf16 %v5162_v40, %v5162_v40  ;;  %2520 = vmatprep.subr.bf16.mxu0 %v4680_v50  ;;  %2561 = vmatprep.subr.bf16.mxu1 %v4692_v41 }
 0x3fa   : > { %2372 = vmatmul.mubr.bf16.vlgmr.msra.gmra.mrb[12].mxu0 %v2338_v13  ;;  %2413 = vmatmul.mubr.bf16.vlgmr.msra.gmra.mrb[12].mxu1 %v2338_v13  ;;  %v5826_v13 = vld [vmem:[#allocation114_spill] sm:$0xff] }
 0x3fb   : > { %2521 = vmatpush1.bf16.msra.mxu0 %v4684_v53  ;;  %2562 = vmatpush1.bf16.msra.mxu1 %v4697_v63 }
 0x3fc   : > { %2522 = vmatprep.subr.bf16.mxu0 %v4688_v52  ;;  %2563 = vmatprep.subr.bf16.mxu1 %v4701_v42  ;;  %v2336_v52 = vld [vmem:[%s2333_s5 + $0x10] sm:$0xff] }
 0x3fd   : > { %2552 = vmatprep.mubr.bf16.mxu0 %v5761_v4  ;;  %2593 = vmatprep.mubr.bf16.mxu1 %v5761_v4 }
 0x3ff   : > { %2523 = vmatpush1.bf16.msra.mxu0 %v4706_v0  ;;  %2564 = vmatpush1.bf16.msra.mxu1 %v4717_v51 }
 0x400   : > { %2524 = vmatprep.subr.bf16.mxu0 %v4712_v45  ;;  %2565 = vmatprep.subr.bf16.mxu1 %v4722_v47  ;;  %v2241_v47 = vld [vmem:[%s2237_s29 + $0x18] sm:$0xff] }
 0x403   : > { %2525 = vmatpush1.bf16.msra.mxu0 %v4731_v60  ;;  %2566 = vmatpush1.bf16.msra.mxu1 %v4741_v54  ;;  %v2240_v54 = vld [vmem:[%s2237_s29 + $0x10] sm:$0xff] }
 0x404   : > { %2526 = vmatprep.subr.bf16.mxu0 %v4736_v57  ;;  %2567 = vmatprep.subr.bf16.mxu1 %v4747_v59 }
 0x407   : > { %2527 = vmatpush1.bf16.msra.mxu0 %v4754_v1  ;;  %2568 = vmatpush1.bf16.msra.mxu1 %v4769_v61  ;;  %v5830_v61 = vld [vmem:[#allocation118_spill] sm:$0xff] }
 0x408   : > { %2528 = vmatprep.subr.bf16.mxu0 %v4764_v2  ;;  %2569 = vmatprep.subr.bf16.mxu1 %v4776_v3  ;;  %v5827_v2 = vld [vmem:[#allocation115_spill] sm:$0xff]  ;;  %v5828_v3 = vld [vmem:[#allocation117_spill] sm:$0xff] }
 0x40b   : > { %2529 = vmatpush1.bf16.msra.mxu0 %v4783_v6  ;;  %2570 = vmatpush1.bf16.msra.mxu1 %v5820_v46  ;;  %v5829_v6 = vld [vmem:[#allocation116_spill] sm:$0xff]  ;;  %v5831_v46 = vld [vmem:[#allocation119_spill] sm:$0xff] }
 0x40c   : > { %2530 = vmatprep.subr.bf16.mxu0 %v5821_v17  ;;  %2571 = vmatprep.subr.bf16.mxu1 %v5822_v16  ;;  %v5832_v17 = vld [vmem:[#allocation121_spill] sm:$0xff]  ;;  %v5833_v16 = vld [vmem:[#allocation120_spill] sm:$0xff] }
 0x40f   : > { %2531 = vmatpush1.bf16.msra.mxu0 %v5823_v11  ;;  %2572 = vmatpush1.bf16.msra.mxu1 %v5824_v9  ;;  %v5834_v11 = vld [vmem:[#allocation122_spill] sm:$0xff] }
 0x410   : > { %2532 = vmatprep.subr.bf16.mxu0 %v5825_v20  ;;  %2573 = vmatprep.subr.bf16.mxu1 %v5826_v13 }
 0x413   : > { %2533 = vmatpush1.bf16.msra.mxu0 %v5827_v2  ;;  %2574 = vmatpush1.bf16.msra.mxu1 %v5828_v3  ;;  %v2238_v3 = vld [vmem:[%s2237_s29] sm:$0xff] }
 0x414   : > { %2534 = vmatprep.subr.bf16.mxu0 %v5829_v6  ;;  %2575 = vmatprep.subr.bf16.mxu1 %v5830_v61  ;;  %v2239_v6 = vld [vmem:[%s2237_s29 + $0x8] sm:$0xff]  ;;  %s4032_s29 = smov (%p3252_p10), [#allocation11]  }
 0x415   :  { %s3081_s17 = sshll.u32 (%p3252_p10), %s4032_s29, 4  ;;  %s3082_s17 = int_to_ptr.vmem [resolvable:$true] %s3081_s17 }
 0x417   : > { %2535 = vmatpush1.bf16.msra.mxu0 %v5831_v46  ;;  %2576 = vmatpush1.bf16.msra.mxu1 %v5832_v17 }
 0x418   : > { %2613 = vmatprep.subr.bf16.mxu0 %v5833_v16  ;;  %2654 = vmatprep.subr.bf16.mxu1 %v5834_v11 }
 0x4ad   : > { %v2277_v2 = vpop.f32.mrb[8].mxu0  ;;  %v2318_v61 = vpop.f32.mrb[8].mxu1 }
 0x4ae   : > { %v2325_v13 = vadd.f32 %v2277_v2, %v2238_v3  ;;  %v2279_v46 = vpop.f32.mrb[9].mxu0  ;;  %v2320_v20 = vpop.f32.mrb[9].mxu1  ;;  %v2327_v60 = vadd.f32 %v2318_v61, %v2240_v54  ;;  %v2335_v54 = vld [vmem:[%s2333_s5 + $0x8] sm:$0xff] }
 0x4af   : > { %v2326_v17 = vadd.f32 %v2279_v46, %v2239_v6  ;;  %v2281_v9 = vpop.f32.mrb[10].mxu0  ;;  %v2322_v16 = vpop.f32.mrb[10].mxu1  ;;  %v2328_v45 = vadd.f32 %v2320_v20, %v2241_v47  ;;  %v5835_v6 = vld [vmem:[#allocation91_spill] sm:$0xff] }
 0x4b0   : > { %v3419_v1 = vmul.f32 -1.442695, %v2325_v13  ;;  %v2282_v11 = vpop.f32.mrb[11].mxu0  ;;  %v2323_v59 = vpop.f32.mrb[11].mxu1  ;;  %v3421_v51 = vmul.f32 -1.442695, %v2327_v60 }
 0x4b1   : > { %v3420_v57 = vmul.f32 -1.442695, %v2326_v17  ;;  %v2220_v59 = vsub.f32 %v5097_v21, %v5835_v6  ;;  %v2482_v21 = vpop.permute.xlu1 %2481 }
 0x4b2   : > { %3769 = vpow2.f32 %v3419_v1 }
 0x4b3   : > { %3771 = vpow2.f32 %v3420_v57  ;;  %v2221_v1 = vmul.f32 %v2220_v59, %v5101_v10  ;;  %v2334_v57 = vld [vmem:[%s2333_s5] sm:$0xff] }
 0x4b4   : > { %3773 = vtanh.f32 %v2328_v45 }
 0x4b5   : > { %3775 = vpow2.f32 %v3421_v51  ;;  %v2222_v45 = vadd.f32 %v5835_v6, %v2221_v1 }
 0x4bc   : > { %v3770_v0 = vpop.eup %3769 }
 0x4bd   : > { %v2434_v42 = vadd.f32 1.0, %v3770_v0  ;;  %v3772_v2 = vpop.eup %3771 }
 0x4be   : > { %v2435_v3 = vadd.f32 1.0, %v3772_v2  ;;  %v3774_v47 = vpop.eup %3773 }
 0x4bf   : > { %3777 = vrcp.f32 %v2434_v42  ;;  %v3776_v61 = vpop.eup %3775 }
 0x4c0   : > { %3779 = vrcp.f32 %v2435_v3  ;;  %v2436_v60 = vadd.f32 1.0, %v3776_v61 }
 0x4c2   : > { %3781 = vrcp.f32 %v2436_v60 }
 0x4c9   : > { %v3778_v0 = vpop.eup %3777 }
 0x4ca   : > { %v2464_v51 = vmul.f32 %v3778_v0, %v3774_v47  ;;  %v3780_v42 = vpop.eup %3779 }
 0x4cb   : > { %v2463_v46 = vmul.f32 %v3780_v42, %v2222_v45 }
 0x4cc   : > { %v3782_v63 = vpop.eup %3781 }
 0x4cd   : > { %v2373_v17 = vpop.f32.mrb[12].mxu0  ;;  %v2414_v16 = vpop.f32.mrb[12].mxu1  ;;  %v2465_v10 = vadd.f32 %v2464_v51, %v2463_v46 }
 0x4ce   : > { %v2421_v11 = vadd.f32 %v2373_v17, %v2334_v57  ;;  %v2375_v9 = vpop.f32.mrb[13].mxu0  ;;  %v2416_v20 = vpop.f32.mrb[13].mxu1  ;;  %v2423_v57 = vadd.f32 %v2414_v16, %v2336_v52  ;;  %v2337_v17 = vld [vmem:[%s2333_s5 + $0x18] sm:$0xff] }
 0x4cf   : > { %v2422_v13 = vadd.f32 %v2375_v9, %v2335_v54  ;;  %v2377_v2 = vpop.f32.mrb[14].mxu0  ;;  %v2418_v3 = vpop.f32.mrb[14].mxu1  ;;  %3783 = vtanh.f32 %v2465_v10  ;;  %v2502_v59 = vsub.f32 %v2465_v10, %v2222_v45  ;;  %v2424_v51 = vadd.f32 %v2416_v20, %v2337_v17 }
 0x4d0   : > { %v3422_v6 = vmul.f32 -1.442695, %v2421_v11  ;;  %v2378_v1 = vpop.f32.mrb[15].mxu0  ;;  %v2419_v47 = vpop.f32.mrb[15].mxu1  ;;  %v3424_v54 = vmul.f32 -1.442695, %v2423_v57 }
 0x4d1   : > { %v3423_v61 = vmul.f32 -1.442695, %v2422_v13  ;;  %v2503_v0 = vmul.f32 %v2502_v59, %v2482_v21  ;;  %v2492_v57 = vpop.permute.xlu1 %2491 }
 0x4d2   : > { %3785 = vpow2.f32 %v3422_v6 }
 0x4d3   : > { %3787 = vpow2.f32 %v3423_v61  ;;  %v5220_v42 = vadd.f32 %v2503_v0, %v2222_v45 }
 0x4d4   : > { %3789 = vtanh.f32 %v2424_v51 }
 0x4d5   : > { %3791 = vpow2.f32 %v3424_v54 }
 0x4d9   : > { %v3784_v60 = vpop.eup %3783 }
 0x4da   : > { %v2470_v46 = vmul.f32 %v3784_v60, %v3782_v63  ;;  %v2226_v63 = vsub.f32 %v5128_v8, %v5811_v7 }
 0x4dc   : > { %v3786_v11 = vpop.eup %3785  ;;  %v2484_v10 = vmul.f32 %v2482_v21, %v2470_v46  ;;  %v2499_v13 = vsub.f32 %v2470_v46, %v5113_v15  ;;  %v2227_v20 = vmul.f32 %v2226_v63, %v5149_v44  ;;  %v5839_v63 = vld [vmem:[#allocation95_spill] sm:$0xff] }
 0x4dd   : > { %v2452_v9 = vadd.f32 1.0, %v3786_v11  ;;  %v3788_v2 = vpop.eup %3787 }
 0x4de   : > { %v2453_v3 = vadd.f32 1.0, %v3788_v2  ;;  %v2485_v45 = vpack.c.bf16 %v2484_v10, %v2484_v10  ;;  %v2500_v6 = vmul.f32 %v2499_v13, %v2482_v21  ;;  %v3790_v21 = vpop.eup %3789  ;;  %v2228_v59 = vadd.f32 %v5811_v7, %v2227_v20  ;;  %v5843_v20 = vld [vmem:[#allocation99_spill] sm:$0xff] }
 0x4df   : > { %3793 = vrcp.f32 %v2452_v9 }
 0x4e0   : > { %3795 = vrcp.f32 %v2453_v3  ;;  %3431 = vst [vmem:[%s5108_s28 + $0x4] sm:$0xf] %v2485_v45  ;;  %v5225_v52 = vadd.f32 %v2500_v6, %v5113_v15  ;;  %v3792_v15 = vpop.eup %3791  ;;  %v5836_v45 = vld [vmem:[#allocation93_spill] sm:$0xff]  ;;  %v5837_v6 = vld [vmem:[#allocation92_spill] sm:$0xff] }
 0x4e1   : > { %v2454_v47 = vadd.f32 1.0, %v3792_v15  ;;  %v5846_v15 = vld [vmem:[#allocation102_spill] sm:$0xff] }
 0x4e2   : > { %v2519_v16 = vpack.c.bf16 %v5225_v52, %v5225_v52 }
 0x4e3   : > { %3797 = vrcp.f32 %v2454_v47  ;;  %v5851_v47 = vld [vmem:[#allocation107_spill] sm:$0xff] }
 0x4e4   : > { %2553 = vmatmul.mubr.bf16.vlgmr.msra.gmra.mrb[16].mxu0 %v2519_v16  ;;  %2594 = vmatmul.mubr.bf16.vlgmr.msra.gmra.mrb[16].mxu1 %v2519_v16  ;;  %v5840_v16 = vld [vmem:[#allocation97_spill] sm:$0xff] }
 0x4e5   : > { %2614 = vmatpush1.bf16.msra.mxu0 %v4871_v23  ;;  %2655 = vmatpush1.bf16.msra.mxu1 %v4881_v18 }
 0x4e6   : > { %2615 = vmatprep.subr.bf16.mxu0 %v4876_v24  ;;  %2656 = vmatprep.subr.bf16.mxu1 %v4886_v25 }
 0x4e7   : > { %2645 = vmatprep.mubr.bf16.mxu0 %v5761_v4  ;;  %2686 = vmatprep.mubr.bf16.mxu1 %v5761_v4 }
 0x4e9   : > { %v3794_v8 = vpop.eup %3793  ;;  %2616 = vmatpush1.bf16.msra.mxu0 %v4891_v26  ;;  %2657 = vmatpush1.bf16.msra.mxu1 %v4901_v29 }
 0x4ea   : > { %v2467_v1 = vmul.f32 %v3794_v8, %v3790_v21  ;;  %v3796_v44 = vpop.eup %3795  ;;  %2617 = vmatprep.subr.bf16.mxu0 %v4896_v28  ;;  %2658 = vmatprep.subr.bf16.mxu1 %v4906_v32  ;;  %v5845_v21 = vld [vmem:[#allocation100_spill] sm:$0xff]  ;;  %v5847_v8 = vld [vmem:[#allocation103_spill] sm:$0xff] }
 0x4eb   : > { %v2466_v61 = vmul.f32 %v3796_v44, %v2228_v59  ;;  %v5850_v44 = vld [vmem:[#allocation106_spill] sm:$0xff] }
 0x4ed   : > { %v2468_v0 = vadd.f32 %v2467_v1, %v2466_v61  ;;  %2618 = vmatpush1.bf16.msra.mxu0 %v4913_v22  ;;  %2659 = vmatpush1.bf16.msra.mxu1 %v4923_v36  ;;  %v3798_v60 = vpop.eup %3797  ;;  %v5849_v1 = vld [vmem:[#allocation104_spill] sm:$0xff]  ;;  %v5852_v61 = vld [vmem:[#allocation109_spill] sm:$0xff] }
 0x4ee   : > { %2619 = vmatprep.subr.bf16.mxu0 %v4918_v35  ;;  %2660 = vmatprep.subr.bf16.mxu1 %v4928_v39 }
 0x4ef   : > { %3799 = vtanh.f32 %v2468_v0  ;;  %v2508_v7 = vsub.f32 %v2468_v0, %v2228_v59  ;;  %v5853_v0 = vld [vmem:[#allocation108_spill] sm:$0xff] }
 0x4f1   : > { %v2509_v17 = vmul.f32 %v2508_v7, %v2492_v57  ;;  %2620 = vmatpush1.bf16.msra.mxu0 %v4933_v27  ;;  %2661 = vmatpush1.bf16.msra.mxu1 %v5812_v48  ;;  %v5854_v7 = vld [vmem:[#allocation110_spill] sm:$0xff] }
 0x4f2   : > { %2621 = vmatprep.subr.bf16.mxu0 %v5813_v5  ;;  %2662 = vmatprep.subr.bf16.mxu1 %v5814_v56 }
 0x4f3   : > { %v5251_v51 = vadd.f32 %v2509_v17, %v2228_v59  ;;  %v5848_v59 = vld [vmem:[#allocation105_spill] sm:$0xff] }
 0x4f4   : > { %v5856_v17 = vld [vmem:[#allocation113_spill] sm:$0xff] }
 0x4f5   : > { %2622 = vmatpush1.bf16.msra.mxu0 %v5815_v55  ;;  %2663 = vmatpush1.bf16.msra.mxu1 %v5816_v12 }
 0x4f6   : > { %2623 = vmatprep.subr.bf16.mxu0 %v5817_v14  ;;  %2664 = vmatprep.subr.bf16.mxu1 %v5818_v58 }
 0x4f9   : > { %v3800_v54 = vpop.eup %3799  ;;  %2624 = vmatpush1.bf16.msra.mxu0 %v5819_v19  ;;  %2665 = vmatpush1.bf16.msra.mxu1 %v4983_v31 }
 0x4fa   : > { %v2472_v46 = vmul.f32 %v3800_v54, %v3798_v60  ;;  %2625 = vmatprep.subr.bf16.mxu0 %v4978_v30  ;;  %2666 = vmatprep.subr.bf16.mxu1 %v4988_v49  ;;  %v5857_v60 = vld [vmem:[#allocation112_spill] sm:$0xff]  ;;  %v5858_v54 = vld [vmem:[#allocation114_spill] sm:$0xff] }
 0x4fc   : > { %v2494_v11 = vmul.f32 %v2492_v57, %v2472_v46  ;;  %v2505_v9 = vsub.f32 %v2472_v46, %v5162_v40  ;;  %v5859_v46 = vld [vmem:[#allocation115_spill] sm:$0xff] }
 0x4fd   : > { %2626 = vmatpush1.bf16.msra.mxu0 %v4993_v34  ;;  %2667 = vmatpush1.bf16.msra.mxu1 %v5003_v38 }
 0x4fe   : > { %v2495_v10 = vpack.c.bf16 %v2494_v11, %v2494_v11  ;;  %v2506_v13 = vmul.f32 %v2505_v9, %v2492_v57  ;;  %2627 = vmatprep.subr.bf16.mxu0 %v4998_v37  ;;  %2668 = vmatprep.subr.bf16.mxu1 %v5008_v62  ;;  %v5855_v57 = vld [vmem:[#allocation111_spill] sm:$0xff]  ;;  %v5860_v11 = vld [vmem:[#allocation117_spill] sm:$0xff]  ;;  %v5861_v9 = vld [vmem:[#allocation116_spill] sm:$0xff] }
 0x500   : > { %2498 = vst [vmem:[%s2497_s7] sm:$0xf] %v2495_v10  ;;  %v5272_v2 = vadd.f32 %v2506_v13, %v5162_v40  ;;  %v5838_v40 = vld [vmem:[#allocation94_spill] sm:$0xff]  ;;  %v5863_v13 = vld [vmem:[#allocation119_spill] sm:$0xff]  ;;  %s5869_s7 = smov %s4475_s18 }
 0x501   : > { %2628 = vmatpush1.bf16.msra.mxu0 %v5013_v43  ;;  %2669 = vmatpush1.bf16.msra.mxu1 %v5019_v33  ;;  %v5862_v10 = vld [vmem:[#allocation118_spill] sm:$0xff] }
 0x502   : > { %v2612_v3 = vpack.c.bf16 %v5272_v2, %v5272_v2  ;;  %2794 = vmatprep.subr.bf16.mxu0 %v4680_v50  ;;  %2835 = vmatprep.subr.bf16.mxu1 %v4692_v41  ;;  %v5841_v50 = vld [vmem:[#allocation96_spill] sm:$0xff]  ;;  %v5842_v41 = vld [vmem:[#allocation98_spill] sm:$0xff] }
 0x504   : > { %2646 = vmatmul.mubr.bf16.vlgmr.msra.gmra.mrb[20].mxu0 %v2612_v3  ;;  %2687 = vmatmul.mubr.bf16.vlgmr.msra.gmra.mrb[20].mxu1 %v2612_v3  ;;  %v5864_v3 = vld [vmem:[#allocation121_spill] sm:$0xff] }
 0x505   : > { %2795 = vmatpush1.bf16.msra.mxu0 %v4684_v53  ;;  %2836 = vmatpush1.bf16.msra.mxu1 %v5836_v45  ;;  %v5844_v53 = vld [vmem:[#allocation101_spill] sm:$0xff]  ;;  %v5865_v45 = vld [vmem:[#allocation120_spill] sm:$0xff] }
 0x506   : > { %2796 = vmatprep.subr.bf16.mxu0 %v5837_v6  ;;  %2837 = vmatprep.subr.bf16.mxu1 %v5838_v40  ;;  %v5866_v6 = vld [vmem:[#allocation122_spill] sm:$0xff]  ;;  %v2515_v40 = vld [vmem:[%s2514_s3] sm:$0xff] }
 0x507   : > { %2826 = vmatprep.mubr.bf16.mxu0 %v5761_v4  ;;  %2867 = vmatprep.mubr.bf16.mxu1 %v5761_v4 }
 0x509   : > { %2797 = vmatpush1.bf16.msra.mxu0 %v5839_v63  ;;  %2838 = vmatpush1.bf16.msra.mxu1 %v5840_v16  ;;  %v2516_v63 = vld [vmem:[%s2514_s3 + $0x8] sm:$0xff] }
 0x50a   : > { %2798 = vmatprep.subr.bf16.mxu0 %v5841_v50  ;;  %2839 = vmatprep.subr.bf16.mxu1 %v5842_v41 }
 0x50d   : > { %2799 = vmatpush1.bf16.msra.mxu0 %v5843_v20  ;;  %2840 = vmatpush1.bf16.msra.mxu1 %v5844_v53 }
 0x50e   : > { %2800 = vmatprep.subr.bf16.mxu0 %v5845_v21  ;;  %2841 = vmatprep.subr.bf16.mxu1 %v5846_v15 }
 0x511   : > { %2801 = vmatpush1.bf16.msra.mxu0 %v5847_v8  ;;  %2842 = vmatpush1.bf16.msra.mxu1 %v5848_v59 }
 0x512   : > { %2802 = vmatprep.subr.bf16.mxu0 %v5849_v1  ;;  %2843 = vmatprep.subr.bf16.mxu1 %v5850_v44 }
 0x515   : > { %2803 = vmatpush1.bf16.msra.mxu0 %v5851_v47  ;;  %2844 = vmatpush1.bf16.msra.mxu1 %v5852_v61  ;;  %v2517_v61 = vld [vmem:[%s2514_s3 + $0x10] sm:$0xff] }
 0x516   : > { %2804 = vmatprep.subr.bf16.mxu0 %v5853_v0  ;;  %2845 = vmatprep.subr.bf16.mxu1 %v5854_v7  ;;  %v2518_v7 = vld [vmem:[%s2514_s3 + $0x18] sm:$0xff] }
 0x519   : > { %2805 = vmatpush1.bf16.msra.mxu0 %v5855_v57  ;;  %2846 = vmatpush1.bf16.msra.mxu1 %v5856_v17 }
 0x51a   : > { %2806 = vmatprep.subr.bf16.mxu0 %v5857_v60  ;;  %2847 = vmatprep.subr.bf16.mxu1 %v5858_v54 }
 0x51d   : > { %2807 = vmatpush1.bf16.msra.mxu0 %v5859_v46  ;;  %2848 = vmatpush1.bf16.msra.mxu1 %v5860_v11 }
 0x51e   : > { %2808 = vmatprep.subr.bf16.mxu0 %v5861_v9  ;;  %2849 = vmatprep.subr.bf16.mxu1 %v5862_v10 }
 0x521   : > { %2809 = vmatpush1.bf16.msra.mxu0 %v5863_v13  ;;  %2850 = vmatpush1.bf16.msra.mxu1 %v5864_v3 }
 0x522   : > { %2887 = vmatprep.subr.bf16.mxu0 %v5865_v45  ;;  %2928 = vmatprep.subr.bf16.mxu1 %v5866_v6 }
 0x5b7   : > { %v2554_v16 = vpop.f32.mrb[16].mxu0  ;;  %v2595_v50 = vpop.f32.mrb[16].mxu1 }
 0x5b8   : > { %v2602_v41 = vadd.f32 %v2554_v16, %v2515_v40  ;;  %v2556_v20 = vpop.f32.mrb[17].mxu0  ;;  %v2597_v53 = vpop.f32.mrb[17].mxu1  ;;  %v2604_v0 = vadd.f32 %v2595_v50, %v2517_v61  ;;  %v2608_v40 = vld [vmem:[%s2607_s12] sm:$0xff]  ;;  %v2609_v16 = vld [vmem:[%s2607_s12 + $0x8] sm:$0xff] }
 0x5b9   : > { %v2603_v21 = vadd.f32 %v2556_v20, %v2516_v63  ;;  %v2558_v15 = vpop.f32.mrb[18].mxu0  ;;  %v2599_v8 = vpop.f32.mrb[18].mxu1  ;;  %v2605_v57 = vadd.f32 %v2597_v53, %v2518_v7 }
 0x5ba   : > { %v3435_v59 = vmul.f32 -1.442695, %v2602_v41  ;;  %v2559_v1 = vpop.f32.mrb[19].mxu0  ;;  %v2600_v44 = vpop.f32.mrb[19].mxu1  ;;  %v3437_v17 = vmul.f32 -1.442695, %v2604_v0 }
 0x5bb   : > { %v3436_v47 = vmul.f32 -1.442695, %v2603_v21  ;;  %v2756_v7 = vpop.permute.xlu0 %2755 }
 0x5bc   : > { %3801 = vpow2.f32 %v3435_v59 }
 0x5bd   : > { %3803 = vpow2.f32 %v3436_v47 }
 0x5be   : > { %3805 = vtanh.f32 %v2605_v57 }
 0x5bf   : > { %3807 = vpow2.f32 %v3437_v17 }
 0x5c6   : > { %v3802_v60 = vpop.eup %3801 }
 0x5c7   : > { %v2708_v54 = vadd.f32 1.0, %v3802_v60  ;;  %v3804_v46 = vpop.eup %3803  ;;  %v2610_v60 = vld [vmem:[%s2607_s12 + $0x10] sm:$0xff] }
 0x5c8   : > { %v2709_v11 = vadd.f32 1.0, %v3804_v46  ;;  %v3806_v9 = vpop.eup %3805 }
 0x5c9   : > { %3809 = vrcp.f32 %v2708_v54  ;;  %v3808_v10 = vpop.eup %3807 }
 0x5ca   : > { %3811 = vrcp.f32 %v2709_v11  ;;  %v2710_v6 = vadd.f32 1.0, %v3808_v10  ;;  %v2611_v11 = vld [vmem:[%s2607_s12 + $0x18] sm:$0xff] }
 0x5cc   : > { %3813 = vrcp.f32 %v2710_v6 }
 0x5d3   : > { %v3810_v13 = vpop.eup %3809 }
 0x5d4   : > { %v2738_v3 = vmul.f32 %v3810_v13, %v3806_v9  ;;  %v3812_v45 = vpop.eup %3811 }
 0x5d5   : > { %v2737_v63 = vmul.f32 %v3812_v45, %v5220_v42 }
 0x5d6   : > { %v3814_v9 = vpop.eup %3813 }
 0x5d7   : > { %v2647_v50 = vpop.f32.mrb[20].mxu0  ;;  %v2688_v41 = vpop.f32.mrb[20].mxu1  ;;  %v2739_v20 = vadd.f32 %v2738_v3, %v2737_v63 }
 0x5d8   : > { %v2695_v53 = vadd.f32 %v2647_v50, %v2608_v40  ;;  %v2649_v21 = vpop.f32.mrb[21].mxu0  ;;  %v2690_v15 = vpop.f32.mrb[21].mxu1  ;;  %v2697_v46 = vadd.f32 %v2688_v41, %v2610_v60 }
 0x5d9   : > { %v2696_v8 = vadd.f32 %v2649_v21, %v2609_v16  ;;  %v2651_v59 = vpop.f32.mrb[22].mxu0  ;;  %v2692_v1 = vpop.f32.mrb[22].mxu1  ;;  %3815 = vtanh.f32 %v2739_v20  ;;  %v2776_v44 = vsub.f32 %v2739_v20, %v5220_v42  ;;  %v2698_v10 = vadd.f32 %v2690_v15, %v2611_v11 }
 0x5da   : > { %v3438_v47 = vmul.f32 -1.442695, %v2695_v53  ;;  %v2652_v61 = vpop.f32.mrb[23].mxu0  ;;  %v2693_v0 = vpop.f32.mrb[23].mxu1  ;;  %v3440_v3 = vmul.f32 -1.442695, %v2697_v46 }
 0x5db   : > { %v3439_v57 = vmul.f32 -1.442695, %v2696_v8  ;;  %v2777_v17 = vmul.f32 %v2776_v44, %v2756_v7 }
 0x5dc   : > { %3817 = vpow2.f32 %v3438_v47 }
 0x5dd   : > { %v5321_v54 = vadd.f32 %v2777_v17, %v5220_v42  ;;  %3819 = vpow2.f32 %v3439_v57 }
 0x5de   : > { %3821 = vtanh.f32 %v2698_v10 }
 0x5df   : > { %3823 = vpow2.f32 %v3440_v3 }
 0x5e3   : > { %v3816_v13 = vpop.eup %3815 }
 0x5e4   : > { %v2744_v45 = vmul.f32 %v3816_v13, %v3814_v9  ;;  %v2882_v13 = vld [vmem:[%s2881_s21] sm:$0xff] }
 0x5e6   : > { %v3818_v6 = vpop.eup %3817  ;;  %v2758_v63 = vmul.f32 %v2756_v7, %v2744_v45  ;;  %v2773_v16 = vsub.f32 %v2744_v45, %v5225_v52  ;;  %v2883_v45 = vld [vmem:[%s2881_s21 + $0x8] sm:$0xff] }
 0x5e7   : > { %v2726_v40 = vadd.f32 1.0, %v3818_v6  ;;  %v3820_v50 = vpop.eup %3819 }
 0x5e8   : > { %v2727_v42 = vadd.f32 1.0, %v3820_v50  ;;  %v2759_v20 = vpack.c.bf16 %v2758_v63, %v2758_v63  ;;  %v2774_v53 = vmul.f32 %v2773_v16, %v2756_v7  ;;  %v3822_v15 = vpop.eup %3821 }
 0x5e9   : > { %3825 = vrcp.f32 %v2726_v40  ;;  %v3824_v8 = vpop.eup %3823 }
 0x5ea   : > { %3827 = vrcp.f32 %v2727_v42  ;;  %3447 = vst [vmem:[%s5108_s28 + $0x8] sm:$0xf] %v2759_v20  ;;  %v5326_v41 = vadd.f32 %v2774_v53, %v5225_v52 }
 0x5ec   : > { %v2793_v21 = vpack.c.bf16 %v5326_v41, %v5326_v41 }
 0x5ee   : > { %2827 = vmatmul.mubr.bf16.vlgmr.msra.gmra.mrb[24].mxu0 %v2793_v21  ;;  %2868 = vmatmul.mubr.bf16.vlgmr.msra.gmra.mrb[24].mxu1 %v2793_v21 }
 0x5ef   : > { %2888 = vmatpush1.bf16.msra.mxu0 %v4871_v23  ;;  %2929 = vmatpush1.bf16.msra.mxu1 %v4881_v18  ;;  %v2728_v23 = vadd.f32 1.0, %v3824_v8 }
 0x5f0   : > { %2889 = vmatprep.subr.bf16.mxu0 %v4876_v24  ;;  %2930 = vmatprep.subr.bf16.mxu1 %v4886_v25 }
 0x5f1   : > { %2919 = vmatprep.mubr.bf16.mxu0 %v5761_v4  ;;  %2960 = vmatprep.mubr.bf16.mxu1 %v5761_v4  ;;  %3829 = vrcp.f32 %v2728_v23 }
 0x5f3   : > { %v3826_v52 = vpop.eup %3825  ;;  %2890 = vmatpush1.bf16.msra.mxu0 %v4891_v26  ;;  %2931 = vmatpush1.bf16.msra.mxu1 %v4901_v29  ;;  %v2766_v26 = vpop.permute.xlu1 %2765 }
 0x5f4   : > { %v2741_v59 = vmul.f32 %v3826_v52, %v3822_v15  ;;  %v3828_v1 = vpop.eup %3827  ;;  %2891 = vmatprep.subr.bf16.mxu0 %v4896_v28  ;;  %2932 = vmatprep.subr.bf16.mxu1 %v4906_v32 }
 0x5f5   : > { %v2740_v24 = vmul.f32 %v3828_v1, %v5251_v51  ;;  %v3030_v1 = vpop.permute.xlu0 %3029 }
 0x5f7   : > { %v2742_v25 = vadd.f32 %v2741_v59, %v2740_v24  ;;  %2892 = vmatpush1.bf16.msra.mxu0 %v4913_v22  ;;  %2933 = vmatpush1.bf16.msra.mxu1 %v4923_v36 }
 0x5f8   : > { %2893 = vmatprep.subr.bf16.mxu0 %v4918_v35  ;;  %2934 = vmatprep.subr.bf16.mxu1 %v4928_v39 }
 0x5f9   : > { %3831 = vtanh.f32 %v2742_v25  ;;  %v2782_v4 = vsub.f32 %v2742_v25, %v5251_v51  ;;  %v2884_v25 = vld [vmem:[%s2881_s21 + $0x10] sm:$0xff] }
 0x5fb   : > { %v2783_v28 = vmul.f32 %v2782_v4, %v2766_v26  ;;  %2894 = vmatpush1.bf16.msra.mxu0 %v4933_v27  ;;  %2935 = vmatpush1.bf16.msra.mxu1 %v5812_v48  ;;  %v3830_v32 = vpop.eup %3829 }
 0x5fc   : > { %2895 = vmatprep.subr.bf16.mxu0 %v5813_v5  ;;  %2936 = vmatprep.subr.bf16.mxu1 %v5814_v56 }
 0x5fd   : > { %v5351_v29 = vadd.f32 %v2783_v28, %v5251_v51 }
 0x5ff   : > { %2896 = vmatpush1.bf16.msra.mxu0 %v5815_v55  ;;  %2937 = vmatpush1.bf16.msra.mxu1 %v5816_v12 }
 0x600   : > { %2897 = vmatprep.subr.bf16.mxu0 %v5817_v14  ;;  %2938 = vmatprep.subr.bf16.mxu1 %v5818_v58 }
 0x603   : > { %v3832_v35 = vpop.eup %3831  ;;  %2898 = vmatpush1.bf16.msra.mxu0 %v5819_v19  ;;  %2939 = vmatpush1.bf16.msra.mxu1 %v4983_v31  ;;  %v2791_v19 = vld [vmem:[%s2788_s20 + $0x10] sm:$0xff] }
 0x604   : > { %2899 = vmatprep.subr.bf16.mxu0 %v4978_v30  ;;  %2940 = vmatprep.subr.bf16.mxu1 %v4988_v49  ;;  %v2746_v27 = vmul.f32 %v3832_v35, %v3830_v32 }
 0x606   : > { %v2768_v36 = vmul.f32 %v2766_v26, %v2746_v27  ;;  %v2779_v39 = vsub.f32 %v2746_v27, %v5272_v2 }
 0x607   : > { %2900 = vmatpush1.bf16.msra.mxu0 %v4993_v34  ;;  %2941 = vmatpush1.bf16.msra.mxu1 %v5003_v38  ;;  %v2789_v34 = vld [vmem:[%s2788_s20] sm:$0xff] }
 0x608   : > { %2901 = vmatprep.subr.bf16.mxu0 %v4998_v37  ;;  %2942 = vmatprep.subr.bf16.mxu1 %v5008_v62  ;;  %v2769_v30 = vpack.c.bf16 %v2768_v36, %v2768_v36  ;;  %v2780_v31 = vmul.f32 %v2779_v39, %v2766_v26  ;;  %v2790_v37 = vld [vmem:[%s2788_s20 + $0x8] sm:$0xff]  ;;  %v2885_v26 = vld [vmem:[%s2881_s21 + $0x18] sm:$0xff] }
 0x60a   : > { %2772 = vst [vmem:[%s2771_s15] sm:$0xf] %v2769_v30  ;;  %v5372_v49 = vadd.f32 %v2780_v31, %v5272_v2  ;;  %v2792_v2 = vld [vmem:[%s2788_s20 + $0x18] sm:$0xff] }
 0x60b   : > { %2902 = vmatpush1.bf16.msra.mxu0 %v5013_v43  ;;  %2943 = vmatpush1.bf16.msra.mxu1 %v5019_v33 }
 0x60c   : > { %v2886_v18 = vpack.c.bf16 %v5372_v49, %v5372_v49 }
 0x60e   : > { %2920 = vmatmul.mubr.bf16.vlgmr.msra.gmra.mrb[28].mxu0 %v2886_v18  ;;  %2961 = vmatmul.mubr.bf16.vlgmr.msra.gmra.mrb[28].mxu1 %v2886_v18 }
 0x6c1   : > { %v2828_v38 = vpop.f32.mrb[24].mxu0  ;;  %v2869_v62 = vpop.f32.mrb[24].mxu1 }
 0x6c2   : > { %v2876_v22 = vadd.f32 %v2828_v38, %v2789_v34  ;;  %v2830_v48 = vpop.f32.mrb[25].mxu0  ;;  %v2871_v5 = vpop.f32.mrb[25].mxu1  ;;  %v2878_v51 = vadd.f32 %v2869_v62, %v2791_v19 }
 0x6c3   : > { %v2877_v56 = vadd.f32 %v2830_v48, %v2790_v37  ;;  %v2832_v55 = vpop.f32.mrb[26].mxu0  ;;  %v2873_v12 = vpop.f32.mrb[26].mxu1  ;;  %v2879_v44 = vadd.f32 %v2871_v5, %v2792_v2 }
 0x6c4   : > { %v3451_v43 = vmul.f32 -1.442695, %v2876_v22  ;;  %v2833_v14 = vpop.f32.mrb[27].mxu0  ;;  %v2874_v33 = vpop.f32.mrb[27].mxu1  ;;  %v3453_v47 = vmul.f32 -1.442695, %v2878_v51 }
 0x6c5   : > { %v3452_v58 = vmul.f32 -1.442695, %v2877_v56 }
 0x6c6   : > { %3833 = vpow2.f32 %v3451_v43 }
 0x6c7   : > { %3835 = vpow2.f32 %v3452_v58  ;;  %v3040_v58 = vpop.permute.xlu1 %3039 }
 0x6c8   : > { %3837 = vtanh.f32 %v2879_v44 }
 0x6c9   : > { %3839 = vpow2.f32 %v3453_v47 }
 0x6d0   : > { %v3834_v61 = vpop.eup %3833 }
 0x6d1   : > { %v2982_v0 = vadd.f32 1.0, %v3834_v61  ;;  %v3836_v7 = vpop.eup %3835 }
 0x6d2   : > { %v2983_v57 = vadd.f32 1.0, %v3836_v7  ;;  %v3838_v17 = vpop.eup %3837 }
 0x6d3   : > { %3841 = vrcp.f32 %v2982_v0  ;;  %v3840_v60 = vpop.eup %3839 }
 0x6d4   : > { %3843 = vrcp.f32 %v2983_v57  ;;  %v2984_v10 = vadd.f32 1.0, %v3840_v60 }
 0x6d6   : > { %3845 = vrcp.f32 %v2984_v10 }
 0x6dd   : > { %v3842_v46 = vpop.eup %3841 }
 0x6de   : > { %v3012_v11 = vmul.f32 %v3842_v46, %v3838_v17  ;;  %v3844_v9 = vpop.eup %3843 }
 0x6df   : > { %v3011_v3 = vmul.f32 %v3844_v9, %v5321_v54 }
 0x6e0   : > { %v3846_v28 = vpop.eup %3845 }
 0x6e1   : > { %v2921_v6 = vpop.f32.mrb[28].mxu0  ;;  %v2962_v40 = vpop.f32.mrb[28].mxu1  ;;  %v3013_v63 = vadd.f32 %v3012_v11, %v3011_v3 }
 0x6e2   : > { %v2969_v16 = vadd.f32 %v2921_v6, %v2882_v13  ;;  %v2923_v50 = vpop.f32.mrb[29].mxu0  ;;  %v2964_v42 = vpop.f32.mrb[29].mxu1  ;;  %v2971_v4 = vadd.f32 %v2962_v40, %v2884_v25 }
 0x6e3   : > { %v2970_v20 = vadd.f32 %v2923_v50, %v2883_v45  ;;  %v2925_v53 = vpop.f32.mrb[30].mxu0  ;;  %v2966_v21 = vpop.f32.mrb[30].mxu1  ;;  %3847 = vtanh.f32 %v3013_v63  ;;  %v3050_v15 = vsub.f32 %v3013_v63, %v5321_v54  ;;  %v2972_v32 = vadd.f32 %v2964_v42, %v2885_v26 }
 0x6e4   : > { %v3454_v8 = vmul.f32 -1.442695, %v2969_v16  ;;  %v2926_v52 = vpop.f32.mrb[31].mxu0  ;;  %v2967_v59 = vpop.f32.mrb[31].mxu1  ;;  %v3456_v27 = vmul.f32 -1.442695, %v2971_v4 }
 0x6e5   : > { %v3455_v23 = vmul.f32 -1.442695, %v2970_v20  ;;  %v3051_v24 = vmul.f32 %v3050_v15, %v3030_v1 }
 0x6e6   : > { %3849 = vpow2.f32 %v3454_v8 }
 0x6e7   : > { %v3052_v63 = vadd.f32 %v3051_v24, %v5321_v54   ;;  %3851 = vpow2.f32 %v3455_v23 }
 0x6e8   : > { %3853 = vtanh.f32 %v2972_v32 }
 0x6e9   : > { %3855 = vpow2.f32 %v3456_v27 }
 0x6ed   : > { %v3848_v35 = vpop.eup %3847 }
 0x6ee   : > { %v3018_v36 = vmul.f32 %v3848_v35, %v3846_v28 }
 0x6f0   : > { %v3850_v39 = vpop.eup %3849  ;;  %v3032_v30 = vmul.f32 %v3030_v1, %v3018_v36  ;;  %v3047_v31 = vsub.f32 %v3018_v36, %v5326_v41 }
 0x6f1   : > { %v3000_v18 = vadd.f32 1.0, %v3850_v39  ;;  %v3852_v34 = vpop.eup %3851 }
 0x6f2   : > { %v3033_v37 = vpack.c.bf16 %v3032_v30, %v3032_v30  ;;  %v3048_v38 = vmul.f32 %v3047_v31, %v3030_v1  ;;  %v3001_v54 = vadd.f32 1.0, %v3852_v34  ;;  %v3854_v22 = vpop.eup %3853 }
 0x6f3   : > { %3857 = vrcp.f32 %v3000_v18  ;;  %v3856_v48 = vpop.eup %3855 }
 0x6f4   : > { %3463 = vst [vmem:[%s5108_s28 + $0xc] sm:$0xf] %v3033_v37  ;;  %v3049_v62 = vadd.f32 %v3048_v38, %v5326_v41   ;;  %3859 = vrcp.f32 %v3001_v54  ;;  %v3002_v12 = vadd.f32 1.0, %v3856_v48 }
 0x6f6   : > { %3861 = vrcp.f32 %v3002_v12  ;;  %3059 = vst [vmem:[#allocation10] sm:$0xff] (%p3252_p10), %v3049_v62 }
 0x6fd   : > { %v3858_v5 = vpop.eup %3857 }
 0x6fe   : > { %v3015_v56 = vmul.f32 %v3858_v5, %v3854_v22  ;;  %v3860_v55 = vpop.eup %3859 }
 0x6ff   : > { %v3014_v43 = vmul.f32 %v3860_v55, %v5351_v29 }
 0x700   : > { %v3862_v41 = vpop.eup %3861 }
 0x701   : > { %v3016_v14 = vadd.f32 %v3015_v56, %v3014_v43 }
 0x703   : > { %3863 = vtanh.f32 %v3016_v14  ;;  %v3056_v33 = vsub.f32 %v3016_v14, %v5351_v29 }
 0x705   : > { %v3057_v19 = vmul.f32 %v3056_v33, %v3040_v58 }
 0x707   : > { %v3058_v42 = vadd.f32 %v3057_v19, %v5351_v29  }
 0x70d   : > { %v3864_v51 = vpop.eup %3863 }
 0x70e   : > { %v3020_v2 = vmul.f32 %v3864_v51, %v3862_v41 }
 0x710   : > { %v3042_v44 = vmul.f32 %v3040_v58, %v3020_v2  ;;  %v3053_v47 = vsub.f32 %v3020_v2, %v5372_v49  ;;  %881 = sbr.rel (!%p3252_p10) target bundleno = 378 (0x17a), region = 127 }
 0x712   : > { %v3043_v61 = vpack.c.bf16 %v3042_v44, %v3042_v44  ;;  %v3054_v0 = vmul.f32 %v3053_v47, %v3040_v58  ;;  %v5868_v44 = vmov %v3049_v62 }
 0x714   : > { %3046 = vst [vmem:[%s3045_s16] sm:$0xf] %v3043_v61  ;;  %v3055_v7 = vadd.f32 %v3054_v0, %v5372_v49  }
 0x716   : > { %v5867_v45 = vmov %v3055_v7  ;;  %3060 = vst [vmem:[#allocation11] sm:$0xff] (%p3252_p10), %v3055_v7 }
 0x717   :  { %3942 = shalt.err (!%p3939_p5)
}
 0x718   :  { %s3943_s18 = scalar_lea.hbm %s5444_s10, 128 }
 0x719   :  { %p3944_p6 = scmp.ne.s32.totalorder %s5444_s10, %s3943_s18  ;;  %p3947_p7 = scmp.lt.u32.totalorder %s3943_s18, %s5444_s10 }
 0x71b   :  { %p3949_p8 = pnand %p3947_p7, %p3944_p6 }
 0x71d   :  { %3952 = shalt.err (!%p3949_p8)
}
 0x71e   :  { %3074 = dma.vmem_to_hbm [thread:$0]  %s3072_s4, 128, %s5444_s10, [#allocation6]  }
 0x71f   :  { %s3953_s25 = scalar_lea.vmem %s3082_s17, 128  ;;  %p3958_p10 = scmp.lt.s32.totalorder %s3082_s17, %s3082_s17 }
 0x720   :  { %p3954_p9 = scmp.ne.s32.totalorder %s3082_s17, %s3953_s25  ;;  %p3959_p11 = scmp.lt.s32.totalorder %s3953_s25, %s3953_s25 }
 0x722   :  { %p3960_p12 = por %p3959_p11, %p3958_p10 }
 0x724   :  { %p3961_p13 = pnand %p3960_p12, %p3954_p9 }
 0x726   :  { %3964 = shalt.err (!%p3961_p13)
}
 0x727   :  { %s3965_s3 = scalar_lea.hbm %s5445_s11, 128 }
 0x728   :  { %p3966_p0 = scmp.ne.s32.totalorder %s5445_s11, %s3965_s3  ;;  %p3969_p1 = scmp.lt.u32.totalorder %s3965_s3, %s5445_s11 }
 0x72a   :  { %p3971_p2 = pnand %p3969_p1, %p3966_p0 }
 0x72c   :  { %3974 = shalt.err (!%p3971_p2)
}
 0x72d   :  { %3084 = dma.vmem_to_hbm [thread:$0]  %s3082_s17, 128, %s5445_s11, [#allocation12]  }
 0x72e   :  { %3999 = dma.done.wait [#allocation6], 128  }
 0x72f   :  { %4000 = vsyncadd [#allocation6], 4294967168 }
 0x730   :  { %4001 = dma.done.wait [#allocation12], 128  }
 0x731   :  { %4002 = vsyncadd [#allocation12], 4294967168 }
 0x732   :  { %3095 = vsyncpa [#allocation5], 1 }
 0x733   :  { %3096 = vsyncpa [#allocation8], 1 }
 0x734   :  { %3097 = vsyncpa [#allocation6], 1 }
 0x735   :  { %3098 = vsyncpa [#allocation12], 1 }

// kernel: bilstm_forward.3
= control target key start
LH: loop header
LB: loop body
LE: loop exit
PB: predicated region body
PF: predicated region fallthrough
CT: control target
= control target key end

     0   :  { %20 = vsyncpa [#allocation5], 0  ;;  %s7855_s0 = inlined_call_operand.vmem [shape: bf16[64,128], index: 0, kind: input, shape index: {}]   ;;  %s7856_s1 = inlined_call_operand.vmem [shape: bf16[64,128], index: 1, kind: input, shape index: {}]   ;;  %s7857_s2 = inlined_call_operand.vmem [shape: f32[8,8,1], index: 2, kind: input, shape index: {}]   ;;  %s7858_s3 = inlined_call_operand.vmem [shape: bf16[128,512], index: 3, kind: input, shape index: {}]   ;;  %s7859_s4 = inlined_call_operand.vmem [shape: bf16[128,512], index: 4, kind: input, shape index: {}]   ;;  %s7860_s5 = inlined_call_operand.vmem [shape: bf16[128,512], index: 5, kind: input, shape index: {}]   ;;  %s7861_s6 = inlined_call_operand.vmem [shape: bf16[128,512], index: 6, kind: input, shape index: {}]   ;;  %s7862_s7 = inlined_call_operand.vmem [shape: bf16[128,512], index: 7, kind: input, shape index: {}]   ;;  %s7863_s8 = inlined_call_operand.hbm [shape: bf16[128,512], index: 8, kind: input, shape index: {}]   ;;  %s7864_s9 = inlined_call_operand.vmem [shape: f32[1,512], index: 9, kind: input, shape index: {}]   ;;  %s7865_s10 = inlined_call_operand.vmem [shape: f32[1,512], index: 10, kind: input, shape index: {}]   ;;  %s7866_s11 = inlined_call_operand.hbm [shape: bf16[8,8,128], index: 11, kind: output, shape index: {0}]   ;;  %s7867_s12 = inlined_call_operand.hbm [shape: bf16[8,8,128], index: 12, kind: output, shape index: {1}]   ;;  %s7868_s13 = inlined_call_operand.vmem [shape: f32[8,128], index: 13, kind: output, shape index: {2}]   ;;  %s7869_s14 = inlined_call_operand.vmem [shape: f32[8,128], index: 14, kind: output, shape index: {3}]  }
   0x1   :  { %21 = vsyncpa [#allocation6], 0 }
   0x2   :  { %22 = vsyncpa [#allocation9], 0  ;;  %s5756_s29 = smov [#allocation4]   ;;  %s5644_s17 = scalar_lea.hbm %s7863_s8, 4096 }
   0x3   :  { %s44_s30 = sshll.u32 %s5756_s29, 4  ;;  %p5645_p0 = scmp.ne.s32.totalorder %s7863_s8, %s5644_s17  ;;  %s45_s30 = int_to_ptr.vmem [resolvable:$true] %s44_s30 }
   0x4   :  { %p5648_p1 = scmp.lt.u32.totalorder %s5644_s17, %s7863_s8 }
   0x6   :  { %p5650_p2 = pnand %p5648_p1, %p5645_p0 }
   0x8   :  { %5653 = shalt.err (!%p5650_p2)
}
   0x9   :  { %s5654_s22 = scalar_lea.vmem %s45_s30, 4096  ;;  %p5659_p4 = scmp.lt.s32.totalorder %s45_s30, %s45_s30 }
   0xa   :  { %p5655_p3 = scmp.ne.s32.totalorder %s45_s30, %s5654_s22  ;;  %p5660_p5 = scmp.lt.s32.totalorder %s5654_s22, %s5654_s22 }
   0xc   :  { %p5661_p6 = por %p5660_p5, %p5659_p4 }
   0xe   :  { %p5662_p7 = pnand %p5661_p6, %p5655_p3 }
  0x10   :  { %5665 = shalt.err (!%p5662_p7)
}
  0x11   :  { %s5757_s23 = smov 256   ;;  %s5758_s24 = smov 16  }
  0x12   :  { %50 = dma.hbm_to_vmem [thread:$0]  %s7863_s8, 4096, %s45_s30, [#allocation5], %s5757_s23, %s5757_s23, %s5758_s24  }
  0x13   :  { %5730 = dma.done.wait [#allocation5], 4096  }
  0x14   :  { %5731 = vsyncadd [#allocation5], 4294963200  ;;  %v7870_v0 = vmov 0   ;;  %v5858_v1 = vld [vmem:[%s7862_s7] sm:$0xff]  ;;  %v5863_v2 = vld [vmem:[%s7862_s7 + $0x8] sm:$0xff] }
  0x15   :  { %365 = vmatprep.mubr.bf16.mxu0 %v7870_v0  ;;  %418 = vmatprep.mubr.bf16.mxu1 %v7870_v0  ;;  %8045 = vst [vmem:[#allocation13_spill] sm:$0xff] %v5858_v1  ;;  %8046 = vst [vmem:[#allocation14_spill] sm:$0xff] %v5863_v2  ;;  %v5868_v3 = vld [vmem:[%s7862_s7 + $0x10] sm:$0xff]  ;;  %v5873_v4 = vld [vmem:[%s7862_s7 + $0x18] sm:$0xff] }
  0x16   :  { %8047 = vst [vmem:[#allocation15_spill] sm:$0xff] %v5868_v3  ;;  %8048 = vst [vmem:[#allocation16_spill] sm:$0xff] %v5873_v4  ;;  %v5878_v5 = vld [vmem:[%s7862_s7 + $0x20] sm:$0xff]  ;;  %v5883_v6 = vld [vmem:[%s7862_s7 + $0x28] sm:$0xff] }
  0x17   :  { %8049 = vst [vmem:[#allocation17_spill] sm:$0xff] %v5878_v5  ;;  %8050 = vst [vmem:[#allocation18_spill] sm:$0xff] %v5883_v6  ;;  %v5888_v7 = vld [vmem:[%s7862_s7 + $0x30] sm:$0xff]  ;;  %v5893_v8 = vld [vmem:[%s7862_s7 + $0x38] sm:$0xff] }
  0x18   :  { %8051 = vst [vmem:[#allocation19_spill] sm:$0xff] %v5888_v7  ;;  %8052 = vst [vmem:[#allocation20_spill] sm:$0xff] %v5893_v8  ;;  %v5898_v9 = vld [vmem:[%s7862_s7 + $0x40] sm:$0xff]  ;;  %v5903_v10 = vld [vmem:[%s7862_s7 + $0x48] sm:$0xff] }
  0x19   :  { %8053 = vst [vmem:[#allocation21_spill] sm:$0xff] %v5898_v9  ;;  %8054 = vst [vmem:[#allocation22_spill] sm:$0xff] %v5903_v10  ;;  %v5908_v11 = vld [vmem:[%s7862_s7 + $0x50] sm:$0xff]  ;;  %v5913_v12 = vld [vmem:[%s7862_s7 + $0x58] sm:$0xff] }
  0x1a   :  { %8055 = vst [vmem:[#allocation23_spill] sm:$0xff] %v5908_v11  ;;  %8056 = vst [vmem:[#allocation24_spill] sm:$0xff] %v5913_v12  ;;  %v5918_v13 = vld [vmem:[%s7862_s7 + $0x60] sm:$0xff]  ;;  %v5923_v14 = vld [vmem:[%s7862_s7 + $0x68] sm:$0xff] }
  0x1b   :  { %8057 = vst [vmem:[#allocation25_spill] sm:$0xff] %v5918_v13  ;;  %8058 = vst [vmem:[#allocation26_spill] sm:$0xff] %v5923_v14  ;;  %v5928_v15 = vld [vmem:[%s7862_s7 + $0x70] sm:$0xff]  ;;  %v5933_v16 = vld [vmem:[%s7862_s7 + $0x78] sm:$0xff] }
  0x1c   :  { %8059 = vst [vmem:[#allocation27_spill] sm:$0xff] %v5928_v15  ;;  %8060 = vst [vmem:[#allocation28_spill] sm:$0xff] %v5933_v16  ;;  %v5938_v17 = vld [vmem:[%s7862_s7 + $0x80] sm:$0xff]  ;;  %v5943_v18 = vld [vmem:[%s7862_s7 + $0x88] sm:$0xff] }
  0x1d   :  { %8061 = vst [vmem:[#allocation29_spill] sm:$0xff] %v5938_v17  ;;  %8062 = vst [vmem:[#allocation30_spill] sm:$0xff] %v5943_v18  ;;  %v5948_v19 = vld [vmem:[%s7862_s7 + $0x90] sm:$0xff]  ;;  %v5953_v20 = vld [vmem:[%s7862_s7 + $0x98] sm:$0xff] }
  0x1e   :  { %8063 = vst [vmem:[#allocation31_spill] sm:$0xff] %v5948_v19  ;;  %8064 = vst [vmem:[#allocation32_spill] sm:$0xff] %v5953_v20  ;;  %v5958_v21 = vld [vmem:[%s7862_s7 + $0xa0] sm:$0xff]  ;;  %v5963_v22 = vld [vmem:[%s7862_s7 + $0xa8] sm:$0xff] }
  0x1f   :  { %8065 = vst [vmem:[#allocation33_spill] sm:$0xff] %v5958_v21  ;;  %8066 = vst [vmem:[#allocation34_spill] sm:$0xff] %v5963_v22  ;;  %v5968_v23 = vld [vmem:[%s7862_s7 + $0xb0] sm:$0xff]  ;;  %v5973_v24 = vld [vmem:[%s7862_s7 + $0xb8] sm:$0xff] }
  0x20   :  { %8067 = vst [vmem:[#allocation35_spill] sm:$0xff] %v5968_v23  ;;  %8068 = vst [vmem:[#allocation36_spill] sm:$0xff] %v5973_v24  ;;  %v5978_v25 = vld [vmem:[%s7862_s7 + $0xc0] sm:$0xff]  ;;  %v5983_v26 = vld [vmem:[%s7862_s7 + $0xc8] sm:$0xff] }
  0x21   :  { %8069 = vst [vmem:[#allocation37_spill] sm:$0xff] %v5978_v25  ;;  %8070 = vst [vmem:[#allocation38_spill] sm:$0xff] %v5983_v26  ;;  %v5988_v27 = vld [vmem:[%s7862_s7 + $0xd0] sm:$0xff]  ;;  %v5993_v28 = vld [vmem:[%s7862_s7 + $0xd8] sm:$0xff] }
  0x22   :  { %8071 = vst [vmem:[#allocation39_spill] sm:$0xff] %v5988_v27  ;;  %8072 = vst [vmem:[#allocation40_spill] sm:$0xff] %v5993_v28  ;;  %v5998_v29 = vld [vmem:[%s7862_s7 + $0xe0] sm:$0xff]  ;;  %v6003_v30 = vld [vmem:[%s7862_s7 + $0xe8] sm:$0xff] }
  0x23   :  { %8073 = vst [vmem:[#allocation41_spill] sm:$0xff] %v5998_v29  ;;  %8074 = vst [vmem:[#allocation42_spill] sm:$0xff] %v6003_v30  ;;  %v6008_v31 = vld [vmem:[%s7862_s7 + $0xf0] sm:$0xff]  ;;  %v6013_v32 = vld [vmem:[%s7862_s7 + $0xf8] sm:$0xff] }
  0x24   :  { %8075 = vst [vmem:[#allocation43_spill] sm:$0xff] %v6008_v31  ;;  %8076 = vst [vmem:[#allocation44_spill] sm:$0xff] %v6013_v32  ;;  %v6015_v33 = vld [vmem:[#allocation4] sm:$0xff]  ;;  %v6017_v34 = vld [vmem:[#allocation4 + $0x8] sm:$0xff] }
  0x25   :  { %8077 = vst [vmem:[#allocation45_spill] sm:$0xff] %v6015_v33  ;;  %8078 = vst [vmem:[#allocation46_spill] sm:$0xff] %v6017_v34  ;;  %v6019_v35 = vld [vmem:[#allocation4 + $0x10] sm:$0xff]  ;;  %v6021_v36 = vld [vmem:[#allocation4 + $0x18] sm:$0xff] }
  0x26   :  { %8079 = vst [vmem:[#allocation47_spill] sm:$0xff] %v6019_v35  ;;  %8080 = vst [vmem:[#allocation48_spill] sm:$0xff] %v6021_v36  ;;  %v6023_v37 = vld [vmem:[#allocation4 + $0x20] sm:$0xff]  ;;  %v6025_v38 = vld [vmem:[#allocation4 + $0x28] sm:$0xff] }
  0x27   :  { %8081 = vst [vmem:[#allocation49_spill] sm:$0xff] %v6023_v37  ;;  %8082 = vst [vmem:[#allocation50_spill] sm:$0xff] %v6025_v38  ;;  %v6027_v39 = vld [vmem:[#allocation4 + $0x30] sm:$0xff]  ;;  %v6029_v40 = vld [vmem:[#allocation4 + $0x38] sm:$0xff] }
  0x28   :  { %8083 = vst [vmem:[#allocation51_spill] sm:$0xff] %v6027_v39  ;;  %8084 = vst [vmem:[#allocation52_spill] sm:$0xff] %v6029_v40  ;;  %v6031_v41 = vld [vmem:[#allocation4 + $0x40] sm:$0xff]  ;;  %v6033_v42 = vld [vmem:[#allocation4 + $0x48] sm:$0xff] }
  0x29   :  { %8085 = vst [vmem:[#allocation53_spill] sm:$0xff] %v6031_v41  ;;  %8086 = vst [vmem:[#allocation54_spill] sm:$0xff] %v6033_v42  ;;  %v6035_v43 = vld [vmem:[#allocation4 + $0x50] sm:$0xff]  ;;  %v6037_v44 = vld [vmem:[#allocation4 + $0x58] sm:$0xff] }
  0x2a   :  { %8087 = vst [vmem:[#allocation55_spill] sm:$0xff] %v6035_v43  ;;  %8088 = vst [vmem:[#allocation56_spill] sm:$0xff] %v6037_v44  ;;  %v6039_v45 = vld [vmem:[#allocation4 + $0x60] sm:$0xff]  ;;  %v6041_v46 = vld [vmem:[#allocation4 + $0x68] sm:$0xff] }
  0x2b   :  { %8089 = vst [vmem:[#allocation57_spill] sm:$0xff] %v6039_v45  ;;  %8090 = vst [vmem:[#allocation58_spill] sm:$0xff] %v6041_v46  ;;  %v6043_v47 = vld [vmem:[#allocation4 + $0x70] sm:$0xff]  ;;  %v6045_v48 = vld [vmem:[#allocation4 + $0x78] sm:$0xff] }
  0x2c   :  { %8091 = vst [vmem:[#allocation59_spill] sm:$0xff] %v6043_v47  ;;  %8092 = vst [vmem:[#allocation60_spill] sm:$0xff] %v6045_v48  ;;  %v6047_v49 = vld [vmem:[#allocation4 + $0x80] sm:$0xff]  ;;  %v6049_v50 = vld [vmem:[#allocation4 + $0x88] sm:$0xff] }
  0x2d   :  { %8093 = vst [vmem:[#allocation61_spill] sm:$0xff] %v6047_v49  ;;  %8094 = vst [vmem:[#allocation62_spill] sm:$0xff] %v6049_v50  ;;  %v6051_v51 = vld [vmem:[#allocation4 + $0x90] sm:$0xff]  ;;  %v6053_v52 = vld [vmem:[#allocation4 + $0x98] sm:$0xff] }
  0x2e   :  { %8095 = vst [vmem:[#allocation63_spill] sm:$0xff] %v6051_v51  ;;  %8096 = vst [vmem:[#allocation64_spill] sm:$0xff] %v6053_v52  ;;  %v6055_v53 = vld [vmem:[#allocation4 + $0xa0] sm:$0xff]  ;;  %v6057_v54 = vld [vmem:[#allocation4 + $0xa8] sm:$0xff] }
  0x2f   :  { %8097 = vst [vmem:[#allocation65_spill] sm:$0xff] %v6055_v53  ;;  %8098 = vst [vmem:[#allocation66_spill] sm:$0xff] %v6057_v54  ;;  %v6059_v55 = vld [vmem:[#allocation4 + $0xb0] sm:$0xff]  ;;  %v6061_v56 = vld [vmem:[#allocation4 + $0xb8] sm:$0xff] }
  0x30   :  { %8099 = vst [vmem:[#allocation67_spill] sm:$0xff] %v6059_v55  ;;  %8100 = vst [vmem:[#allocation68_spill] sm:$0xff] %v6061_v56  ;;  %v6063_v57 = vld [vmem:[#allocation4 + $0xc0] sm:$0xff]  ;;  %v6065_v58 = vld [vmem:[#allocation4 + $0xc8] sm:$0xff]  ;;  %v8109_v56 = vmov 0  }
  0x31   :  { %8101 = vst [vmem:[#allocation69_spill] sm:$0xff] %v6063_v57  ;;  %8102 = vst [vmem:[#allocation70_spill] sm:$0xff] %v6065_v58  ;;  %v6067_v59 = vld [vmem:[#allocation4 + $0xd0] sm:$0xff]  ;;  %v6069_v60 = vld [vmem:[#allocation4 + $0xd8] sm:$0xff] }
  0x32   :  { %8103 = vst [vmem:[#allocation71_spill] sm:$0xff] %v6067_v59  ;;  %8104 = vst [vmem:[#allocation72_spill] sm:$0xff] %v6069_v60  ;;  %v6071_v61 = vld [vmem:[#allocation4 + $0xe0] sm:$0xff]  ;;  %v6073_v62 = vld [vmem:[#allocation4 + $0xe8] sm:$0xff] }
  0x33   :  { %8105 = vst [vmem:[#allocation73_spill] sm:$0xff] %v6071_v61  ;;  %8106 = vst [vmem:[#allocation74_spill] sm:$0xff] %v6073_v62  ;;  %v6075_v63 = vld [vmem:[#allocation4 + $0xf0] sm:$0xff]  ;;  %v6077_v0 = vld [vmem:[#allocation4 + $0xf8] sm:$0xff] }
  0x34   :  { %8107 = vst [vmem:[#allocation75_spill] sm:$0xff] %v6075_v63  ;;  %8108 = vst [vmem:[#allocation76_spill] sm:$0xff] %v6077_v0  ;;  %v5114_v54 = vld [vmem:[%s7858_s3 + $0x4] ss:$16 sps:$4 sm:$0xff]   ;;  %v5116_v58 = vld [vmem:[%s7858_s3 + $0xc] ss:$16 sps:$4 sm:$0xff]  }
  0x35   :  { %v5118_v60 = vld [vmem:[%s7858_s3] ss:$16 sps:$4 sm:$0xff]   ;;  %v5119_v62 = vld [vmem:[%s7858_s3 + $0x8] ss:$16 sps:$4 sm:$0xff]   ;;  %333 = vmatprep.subr.bf16.mxu0 %v5114_v54  ;;  %v5120_v0 = vld [vmem:[%s7858_s3 + $0x24] ss:$16 sps:$4 sm:$0xff]   ;;  %386 = vmatprep.subr.bf16.mxu1 %v5116_v58 }
  0x36   :  { %334 = vmatpush1.bf16.msra.mxu0 %v5118_v60  ;;  %v5122_v61 = vld [vmem:[%s7858_s3 + $0x2c] ss:$16 sps:$4 sm:$0xff]   ;;  %387 = vmatpush1.bf16.msra.mxu1 %v5119_v62  ;;  %v5124_v63 = vld [vmem:[%s7858_s3 + $0x20] ss:$16 sps:$4 sm:$0xff]   ;;  %v5125_v54 = vld [vmem:[%s7858_s3 + $0x28] ss:$16 sps:$4 sm:$0xff]  }
  0x37   :  { %335 = vmatprep.subr.bf16.mxu0 %v5120_v0  ;;  %388 = vmatprep.subr.bf16.mxu1 %v5122_v61  ;;  %v5126_v58 = vld [vmem:[%s7858_s3 + $0x44] ss:$16 sps:$4 sm:$0xff]   ;;  %v5128_v60 = vld [vmem:[%s7858_s3 + $0x4c] ss:$16 sps:$4 sm:$0xff]   ;;  %v5130_v0 = vld [vmem:[%s7858_s3 + $0x40] ss:$16 sps:$4 sm:$0xff]  }
  0x38   :  { %v5131_v62 = vld [vmem:[%s7858_s3 + $0x48] ss:$16 sps:$4 sm:$0xff]   ;;  %v5132_v61 = vld [vmem:[%s7858_s3 + $0x64] ss:$16 sps:$4 sm:$0xff]   ;;  %v5134_v57 = vld [vmem:[%s7858_s3 + $0x6c] ss:$16 sps:$4 sm:$0xff]  }
  0x39   :  { %v5160_v59 = vld [vmem:[%s7858_s3 + $0xe0] ss:$16 sps:$4 sm:$0xff]   ;;  %v5184_v53 = vld [vmem:[%s7860_s5 + $0x68] ss:$16 sps:$4 sm:$0xff]  }
  0x3a   :  { %336 = vmatpush1.bf16.msra.mxu0 %v5124_v63  ;;  %389 = vmatpush1.bf16.msra.mxu1 %v5125_v54  ;;  %v5136_v63 = vld [vmem:[%s7858_s3 + $0x60] ss:$16 sps:$4 sm:$0xff]   ;;  %v5137_v54 = vld [vmem:[%s7858_s3 + $0x68] ss:$16 sps:$4 sm:$0xff]  }
  0x3b   :  { %337 = vmatprep.subr.bf16.mxu0 %v5126_v58  ;;  %390 = vmatprep.subr.bf16.mxu1 %v5128_v60  ;;  %v5138_v58 = vld [vmem:[%s7858_s3 + $0x84] ss:$16 sps:$4 sm:$0xff]   ;;  %v5140_v60 = vld [vmem:[%s7858_s3 + $0x8c] ss:$16 sps:$4 sm:$0xff]  }
  0x3e   :  { %338 = vmatpush1.bf16.msra.mxu0 %v5130_v0  ;;  %391 = vmatpush1.bf16.msra.mxu1 %v5131_v62  ;;  %v5142_v0 = vld [vmem:[%s7858_s3 + $0x80] ss:$16 sps:$4 sm:$0xff]   ;;  %v5143_v62 = vld [vmem:[%s7858_s3 + $0x88] ss:$16 sps:$4 sm:$0xff]  }
  0x3f   :  { %339 = vmatprep.subr.bf16.mxu0 %v5132_v61  ;;  %392 = vmatprep.subr.bf16.mxu1 %v5134_v57  ;;  %v5144_v61 = vld [vmem:[%s7858_s3 + $0xa4] ss:$16 sps:$4 sm:$0xff]   ;;  %v5146_v57 = vld [vmem:[%s7858_s3 + $0xac] ss:$16 sps:$4 sm:$0xff]  }
  0x42   :  { %340 = vmatpush1.bf16.msra.mxu0 %v5136_v63  ;;  %393 = vmatpush1.bf16.msra.mxu1 %v5137_v54  ;;  %v5148_v63 = vld [vmem:[%s7858_s3 + $0xa0] ss:$16 sps:$4 sm:$0xff]   ;;  %v5149_v54 = vld [vmem:[%s7858_s3 + $0xa8] ss:$16 sps:$4 sm:$0xff]  }
  0x43   :  { %341 = vmatprep.subr.bf16.mxu0 %v5138_v58  ;;  %394 = vmatprep.subr.bf16.mxu1 %v5140_v60  ;;  %v5150_v58 = vld [vmem:[%s7858_s3 + $0xc4] ss:$16 sps:$4 sm:$0xff]   ;;  %v5152_v60 = vld [vmem:[%s7858_s3 + $0xcc] ss:$16 sps:$4 sm:$0xff]  }
  0x46   :  { %342 = vmatpush1.bf16.msra.mxu0 %v5142_v0  ;;  %395 = vmatpush1.bf16.msra.mxu1 %v5143_v62  ;;  %v5154_v0 = vld [vmem:[%s7858_s3 + $0xc0] ss:$16 sps:$4 sm:$0xff]   ;;  %v5155_v62 = vld [vmem:[%s7858_s3 + $0xc8] ss:$16 sps:$4 sm:$0xff]  }
  0x47   :  { %343 = vmatprep.subr.bf16.mxu0 %v5144_v61  ;;  %396 = vmatprep.subr.bf16.mxu1 %v5146_v57  ;;  %v5156_v61 = vld [vmem:[%s7858_s3 + $0xe4] ss:$16 sps:$4 sm:$0xff]   ;;  %v5158_v57 = vld [vmem:[%s7858_s3 + $0xec] ss:$16 sps:$4 sm:$0xff]  }
  0x4a   :  { %344 = vmatpush1.bf16.msra.mxu0 %v5148_v63  ;;  %397 = vmatpush1.bf16.msra.mxu1 %v5149_v54  ;;  %v5161_v63 = vld [vmem:[%s7858_s3 + $0xe8] ss:$16 sps:$4 sm:$0xff]   ;;  %v5164_v54 = vld [vmem:[%s7860_s5 + $0x4] ss:$16 sps:$4 sm:$0xff]  }
  0x4b   :  { %345 = vmatprep.subr.bf16.mxu0 %v5150_v58  ;;  %398 = vmatprep.subr.bf16.mxu1 %v5152_v60  ;;  %v5167_v58 = vld [vmem:[%s7860_s5 + $0xc] ss:$16 sps:$4 sm:$0xff]   ;;  %v5162_v60 = vld [vmem:[%s7860_s5] ss:$16 sps:$4 sm:$0xff]  }
  0x4e   :  { %346 = vmatpush1.bf16.msra.mxu0 %v5154_v0  ;;  %399 = vmatpush1.bf16.msra.mxu1 %v5155_v62  ;;  %v5168_v0 = vld [vmem:[%s7855_s0] sm:$0xff]   ;;  %v5165_v62 = vld [vmem:[%s7860_s5 + $0x8] ss:$16 sps:$4 sm:$0xff]  }
  0x4f   :  { %347 = vmatprep.subr.bf16.mxu0 %v5156_v61  ;;  %400 = vmatprep.subr.bf16.mxu1 %v5158_v57  ;;  %v5171_v61 = vld [vmem:[%s7860_s5 + $0x24] ss:$16 sps:$4 sm:$0xff]   ;;  %v5174_v57 = vld [vmem:[%s7860_s5 + $0x2c] ss:$16 sps:$4 sm:$0xff]  }
  0x52   :  { %348 = vmatpush1.bf16.msra.mxu0 %v5160_v59  ;;  %401 = vmatpush1.bf16.msra.mxu1 %v5161_v63  ;;  %v5169_v59 = vld [vmem:[%s7860_s5 + $0x20] ss:$16 sps:$4 sm:$0xff]   ;;  %v5172_v63 = vld [vmem:[%s7860_s5 + $0x28] ss:$16 sps:$4 sm:$0xff]  }
  0x53   :  { %684 = vmatprep.subr.bf16.mxu0 %v5164_v54  ;;  %737 = vmatprep.subr.bf16.mxu1 %v5167_v58  ;;  %v5177_v54 = vld [vmem:[%s7860_s5 + $0x44] ss:$16 sps:$4 sm:$0xff]   ;;  %v5180_v58 = vld [vmem:[%s7860_s5 + $0x4c] ss:$16 sps:$4 sm:$0xff]  }
  0x55   :  { %366 = vmatmul.mubr.bf16.vlgmr.msra.gmra.mrb[0].mxu0 %v5168_v0  ;;  %419 = vmatmul.mubr.bf16.vlgmr.msra.gmra.mrb[0].mxu1 %v5168_v0  ;;  %v5178_v0 = vld [vmem:[%s7860_s5 + $0x48] ss:$16 sps:$4 sm:$0xff]  }
  0x56   :  { %685 = vmatpush1.bf16.msra.mxu0 %v5162_v60  ;;  %738 = vmatpush1.bf16.msra.mxu1 %v5165_v62  ;;  %v5175_v60 = vld [vmem:[%s7860_s5 + $0x40] ss:$16 sps:$4 sm:$0xff]   ;;  %v5183_v62 = vld [vmem:[%s7860_s5 + $0x64] ss:$16 sps:$4 sm:$0xff]  }
  0x57   :  { %686 = vmatprep.subr.bf16.mxu0 %v5171_v61  ;;  %739 = vmatprep.subr.bf16.mxu1 %v5174_v57  ;;  %v5186_v61 = vld [vmem:[%s7860_s5 + $0x6c] ss:$16 sps:$4 sm:$0xff]  }
  0x58   :  { %375 = vmatprep.mubr.bf16.mxu0 %v8109_v56  ;;  %428 = vmatprep.mubr.bf16.mxu1 %v8109_v56  ;;  %v5205_v57 = vld [vmem:[%s7855_s0 + $0x8] sm:$0xff]  }
  0x5a   :  { %687 = vmatpush1.bf16.msra.mxu0 %v5169_v59  ;;  %740 = vmatpush1.bf16.msra.mxu1 %v5172_v63  ;;  %v5181_v59 = vld [vmem:[%s7860_s5 + $0x60] ss:$16 sps:$4 sm:$0xff]   ;;  %v5189_v63 = vld [vmem:[%s7860_s5 + $0x84] ss:$16 sps:$4 sm:$0xff]  }
  0x5b   :  { %688 = vmatprep.subr.bf16.mxu0 %v5177_v54  ;;  %741 = vmatprep.subr.bf16.mxu1 %v5180_v58  ;;  %v5192_v54 = vld [vmem:[%s7860_s5 + $0x8c] ss:$16 sps:$4 sm:$0xff]   ;;  %v5187_v58 = vld [vmem:[%s7860_s5 + $0x80] ss:$16 sps:$4 sm:$0xff]  }
  0x5d   :  { %429 = vmatmul.mubr.bf16.gmra.mrb[4].mxu1 %v5205_v57  ;;  %376 = vmatmul.mubr.bf16.gmra.mrb[4].mxu0 %v5205_v57  ;;  %v5201_v57 = vld [vmem:[%s7860_s5 + $0xc4] ss:$16 sps:$4 sm:$0xff]  }
  0x5e   :  { %689 = vmatpush1.bf16.msra.mxu0 %v5175_v60  ;;  %742 = vmatpush1.bf16.msra.mxu1 %v5178_v0  ;;  %v5190_v60 = vld [vmem:[%s7860_s5 + $0x88] ss:$16 sps:$4 sm:$0xff]   ;;  %v5195_v0 = vld [vmem:[%s7860_s5 + $0xa4] ss:$16 sps:$4 sm:$0xff]  }
  0x5f   :  { %690 = vmatprep.subr.bf16.mxu0 %v5183_v62  ;;  %743 = vmatprep.subr.bf16.mxu1 %v5186_v61  ;;  %v5198_v62 = vld [vmem:[%s7860_s5 + $0xac] ss:$16 sps:$4 sm:$0xff]   ;;  %v5193_v61 = vld [vmem:[%s7860_s5 + $0xa0] ss:$16 sps:$4 sm:$0xff]  }
  0x60   :  { %716 = vmatprep.mubr.bf16.mxu0 %v8109_v56  ;;  %769 = vmatprep.mubr.bf16.mxu1 %v8109_v56 }
  0x62   :  { %691 = vmatpush1.bf16.msra.mxu0 %v5181_v59  ;;  %744 = vmatpush1.bf16.msra.mxu1 %v5184_v53  ;;  %v5196_v53 = vld [vmem:[%s7860_s5 + $0xa8] ss:$16 sps:$4 sm:$0xff]   ;;  %v5204_v59 = vld [vmem:[%s7860_s5 + $0xcc] ss:$16 sps:$4 sm:$0xff]  }
  0x63   :  { %692 = vmatprep.subr.bf16.mxu0 %v5189_v63  ;;  %745 = vmatprep.subr.bf16.mxu1 %v5192_v54  ;;  %v5199_v63 = vld [vmem:[%s7860_s5 + $0xc0] ss:$16 sps:$4 sm:$0xff]   ;;  %v5202_v54 = vld [vmem:[%s7860_s5 + $0xc8] ss:$16 sps:$4 sm:$0xff]  }
  0x66   :  { %693 = vmatpush1.bf16.msra.mxu0 %v5187_v58  ;;  %746 = vmatpush1.bf16.msra.mxu1 %v5190_v60  ;;  %v5208_v58 = vld [vmem:[%s7860_s5 + $0xe4] ss:$16 sps:$4 sm:$0xff]   ;;  %v5211_v60 = vld [vmem:[%s7860_s5 + $0xec] ss:$16 sps:$4 sm:$0xff]  }
  0x67   :  { %694 = vmatprep.subr.bf16.mxu0 %v5195_v0  ;;  %747 = vmatprep.subr.bf16.mxu1 %v5198_v62  ;;  %v5206_v0 = vld [vmem:[%s7860_s5 + $0xe0] ss:$16 sps:$4 sm:$0xff]   ;;  %v5209_v62 = vld [vmem:[%s7860_s5 + $0xe8] ss:$16 sps:$4 sm:$0xff]  }
  0x6a   :  { %695 = vmatpush1.bf16.msra.mxu0 %v5193_v61  ;;  %748 = vmatpush1.bf16.msra.mxu1 %v5196_v53  ;;  %v5214_v61 = vld [vmem:[%s7859_s4 + $0x4] ss:$16 sps:$4 sm:$0xff]   ;;  %v5217_v53 = vld [vmem:[%s7859_s4 + $0xc] ss:$16 sps:$4 sm:$0xff]  }
  0x6b   :  { %696 = vmatprep.subr.bf16.mxu0 %v5201_v57  ;;  %749 = vmatprep.subr.bf16.mxu1 %v5204_v59  ;;  %v5218_v57 = vld [vmem:[%s7855_s0 + $0x10] sm:$0xff]  }
  0x6c   :  { %v5212_v59 = vld [vmem:[%s7859_s4] ss:$16 sps:$4 sm:$0xff]  }
  0x6e   :  { %697 = vmatpush1.bf16.msra.mxu0 %v5199_v63  ;;  %750 = vmatpush1.bf16.msra.mxu1 %v5202_v54  ;;  %v5215_v63 = vld [vmem:[%s7859_s4 + $0x8] ss:$16 sps:$4 sm:$0xff]   ;;  %v5221_v54 = vld [vmem:[%s7859_s4 + $0x24] ss:$16 sps:$4 sm:$0xff]  }
  0x6f   :  { %698 = vmatprep.subr.bf16.mxu0 %v5208_v58  ;;  %751 = vmatprep.subr.bf16.mxu1 %v5211_v60  ;;  %v5224_v58 = vld [vmem:[%s7859_s4 + $0x2c] ss:$16 sps:$4 sm:$0xff]   ;;  %v5219_v60 = vld [vmem:[%s7859_s4 + $0x20] ss:$16 sps:$4 sm:$0xff]  }
  0x72   :  { %699 = vmatpush1.bf16.msra.mxu0 %v5206_v0  ;;  %752 = vmatpush1.bf16.msra.mxu1 %v5209_v62  ;;  %v5222_v0 = vld [vmem:[%s7859_s4 + $0x28] ss:$16 sps:$4 sm:$0xff]   ;;  %v5227_v62 = vld [vmem:[%s7859_s4 + $0x44] ss:$16 sps:$4 sm:$0xff]  }
  0x73   :  { %1035 = vmatprep.subr.bf16.mxu0 %v5214_v61  ;;  %1088 = vmatprep.subr.bf16.mxu1 %v5217_v53  ;;  %v5230_v61 = vld [vmem:[%s7859_s4 + $0x4c] ss:$16 sps:$4 sm:$0xff]   ;;  %v5225_v53 = vld [vmem:[%s7859_s4 + $0x40] ss:$16 sps:$4 sm:$0xff]  }
  0x75   :  { %717 = vmatmul.mubr.bf16.vlgmr.msra.gmra.mrb[8].mxu0 %v5218_v57  ;;  %770 = vmatmul.mubr.bf16.vlgmr.msra.gmra.mrb[8].mxu1 %v5218_v57  ;;  %v5249_v57 = vld [vmem:[%s7855_s0 + $0x18] sm:$0xff]  }
  0x76   :  { %1036 = vmatpush1.bf16.msra.mxu0 %v5212_v59  ;;  %1089 = vmatpush1.bf16.msra.mxu1 %v5215_v63  ;;  %v5228_v59 = vld [vmem:[%s7859_s4 + $0x48] ss:$16 sps:$4 sm:$0xff]   ;;  %v5233_v63 = vld [vmem:[%s7859_s4 + $0x64] ss:$16 sps:$4 sm:$0xff]  }
  0x77   :  { %1037 = vmatprep.subr.bf16.mxu0 %v5221_v54  ;;  %1090 = vmatprep.subr.bf16.mxu1 %v5224_v58  ;;  %v5236_v54 = vld [vmem:[%s7859_s4 + $0x6c] ss:$16 sps:$4 sm:$0xff]   ;;  %v5231_v58 = vld [vmem:[%s7859_s4 + $0x60] ss:$16 sps:$4 sm:$0xff]  }
  0x78   :  { %726 = vmatprep.mubr.bf16.mxu0 %v8109_v56  ;;  %779 = vmatprep.mubr.bf16.mxu1 %v8109_v56 }
  0x7a   :  { %1038 = vmatpush1.bf16.msra.mxu0 %v5219_v60  ;;  %1091 = vmatpush1.bf16.msra.mxu1 %v5222_v0  ;;  %v5234_v60 = vld [vmem:[%s7859_s4 + $0x68] ss:$16 sps:$4 sm:$0xff]   ;;  %v5239_v0 = vld [vmem:[%s7859_s4 + $0x84] ss:$16 sps:$4 sm:$0xff]  }
  0x7b   :  { %1039 = vmatprep.subr.bf16.mxu0 %v5227_v62  ;;  %1092 = vmatprep.subr.bf16.mxu1 %v5230_v61  ;;  %v5242_v62 = vld [vmem:[%s7859_s4 + $0x8c] ss:$16 sps:$4 sm:$0xff]   ;;  %v5237_v61 = vld [vmem:[%s7859_s4 + $0x80] ss:$16 sps:$4 sm:$0xff]  }
  0x7d   :  { %727 = vmatmul.mubr.bf16.gmra.mrb[12].mxu0 %v5249_v57  ;;  %780 = vmatmul.mubr.bf16.gmra.mrb[12].mxu1 %v5249_v57  ;;  %v5245_v57 = vld [vmem:[%s7859_s4 + $0xa4] ss:$16 sps:$4 sm:$0xff]  }
  0x7e   :  { %1040 = vmatpush1.bf16.msra.mxu0 %v5225_v53  ;;  %1093 = vmatpush1.bf16.msra.mxu1 %v5228_v59  ;;  %v5240_v53 = vld [vmem:[%s7859_s4 + $0x88] ss:$16 sps:$4 sm:$0xff]   ;;  %v5248_v59 = vld [vmem:[%s7859_s4 + $0xac] ss:$16 sps:$4 sm:$0xff]  }
  0x7f   :  { %1041 = vmatprep.subr.bf16.mxu0 %v5233_v63  ;;  %1094 = vmatprep.subr.bf16.mxu1 %v5236_v54  ;;  %v5243_v63 = vld [vmem:[%s7859_s4 + $0xa0] ss:$16 sps:$4 sm:$0xff]   ;;  %v5246_v54 = vld [vmem:[%s7859_s4 + $0xa8] ss:$16 sps:$4 sm:$0xff]  }
  0x80   :  { %1067 = vmatprep.mubr.bf16.mxu0 %v8109_v56  ;;  %1120 = vmatprep.mubr.bf16.mxu1 %v8109_v56 }
  0x82   :  { %1042 = vmatpush1.bf16.msra.mxu0 %v5231_v58  ;;  %1095 = vmatpush1.bf16.msra.mxu1 %v5234_v60  ;;  %v5252_v58 = vld [vmem:[%s7859_s4 + $0xc4] ss:$16 sps:$4 sm:$0xff]   ;;  %v5255_v60 = vld [vmem:[%s7859_s4 + $0xcc] ss:$16 sps:$4 sm:$0xff]  }
  0x83   :  { %1043 = vmatprep.subr.bf16.mxu0 %v5239_v0  ;;  %1096 = vmatprep.subr.bf16.mxu1 %v5242_v62  ;;  %v5250_v0 = vld [vmem:[%s7859_s4 + $0xc0] ss:$16 sps:$4 sm:$0xff]   ;;  %v5253_v62 = vld [vmem:[%s7859_s4 + $0xc8] ss:$16 sps:$4 sm:$0xff]  }
  0x86   :  { %1044 = vmatpush1.bf16.msra.mxu0 %v5237_v61  ;;  %1097 = vmatpush1.bf16.msra.mxu1 %v5240_v53  ;;  %v5258_v61 = vld [vmem:[%s7859_s4 + $0xe4] ss:$16 sps:$4 sm:$0xff]   ;;  %v5261_v53 = vld [vmem:[%s7859_s4 + $0xec] ss:$16 sps:$4 sm:$0xff]  }
  0x87   :  { %1045 = vmatprep.subr.bf16.mxu0 %v5245_v57  ;;  %1098 = vmatprep.subr.bf16.mxu1 %v5248_v59  ;;  %v5256_v57 = vld [vmem:[%s7859_s4 + $0xe0] ss:$16 sps:$4 sm:$0xff]   ;;  %v5259_v59 = vld [vmem:[%s7859_s4 + $0xe8] ss:$16 sps:$4 sm:$0xff]  }
  0x8a   :  { %1046 = vmatpush1.bf16.msra.mxu0 %v5243_v63  ;;  %1099 = vmatpush1.bf16.msra.mxu1 %v5246_v54  ;;  %v5265_v63 = vld [vmem:[%s7861_s6 + $0x4] ss:$16 sps:$4 sm:$0xff]   ;;  %v5268_v54 = vld [vmem:[%s7861_s6 + $0xc] ss:$16 sps:$4 sm:$0xff]  }
  0x8b   :  { %1047 = vmatprep.subr.bf16.mxu0 %v5252_v58  ;;  %1100 = vmatprep.subr.bf16.mxu1 %v5255_v60  ;;  %v5262_v58 = vld [vmem:[%s7856_s1] sm:$0xff]  }
  0x8c   :  { %v5263_v60 = vld [vmem:[%s7861_s6] ss:$16 sps:$4 sm:$0xff]  }
  0x8e   :  { %1048 = vmatpush1.bf16.msra.mxu0 %v5250_v0  ;;  %1101 = vmatpush1.bf16.msra.mxu1 %v5253_v62  ;;  %v5266_v0 = vld [vmem:[%s7861_s6 + $0x8] ss:$16 sps:$4 sm:$0xff]   ;;  %v5271_v62 = vld [vmem:[%s7861_s6 + $0x24] ss:$16 sps:$4 sm:$0xff]  }
  0x8f   :  { %1049 = vmatprep.subr.bf16.mxu0 %v5258_v61  ;;  %1102 = vmatprep.subr.bf16.mxu1 %v5261_v53  ;;  %v5274_v61 = vld [vmem:[%s7861_s6 + $0x2c] ss:$16 sps:$4 sm:$0xff]   ;;  %v5269_v53 = vld [vmem:[%s7861_s6 + $0x20] ss:$16 sps:$4 sm:$0xff]  }
  0x92   :  { %1050 = vmatpush1.bf16.msra.mxu0 %v5256_v57  ;;  %1103 = vmatpush1.bf16.msra.mxu1 %v5259_v59  ;;  %v5272_v57 = vld [vmem:[%s7861_s6 + $0x28] ss:$16 sps:$4 sm:$0xff]   ;;  %v5278_v59 = vld [vmem:[%s7861_s6 + $0x44] ss:$16 sps:$4 sm:$0xff]  }
  0x93   :  { %1365 = vmatprep.subr.bf16.mxu0 %v5265_v63  ;;  %1418 = vmatprep.subr.bf16.mxu1 %v5268_v54  ;;  %v5281_v63 = vld [vmem:[%s7861_s6 + $0x4c] ss:$16 sps:$4 sm:$0xff]  }
  0x94   :  { %v5275_v54 = vld [vmem:[%s7856_s1 + $0x8] sm:$0xff]  }
  0x95   :  { %1068 = vmatmul.mubr.bf16.vlgmr.msra.gmra.mrb[0].mxu0 %v5262_v58  ;;  %1121 = vmatmul.mubr.bf16.vlgmr.msra.gmra.mrb[0].mxu1 %v5262_v58  ;;  %v5276_v58 = vld [vmem:[%s7861_s6 + $0x40] ss:$16 sps:$4 sm:$0xff]  }
  0x96   :  { %1366 = vmatpush1.bf16.msra.mxu0 %v5263_v60  ;;  %1419 = vmatpush1.bf16.msra.mxu1 %v5266_v0  ;;  %v5279_v60 = vld [vmem:[%s7861_s6 + $0x48] ss:$16 sps:$4 sm:$0xff]   ;;  %v5284_v0 = vld [vmem:[%s7861_s6 + $0x64] ss:$16 sps:$4 sm:$0xff]  }
  0x97   :  { %1367 = vmatprep.subr.bf16.mxu0 %v5271_v62  ;;  %1420 = vmatprep.subr.bf16.mxu1 %v5274_v61  ;;  %v5287_v62 = vld [vmem:[%s7861_s6 + $0x6c] ss:$16 sps:$4 sm:$0xff]   ;;  %v5282_v61 = vld [vmem:[%s7861_s6 + $0x60] ss:$16 sps:$4 sm:$0xff]  }
  0x98   :  { %1077 = vmatprep.mubr.bf16.mxu0 %v8109_v56  ;;  %1130 = vmatprep.mubr.bf16.mxu1 %v8109_v56 }
  0x9a   :  { %1368 = vmatpush1.bf16.msra.mxu0 %v5269_v53  ;;  %1421 = vmatpush1.bf16.msra.mxu1 %v5272_v57  ;;  %v5285_v53 = vld [vmem:[%s7861_s6 + $0x68] ss:$16 sps:$4 sm:$0xff]   ;;  %v5290_v57 = vld [vmem:[%s7861_s6 + $0x84] ss:$16 sps:$4 sm:$0xff]  }
  0x9b   :  { %1369 = vmatprep.subr.bf16.mxu0 %v5278_v59  ;;  %1422 = vmatprep.subr.bf16.mxu1 %v5281_v63  ;;  %v5293_v59 = vld [vmem:[%s7861_s6 + $0x8c] ss:$16 sps:$4 sm:$0xff]   ;;  %v5288_v63 = vld [vmem:[%s7861_s6 + $0x80] ss:$16 sps:$4 sm:$0xff]  }
  0x9d   :  { %1078 = vmatmul.mubr.bf16.gmra.mrb[4].mxu0 %v5275_v54  ;;  %1131 = vmatmul.mubr.bf16.gmra.mrb[4].mxu1 %v5275_v54  ;;  %v5291_v54 = vld [vmem:[%s7861_s6 + $0x88] ss:$16 sps:$4 sm:$0xff]  }
  0x9e   :  { %1370 = vmatpush1.bf16.msra.mxu0 %v5276_v58  ;;  %1423 = vmatpush1.bf16.msra.mxu1 %v5279_v60  ;;  %v5296_v58 = vld [vmem:[%s7861_s6 + $0xa4] ss:$16 sps:$4 sm:$0xff]   ;;  %v5299_v60 = vld [vmem:[%s7861_s6 + $0xac] ss:$16 sps:$4 sm:$0xff]  }
  0x9f   :  { %1371 = vmatprep.subr.bf16.mxu0 %v5284_v0  ;;  %1424 = vmatprep.subr.bf16.mxu1 %v5287_v62  ;;  %v5294_v0 = vld [vmem:[%s7861_s6 + $0xa0] ss:$16 sps:$4 sm:$0xff]   ;;  %v5297_v62 = vld [vmem:[%s7861_s6 + $0xa8] ss:$16 sps:$4 sm:$0xff]  }
  0xa0   :  { %1397 = vmatprep.mubr.bf16.mxu0 %v8109_v56  ;;  %1450 = vmatprep.mubr.bf16.mxu1 %v8109_v56 }
  0xa2   :  { %1372 = vmatpush1.bf16.msra.mxu0 %v5282_v61  ;;  %1425 = vmatpush1.bf16.msra.mxu1 %v5285_v53  ;;  %v5302_v61 = vld [vmem:[%s7861_s6 + $0xc4] ss:$16 sps:$4 sm:$0xff]   ;;  %v5305_v53 = vld [vmem:[%s7861_s6 + $0xcc] ss:$16 sps:$4 sm:$0xff]  }
  0xa3   :  { %1373 = vmatprep.subr.bf16.mxu0 %v5290_v57  ;;  %1426 = vmatprep.subr.bf16.mxu1 %v5293_v59  ;;  %v5300_v57 = vld [vmem:[%s7861_s6 + $0xc0] ss:$16 sps:$4 sm:$0xff]   ;;  %v5303_v59 = vld [vmem:[%s7861_s6 + $0xc8] ss:$16 sps:$4 sm:$0xff]  }
  0xa6   :  { %1374 = vmatpush1.bf16.msra.mxu0 %v5288_v63  ;;  %1427 = vmatpush1.bf16.msra.mxu1 %v5291_v54  ;;  %v5308_v63 = vld [vmem:[%s7861_s6 + $0xe4] ss:$16 sps:$4 sm:$0xff]   ;;  %v5311_v54 = vld [vmem:[%s7861_s6 + $0xec] ss:$16 sps:$4 sm:$0xff]  }
  0xa7   :  { %1375 = vmatprep.subr.bf16.mxu0 %v5296_v58  ;;  %1428 = vmatprep.subr.bf16.mxu1 %v5299_v60  ;;  %v5306_v58 = vld [vmem:[%s7861_s6 + $0xe0] ss:$16 sps:$4 sm:$0xff]   ;;  %v5309_v60 = vld [vmem:[%s7861_s6 + $0xe8] ss:$16 sps:$4 sm:$0xff]  }
  0xaa   :  { %1376 = vmatpush1.bf16.msra.mxu0 %v5294_v0  ;;  %1429 = vmatpush1.bf16.msra.mxu1 %v5297_v62  ;;  %v5312_v0 = vld [vmem:[%s7856_s1 + $0x10] sm:$0xff]   ;;  %v5313_v62 = vld [vmem:[%s7856_s1 + $0x18] sm:$0xff]  }
  0xab   :  { %1377 = vmatprep.subr.bf16.mxu0 %v5302_v61  ;;  %1430 = vmatprep.subr.bf16.mxu1 %v5305_v53  ;;  %v440_v61 = vlaneseq }
  0xad   :  { %v6501_v53 = vshrl.u32 %v440_v61, 7 }
  0xae   :  { %1378 = vmatpush1.bf16.msra.mxu0 %v5300_v57  ;;  %1431 = vmatpush1.bf16.msra.mxu1 %v5303_v59  ;;  %v123_v59 = vld [vmem:[%s7864_s9] sm:$0xf] }
  0xaf   :  { %1379 = vmatprep.subr.bf16.mxu0 %v5308_v63  ;;  %1432 = vmatprep.subr.bf16.mxu1 %v5311_v54  ;;  %v442_v57 = vsub.s32 0, %v6501_v53  ;;  %v450_v63 = vsub.s32 2, %v6501_v53  ;;  %v446_v54 = vsub.s32 1, %v6501_v53 }
  0xb2   :  { %1380 = vmatpush1.bf16.msra.mxu0 %v5306_v58  ;;  %1433 = vmatpush1.bf16.msra.mxu1 %v5309_v60  ;;  %v6510_v58 = vrot.slane %v123_v59, %v442_v57  ;;  %v6512_v60 = vrot.slane %v123_v59, %v450_v63 }
  0xb4   :  { %8110 = vst [vmem:[#allocation77_spill] sm:$0xff] %v6510_v58  ;;  %8111 = vst [vmem:[#allocation78_spill] sm:$0xff] %v6512_v60 }
  0xb5   :  { %1398 = vmatmul.mubr.bf16.vlgmr.msra.gmra.mrb[8].mxu0 %v5312_v0  ;;  %1451 = vmatmul.mubr.bf16.vlgmr.msra.gmra.mrb[8].mxu1 %v5312_v0  ;;  %v6514_v0 = vrot.slane %v123_v59, %v446_v54 }
  0xb6   :  { %1407 = vmatprep.mubr.bf16.mxu0 %v8109_v56  ;;  %1460 = vmatprep.mubr.bf16.mxu1 %v8109_v56  ;;  %v454_v56 = vsub.s32 3, %v6501_v53 }
  0xb7   :  { %8112 = vst [vmem:[#allocation79_spill] sm:$0xff] %v6514_v0 }
  0xbd   :  { %1408 = vmatmul.mubr.bf16.gmra.mrb[12].mxu0 %v5313_v62  ;;  %1461 = vmatmul.mubr.bf16.gmra.mrb[12].mxu1 %v5313_v62  ;;  %v6516_v62 = vrot.slane %v123_v59, %v454_v56 }
  0xbf   :  { %8113 = vst [vmem:[#allocation80_spill] sm:$0xff] %v6516_v62 }
 0x168   :  { %v1069_v61 = vpop.f32.mrb[0].mxu0  ;;  %v1122_v50 = vpop.f32.mrb[0].mxu1 }
 0x169   :  { %v4936_v55 = vadd.f32 %v1069_v61, %v6510_v58  ;;  %v1071_v52 = vpop.f32.mrb[1].mxu0  ;;  %v4944_v49 = vadd.f32 %v1122_v50, %v6512_v60  ;;  %v1124_v46 = vpop.f32.mrb[1].mxu1 }
 0x16a   :  { %v4937_v51 = vadd.f32 %v1071_v52, %v6514_v0  ;;  %v1073_v48 = vpop.f32.mrb[2].mxu0  ;;  %v4945_v53 = vadd.f32 %v1124_v46, %v6516_v62  ;;  %v1126_v47 = vpop.f32.mrb[2].mxu1 }
 0x16b   :  { %1487 = vst [vmem:[#allocation2] sm:$0xff] %v4936_v55  ;;  %v4938_v45 = vadd.f32 %v1073_v48, %v6510_v58  ;;  %v1075_v42 = vpop.f32.mrb[3].mxu0  ;;  %1489 = vst [vmem:[#allocation2 + $0x10] sm:$0xff] %v4944_v49  ;;  %v4946_v59 = vadd.f32 %v1126_v47, %v6512_v60  ;;  %v1128_v44 = vpop.f32.mrb[3].mxu1 }
 0x16c   :  { %1488 = vst [vmem:[#allocation2 + $0x8] sm:$0xff] %v4937_v51  ;;  %v4939_v61 = vadd.f32 %v1075_v42, %v6514_v0  ;;  %1490 = vst [vmem:[#allocation2 + $0x18] sm:$0xff] %v4945_v53  ;;  %v4947_v50 = vadd.f32 %v1128_v44, %v6516_v62 }
 0x16d   :  { %1491 = vst [vmem:[#allocation2 + $0x20] sm:$0xff] %v4938_v45  ;;  %1493 = vst [vmem:[#allocation2 + $0x30] sm:$0xff] %v4946_v59 }
 0x16e   :  { %1492 = vst [vmem:[#allocation2 + $0x28] sm:$0xff] %v4939_v61  ;;  %1494 = vst [vmem:[#allocation2 + $0x38] sm:$0xff] %v4947_v50 }
 0x170   :  { %v1079_v52 = vpop.f32.mrb[4].mxu0  ;;  %v1132_v48 = vpop.f32.mrb[4].mxu1 }
 0x171   :  { %v4940_v46 = vadd.f32 %v1079_v52, %v6510_v58  ;;  %v1081_v55 = vpop.f32.mrb[5].mxu0  ;;  %v4948_v49 = vadd.f32 %v1132_v48, %v6512_v60  ;;  %v1134_v47 = vpop.f32.mrb[5].mxu1 }
 0x172   :  { %v4941_v51 = vadd.f32 %v1081_v55, %v6514_v0  ;;  %v1083_v41 = vpop.f32.mrb[6].mxu0  ;;  %v4949_v42 = vadd.f32 %v1134_v47, %v6516_v62  ;;  %v1136_v44 = vpop.f32.mrb[6].mxu1 }
 0x173   :  { %1495 = vst [vmem:[#allocation2 + $0x40] sm:$0xff] %v4940_v46  ;;  %v4942_v45 = vadd.f32 %v1083_v41, %v6510_v58  ;;  %v1085_v53 = vpop.f32.mrb[7].mxu0  ;;  %1497 = vst [vmem:[#allocation2 + $0x50] sm:$0xff] %v4948_v49  ;;  %v4950_v59 = vadd.f32 %v1136_v44, %v6512_v60  ;;  %v1138_v50 = vpop.f32.mrb[7].mxu1  ;;  %v124_v41 = vld [vmem:[%s7865_s10] sm:$0xf] }
 0x174   :  { %1496 = vst [vmem:[#allocation2 + $0x48] sm:$0xff] %v4941_v51  ;;  %v4943_v61 = vadd.f32 %v1085_v53, %v6514_v0  ;;  %1498 = vst [vmem:[#allocation2 + $0x58] sm:$0xff] %v4949_v42  ;;  %v4951_v52 = vadd.f32 %v1138_v50, %v6516_v62  ;;  %v6537_v46 = vrot.slane %v124_v41, %v442_v57  ;;  %s6569_s10 = smov 0  }
 0x175   :  { %1499 = vst [vmem:[#allocation2 + $0x60] sm:$0xff] %v4942_v45  ;;  %1501 = vst [vmem:[#allocation2 + $0x70] sm:$0xff] %v4950_v59  ;;  %v6539_v48 = vrot.slane %v124_v41, %v450_v63  ;;  %v6541_v55 = vrot.slane %v124_v41, %v446_v54  ;;  %v6543_v49 = vrot.slane %v124_v41, %v454_v56 }
 0x176   :  { %1500 = vst [vmem:[#allocation2 + $0x68] sm:$0xff] %v4943_v61  ;;  %1502 = vst [vmem:[#allocation2 + $0x78] sm:$0xff] %v4951_v52 }
 0x177   :  { %8114 = vst [vmem:[#allocation81_spill] sm:$0xff] %v6537_v46  ;;  %8115 = vst [vmem:[#allocation82_spill] sm:$0xff] %v6539_v48 }
 0x178   :  { %8116 = vst [vmem:[#allocation83_spill] sm:$0xff] %v6541_v55  ;;  %8117 = vst [vmem:[#allocation84_spill] sm:$0xff] %v6543_v49 }
 0x188   :  { %v1399_v51 = vpop.f32.mrb[8].mxu0  ;;  %v1452_v42 = vpop.f32.mrb[8].mxu1 }
 0x189   :  { %v4952_v47 = vadd.f32 %v1399_v51, %v6537_v46  ;;  %v1401_v45 = vpop.f32.mrb[9].mxu0  ;;  %v4960_v44 = vadd.f32 %v1452_v42, %v6539_v48  ;;  %v1454_v59 = vpop.f32.mrb[9].mxu1 }
 0x18a   :  { %v4953_v53 = vadd.f32 %v1401_v45, %v6541_v55  ;;  %v1403_v61 = vpop.f32.mrb[10].mxu0  ;;  %v4961_v57 = vadd.f32 %v1454_v59, %v6543_v49  ;;  %v1456_v54 = vpop.f32.mrb[10].mxu1 }
 0x18b   :  { %1503 = vst [vmem:[#allocation3] sm:$0xff] %v4952_v47  ;;  %v4954_v63 = vadd.f32 %v1403_v61, %v6537_v46  ;;  %v1405_v50 = vpop.f32.mrb[11].mxu0  ;;  %1505 = vst [vmem:[#allocation3 + $0x10] sm:$0xff] %v4960_v44  ;;  %v4962_v56 = vadd.f32 %v1456_v54, %v6539_v48  ;;  %v1458_v41 = vpop.f32.mrb[11].mxu1 }
 0x18c   :  { %1504 = vst [vmem:[#allocation3 + $0x8] sm:$0xff] %v4953_v53  ;;  %v4955_v52 = vadd.f32 %v1405_v50, %v6541_v55  ;;  %1506 = vst [vmem:[#allocation3 + $0x18] sm:$0xff] %v4961_v57  ;;  %v4963_v51 = vadd.f32 %v1458_v41, %v6543_v49 }
 0x18d   :  { %1507 = vst [vmem:[#allocation3 + $0x20] sm:$0xff] %v4954_v63  ;;  %1509 = vst [vmem:[#allocation3 + $0x30] sm:$0xff] %v4962_v56 }
 0x18e   :  { %1508 = vst [vmem:[#allocation3 + $0x28] sm:$0xff] %v4955_v52  ;;  %1510 = vst [vmem:[#allocation3 + $0x38] sm:$0xff] %v4963_v51 }
 0x190   :  { %v1409_v47 = vpop.f32.mrb[12].mxu0  ;;  %v1462_v45 = vpop.f32.mrb[12].mxu1 }
 0x191   :  { %v4956_v42 = vadd.f32 %v1409_v47, %v6537_v46  ;;  %v1411_v59 = vpop.f32.mrb[13].mxu0  ;;  %v4964_v44 = vadd.f32 %v1462_v45, %v6539_v48  ;;  %v1464_v61 = vpop.f32.mrb[13].mxu1  ;;  %v6563_v45 = vmov 0.0  }
 0x192   :  { %v4957_v53 = vadd.f32 %v1411_v59, %v6541_v55  ;;  %v1413_v54 = vpop.f32.mrb[14].mxu0  ;;  %v4965_v57 = vadd.f32 %v1464_v61, %v6543_v49  ;;  %v1466_v50 = vpop.f32.mrb[14].mxu1  ;;  %v6565_v59 = vmov 0.0  }
 0x193   :  { %1511 = vst [vmem:[#allocation3 + $0x40] sm:$0xff] %v4956_v42  ;;  %v4958_v63 = vadd.f32 %v1413_v54, %v6537_v46  ;;  %v1415_v56 = vpop.f32.mrb[15].mxu0  ;;  %1513 = vst [vmem:[#allocation3 + $0x50] sm:$0xff] %v4964_v44  ;;  %v4966_v52 = vadd.f32 %v1466_v50, %v6539_v48  ;;  %v1468_v51 = vpop.f32.mrb[15].mxu1  ;;  %v6561_v42 = vmov 0.0   ;;  %v6567_v44 = vmov 0.0  }
 0x194   :  { %1512 = vst [vmem:[#allocation3 + $0x48] sm:$0xff] %v4957_v53  ;;  %v4959_v41 = vadd.f32 %v1415_v56, %v6541_v55  ;;  %1514 = vst [vmem:[#allocation3 + $0x58] sm:$0xff] %v4965_v57  ;;  %v4967_v47 = vadd.f32 %v1468_v51, %v6543_v49 }
 0x195   :  { %1515 = vst [vmem:[#allocation3 + $0x60] sm:$0xff] %v4958_v63  ;;  %1517 = vst [vmem:[#allocation3 + $0x70] sm:$0xff] %v4966_v52 }
 0x196   :  { %1516 = vst [vmem:[#allocation3 + $0x68] sm:$0xff] %v4959_v41  ;;  %1518 = vst [vmem:[#allocation3 + $0x78] sm:$0xff] %v4967_v47 }
 0x197 LB: > { %v8118_v62 = vld [vmem:[#allocation80_spill] sm:$0xff]  ;;  %v8119_v60 = vld [vmem:[#allocation78_spill] sm:$0xff]  ;;  %v8120_v55 = vld [vmem:[#allocation83_spill] sm:$0xff]  ;;  %8167 = vst [vmem:[#allocation85_spill] sm:$0xff] %v5738_v42  ;;  %s6587_s27 = sadd.s32 1, %s5754_s10   ;;  %v5750_v44 = vphi %v6567_v44, %v8293_v44   ;;  %v5746_v59 = vphi %v6565_v59, %v8292_v59   ;;  %v5742_v45 = vphi %v6563_v45, %v8291_v45   ;;  %v5738_v42 = vphi %v6561_v42, %v4364_v42   ;;  %s5754_s10 = sphi %s6569_s10, %s8294_s10  }
 0x198   : > { %v8121_v49 = vld [vmem:[#allocation84_spill] sm:$0xff]  ;;  %v8122_v48 = vld [vmem:[#allocation82_spill] sm:$0xff]  ;;  %v8123_v46 = vld [vmem:[#allocation81_spill] sm:$0xff]  ;;  %8168 = vst [vmem:[#allocation86_spill] sm:$0xff] %v5746_v59  ;;  %p4633_p8 = scmp.ge.s32.totalorder %s6587_s27, 2 }
 0x199   : > { %v8124_v43 = vld [vmem:[#allocation55_spill] sm:$0xff]  ;;  %v8125_v40 = vld [vmem:[#allocation52_spill] sm:$0xff]  ;;  %v8127_v38 = vld [vmem:[#allocation50_spill] sm:$0xff]  ;;  %v5760_v54 = vmov (!%p4633_p8), 0   ;;  %s4916_s7 = sshll.u32 (!%p4633_p8), %s5754_s10, 5  ;;  %s1547_s23 = ssub.s32 (!%p4633_p8), 0, %s5754_s10 }
 0x19a   : > { %v8126_v39 = vld [vmem:[#allocation51_spill] sm:$0xff]  ;;  %v8128_v37 = vld [vmem:[#allocation49_spill] sm:$0xff]  ;;  %v8129_v36 = vld [vmem:[#allocation48_spill] sm:$0xff]  ;;  %1793 = vmatprep.mubr.bf16.mxu0 (!%p4633_p8), %v5760_v54  ;;  %1846 = vmatprep.mubr.bf16.mxu1 (!%p4633_p8), %v5760_v54  ;;  %s4917_s29 = sadd.s32 (!%p4633_p8), 32, %s4916_s7  ;;  %s4638_s8 = sshll.u32 (!%p4633_p8), %s1547_s23, 5 }
 0x19b   : > { %v8130_v35 = vld [vmem:[#allocation47_spill] sm:$0xff]  ;;  %v8131_v34 = vld [vmem:[#allocation46_spill] sm:$0xff]  ;;  %v8132_v33 = vld [vmem:[#allocation45_spill] sm:$0xff]  ;;  %s1549_s21 = sshra.s32 (!%p4633_p8), %s4917_s29, 3  ;;  %s1883_s25 = sshra.s32 (!%p4633_p8), %s4638_s8, 3 }
 0x19c   : > { %v8133_v32 = vld [vmem:[#allocation44_spill] sm:$0xff]  ;;  %v8134_v31 = vld [vmem:[#allocation43_spill] sm:$0xff]  ;;  %v8135_v30 = vld [vmem:[#allocation42_spill] sm:$0xff]  ;;  %s6670_s26 = sshll.u32 (!%p4633_p8), %s1549_s21, 2  ;;  %s6746_s9 = sshll.u32 (!%p4633_p8), %s1883_s25, 2 }
 0x19d   : > { %v8136_v29 = vld [vmem:[#allocation41_spill] sm:$0xff]  ;;  %v8137_v28 = vld [vmem:[#allocation40_spill] sm:$0xff]  ;;  %v8138_v27 = vld [vmem:[#allocation39_spill] sm:$0xff]  ;;  %s6685_s19 = scalar_lea.vmem (!%p4633_p8), %s7855_s0, %s6670_s26  ;;  %s6766_s21 = scalar_lea.vmem (!%p4633_p8), %s7855_s0, %s6746_s9 }
 0x19e   : > { %v8139_v26 = vld [vmem:[#allocation38_spill] sm:$0xff]  ;;  %v8140_v25 = vld [vmem:[#allocation37_spill] sm:$0xff]  ;;  %v8141_v24 = vld [vmem:[#allocation36_spill] sm:$0xff]  ;;  %s6833_s30 = scalar_lea.vmem (!%p4633_p8), %s7856_s1, %s6670_s26  ;;  %s6916_s22 = scalar_lea.vmem (!%p4633_p8), %s7856_s1, %s6746_s9 }
 0x19f   : > { %v8142_v23 = vld [vmem:[#allocation35_spill] sm:$0xff]  ;;  %v8143_v22 = vld [vmem:[#allocation34_spill] sm:$0xff]  ;;  %v8144_v21 = vld [vmem:[#allocation33_spill] sm:$0xff]  ;;  %s1535_s24 = ssub.s32 (!%p4633_p8), 0, %s6587_s27  ;;  %p1534_p9 = scmp.lt.s32.totalorder (!%p4633_p8), %s6587_s27, 0 }
 0x1a0   : > { %v8145_v20 = vld [vmem:[#allocation32_spill] sm:$0xff]  ;;  %v8146_v19 = vld [vmem:[#allocation31_spill] sm:$0xff]  ;;  %v8147_v18 = vld [vmem:[#allocation30_spill] sm:$0xff]  ;;  %s4634_s23 = smin.u32 (!%p4633_p8), %s1535_s24, %s6587_s27 }
 0x1a1   : > { %v8148_v17 = vld [vmem:[#allocation29_spill] sm:$0xff]  ;;  %v8149_v16 = vld [vmem:[#allocation28_spill] sm:$0xff]  ;;  %v8150_v15 = vld [vmem:[#allocation27_spill] sm:$0xff]  ;;  %1533 = sbr.rel (%p4633_p8) target bundleno = 779 (0x30b), region = 60  ;;  %s1537_s26 = sand.u32 (!%p4633_p8), 1, %s4634_s23  }
 0x1a2   : > { %v8151_v14 = vld [vmem:[#allocation26_spill] sm:$0xff]  ;;  %v8152_v13 = vld [vmem:[#allocation25_spill] sm:$0xff]  ;;  %v8153_v12 = vld [vmem:[#allocation24_spill] sm:$0xff]  ;;  %s1538_s25 = ssub.s32 (!%p4633_p8), 0, %s1537_s26 }
 0x1a3   : > { %v8154_v11 = vld [vmem:[#allocation23_spill] sm:$0xff]  ;;  %v8155_v10 = vld [vmem:[#allocation22_spill] sm:$0xff]  ;;  %v8156_v9 = vld [vmem:[#allocation21_spill] sm:$0xff] }
 0x1a4   : > { %v8157_v8 = vld [vmem:[#allocation20_spill] sm:$0xff]  ;;  %v8158_v7 = vld [vmem:[#allocation19_spill] sm:$0xff]  ;;  %v8159_v6 = vld [vmem:[#allocation18_spill] sm:$0xff] }
 0x1a5   : > { %v8160_v5 = vld [vmem:[#allocation17_spill] sm:$0xff]  ;;  %v8161_v4 = vld [vmem:[#allocation16_spill] sm:$0xff]  ;;  %v8162_v3 = vld [vmem:[#allocation15_spill] sm:$0xff] }
 0x1a6   : > { %v8163_v2 = vld [vmem:[#allocation14_spill] sm:$0xff]  ;;  %v8164_v1 = vld [vmem:[#allocation13_spill] sm:$0xff]  ;;  %v8165_v0 = vld [vmem:[#allocation79_spill] sm:$0xff] }
 0x1a7   : > { %v8166_v58 = vld [vmem:[#allocation77_spill] sm:$0xff]  ;;  %v5316_v61 = vld [vmem:[%s7858_s3 + $0xc] ss:$16 sps:$4 sm:$0xff] (!%p4633_p8)   ;;  %v5319_v63 = vld [vmem:[%s7858_s3 + $0x8] ss:$16 sps:$4 sm:$0xff] (!%p4633_p8)  }
 0x1a8   : > { %v5314_v53 = vld [vmem:[%s7858_s3 + $0x4] ss:$16 sps:$4 sm:$0xff]   ;;  %v5318_v57 = vld [vmem:[%s7858_s3] ss:$16 sps:$4 sm:$0xff]   ;;  %1814 = vmatprep.subr.bf16.mxu1 %v5316_v61  ;;  %v5322_v56 = vld [vmem:[%s7858_s3 + $0x2c] ss:$16 sps:$4 sm:$0xff]   ;;  %s8296_s25 = smov (!%p1534_p9, %s1538_s25), %s1537_s26 }
 0x1a9   : > { %1761 = vmatprep.subr.bf16.mxu0 %v5314_v53  ;;  %v5320_v50 = vld [vmem:[%s7858_s3 + $0x24] ss:$16 sps:$4 sm:$0xff]   ;;  %1815 = vmatpush1.bf16.msra.mxu1 %v5319_v63  ;;  %v5324_v52 = vld [vmem:[%s7858_s3 + $0x20] ss:$16 sps:$4 sm:$0xff]   ;;  %v5325_v41 = vld [vmem:[%s7858_s3 + $0x28] ss:$16 sps:$4 sm:$0xff]  }
 0x1aa   : > { %1762 = vmatpush1.bf16.msra.mxu0 %v5318_v57  ;;  %1816 = vmatprep.subr.bf16.mxu1 %v5322_v56  ;;  %v5326_v51 = vld [vmem:[%s7858_s3 + $0x44] ss:$16 sps:$4 sm:$0xff]   ;;  %v5328_v47 = vld [vmem:[%s7858_s3 + $0x4c] ss:$16 sps:$4 sm:$0xff]   ;;  %v5330_v53 = vld [vmem:[%s7858_s3 + $0x40] ss:$16 sps:$4 sm:$0xff]  }
 0x1ab   : > { %1763 = vmatprep.subr.bf16.mxu0 %v5320_v50  ;;  %v5331_v61 = vld [vmem:[%s7858_s3 + $0x48] ss:$16 sps:$4 sm:$0xff]   ;;  %v5332_v57 = vld [vmem:[%s7858_s3 + $0x64] ss:$16 sps:$4 sm:$0xff]   ;;  %v5334_v63 = vld [vmem:[%s7858_s3 + $0x6c] ss:$16 sps:$4 sm:$0xff]  }
 0x1ac   : > { %v5336_v50 = vld [vmem:[%s7858_s3 + $0x60] ss:$16 sps:$4 sm:$0xff]   ;;  %v5337_v56 = vld [vmem:[%s7858_s3 + $0x68] ss:$16 sps:$4 sm:$0xff]   ;;  %p4636_p10 = scmp.lt.s32.totalorder %s8296_s25, 0  ;;  %s1544_s28 = sadd.s32 2, %s8296_s25 }
 0x1ad   : > { %1817 = vmatpush1.bf16.msra.mxu1 %v5325_v41  ;;  %v5340_v41 = vld [vmem:[%s7858_s3 + $0x8c] ss:$16 sps:$4 sm:$0xff]  }
 0x1ae   : > { %1764 = vmatpush1.bf16.msra.mxu0 %v5324_v52  ;;  %1818 = vmatprep.subr.bf16.mxu1 %v5328_v47  ;;  %v5338_v52 = vld [vmem:[%s7858_s3 + $0x84] ss:$16 sps:$4 sm:$0xff]   ;;  %v5343_v47 = vld [vmem:[%s7858_s3 + $0x88] ss:$16 sps:$4 sm:$0xff]   ;;  %s8298_s28 = smov (!%p4636_p10, %s1544_s28), %s8296_s25 }
 0x1af   : > { %1765 = vmatprep.subr.bf16.mxu0 %v5326_v51  ;;  %v5342_v51 = vld [vmem:[%s7858_s3 + $0x80] ss:$16 sps:$4 sm:$0xff]   ;;  %s4779_s29 = sshll.u32 %s8298_s28, 5 }
 0x1b0   : > { %s7033_s15 = sshra.s32 %s4779_s29, 3 }
 0x1b1   : > { %1819 = vmatpush1.bf16.msra.mxu1 %v5331_v61  ;;  %v5346_v61 = vld [vmem:[%s7858_s3 + $0xac] ss:$16 sps:$4 sm:$0xff]   ;;  %s4918_s9 = sshll.u32 %s7033_s15, 5 }
 0x1b2   : > { %1766 = vmatpush1.bf16.msra.mxu0 %v5330_v53  ;;  %1820 = vmatprep.subr.bf16.mxu1 %v5334_v63  ;;  %v5344_v53 = vld [vmem:[%s7858_s3 + $0xa4] ss:$16 sps:$4 sm:$0xff]   ;;  %v5349_v63 = vld [vmem:[%s7858_s3 + $0xa8] ss:$16 sps:$4 sm:$0xff]   ;;  %s7078_s16 = scalar_lea.vmem [#allocation3], %s4918_s9 }
 0x1b3   : > { %1767 = vmatprep.subr.bf16.mxu0 %v5332_v57  ;;  %v5348_v57 = vld [vmem:[%s7858_s3 + $0xa0] ss:$16 sps:$4 sm:$0xff]  }
 0x1b5   : > { %1821 = vmatpush1.bf16.msra.mxu1 %v5337_v56  ;;  %v5352_v56 = vld [vmem:[%s7858_s3 + $0xcc] ss:$16 sps:$4 sm:$0xff]  }
 0x1b6   : > { %1768 = vmatpush1.bf16.msra.mxu0 %v5336_v50  ;;  %1822 = vmatprep.subr.bf16.mxu1 %v5340_v41  ;;  %v5350_v50 = vld [vmem:[%s7858_s3 + $0xc4] ss:$16 sps:$4 sm:$0xff]   ;;  %v5355_v41 = vld [vmem:[%s7858_s3 + $0xc8] ss:$16 sps:$4 sm:$0xff]  }
 0x1b7   : > { %1769 = vmatprep.subr.bf16.mxu0 %v5338_v52  ;;  %v5354_v52 = vld [vmem:[%s7858_s3 + $0xc0] ss:$16 sps:$4 sm:$0xff]  }
 0x1b9   : > { %1823 = vmatpush1.bf16.msra.mxu1 %v5343_v47  ;;  %v5358_v47 = vld [vmem:[%s7858_s3 + $0xec] ss:$16 sps:$4 sm:$0xff]  }
 0x1ba   : > { %1770 = vmatpush1.bf16.msra.mxu0 %v5342_v51  ;;  %1824 = vmatprep.subr.bf16.mxu1 %v5346_v61  ;;  %v5356_v51 = vld [vmem:[%s7858_s3 + $0xe4] ss:$16 sps:$4 sm:$0xff]   ;;  %v5361_v61 = vld [vmem:[%s7858_s3 + $0xe8] ss:$16 sps:$4 sm:$0xff]  }
 0x1bb   : > { %1771 = vmatprep.subr.bf16.mxu0 %v5344_v53  ;;  %v5360_v53 = vld [vmem:[%s7858_s3 + $0xe0] ss:$16 sps:$4 sm:$0xff]  }
 0x1bd   : > { %1825 = vmatpush1.bf16.msra.mxu1 %v5349_v63  ;;  %v5367_v63 = vld [vmem:[%s7860_s5 + $0xc] ss:$16 sps:$4 sm:$0xff]  }
 0x1be   : > { %1772 = vmatpush1.bf16.msra.mxu0 %v5348_v57  ;;  %1826 = vmatprep.subr.bf16.mxu1 %v5352_v56  ;;  %v5364_v57 = vld [vmem:[%s7860_s5 + $0x4] ss:$16 sps:$4 sm:$0xff]  }
 0x1bf   : > { %1773 = vmatprep.subr.bf16.mxu0 %v5350_v50  ;;  %v5362_v50 = vld [vmem:[%s7860_s5] ss:$16 sps:$4 sm:$0xff]  }
 0x1c0   : > { %v5368_v56 = vld [vmem:[%s6685_s19] sm:$0xff]  }
 0x1c1   : > { %1827 = vmatpush1.bf16.msra.mxu1 %v5355_v41  ;;  %v5371_v41 = vld [vmem:[%s7860_s5 + $0x24] ss:$16 sps:$4 sm:$0xff]  }
 0x1c2   : > { %1774 = vmatpush1.bf16.msra.mxu0 %v5354_v52  ;;  %1828 = vmatprep.subr.bf16.mxu1 %v5358_v47  ;;  %v5365_v52 = vld [vmem:[%s7860_s5 + $0x8] ss:$16 sps:$4 sm:$0xff]   ;;  %v5369_v47 = vld [vmem:[%s7860_s5 + $0x20] ss:$16 sps:$4 sm:$0xff]  }
 0x1c3   : > { %1775 = vmatprep.subr.bf16.mxu0 %v5356_v51  ;;  %v5374_v51 = vld [vmem:[%s7860_s5 + $0x2c] ss:$16 sps:$4 sm:$0xff]  }
 0x1c5   : > { %1829 = vmatpush1.bf16.msra.mxu1 %v5361_v61  ;;  %v5377_v61 = vld [vmem:[%s7860_s5 + $0x44] ss:$16 sps:$4 sm:$0xff]  }
 0x1c6   : > { %1776 = vmatpush1.bf16.msra.mxu0 %v5360_v53  ;;  %2148 = vmatprep.subr.bf16.mxu1 %v5367_v63  ;;  %v5372_v53 = vld [vmem:[%s7860_s5 + $0x28] ss:$16 sps:$4 sm:$0xff]   ;;  %v5375_v63 = vld [vmem:[%s7860_s5 + $0x40] ss:$16 sps:$4 sm:$0xff]  }
 0x1c7   : > { %2095 = vmatprep.subr.bf16.mxu0 %v5364_v57  ;;  %v5380_v57 = vld [vmem:[%s7860_s5 + $0x4c] ss:$16 sps:$4 sm:$0xff]  }
 0x1c8   : > { %1847 = vmatmul.mubr.bf16.vlgmr.msra.gmra.mrb[0].mxu1 %v5368_v56 }
 0x1c9   : > { %1794 = vmatmul.mubr.bf16.vlgmr.msra.gmra.mrb[0].mxu0 %v5368_v56  ;;  %2149 = vmatpush1.bf16.msra.mxu1 %v5365_v52  ;;  %v5383_v56 = vld [vmem:[%s7860_s5 + $0x64] ss:$16 sps:$4 sm:$0xff]   ;;  %v5386_v52 = vld [vmem:[%s7860_s5 + $0x6c] ss:$16 sps:$4 sm:$0xff]  }
 0x1ca   : > { %2096 = vmatpush1.bf16.msra.mxu0 %v5362_v50  ;;  %2150 = vmatprep.subr.bf16.mxu1 %v5374_v51  ;;  %v5378_v50 = vld [vmem:[%s7860_s5 + $0x48] ss:$16 sps:$4 sm:$0xff]   ;;  %v5381_v51 = vld [vmem:[%s7860_s5 + $0x60] ss:$16 sps:$4 sm:$0xff]  }
 0x1cb   : > { %2097 = vmatprep.subr.bf16.mxu0 %v5371_v41  ;;  %1803 = vmatprep.mubr.bf16.mxu0 %v5760_v54  ;;  %v5405_v41 = vld [vmem:[%s6685_s19 + $0x8] sm:$0xff]  }
 0x1cc   : > { %1856 = vmatprep.mubr.bf16.mxu1 %v5760_v54 }
 0x1cd   : > { %2151 = vmatpush1.bf16.msra.mxu1 %v5372_v53  ;;  %v5389_v53 = vld [vmem:[%s7860_s5 + $0x84] ss:$16 sps:$4 sm:$0xff]  }
 0x1ce   : > { %2098 = vmatpush1.bf16.msra.mxu0 %v5369_v47  ;;  %2152 = vmatprep.subr.bf16.mxu1 %v5380_v57  ;;  %v5384_v47 = vld [vmem:[%s7860_s5 + $0x68] ss:$16 sps:$4 sm:$0xff]   ;;  %v5387_v57 = vld [vmem:[%s7860_s5 + $0x80] ss:$16 sps:$4 sm:$0xff]  }
 0x1cf   : > { %2099 = vmatprep.subr.bf16.mxu0 %v5377_v61  ;;  %v5392_v61 = vld [vmem:[%s7860_s5 + $0x8c] ss:$16 sps:$4 sm:$0xff]  }
 0x1d0   : > { %1857 = vmatmul.mubr.bf16.gmra.mrb[4].mxu1 %v5405_v41 }
 0x1d1   : > { %1804 = vmatmul.mubr.bf16.gmra.mrb[4].mxu0 %v5405_v41  ;;  %2153 = vmatpush1.bf16.msra.mxu1 %v5378_v50  ;;  %v5395_v50 = vld [vmem:[%s7860_s5 + $0xa4] ss:$16 sps:$4 sm:$0xff]   ;;  %v5396_v41 = vld [vmem:[%s7860_s5 + $0xa8] ss:$16 sps:$4 sm:$0xff]  }
 0x1d2   : > { %2100 = vmatpush1.bf16.msra.mxu0 %v5375_v63  ;;  %2154 = vmatprep.subr.bf16.mxu1 %v5386_v52  ;;  %v5390_v63 = vld [vmem:[%s7860_s5 + $0x88] ss:$16 sps:$4 sm:$0xff]   ;;  %v5393_v52 = vld [vmem:[%s7860_s5 + $0xa0] ss:$16 sps:$4 sm:$0xff]  }
 0x1d3   : > { %2101 = vmatprep.subr.bf16.mxu0 %v5383_v56  ;;  %2127 = vmatprep.mubr.bf16.mxu0 %v5760_v54  ;;  %v5398_v56 = vld [vmem:[%s7860_s5 + $0xac] ss:$16 sps:$4 sm:$0xff]  }
 0x1d4   : > { %2180 = vmatprep.mubr.bf16.mxu1 %v5760_v54 }
 0x1d5   : > { %2155 = vmatpush1.bf16.msra.mxu1 %v5384_v47  ;;  %v5404_v47 = vld [vmem:[%s7860_s5 + $0xcc] ss:$16 sps:$4 sm:$0xff]  }
 0x1d6   : > { %2102 = vmatpush1.bf16.msra.mxu0 %v5381_v51  ;;  %2156 = vmatprep.subr.bf16.mxu1 %v5392_v61  ;;  %v5401_v51 = vld [vmem:[%s7860_s5 + $0xc4] ss:$16 sps:$4 sm:$0xff]   ;;  %v5402_v61 = vld [vmem:[%s7860_s5 + $0xc8] ss:$16 sps:$4 sm:$0xff]  }
 0x1d7   : > { %2103 = vmatprep.subr.bf16.mxu0 %v5389_v53  ;;  %v5399_v53 = vld [vmem:[%s7860_s5 + $0xc0] ss:$16 sps:$4 sm:$0xff]  }
 0x1d9   : > { %2157 = vmatpush1.bf16.msra.mxu1 %v5390_v63  ;;  %v5411_v63 = vld [vmem:[%s7860_s5 + $0xec] ss:$16 sps:$4 sm:$0xff]  }
 0x1da   : > { %2104 = vmatpush1.bf16.msra.mxu0 %v5387_v57  ;;  %2158 = vmatprep.subr.bf16.mxu1 %v5398_v56  ;;  %v5408_v57 = vld [vmem:[%s7860_s5 + $0xe4] ss:$16 sps:$4 sm:$0xff]   ;;  %v5409_v56 = vld [vmem:[%s7860_s5 + $0xe8] ss:$16 sps:$4 sm:$0xff]  }
 0x1db   : > { %2105 = vmatprep.subr.bf16.mxu0 %v5395_v50  ;;  %v5406_v50 = vld [vmem:[%s7860_s5 + $0xe0] ss:$16 sps:$4 sm:$0xff]  }
 0x1dd   : > { %2159 = vmatpush1.bf16.msra.mxu1 %v5396_v41  ;;  %v5417_v41 = vld [vmem:[%s7859_s4 + $0xc] ss:$16 sps:$4 sm:$0xff]  }
 0x1de   : > { %2106 = vmatpush1.bf16.msra.mxu0 %v5393_v52  ;;  %2160 = vmatprep.subr.bf16.mxu1 %v5404_v47  ;;  %v5414_v52 = vld [vmem:[%s7859_s4 + $0x4] ss:$16 sps:$4 sm:$0xff]   ;;  %v5415_v47 = vld [vmem:[%s7859_s4 + $0x8] ss:$16 sps:$4 sm:$0xff]  }
 0x1df   : > { %2107 = vmatprep.subr.bf16.mxu0 %v5401_v51  ;;  %v5412_v51 = vld [vmem:[%s7859_s4] ss:$16 sps:$4 sm:$0xff]  }
 0x1e1   : > { %2161 = vmatpush1.bf16.msra.mxu1 %v5402_v61  ;;  %v5421_v61 = vld [vmem:[%s7859_s4 + $0x24] ss:$16 sps:$4 sm:$0xff]  }
 0x1e2   : > { %2108 = vmatpush1.bf16.msra.mxu0 %v5399_v53  ;;  %2162 = vmatprep.subr.bf16.mxu1 %v5411_v63  ;;  %v5418_v53 = vld [vmem:[%s6766_s21] sm:$0xff]  }
 0x1e3   : > { %2109 = vmatprep.subr.bf16.mxu0 %v5408_v57  ;;  %v5424_v57 = vld [vmem:[%s7859_s4 + $0x2c] ss:$16 sps:$4 sm:$0xff]   ;;  %v5419_v63 = vld [vmem:[%s7859_s4 + $0x20] ss:$16 sps:$4 sm:$0xff]  }
 0x1e5   : > { %2163 = vmatpush1.bf16.msra.mxu1 %v5409_v56  ;;  %v5427_v56 = vld [vmem:[%s7859_s4 + $0x44] ss:$16 sps:$4 sm:$0xff]  }
 0x1e6   : > { %2110 = vmatpush1.bf16.msra.mxu0 %v5406_v50  ;;  %2480 = vmatprep.subr.bf16.mxu1 %v5417_v41  ;;  %v5422_v50 = vld [vmem:[%s7859_s4 + $0x28] ss:$16 sps:$4 sm:$0xff]   ;;  %v5425_v41 = vld [vmem:[%s7859_s4 + $0x40] ss:$16 sps:$4 sm:$0xff]  }
 0x1e7   : > { %2427 = vmatprep.subr.bf16.mxu0 %v5414_v52  ;;  %v5430_v52 = vld [vmem:[%s7859_s4 + $0x4c] ss:$16 sps:$4 sm:$0xff]  }
 0x1e8   : > { %2181 = vmatmul.mubr.bf16.vlgmr.msra.gmra.mrb[8].mxu1 %v5418_v53 }
 0x1e9   : > { %2128 = vmatmul.mubr.bf16.vlgmr.msra.gmra.mrb[8].mxu0 %v5418_v53  ;;  %2481 = vmatpush1.bf16.msra.mxu1 %v5415_v47  ;;  %v5428_v47 = vld [vmem:[%s7859_s4 + $0x48] ss:$16 sps:$4 sm:$0xff]   ;;  %v5433_v53 = vld [vmem:[%s7859_s4 + $0x64] ss:$16 sps:$4 sm:$0xff]  }
 0x1ea   : > { %2428 = vmatpush1.bf16.msra.mxu0 %v5412_v51  ;;  %2482 = vmatprep.subr.bf16.mxu1 %v5424_v57  ;;  %v5449_v51 = vld [vmem:[%s6766_s21 + $0x8] sm:$0xff]   ;;  %v5431_v57 = vld [vmem:[%s7859_s4 + $0x60] ss:$16 sps:$4 sm:$0xff]  }
 0x1eb   : > { %2429 = vmatprep.subr.bf16.mxu0 %v5421_v61  ;;  %2137 = vmatprep.mubr.bf16.mxu0 %v5760_v54  ;;  %v5436_v61 = vld [vmem:[%s7859_s4 + $0x6c] ss:$16 sps:$4 sm:$0xff]  }
 0x1ec   : > { %2190 = vmatprep.mubr.bf16.mxu1 %v5760_v54 }
 0x1ed   : > { %2483 = vmatpush1.bf16.msra.mxu1 %v5422_v50  ;;  %v5439_v50 = vld [vmem:[%s7859_s4 + $0x84] ss:$16 sps:$4 sm:$0xff]  }
 0x1ee   : > { %2430 = vmatpush1.bf16.msra.mxu0 %v5419_v63  ;;  %2484 = vmatprep.subr.bf16.mxu1 %v5430_v52  ;;  %v5434_v63 = vld [vmem:[%s7859_s4 + $0x68] ss:$16 sps:$4 sm:$0xff]   ;;  %v5437_v52 = vld [vmem:[%s7859_s4 + $0x80] ss:$16 sps:$4 sm:$0xff]  }
 0x1ef   : > { %2431 = vmatprep.subr.bf16.mxu0 %v5427_v56  ;;  %v5442_v56 = vld [vmem:[%s7859_s4 + $0x8c] ss:$16 sps:$4 sm:$0xff]  }
 0x1f0   : > { %2191 = vmatmul.mubr.bf16.gmra.mrb[12].mxu1 %v5449_v51 }
 0x1f1   : > { %2138 = vmatmul.mubr.bf16.gmra.mrb[12].mxu0 %v5449_v51  ;;  %2485 = vmatpush1.bf16.msra.mxu1 %v5428_v47  ;;  %v5445_v51 = vld [vmem:[%s7859_s4 + $0xa4] ss:$16 sps:$4 sm:$0xff]   ;;  %v5448_v47 = vld [vmem:[%s7859_s4 + $0xac] ss:$16 sps:$4 sm:$0xff]  }
 0x1f2   : > { %2432 = vmatpush1.bf16.msra.mxu0 %v5425_v41  ;;  %2486 = vmatprep.subr.bf16.mxu1 %v5436_v61  ;;  %v5440_v41 = vld [vmem:[%s7859_s4 + $0x88] ss:$16 sps:$4 sm:$0xff]  }
 0x1f3   : > { %2433 = vmatprep.subr.bf16.mxu0 %v5433_v53  ;;  %2459 = vmatprep.mubr.bf16.mxu0 %v5760_v54  ;;  %v5443_v53 = vld [vmem:[%s7859_s4 + $0xa0] ss:$16 sps:$4 sm:$0xff]   ;;  %v5446_v61 = vld [vmem:[%s7859_s4 + $0xa8] ss:$16 sps:$4 sm:$0xff]  }
 0x1f4   : > { %2512 = vmatprep.mubr.bf16.mxu1 %v5760_v54 }
 0x1f5   : > { %2487 = vmatpush1.bf16.msra.mxu1 %v5434_v63  ;;  %v5455_v63 = vld [vmem:[%s7859_s4 + $0xcc] ss:$16 sps:$4 sm:$0xff]  }
 0x1f6   : > { %2434 = vmatpush1.bf16.msra.mxu0 %v5431_v57  ;;  %2488 = vmatprep.subr.bf16.mxu1 %v5442_v56  ;;  %v5452_v57 = vld [vmem:[%s7859_s4 + $0xc4] ss:$16 sps:$4 sm:$0xff]   ;;  %v5453_v56 = vld [vmem:[%s7859_s4 + $0xc8] ss:$16 sps:$4 sm:$0xff]  }
 0x1f7   : > { %2435 = vmatprep.subr.bf16.mxu0 %v5439_v50  ;;  %v5450_v50 = vld [vmem:[%s7859_s4 + $0xc0] ss:$16 sps:$4 sm:$0xff]  }
 0x1f9   : > { %2489 = vmatpush1.bf16.msra.mxu1 %v5440_v41  ;;  %v5461_v41 = vld [vmem:[%s7859_s4 + $0xec] ss:$16 sps:$4 sm:$0xff]  }
 0x1fa   : > { %2436 = vmatpush1.bf16.msra.mxu0 %v5437_v52  ;;  %2490 = vmatprep.subr.bf16.mxu1 %v5448_v47  ;;  %v5458_v52 = vld [vmem:[%s7859_s4 + $0xe4] ss:$16 sps:$4 sm:$0xff]   ;;  %v5459_v47 = vld [vmem:[%s7859_s4 + $0xe8] ss:$16 sps:$4 sm:$0xff]  }
 0x1fb   : > { %2437 = vmatprep.subr.bf16.mxu0 %v5445_v51  ;;  %v5456_v51 = vld [vmem:[%s7859_s4 + $0xe0] ss:$16 sps:$4 sm:$0xff]  }
 0x1fd   : > { %2491 = vmatpush1.bf16.msra.mxu1 %v5446_v61  ;;  %v5468_v61 = vld [vmem:[%s7861_s6 + $0xc] ss:$16 sps:$4 sm:$0xff]  }
 0x1fe   : > { %2438 = vmatpush1.bf16.msra.mxu0 %v5443_v53  ;;  %2492 = vmatprep.subr.bf16.mxu1 %v5455_v63  ;;  %v5465_v53 = vld [vmem:[%s7861_s6 + $0x4] ss:$16 sps:$4 sm:$0xff]   ;;  %v5463_v63 = vld [vmem:[%s7861_s6] ss:$16 sps:$4 sm:$0xff]  }
 0x1ff   : > { %2439 = vmatprep.subr.bf16.mxu0 %v5452_v57  ;;  %v5462_v57 = vld [vmem:[%s6833_s30] sm:$0xff]  }
 0x201   : > { %2493 = vmatpush1.bf16.msra.mxu1 %v5453_v56  ;;  %v5471_v56 = vld [vmem:[%s7861_s6 + $0x24] ss:$16 sps:$4 sm:$0xff]  }
 0x202   : > { %2440 = vmatpush1.bf16.msra.mxu0 %v5450_v50  ;;  %2494 = vmatprep.subr.bf16.mxu1 %v5461_v41  ;;  %v5466_v50 = vld [vmem:[%s7861_s6 + $0x8] ss:$16 sps:$4 sm:$0xff]   ;;  %v5469_v41 = vld [vmem:[%s7861_s6 + $0x20] ss:$16 sps:$4 sm:$0xff]  }
 0x203   : > { %2441 = vmatprep.subr.bf16.mxu0 %v5458_v52  ;;  %v5474_v52 = vld [vmem:[%s7861_s6 + $0x2c] ss:$16 sps:$4 sm:$0xff]  }
 0x205   : > { %2495 = vmatpush1.bf16.msra.mxu1 %v5459_v47  ;;  %v5478_v47 = vld [vmem:[%s7861_s6 + $0x44] ss:$16 sps:$4 sm:$0xff]  }
 0x206   : > { %2442 = vmatpush1.bf16.msra.mxu0 %v5456_v51  ;;  %2812 = vmatprep.subr.bf16.mxu1 %v5468_v61  ;;  %v5472_v51 = vld [vmem:[%s7861_s6 + $0x28] ss:$16 sps:$4 sm:$0xff]  }
 0x207   : > { %2759 = vmatprep.subr.bf16.mxu0 %v5465_v53  ;;  %v5481_v53 = vld [vmem:[%s7861_s6 + $0x4c] ss:$16 sps:$4 sm:$0xff]  }
 0x208   : > { %2513 = vmatmul.mubr.bf16.vlgmr.msra.gmra.mrb[0].mxu1 %v5462_v57  ;;  %v5475_v61 = vld [vmem:[%s6833_s30 + $0x8] sm:$0xff]  }
 0x209   : > { %2460 = vmatmul.mubr.bf16.vlgmr.msra.gmra.mrb[0].mxu0 %v5462_v57  ;;  %2813 = vmatpush1.bf16.msra.mxu1 %v5466_v50  ;;  %v5476_v57 = vld [vmem:[%s7861_s6 + $0x40] ss:$16 sps:$4 sm:$0xff]   ;;  %v5484_v50 = vld [vmem:[%s7861_s6 + $0x64] ss:$16 sps:$4 sm:$0xff]  }
 0x20a   : > { %2760 = vmatpush1.bf16.msra.mxu0 %v5463_v63  ;;  %2814 = vmatprep.subr.bf16.mxu1 %v5474_v52  ;;  %v5479_v63 = vld [vmem:[%s7861_s6 + $0x48] ss:$16 sps:$4 sm:$0xff]   ;;  %v5482_v52 = vld [vmem:[%s7861_s6 + $0x60] ss:$16 sps:$4 sm:$0xff]  }
 0x20b   : > { %2761 = vmatprep.subr.bf16.mxu0 %v5471_v56  ;;  %2469 = vmatprep.mubr.bf16.mxu0 %v5760_v54  ;;  %v5487_v56 = vld [vmem:[%s7861_s6 + $0x6c] ss:$16 sps:$4 sm:$0xff]  }
 0x20c   : > { %2522 = vmatprep.mubr.bf16.mxu1 %v5760_v54 }
 0x20d   : > { %2815 = vmatpush1.bf16.msra.mxu1 %v5472_v51  ;;  %v5490_v51 = vld [vmem:[%s7861_s6 + $0x84] ss:$16 sps:$4 sm:$0xff]  }
 0x20e   : > { %2762 = vmatpush1.bf16.msra.mxu0 %v5469_v41  ;;  %2816 = vmatprep.subr.bf16.mxu1 %v5481_v53  ;;  %v5485_v41 = vld [vmem:[%s7861_s6 + $0x68] ss:$16 sps:$4 sm:$0xff]   ;;  %v5488_v53 = vld [vmem:[%s7861_s6 + $0x80] ss:$16 sps:$4 sm:$0xff]  }
 0x20f   : > { %2763 = vmatprep.subr.bf16.mxu0 %v5478_v47  ;;  %v5493_v47 = vld [vmem:[%s7861_s6 + $0x8c] ss:$16 sps:$4 sm:$0xff]  }
 0x210   : > { %2523 = vmatmul.mubr.bf16.gmra.mrb[4].mxu1 %v5475_v61 }
 0x211   : > { %2470 = vmatmul.mubr.bf16.gmra.mrb[4].mxu0 %v5475_v61  ;;  %2817 = vmatpush1.bf16.msra.mxu1 %v5479_v63  ;;  %v5491_v61 = vld [vmem:[%s7861_s6 + $0x88] ss:$16 sps:$4 sm:$0xff]   ;;  %v5499_v63 = vld [vmem:[%s7861_s6 + $0xac] ss:$16 sps:$4 sm:$0xff]  }
 0x212   : > { %2764 = vmatpush1.bf16.msra.mxu0 %v5476_v57  ;;  %2818 = vmatprep.subr.bf16.mxu1 %v5487_v56  ;;  %v5496_v57 = vld [vmem:[%s7861_s6 + $0xa4] ss:$16 sps:$4 sm:$0xff]   ;;  %v5497_v56 = vld [vmem:[%s7861_s6 + $0xa8] ss:$16 sps:$4 sm:$0xff]  }
 0x213   : > { %2765 = vmatprep.subr.bf16.mxu0 %v5484_v50  ;;  %2791 = vmatprep.mubr.bf16.mxu0 %v5760_v54  ;;  %v5494_v50 = vld [vmem:[%s7861_s6 + $0xa0] ss:$16 sps:$4 sm:$0xff]  }
 0x214   : > { %2844 = vmatprep.mubr.bf16.mxu1 %v5760_v54 }
 0x215   : > { %2819 = vmatpush1.bf16.msra.mxu1 %v5485_v41  ;;  %v5505_v41 = vld [vmem:[%s7861_s6 + $0xcc] ss:$16 sps:$4 sm:$0xff]  }
 0x216   : > { %2766 = vmatpush1.bf16.msra.mxu0 %v5482_v52  ;;  %2820 = vmatprep.subr.bf16.mxu1 %v5493_v47  ;;  %v5502_v52 = vld [vmem:[%s7861_s6 + $0xc4] ss:$16 sps:$4 sm:$0xff]   ;;  %v5503_v47 = vld [vmem:[%s7861_s6 + $0xc8] ss:$16 sps:$4 sm:$0xff]  }
 0x217   : > { %2767 = vmatprep.subr.bf16.mxu0 %v5490_v51  ;;  %v5500_v51 = vld [vmem:[%s7861_s6 + $0xc0] ss:$16 sps:$4 sm:$0xff]  }
 0x219   : > { %2821 = vmatpush1.bf16.msra.mxu1 %v5491_v61  ;;  %v5511_v61 = vld [vmem:[%s7861_s6 + $0xec] ss:$16 sps:$4 sm:$0xff]  }
 0x21a   : > { %2768 = vmatpush1.bf16.msra.mxu0 %v5488_v53  ;;  %2822 = vmatprep.subr.bf16.mxu1 %v5499_v63  ;;  %v5508_v53 = vld [vmem:[%s7861_s6 + $0xe4] ss:$16 sps:$4 sm:$0xff]   ;;  %v5509_v63 = vld [vmem:[%s7861_s6 + $0xe8] ss:$16 sps:$4 sm:$0xff]  }
 0x21b   : > { %2769 = vmatprep.subr.bf16.mxu0 %v5496_v57  ;;  %v5506_v57 = vld [vmem:[%s7861_s6 + $0xe0] ss:$16 sps:$4 sm:$0xff]  }
 0x21d   : > { %2823 = vmatpush1.bf16.msra.mxu1 %v5497_v56  ;;  %v5513_v56 = vld [vmem:[%s6916_s22 + $0x8] sm:$0xff]  }
 0x21e   : > { %2770 = vmatpush1.bf16.msra.mxu0 %v5494_v50  ;;  %2824 = vmatprep.subr.bf16.mxu1 %v5505_v41  ;;  %v5512_v50 = vld [vmem:[%s6916_s22] sm:$0xff]   ;;  %s7042_s22 = scalar_lea.vmem [#allocation2], %s4918_s9 }
 0x21f   : > { %2771 = vmatprep.subr.bf16.mxu0 %v5502_v52 }
 0x221   : > { %2825 = vmatpush1.bf16.msra.mxu1 %v5503_v47 }
 0x222   : > { %2772 = vmatpush1.bf16.msra.mxu0 %v5500_v51  ;;  %2826 = vmatprep.subr.bf16.mxu1 %v5511_v61 }
 0x223   : > { %2773 = vmatprep.subr.bf16.mxu0 %v5508_v53 }
 0x225   : > { %2827 = vmatpush1.bf16.msra.mxu1 %v5509_v63 }
 0x226   : > { %2774 = vmatpush1.bf16.msra.mxu0 %v5506_v57 }
 0x228   : > { %2845 = vmatmul.mubr.bf16.vlgmr.msra.gmra.mrb[8].mxu1 %v5512_v50 }
 0x229   : > { %2792 = vmatmul.mubr.bf16.vlgmr.msra.gmra.mrb[8].mxu0 %v5512_v50  ;;  %2854 = vmatprep.mubr.bf16.mxu1 %v5760_v54 }
 0x22a   : > { %2801 = vmatprep.mubr.bf16.mxu0 %v5760_v54 }
 0x230   : > { %2855 = vmatmul.mubr.bf16.gmra.mrb[12].mxu1 %v5513_v56 }
 0x231   : > { %2802 = vmatmul.mubr.bf16.gmra.mrb[12].mxu0 %v5513_v56 }
 0x2db   : > { %v2514_v54 = vpop.f32.mrb[0].mxu1 }
 0x2dc   : > { %v2461_v52 = vpop.f32.mrb[0].mxu0  ;;  %v5008_v51 = vadd.f32 %v2514_v54, %v8119_v60  ;;  %v2516_v53 = vpop.f32.mrb[1].mxu1 }
 0x2dd   : > { %v5000_v41 = vadd.f32 %v2461_v52, %v8166_v58  ;;  %v2463_v47 = vpop.f32.mrb[1].mxu0  ;;  %v5009_v57 = vadd.f32 %v2516_v53, %v8118_v62  ;;  %v2518_v50 = vpop.f32.mrb[2].mxu1 }
 0x2de   : > { %v5001_v61 = vadd.f32 %v2463_v47, %v8165_v0  ;;  %v2465_v63 = vpop.f32.mrb[2].mxu0  ;;  %2889 = vst [vmem:[%s7042_s22 + $0x10] sm:$0xff] %v5008_v51  ;;  %v5010_v52 = vadd.f32 %v2518_v50, %v8119_v60  ;;  %v2520_v47 = vpop.f32.mrb[3].mxu1 }
 0x2df   : > { %2887 = vst [vmem:[%s7042_s22] sm:$0xff] %v5000_v41  ;;  %v5002_v56 = vadd.f32 %v2465_v63, %v8166_v58  ;;  %v2467_v54 = vpop.f32.mrb[3].mxu0  ;;  %2890 = vst [vmem:[%s7042_s22 + $0x18] sm:$0xff] %v5009_v57  ;;  %v5011_v42 = vadd.f32 %v2520_v47, %v8118_v62 }
 0x2e0   : > { %2888 = vst [vmem:[%s7042_s22 + $0x8] sm:$0xff] %v5001_v61  ;;  %v5003_v53 = vadd.f32 %v2467_v54, %v8165_v0  ;;  %2893 = vst [vmem:[%s7042_s22 + $0x30] sm:$0xff] %v5010_v52 }
 0x2e1   : > { %2891 = vst [vmem:[%s7042_s22 + $0x20] sm:$0xff] %v5002_v56  ;;  %2894 = vst [vmem:[%s7042_s22 + $0x38] sm:$0xff] %v5011_v42 }
 0x2e2   : > { %2892 = vst [vmem:[%s7042_s22 + $0x28] sm:$0xff] %v5003_v53 }
 0x2e3   : > { %v2524_v51 = vpop.f32.mrb[4].mxu1 }
 0x2e4   : > { %v2471_v41 = vpop.f32.mrb[4].mxu0  ;;  %v5012_v50 = vadd.f32 %v2524_v51, %v8119_v60  ;;  %v2526_v57 = vpop.f32.mrb[5].mxu1 }
 0x2e5   : > { %v5004_v63 = vadd.f32 %v2471_v41, %v8166_v58  ;;  %v2473_v61 = vpop.f32.mrb[5].mxu0  ;;  %v5013_v56 = vadd.f32 %v2526_v57, %v8118_v62  ;;  %v2528_v42 = vpop.f32.mrb[6].mxu1 }
 0x2e6   : > { %v5005_v54 = vadd.f32 %v2473_v61, %v8165_v0  ;;  %v2475_v52 = vpop.f32.mrb[6].mxu0  ;;  %2897 = vst [vmem:[%s7042_s22 + $0x50] sm:$0xff] %v5012_v50  ;;  %v5014_v53 = vadd.f32 %v2528_v42, %v8119_v60  ;;  %v2530_v51 = vpop.f32.mrb[7].mxu1 }
 0x2e7   : > { %2895 = vst [vmem:[%s7042_s22 + $0x40] sm:$0xff] %v5004_v63  ;;  %v5006_v47 = vadd.f32 %v2475_v52, %v8166_v58  ;;  %v2477_v41 = vpop.f32.mrb[7].mxu0  ;;  %2898 = vst [vmem:[%s7042_s22 + $0x58] sm:$0xff] %v5013_v56  ;;  %v5015_v61 = vadd.f32 %v2530_v51, %v8118_v62 }
 0x2e8   : > { %2896 = vst [vmem:[%s7042_s22 + $0x48] sm:$0xff] %v5005_v54  ;;  %v5007_v59 = vadd.f32 %v2477_v41, %v8165_v0  ;;  %2901 = vst [vmem:[%s7042_s22 + $0x70] sm:$0xff] %v5014_v53 }
 0x2e9   : > { %2899 = vst [vmem:[%s7042_s22 + $0x60] sm:$0xff] %v5006_v47  ;;  %2902 = vst [vmem:[%s7042_s22 + $0x78] sm:$0xff] %v5015_v61 }
 0x2ea   : > { %2900 = vst [vmem:[%s7042_s22 + $0x68] sm:$0xff] %v5007_v59 }
 0x2fb   : > { %v2846_v63 = vpop.f32.mrb[8].mxu1 }
 0x2fc   : > { %v2793_v57 = vpop.f32.mrb[8].mxu0  ;;  %v5024_v52 = vadd.f32 %v2846_v63, %v8122_v48  ;;  %v2848_v58 = vpop.f32.mrb[9].mxu1 }
 0x2fd   : > { %v5016_v50 = vadd.f32 %v2793_v57, %v8123_v46  ;;  %v2795_v42 = vpop.f32.mrb[9].mxu0  ;;  %v5025_v56 = vadd.f32 %v2848_v58, %v8121_v49  ;;  %v2850_v0 = vpop.f32.mrb[10].mxu1 }
 0x2fe   : > { %v5017_v54 = vadd.f32 %v2795_v42, %v8120_v55  ;;  %v2797_v41 = vpop.f32.mrb[10].mxu0  ;;  %2907 = vst [vmem:[%s7078_s16 + $0x10] sm:$0xff] %v5024_v52  ;;  %v5026_v47 = vadd.f32 %v2850_v0, %v8122_v48  ;;  %v2852_v53 = vpop.f32.mrb[11].mxu1 }
 0x2ff   : > { %2905 = vst [vmem:[%s7078_s16] sm:$0xff] %v5016_v50  ;;  %v5018_v59 = vadd.f32 %v2797_v41, %v8123_v46  ;;  %v2799_v58 = vpop.f32.mrb[11].mxu0  ;;  %2908 = vst [vmem:[%s7078_s16 + $0x18] sm:$0xff] %v5025_v56  ;;  %v5027_v61 = vadd.f32 %v2852_v53, %v8121_v49 }
 0x300   : > { %2906 = vst [vmem:[%s7078_s16 + $0x8] sm:$0xff] %v5017_v54  ;;  %v5019_v51 = vadd.f32 %v2799_v58, %v8120_v55  ;;  %2911 = vst [vmem:[%s7078_s16 + $0x30] sm:$0xff] %v5026_v47 }
 0x301   : > { %2909 = vst [vmem:[%s7078_s16 + $0x20] sm:$0xff] %v5018_v59  ;;  %2912 = vst [vmem:[%s7078_s16 + $0x38] sm:$0xff] %v5027_v61 }
 0x302   : > { %2910 = vst [vmem:[%s7078_s16 + $0x28] sm:$0xff] %v5019_v51 }
 0x303   : > { %v2856_v63 = vpop.f32.mrb[12].mxu1 }
 0x304   : > { %v2803_v57 = vpop.f32.mrb[12].mxu0  ;;  %v5028_v50 = vadd.f32 %v2856_v63, %v8122_v48  ;;  %v2858_v42 = vpop.f32.mrb[13].mxu1 }
 0x305   : > { %v5020_v0 = vadd.f32 %v2803_v57, %v8123_v46  ;;  %v2805_v52 = vpop.f32.mrb[13].mxu0  ;;  %v5029_v56 = vadd.f32 %v2858_v42, %v8121_v49  ;;  %v2860_v59 = vpop.f32.mrb[14].mxu1 }
 0x306   : > { %v5021_v54 = vadd.f32 %v2805_v52, %v8120_v55  ;;  %v2807_v41 = vpop.f32.mrb[14].mxu0  ;;  %2915 = vst [vmem:[%s7078_s16 + $0x50] sm:$0xff] %v5028_v50  ;;  %v5030_v58 = vadd.f32 %v2860_v59, %v8122_v48  ;;  %v2862_v51 = vpop.f32.mrb[15].mxu1 }
 0x307   : > { %2913 = vst [vmem:[%s7078_s16 + $0x40] sm:$0xff] %v5020_v0  ;;  %v5022_v47 = vadd.f32 %v2807_v41, %v8123_v46  ;;  %v2809_v53 = vpop.f32.mrb[15].mxu0  ;;  %2916 = vst [vmem:[%s7078_s16 + $0x58] sm:$0xff] %v5029_v56  ;;  %v5031_v57 = vadd.f32 %v2862_v51, %v8121_v49 }
 0x308   : > { %2914 = vst [vmem:[%s7078_s16 + $0x48] sm:$0xff] %v5021_v54  ;;  %v5023_v61 = vadd.f32 %v2809_v53, %v8120_v55  ;;  %2919 = vst [vmem:[%s7078_s16 + $0x70] sm:$0xff] %v5030_v58 }
 0x309   : > { %2917 = vst [vmem:[%s7078_s16 + $0x60] sm:$0xff] %v5022_v47  ;;  %2920 = vst [vmem:[%s7078_s16 + $0x78] sm:$0xff] %v5031_v57 }
 0x30a   : > { %2918 = vst [vmem:[%s7078_s16 + $0x68] sm:$0xff] %v5023_v61 }
 0x30b PF: > { %v7110_v63 = vcombine.high %v8164_v1, %v8162_v3  ;;  %v7114_v0 = vcombine.low %v8164_v1, %v8162_v3  ;;  %v7118_v50 = vcombine.high %v8160_v5, %v8158_v7  ;;  %v7122_v52 = vcombine.high %v8163_v2, %v8161_v4  ;;  %s7156_s17 = sshll.u32 %s5754_s10, 2  ;;  %s4922_s8 = sshll.u32 %s5754_s10, 5  ;;  %v8212_v48 = vld [vmem:[#allocation62_spill] sm:$0xff]  ;;  %v8216_v55 = vld [vmem:[#allocation65_spill] sm:$0xff] }
 0x30c   : > { %v7127_v42 = vcombine.low %v8163_v2, %v8161_v4  ;;  %v7131_v54 = vcombine.high %v8159_v6, %v8157_v8  ;;  %v7136_v56 = vcombine.low %v8160_v5, %v8158_v7  ;;  %v7142_v41 = vcombine.high %v8156_v9, %v8154_v11  ;;  %s2934_s19 = ssub.s32 7, %s7156_s17  ;;  %s7189_s20 = scalar_lea.vmem %s7857_s2, %s4922_s8  ;;  %v8220_v62 = vld [vmem:[#allocation66_spill] sm:$0xff] }
 0x30d   : > { %3107 = vmatprep.subr.bf16.mxu0 %v7110_v63  ;;  %3148 = vmatprep.subr.bf16.mxu1 %v7122_v52  ;;  %v7147_v59 = vcombine.low %v8159_v6, %v8157_v8  ;;  %v7152_v47 = vcombine.high %v8155_v10, %v8153_v12  ;;  %v7903_v58 = vmov 0   ;;  %v7161_v53 = vcombine.low %v8156_v9, %v8154_v11  ;;  %s4863_s30 = sshll.u32 %s2934_s19, 3  ;;  %v3499_v5 = vld [vmem:[%s7189_s20] sm:$0xff]  ;;  %s7994_s26 = ssub.s32 6, %s7156_s17 }
 0x30e   : > { %8169 = vst [vmem:[#allocation87_spill] sm:$0xff] %v7131_v54  ;;  %3108 = vmatpush1.bf16.msra.mxu0 %v7114_v0  ;;  %8170 = vst [vmem:[#allocation88_spill] sm:$0xff] %v7136_v56  ;;  %3149 = vmatpush1.bf16.msra.mxu1 %v7127_v42  ;;  %v7166_v51 = vcombine.high %v8152_v13, %v8150_v15  ;;  %v7171_v61 = vcombine.low %v8155_v10, %v8153_v12  ;;  %v8182_v4 = vmov 0   ;;  %s3501_s23 = scalar_lea.vmem %s7857_s2, %s4863_s30  ;;  %s3818_s25 = ssub.s32 5, %s7156_s17 }
 0x30f   : > { %3109 = vmatprep.subr.bf16.mxu0 %v7118_v50  ;;  %8171 = vst [vmem:[#allocation89_spill] sm:$0xff] %v7142_v41  ;;  %8172 = vst [vmem:[#allocation90_spill] sm:$0xff] %v7147_v59  ;;  %3150 = vmatprep.subr.bf16.mxu1 %v7131_v54  ;;  %v7177_v57 = vcombine.high %v8151_v14, %v8149_v16  ;;  %v7184_v1 = vcombine.low %v8152_v13, %v8150_v15  ;;  %v3502_v10 = vld [vmem:[%s3501_s23] sm:$0xff]  ;;  %s4879_s28 = sshll.u32 %s7994_s26, 3  ;;  %s2922_s22 = ssub.s32 0, %s5754_s10 }
 0x310   : > { %8173 = vst [vmem:[#allocation91_spill] sm:$0xff] %v7152_v47  ;;  %3139 = vmatprep.mubr.bf16.mxu0 %v7903_v58  ;;  %8174 = vst [vmem:[#allocation92_spill] sm:$0xff] %v7161_v53  ;;  %3180 = vmatprep.mubr.bf16.mxu1 %v7903_v58  ;;  %v7194_v2 = vcombine.high %v8148_v17, %v8146_v19  ;;  %v7199_v58 = vcombine.low %v8151_v14, %v8149_v16  ;;  %v4894_v14 = vld [vmem:[%s7189_s20 + $0x10] sm:$0xff]  ;;  %s3783_s9 = scalar_lea.vmem %s7857_s2, %s4879_s28  ;;  %s4895_s16 = sshll.u32 %s3818_s25, 3 }
 0x311   : > { %8175 = vst [vmem:[#allocation93_spill] sm:$0xff] %v7166_v51  ;;  %8176 = vst [vmem:[#allocation94_spill] sm:$0xff] %v7171_v61  ;;  %v7206_v3 = vcombine.high %v8147_v18, %v8145_v20  ;;  %5514 = vset.pattern.permute.xlu0 %v8182_v4  ;;  %v7213_v6 = vcombine.low %v8148_v17, %v8146_v19  ;;  %v7221_v7 = vcombine.high %v8144_v21, %v8142_v23  ;;  %s4057_s21 = scalar_lea.vmem %s7857_s2, %s4895_s16  ;;  %s4783_s30 = smin.u32 %s5754_s10, %s2922_s22 }
 0x312   : > { %3110 = vmatpush1.bf16.msra.mxu0 %v7136_v56  ;;  %3151 = vmatpush1.bf16.msra.mxu1 %v7147_v59  ;;  %8177 = vst [vmem:[#allocation95_spill] sm:$0xff] %v7177_v57  ;;  %8178 = vst [vmem:[#allocation96_spill] sm:$0xff] %v7184_v1  ;;  %v7226_v8 = vcombine.low %v8147_v18, %v8145_v20  ;;  %v7231_v9 = vcombine.high %v8143_v22, %v8141_v24  ;;  %v4910_v18 = vld [vmem:[%s7189_s20 + $0x18] sm:$0xff]  ;;  %s2924_s29 = sand.u32 1, %s4783_s30   ;;  %p2921_p11 = scmp.lt.s32.totalorder %s5754_s10, 0 }
 0x313   : > { %3111 = vmatprep.subr.bf16.mxu0 %v7142_v41  ;;  %3152 = vmatprep.subr.bf16.mxu1 %v7152_v47  ;;  %8179 = vst [vmem:[#allocation97_spill] sm:$0xff] %v7194_v2  ;;  %8180 = vst [vmem:[#allocation98_spill] sm:$0xff] %v7199_v58  ;;  %v7237_v11 = vcombine.low %v8144_v21, %v8142_v23  ;;  %v7242_v12 = vcombine.high %v8140_v25, %v8138_v27  ;;  %s2925_s28 = ssub.s32 0, %s2924_s29 }
 0x314   : > { %8181 = vst [vmem:[#allocation99_spill] sm:$0xff] %v7206_v3  ;;  %8183 = vst [vmem:[#allocation100_spill] sm:$0xff] %v7213_v6  ;;  %3505 = vperm.xlu0 %5514, %v3499_v5   ;;  %5515 = vset.pattern.permute.xlu1 %v8182_v4  ;;  %v7247_v5 = vcombine.low %v8143_v22, %v8141_v24  ;;  %v7252_v13 = vcombine.high %v8139_v26, %v8137_v28  ;;  %s8300_s28 = smov (!%p2921_p11, %s2925_s28), %s2924_s29 }
 0x315   : > { %8184 = vst [vmem:[#allocation101_spill] sm:$0xff] %v7221_v7  ;;  %8185 = vst [vmem:[#allocation102_spill] sm:$0xff] %v7226_v8  ;;  %v7258_v15 = vcombine.low %v8140_v25, %v8138_v27  ;;  %v7263_v16 = vcombine.high %v8136_v29, %v8134_v31  ;;  %v7268_v17 = vcombine.low %v8139_v26, %v8137_v28  ;;  %v8199_v27 = vld [vmem:[#allocation53_spill] sm:$0xff]  ;;  %p4785_p12 = scmp.lt.s32.totalorder %s8300_s28, 0  ;;  %s2931_s15 = sadd.s32 2, %s8300_s28 }
 0x316   : > { %3112 = vmatpush1.bf16.msra.mxu0 %v7161_v53  ;;  %3153 = vmatpush1.bf16.msra.mxu1 %v7171_v61  ;;  %8186 = vst [vmem:[#allocation103_spill] sm:$0xff] %v7231_v9  ;;  %8187 = vst [vmem:[#allocation104_spill] sm:$0xff] %v7237_v11  ;;  %v7279_v19 = vcombine.low %v8136_v29, %v8134_v31  ;;  %v7284_v20 = vcombine.high %v8132_v33, %v8130_v35  ;;  %v8201_v31 = vld [vmem:[#allocation54_spill] sm:$0xff] }
 0x317   : > { %3113 = vmatprep.subr.bf16.mxu0 %v7166_v51  ;;  %3154 = vmatprep.subr.bf16.mxu1 %v7177_v57  ;;  %8188 = vst [vmem:[#allocation105_spill] sm:$0xff] %v7242_v12  ;;  %8189 = vst [vmem:[#allocation106_spill] sm:$0xff] %v7247_v5  ;;  %v7289_v21 = vcombine.low %v8135_v30, %v8133_v32  ;;  %v2946_v22 = vpack.c.bf16 %v5750_v44, %v5750_v44  ;;  %s8302_s15 = smov (!%p4785_p12, %s2931_s15), %s8300_s28 }
 0x318   : > { %8190 = vst [vmem:[#allocation107_spill] sm:$0xff] %v7252_v13  ;;  %3515 = vperm.xlu0 %5514, %v3502_v10   ;;  %8191 = vst [vmem:[#allocation108_spill] sm:$0xff] %v7258_v15  ;;  %v7273_v10 = vcombine.high %v8135_v30, %v8133_v32  ;;  %v7301_v23 = vcombine.low %v8132_v33, %v8130_v35  ;;  %v7306_v24 = vcombine.high %v8128_v37, %v8126_v39  ;;  %v8200_v30 = vld [vmem:[#allocation56_spill] sm:$0xff]  ;;  %v8202_v33 = vld [vmem:[#allocation59_spill] sm:$0xff] }
 0x319   : > { %8192 = vst [vmem:[#allocation109_spill] sm:$0xff] %v7263_v16  ;;  %8193 = vst [vmem:[#allocation110_spill] sm:$0xff] %v7268_v17  ;;  %v7316_v25 = vcombine.high %v8127_v38, %v8125_v40  ;;  %v7321_v26 = vcombine.low %v8128_v37, %v8126_v39  ;;  %v7326_v28 = vcombine.high %v8199_v27, %v8124_v43  ;;  %v8204_v37 = vld [vmem:[#allocation60_spill] sm:$0xff] }
 0x31a   : > { %3114 = vmatpush1.bf16.msra.mxu0 %v7184_v1  ;;  %3155 = vmatpush1.bf16.msra.mxu1 %v7199_v58  ;;  %8194 = vst [vmem:[#allocation111_spill] sm:$0xff] %v7273_v10  ;;  %8195 = vst [vmem:[#allocation112_spill] sm:$0xff] %v7279_v19  ;;  %v7331_v29 = vcombine.low %v8127_v38, %v8125_v40  ;;  %v7336_v32 = vcombine.high %v8201_v31, %v8200_v30  ;;  %v8205_v38 = vld [vmem:[#allocation58_spill] sm:$0xff]  ;;  %v8207_v40 = vld [vmem:[#allocation63_spill] sm:$0xff] }
 0x31b   : > { %3115 = vmatprep.subr.bf16.mxu0 %v7194_v2  ;;  %3156 = vmatprep.subr.bf16.mxu1 %v7206_v3  ;;  %8196 = vst [vmem:[#allocation113_spill] sm:$0xff] %v7284_v20  ;;  %8197 = vst [vmem:[#allocation114_spill] sm:$0xff] %v7289_v21  ;;  %v7358_v39 = vcombine.high %v8205_v38, %v8204_v37 }
 0x31c   : > { %4061 = vperm.xlu0 %5514, %v4894_v14   ;;  %v7294_v14 = vcombine.high %v8131_v34, %v8129_v36 }
 0x31e   : > { %3116 = vmatpush1.bf16.msra.mxu0 %v7213_v6  ;;  %3157 = vmatpush1.bf16.msra.mxu1 %v7226_v8  ;;  %8198 = vst [vmem:[#allocation115_spill] sm:$0xff] %v7294_v14 }
 0x31f   : > { %3117 = vmatprep.subr.bf16.mxu0 %v7221_v7  ;;  %3158 = vmatprep.subr.bf16.mxu1 %v7231_v9 }
 0x320   : > { %4335 = vperm.xlu0 %5514, %v4910_v18   ;;  %v7311_v18 = vcombine.low %v8131_v34, %v8129_v36  ;;  %v8203_v34 = vld [vmem:[#allocation57_spill] sm:$0xff]  ;;  %v7353_v36 = vcombine.low %v8201_v31, %v8200_v30  ;;  %v7373_v30 = vcombine.low %v8205_v38, %v8204_v37  ;;  %v8211_v31 = vld [vmem:[#allocation64_spill] sm:$0xff] }
 0x321   : > { %v7348_v35 = vcombine.high %v8203_v34, %v8202_v33  ;;  %v7378_v49 = vcombine.high %v8212_v48, %v8211_v31  ;;  %v7393_v37 = vcombine.low %v8212_v48, %v8211_v31  ;;  %v8219_v38 = vld [vmem:[#allocation68_spill] sm:$0xff] }
 0x322   : > { %3118 = vmatpush1.bf16.msra.mxu0 %v7237_v11  ;;  %3159 = vmatpush1.bf16.msra.mxu1 %v7247_v5  ;;  %8210 = vst [vmem:[#allocation118_spill] sm:$0xff] %v7373_v30  ;;  %v7413_v31 = vcombine.low %v8220_v62, %v8219_v38  ;;  %v8226_v48 = vld [vmem:[#allocation72_spill] sm:$0xff] }
 0x323   : > { %3119 = vmatprep.subr.bf16.mxu0 %v7242_v12  ;;  %3160 = vmatprep.subr.bf16.mxu1 %v7252_v13  ;;  %8213 = vst [vmem:[#allocation119_spill] sm:$0xff] %v7378_v49  ;;  %8218 = vst [vmem:[#allocation122_spill] sm:$0xff] %v7393_v37 }
 0x326   : > { %3120 = vmatpush1.bf16.msra.mxu0 %v7258_v15  ;;  %3161 = vmatpush1.bf16.msra.mxu1 %v7268_v17 }
 0x327   : > { %3121 = vmatprep.subr.bf16.mxu0 %v7263_v16  ;;  %3162 = vmatprep.subr.bf16.mxu1 %v7273_v10 }
 0x32a   : > { %3122 = vmatpush1.bf16.msra.mxu0 %v7279_v19  ;;  %3163 = vmatpush1.bf16.msra.mxu1 %v7289_v21 }
 0x32b   : > { %3363 = vmatprep.subr.bf16.mxu0 %v7284_v20  ;;  %3404 = vmatprep.subr.bf16.mxu1 %v7294_v14 }
 0x32d   : > { %3140 = vmatmul.mubr.bf16.vlgmr.msra.gmra.mrb[0].mxu0 %v2946_v22  ;;  %3181 = vmatmul.mubr.bf16.vlgmr.msra.gmra.mrb[0].mxu1 %v2946_v22  ;;  %v7343_v22 = vcombine.low %v8199_v27, %v8124_v43  ;;  %v7363_v27 = vcombine.low %v8203_v34, %v8202_v33  ;;  %v8208_v43 = vld [vmem:[#allocation61_spill] sm:$0xff]  ;;  %v8215_v34 = vld [vmem:[#allocation67_spill] sm:$0xff] }
 0x32e   : > { %3364 = vmatpush1.bf16.msra.mxu0 %v7301_v23  ;;  %3405 = vmatpush1.bf16.msra.mxu1 %v7311_v18  ;;  %v7368_v46 = vcombine.high %v8208_v43, %v8207_v40  ;;  %v7383_v33 = vcombine.low %v8208_v43, %v8207_v40  ;;  %v7388_v60 = vcombine.high %v8216_v55, %v8215_v34  ;;  %v8223_v43 = vld [vmem:[#allocation71_spill] sm:$0xff] }
 0x32f   : > { %3365 = vmatprep.subr.bf16.mxu0 %v7306_v24  ;;  %3406 = vmatprep.subr.bf16.mxu1 %v7316_v25  ;;  %8206 = vst [vmem:[#allocation116_spill] sm:$0xff] %v7363_v27  ;;  %v7403_v40 = vcombine.low %v8216_v55, %v8215_v34  ;;  %v8229_v55 = vld [vmem:[#allocation75_spill] sm:$0xff] }
 0x330   : > { %3395 = vmatprep.mubr.bf16.mxu0 %v8182_v4  ;;  %3436 = vmatprep.mubr.bf16.mxu1 %v8182_v4  ;;  %8209 = vst [vmem:[#allocation117_spill] sm:$0xff] %v7368_v46  ;;  %8214 = vst [vmem:[#allocation120_spill] sm:$0xff] %v7383_v33 }
 0x331   : > { %8217 = vst [vmem:[#allocation121_spill] sm:$0xff] %v7388_v60  ;;  %8222 = vst [vmem:[#allocation124_spill] sm:$0xff] %v7403_v40 }
 0x332   : > { %3366 = vmatpush1.bf16.msra.mxu0 %v7321_v26  ;;  %3407 = vmatpush1.bf16.msra.mxu1 %v7331_v29 }
 0x333   : > { %3367 = vmatprep.subr.bf16.mxu0 %v7326_v28  ;;  %3408 = vmatprep.subr.bf16.mxu1 %v7336_v32 }
 0x336   : > { %3368 = vmatpush1.bf16.msra.mxu0 %v7343_v22  ;;  %3409 = vmatpush1.bf16.msra.mxu1 %v7353_v36 }
 0x337   : > { %3369 = vmatprep.subr.bf16.mxu0 %v7348_v35  ;;  %3410 = vmatprep.subr.bf16.mxu1 %v7358_v39 }
 0x33a   : > { %3370 = vmatpush1.bf16.msra.mxu0 %v7363_v27  ;;  %3411 = vmatpush1.bf16.msra.mxu1 %v7373_v30  ;;  %v7398_v27 = vcombine.high %v8220_v62, %v8219_v38  ;;  %v8231_v62 = vld [vmem:[#allocation76_spill] sm:$0xff] }
 0x33b   : > { %3371 = vmatprep.subr.bf16.mxu0 %v7368_v46  ;;  %3412 = vmatprep.subr.bf16.mxu1 %v7378_v49  ;;  %v8224_v46 = vld [vmem:[#allocation69_spill] sm:$0xff] }
 0x33c   : > { %8221 = vst [vmem:[#allocation123_spill] sm:$0xff] %v7398_v27  ;;  %v7408_v30 = vcombine.high %v8224_v46, %v8223_v43  ;;  %v7423_v34 = vcombine.low %v8224_v46, %v8223_v43  ;;  %v3202_v46 = vpack.c.bf16 %v5742_v45, %v5742_v45 }
 0x33e   : > { %3372 = vmatpush1.bf16.msra.mxu0 %v7383_v33  ;;  %8225 = vst [vmem:[#allocation125_spill] sm:$0xff] %v7408_v30  ;;  %3413 = vmatpush1.bf16.msra.mxu1 %v7393_v37  ;;  %v8227_v33 = vld [vmem:[#allocation70_spill] sm:$0xff] }
 0x33f   : > { %3373 = vmatprep.subr.bf16.mxu0 %v7388_v60  ;;  %3414 = vmatprep.subr.bf16.mxu1 %v7398_v27  ;;  %v7418_v49 = vcombine.high %v8227_v33, %v8226_v48  ;;  %v8230_v60 = vld [vmem:[#allocation73_spill] sm:$0xff]  ;;  %v7433_v38 = vcombine.low %v8227_v33, %v8226_v48 }
 0x340   : > { %v7428_v37 = vcombine.high %v8230_v60, %v8229_v55  ;;  %v7443_v43 = vcombine.low %v8230_v60, %v8229_v55  ;;  %v4058_v48 = vld [vmem:[%s4057_s21] sm:$0xff] }
 0x341   : > { %8228 = vst [vmem:[#allocation126_spill] sm:$0xff] %v7418_v49 }
 0x342   : > { %3374 = vmatpush1.bf16.msra.mxu0 %v7403_v40  ;;  %3415 = vmatpush1.bf16.msra.mxu1 %v7413_v31  ;;  %v8232_v40 = vld [vmem:[#allocation74_spill] sm:$0xff] }
 0x343   : > { %3375 = vmatprep.subr.bf16.mxu0 %v7408_v30  ;;  %3416 = vmatprep.subr.bf16.mxu1 %v7418_v49  ;;  %v7438_v27 = vcombine.high %v8232_v40, %v8231_v62  ;;  %v7449_v33 = vcombine.low %v8232_v40, %v8231_v62  ;;  %v3784_v40 = vld [vmem:[%s3783_s9] sm:$0xff]  ;;  %s7514_s9 = sshll.u32 %s8302_s15, 5 }
 0x344   : > { %s2937_s22 = sshra.s32 %s7514_s9, 3  ;;  %s3537_s23 = sadd.s32 8, %s7514_s9 }
 0x345   : > { %s7517_s16 = sshll.u32 %s2937_s22, 5  ;;  %s7629_s29 = sshra.s32 %s3537_s23, 3 }
 0x346   : > { %3376 = vmatpush1.bf16.msra.mxu0 %v7423_v34  ;;  %3417 = vmatpush1.bf16.msra.mxu1 %v7433_v38  ;;  %s2941_s8 = scalar_lea.vmem [#allocation2], %s7517_s16  ;;  %s4924_s28 = sshll.u32 %s7629_s29, 5 }
 0x347   : > { %3377 = vmatprep.subr.bf16.mxu0 %v7428_v37  ;;  %3418 = vmatprep.subr.bf16.mxu1 %v7438_v27  ;;  %v2943_v55 = vld [vmem:[%s2941_s8 + $0x8] sm:$0xff]  ;;  %s3543_s15 = scalar_lea.vmem [#allocation2], %s4924_s28  ;;  %s3538_s22 = sadd.s32 16, %s7514_s9 }
 0x348   : > { %s3913_s23 = scalar_lea.vmem [#allocation3], %s4924_s28  ;;  %s4899_s29 = sshll.u32 %s3818_s25, 2 }
 0x349   : > { %s4077_s25 = scalar_lea.vmem [#allocation8], %s4899_s29 }
 0x34a   : > { %3378 = vmatpush1.bf16.msra.mxu0 %v7443_v43  ;;  %3419 = vmatpush1.bf16.msra.mxu1 %v7449_v33 }
 0x34b   : > { %3549 = vmatprep.subr.bf16.mxu0 %v7110_v63  ;;  %3590 = vmatprep.subr.bf16.mxu1 %v7122_v52 }
 0x34d   : > { %3396 = vmatmul.mubr.bf16.vlgmr.msra.gmra.mrb[4].mxu0 %v3202_v46  ;;  %3437 = vmatmul.mubr.bf16.vlgmr.msra.gmra.mrb[4].mxu1 %v3202_v46  ;;  %v4878_v46 = vld [vmem:[%s7189_s20 + $0x8] sm:$0xff]  ;;  %s4092_s20 = ssub.s32 4, %s7156_s17 }
 0x34e   : > { %3550 = vmatpush1.bf16.msra.mxu0 %v7114_v0  ;;  %3591 = vmatpush1.bf16.msra.mxu1 %v7127_v42  ;;  %s4911_s7 = sshll.u32 %s4092_s20, 3 }
 0x34f   : > { %3551 = vmatprep.subr.bf16.mxu0 %v7118_v50  ;;  %3592 = vmatprep.subr.bf16.mxu1 %v7131_v54  ;;  %s4331_s26 = scalar_lea.vmem %s7857_s2, %s4911_s7  ;;  %s4923_s7 = sshll.u32 %s5754_s10, 4 }
 0x350   : > { %3581 = vmatprep.mubr.bf16.mxu0 %v8182_v4  ;;  %3622 = vmatprep.mubr.bf16.mxu1 %v8182_v4  ;;  %s7536_s24 = scalar_lea.vmem [#allocation7], %s4923_s7  ;;  %s4865_s10 = sshll.u32 %s2934_s19, 2 }
 0x351   : > { %3787 = vperm.xlu1 %5515, %v4878_v46   ;;  %v4332_v46 = vld [vmem:[%s4331_s26] sm:$0xff]  ;;  %s2936_s26 = sadd.s32 24, %s7514_s9  ;;  %s3521_s19 = scalar_lea.vmem [#allocation8], %s4865_s10 }
 0x352   : > { %3552 = vmatpush1.bf16.msra.mxu0 %v7136_v56  ;;  %3593 = vmatpush1.bf16.msra.mxu1 %v7147_v59  ;;  %s7521_s18 = sshra.s32 %s2936_s26, 3 }
 0x353   : > { %3553 = vmatprep.subr.bf16.mxu0 %v7142_v41  ;;  %3594 = vmatprep.subr.bf16.mxu1 %v7152_v47  ;;  %s4921_s21 = sshll.u32 %s7521_s18, 5  ;;  %s4187_s18 = scalar_lea.vmem [#allocation3], %s7517_s16 }
 0x354   : > { %s3197_s30 = scalar_lea.vmem [#allocation3], %s4921_s21  ;;  %s4094_s28 = scalar_lea.vmem [#allocation2], %s4921_s21 }
 0x355   : > { %3797 = vperm.xlu1 %5515, %v3784_v40   ;;  %v2942_v40 = vld [vmem:[%s2941_s8] sm:$0xff]  ;;  %s4915_s16 = sshll.u32 %s4092_s20, 2 }
 0x356   : > { %3554 = vmatpush1.bf16.msra.mxu0 %v7161_v53  ;;  %3595 = vmatpush1.bf16.msra.mxu1 %v7171_v61  ;;  %s4351_s21 = scalar_lea.vmem [#allocation8], %s4915_s16 }
 0x357   : > { %3555 = vmatprep.subr.bf16.mxu0 %v7166_v51  ;;  %3596 = vmatprep.subr.bf16.mxu1 %v7177_v57 }
 0x359   : > { %4071 = vperm.xlu1 %5515, %v4058_v48  }
 0x35a   : > { %3556 = vmatpush1.bf16.msra.mxu0 %v7184_v1  ;;  %3597 = vmatpush1.bf16.msra.mxu1 %v7199_v58 }
 0x35b   : > { %3557 = vmatprep.subr.bf16.mxu0 %v7194_v2  ;;  %3598 = vmatprep.subr.bf16.mxu1 %v7206_v3 }
 0x35d   : > { %4345 = vperm.xlu1 %5515, %v4332_v46  }
 0x35e   : > { %3558 = vmatpush1.bf16.msra.mxu0 %v7213_v6  ;;  %3599 = vmatpush1.bf16.msra.mxu1 %v7226_v8 }
 0x35f   : > { %3559 = vmatprep.subr.bf16.mxu0 %v7221_v7  ;;  %3600 = vmatprep.subr.bf16.mxu1 %v7231_v9 }
 0x362   : > { %3560 = vmatpush1.bf16.msra.mxu0 %v7237_v11  ;;  %3601 = vmatpush1.bf16.msra.mxu1 %v7247_v5  ;;  %v2945_v5 = vld [vmem:[%s2941_s8 + $0x18] sm:$0xff] }
 0x363   : > { %3561 = vmatprep.subr.bf16.mxu0 %v7242_v12  ;;  %3602 = vmatprep.subr.bf16.mxu1 %v7252_v13 }
 0x366   : > { %3562 = vmatpush1.bf16.msra.mxu0 %v7258_v15  ;;  %3603 = vmatpush1.bf16.msra.mxu1 %v7268_v17  ;;  %v2944_v15 = vld [vmem:[%s2941_s8 + $0x10] sm:$0xff]  ;;  %s7637_s8 = sshra.s32 %s3538_s22, 3  ;;  %s5762_s22 = smov (%p4633_p8), [#allocation7]  }
 0x367   : > { %3563 = vmatprep.subr.bf16.mxu0 %v7263_v16  ;;  %3604 = vmatprep.subr.bf16.mxu1 %v7273_v10  ;;  %s4925_s26 = sshll.u32 %s7637_s8, 5  ;;  %s4372_s8 = sshll.u32 (%p4633_p8), %s5762_s22, 4  ;;  %s4373_s8 = int_to_ptr.vmem [resolvable:$true] %s4372_s8 }
 0x368   : > { %s3639_s9 = scalar_lea.vmem [#allocation3], %s4925_s26  ;;  %p5671_p0 = scmp.lt.s32.totalorder (%p4633_p8), %s4373_s8, %s4373_s8 }
 0x36a   : > { %3564 = vmatpush1.bf16.msra.mxu0 %v7279_v19  ;;  %3605 = vmatpush1.bf16.msra.mxu1 %v7289_v21 }
 0x36b   : > { %3645 = vmatprep.subr.bf16.mxu0 %v7284_v20  ;;  %3686 = vmatprep.subr.bf16.mxu1 %v7294_v14 }
 0x400   : > { %v3141_v60 = vpop.f32.mrb[0].mxu0  ;;  %v3182_v14 = vpop.f32.mrb[0].mxu1 }
 0x401   : > { %v3189_v48 = vadd.f32 %v3141_v60, %v2942_v40  ;;  %v3143_v62 = vpop.f32.mrb[1].mxu0  ;;  %v3184_v21 = vpop.f32.mrb[1].mxu1  ;;  %v3191_v12 = vadd.f32 %v3182_v14, %v2944_v15 }
 0x402   : > { %v3190_v20 = vadd.f32 %v3143_v62, %v2943_v55  ;;  %v3145_v46 = vpop.f32.mrb[2].mxu0  ;;  %v3186_v16 = vpop.f32.mrb[2].mxu1  ;;  %v3192_v9 = vadd.f32 %v3184_v21, %v2945_v5 }
 0x403   : > { %v4856_v19 = vmul.f32 -1.442695, %v3189_v48  ;;  %v3146_v10 = vpop.f32.mrb[3].mxu0  ;;  %v3187_v13 = vpop.f32.mrb[3].mxu1  ;;  %v4858_v11 = vmul.f32 -1.442695, %v3191_v12 }
 0x404   : > { %v4857_v17 = vmul.f32 -1.442695, %v3190_v20  ;;  %v8233_v20 = vld [vmem:[#allocation86_spill] sm:$0xff] }
 0x405   : > { %5516 = vpow2.f32 %v4856_v19 }
 0x406   : > { %5518 = vpow2.f32 %v4857_v17 }
 0x407   : > { %5520 = vpow2.f32 %v4858_v11 }
 0x408   : > { %5522 = vtanh.f32 %v3192_v9  ;;  %v3199_v9 = vld [vmem:[%s3197_s30 + $0x8] sm:$0xff] }
 0x40f   : > { %v5517_v7 = vpop.eup %5516 }
 0x410   : > { %v5519_v60 = vpop.eup %5518  ;;  %v3458_v40 = vadd.f32 1.0, %v5517_v7  ;;  %v3198_v7 = vld [vmem:[%s3197_s30] sm:$0xff] }
 0x411   : > { %v3459_v62 = vadd.f32 1.0, %v5519_v60  ;;  %v5521_v13 = vpop.eup %5520 }
 0x412   : > { %5524 = vrcp.f32 %v3458_v40  ;;  %v5523_v16 = vpop.eup %5522  ;;  %v3460_v17 = vadd.f32 1.0, %v5521_v13 }
 0x413   : > { %5526 = vrcp.f32 %v3459_v62 }
 0x414   : > { %5528 = vrcp.f32 %v3460_v17 }
 0x41c   : > { %v5525_v15 = vpop.eup %5524 }
 0x41d   : > { %v5527_v12 = vpop.eup %5526  ;;  %v3488_v19 = vmul.f32 %v5525_v15, %v5523_v16  ;;  %v3200_v15 = vld [vmem:[%s3197_s30 + $0x10] sm:$0xff] }
 0x41e   : > { %v3487_v11 = vmul.f32 %v8233_v20, %v5527_v12 }
 0x420   : > { %v3397_v21 = vpop.f32.mrb[4].mxu0  ;;  %v7527_v55 = vadd.f32 %v3488_v19, %v3487_v11  ;;  %v3438_v14 = vpop.f32.mrb[4].mxu1  ;;  %v3201_v19 = vld [vmem:[%s3197_s30 + $0x18] sm:$0xff]  ;;  %s8259_s30 = ssub.s32 6, %s7156_s17 }
 0x421   : > { %v3445_v5 = vadd.f32 %v3397_v21, %v3198_v7  ;;  %v3399_v10 = vpop.f32.mrb[5].mxu0  ;;  %v3440_v60 = vpop.f32.mrb[5].mxu1  ;;  %v3447_v17 = vadd.f32 %v3438_v14, %v3200_v15  ;;  %s4883_s7 = sshll.u32 %s8259_s30, 2 }
 0x422   : > { %v3446_v48 = vadd.f32 %v3399_v10, %v3199_v9  ;;  %v3401_v46 = vpop.f32.mrb[6].mxu0  ;;  %5530 = vtanh.f32 %v7527_v55  ;;  %v3442_v13 = vpop.f32.mrb[6].mxu1  ;;  %v3448_v20 = vadd.f32 %v3440_v60, %v3201_v19  ;;  %s3803_s10 = scalar_lea.vmem [#allocation8], %s4883_s7 }
 0x423   : > { %v4859_v40 = vmul.f32 -1.442695, %v3445_v5  ;;  %v3402_v62 = vpop.f32.mrb[7].mxu0  ;;  %v3443_v12 = vpop.f32.mrb[7].mxu1  ;;  %v4861_v7 = vmul.f32 -1.442695, %v3447_v17 }
 0x424   : > { %v4860_v16 = vmul.f32 -1.442695, %v3446_v48  ;;  %v5529_v11 = vpop.eup %5528  ;;  %v7531_v10 = vpop.permute.xlu0 %3505 }
 0x425   : > { %5532 = vpow2.f32 %v4859_v40 }
 0x426   : > { %5534 = vpow2.f32 %v4860_v16 }
 0x427   : > { %5536 = vpow2.f32 %v4861_v7  ;;  %v8234_v7 = vld [vmem:[#allocation85_spill] sm:$0xff] }
 0x428   : > { %5538 = vtanh.f32 %v3448_v20 }
 0x42c   : > { %v5531_v21 = vpop.eup %5530 }
 0x42d   : > { %v3494_v9 = vmul.f32 %v5531_v21, %v5529_v11 }
 0x42f   : > { %v5533_v46 = vpop.eup %5532  ;;  %v3508_v5 = vmul.f32 %v7531_v10, %v3494_v9  ;;  %v3523_v62 = vsub.f32 %v3494_v9, %v5750_v44 }
 0x430   : > { %v5535_v48 = vpop.eup %5534  ;;  %v3476_v13 = vadd.f32 1.0, %v5533_v46  ;;  %v8235_v46 = vld [vmem:[#allocation116_spill] sm:$0xff] }
 0x431   : > { %v3477_v40 = vadd.f32 1.0, %v5535_v48  ;;  %v3509_v14 = vpack.c.bf16 %v3508_v5, %v3508_v5  ;;  %v3524_v16 = vmul.f32 %v3523_v62, %v7531_v10  ;;  %v5537_v20 = vpop.eup %5536  ;;  %v8236_v5 = vld [vmem:[#allocation118_spill] sm:$0xff]  ;;  %v8237_v62 = vld [vmem:[#allocation117_spill] sm:$0xff]  ;;  %v8238_v48 = vld [vmem:[#allocation119_spill] sm:$0xff] }
 0x432   : > { %5540 = vrcp.f32 %v3476_v13  ;;  %v5539_v12 = vpop.eup %5538  ;;  %v3478_v17 = vadd.f32 1.0, %v5537_v20  ;;  %v8239_v13 = vld [vmem:[#allocation120_spill] sm:$0xff] }
 0x433   : > { %5542 = vrcp.f32 %v3477_v40  ;;  %3512 = vst [vmem:[%s7536_s24] sm:$0xf] %v3509_v14  ;;  %v7540_v60 = vadd.f32 %v5750_v44, %v3524_v16  ;;  %v8240_v40 = vld [vmem:[#allocation122_spill] sm:$0xff]  ;;  %v8241_v14 = vld [vmem:[#allocation121_spill] sm:$0xff]  ;;  %v8242_v16 = vld [vmem:[#allocation123_spill] sm:$0xff] }
 0x434   : > { %5544 = vrcp.f32 %v3478_v17  ;;  %v7576_v17 = vpop.permute.xlu0 %3515 }
 0x435   : > { %v3548_v15 = vpack.c.bf16 %v7540_v60, %v7540_v60 }
 0x437   : > { %3582 = vmatmul.mubr.bf16.vlgmr.msra.gmra.mrb[8].mxu0 %v3548_v15  ;;  %3623 = vmatmul.mubr.bf16.vlgmr.msra.gmra.mrb[8].mxu1 %v3548_v15 }
 0x438   : > { %3646 = vmatpush1.bf16.msra.mxu0 %v7301_v23  ;;  %3687 = vmatpush1.bf16.msra.mxu1 %v7311_v18 }
 0x439   : > { %3647 = vmatprep.subr.bf16.mxu0 %v7306_v24  ;;  %3688 = vmatprep.subr.bf16.mxu1 %v7316_v25 }
 0x43a   : > { %3677 = vmatprep.mubr.bf16.mxu0 %v8182_v4  ;;  %3718 = vmatprep.mubr.bf16.mxu1 %v8182_v4 }
 0x43c   : > { %v5541_v44 = vpop.eup %5540  ;;  %3648 = vmatpush1.bf16.msra.mxu0 %v7321_v26  ;;  %3689 = vmatpush1.bf16.msra.mxu1 %v7331_v29 }
 0x43d   : > { %v5543_v19 = vpop.eup %5542  ;;  %v3491_v11 = vmul.f32 %v5541_v44, %v5539_v12  ;;  %3649 = vmatprep.subr.bf16.mxu0 %v7326_v28  ;;  %3690 = vmatprep.subr.bf16.mxu1 %v7336_v32  ;;  %v8243_v12 = vld [vmem:[#allocation124_spill] sm:$0xff] }
 0x43e   : > { %v3490_v21 = vmul.f32 %v8234_v7, %v5543_v19  ;;  %v5545_v15 = vpop.eup %5544 }
 0x440   : > { %v7555_v9 = vadd.f32 %v3491_v11, %v3490_v21  ;;  %3650 = vmatpush1.bf16.msra.mxu0 %v7343_v22  ;;  %3691 = vmatpush1.bf16.msra.mxu1 %v7353_v36 }
 0x441   : > { %3651 = vmatprep.subr.bf16.mxu0 %v7348_v35  ;;  %3692 = vmatprep.subr.bf16.mxu1 %v7358_v39 }
 0x442   : > { %5546 = vtanh.f32 %v7555_v9 }
 0x444   : > { %3652 = vmatpush1.bf16.msra.mxu0 %v8235_v46  ;;  %3693 = vmatpush1.bf16.msra.mxu1 %v8236_v5 }
 0x445   : > { %3653 = vmatprep.subr.bf16.mxu0 %v8237_v62  ;;  %3694 = vmatprep.subr.bf16.mxu1 %v8238_v48 }
 0x448   : > { %3654 = vmatpush1.bf16.msra.mxu0 %v8239_v13  ;;  %3695 = vmatpush1.bf16.msra.mxu1 %v8240_v40 }
 0x449   : > { %3655 = vmatprep.subr.bf16.mxu0 %v8241_v14  ;;  %3696 = vmatprep.subr.bf16.mxu1 %v8242_v16 }
 0x44c   : > { %v5547_v20 = vpop.eup %5546  ;;  %3656 = vmatpush1.bf16.msra.mxu0 %v8243_v12  ;;  %3697 = vmatpush1.bf16.msra.mxu1 %v7413_v31 }
 0x44d   : > { %3657 = vmatprep.subr.bf16.mxu0 %v7408_v30  ;;  %3698 = vmatprep.subr.bf16.mxu1 %v7418_v49  ;;  %v3496_v44 = vmul.f32 %v5547_v20, %v5545_v15  ;;  %v8246_v20 = vld [vmem:[#allocation104_spill] sm:$0xff] }
 0x44f   : > { %v3529_v19 = vsub.f32 %v3496_v44, %v5742_v45  ;;  %v3518_v11 = vmul.f32 %v7576_v17, %v3496_v44  ;;  %v8247_v44 = vld [vmem:[#allocation106_spill] sm:$0xff] }
 0x450   : > { %3658 = vmatpush1.bf16.msra.mxu0 %v7423_v34  ;;  %3699 = vmatpush1.bf16.msra.mxu1 %v7433_v38 }
 0x451   : > { %3659 = vmatprep.subr.bf16.mxu0 %v7428_v37  ;;  %3700 = vmatprep.subr.bf16.mxu1 %v7438_v27  ;;  %v3530_v21 = vmul.f32 %v3529_v19, %v7576_v17  ;;  %v3519_v30 = vpack.c.bf16 %v3518_v11, %v3518_v11  ;;  %v8248_v19 = vld [vmem:[#allocation105_spill] sm:$0xff]  ;;  %v8249_v11 = vld [vmem:[#allocation107_spill] sm:$0xff] }
 0x453   : > { %v7586_v49 = vadd.f32 %v5742_v45, %v3530_v21  ;;  %3522 = vst [vmem:[%s3521_s19] sm:$0xf] %v3519_v30  ;;  %v8244_v30 = vld [vmem:[#allocation101_spill] sm:$0xff]  ;;  %v8245_v45 = vld [vmem:[#allocation103_spill] sm:$0xff]  ;;  %v8250_v21 = vld [vmem:[#allocation108_spill] sm:$0xff]  ;;  %s3820_s19 = scalar_lea.vmem [#allocation2], %s4925_s26  ;;  %s5666_s26 = scalar_lea.vmem (%p4633_p8), %s4373_s8, 512 }
 0x454   : > { %3660 = vmatpush1.bf16.msra.mxu0 %v7443_v43  ;;  %3701 = vmatpush1.bf16.msra.mxu1 %v7449_v33  ;;  %p5667_p13 = scmp.ne.s32.totalorder (%p4633_p8), %s4373_s8, %s5666_s26  ;;  %p5672_p1 = scmp.lt.s32.totalorder (%p4633_p8), %s5666_s26, %s5666_s26 }
 0x455   : > { %v3644_v15 = vpack.c.bf16 %v7586_v49, %v7586_v49  ;;  %3826 = vmatprep.subr.bf16.mxu0 %v7110_v63  ;;  %3867 = vmatprep.subr.bf16.mxu1 %v7122_v52 }
 0x456   :  { %p5673_p2 = por (%p4633_p8), %p5672_p1, %p5671_p0 }
 0x457   : > { %3678 = vmatmul.mubr.bf16.vlgmr.msra.gmra.mrb[12].mxu0 %v3644_v15  ;;  %3719 = vmatmul.mubr.bf16.vlgmr.msra.gmra.mrb[12].mxu1 %v3644_v15  ;;  %v8251_v15 = vld [vmem:[#allocation110_spill] sm:$0xff] }
 0x458   : > { %3827 = vmatpush1.bf16.msra.mxu0 %v7114_v0  ;;  %3868 = vmatpush1.bf16.msra.mxu1 %v7127_v42  ;;  %p5674_p3 = pnand (%p4633_p8), %p5673_p2, %p5667_p13 }
 0x459   : > { %3828 = vmatprep.subr.bf16.mxu0 %v7118_v50  ;;  %3869 = vmatprep.subr.bf16.mxu1 %v7131_v54 }
 0x45a   : > { %3858 = vmatprep.mubr.bf16.mxu0 %v8182_v4  ;;  %3899 = vmatprep.mubr.bf16.mxu1 %v8182_v4 }
 0x45c   : > { %3829 = vmatpush1.bf16.msra.mxu0 %v7136_v56  ;;  %3870 = vmatpush1.bf16.msra.mxu1 %v7147_v59  ;;  %v3642_v56 = vld [vmem:[%s3639_s9 + $0x10] sm:$0xff] }
 0x45d   : > { %3830 = vmatprep.subr.bf16.mxu0 %v7142_v41  ;;  %3871 = vmatprep.subr.bf16.mxu1 %v7152_v47 }
 0x460   : > { %3831 = vmatpush1.bf16.msra.mxu0 %v7161_v53  ;;  %3872 = vmatpush1.bf16.msra.mxu1 %v7171_v61  ;;  %v3547_v61 = vld [vmem:[%s3543_s15 + $0x18] sm:$0xff] }
 0x461   : > { %3832 = vmatprep.subr.bf16.mxu0 %v7166_v51  ;;  %3873 = vmatprep.subr.bf16.mxu1 %v7177_v57  ;;  %v3546_v57 = vld [vmem:[%s3543_s15 + $0x10] sm:$0xff] }
 0x464   : > { %3833 = vmatpush1.bf16.msra.mxu0 %v7184_v1  ;;  %3874 = vmatpush1.bf16.msra.mxu1 %v7199_v58 }
 0x465   : > { %3834 = vmatprep.subr.bf16.mxu0 %v7194_v2  ;;  %3875 = vmatprep.subr.bf16.mxu1 %v7206_v3  ;;  %v8253_v3 = vld [vmem:[#allocation111_spill] sm:$0xff] }
 0x468   : > { %3835 = vmatpush1.bf16.msra.mxu0 %v7213_v6  ;;  %3876 = vmatpush1.bf16.msra.mxu1 %v7226_v8  ;;  %v8252_v6 = vld [vmem:[#allocation109_spill] sm:$0xff]  ;;  %v8254_v8 = vld [vmem:[#allocation112_spill] sm:$0xff] }
 0x469   : > { %3836 = vmatprep.subr.bf16.mxu0 %v8244_v30  ;;  %3877 = vmatprep.subr.bf16.mxu1 %v8245_v45  ;;  %v8255_v30 = vld [vmem:[#allocation114_spill] sm:$0xff]  ;;  %v8256_v45 = vld [vmem:[#allocation113_spill] sm:$0xff] }
 0x46c   : > { %3837 = vmatpush1.bf16.msra.mxu0 %v8246_v20  ;;  %3878 = vmatpush1.bf16.msra.mxu1 %v8247_v44  ;;  %v8257_v20 = vld [vmem:[#allocation115_spill] sm:$0xff] }
 0x46d   : > { %3838 = vmatprep.subr.bf16.mxu0 %v8248_v19  ;;  %3879 = vmatprep.subr.bf16.mxu1 %v8249_v11 }
 0x470   : > { %3839 = vmatpush1.bf16.msra.mxu0 %v8250_v21  ;;  %3880 = vmatpush1.bf16.msra.mxu1 %v8251_v15  ;;  %v3544_v15 = vld [vmem:[%s3543_s15] sm:$0xff] }
 0x471   : > { %3840 = vmatprep.subr.bf16.mxu0 %v8252_v6  ;;  %3881 = vmatprep.subr.bf16.mxu1 %v8253_v3  ;;  %v3545_v6 = vld [vmem:[%s3543_s15 + $0x8] sm:$0xff] }
 0x474   : > { %3841 = vmatpush1.bf16.msra.mxu0 %v8254_v8  ;;  %3882 = vmatpush1.bf16.msra.mxu1 %v8255_v30 }
 0x475   : > { %3919 = vmatprep.subr.bf16.mxu0 %v8256_v45  ;;  %3960 = vmatprep.subr.bf16.mxu1 %v8257_v20 }
 0x50a   : > { %v3583_v21 = vpop.f32.mrb[8].mxu0  ;;  %v3624_v3 = vpop.f32.mrb[8].mxu1 }
 0x50b   : > { %v3631_v11 = vadd.f32 %v3583_v21, %v3544_v15  ;;  %v3585_v8 = vpop.f32.mrb[9].mxu0  ;;  %v3626_v19 = vpop.f32.mrb[9].mxu1  ;;  %v3633_v51 = vadd.f32 %v3624_v3, %v3546_v57  ;;  %v3641_v57 = vld [vmem:[%s3639_s9 + $0x8] sm:$0xff] }
 0x50c   : > { %v3632_v30 = vadd.f32 %v3585_v8, %v3545_v6  ;;  %v3587_v44 = vpop.f32.mrb[10].mxu0  ;;  %v3628_v45 = vpop.f32.mrb[10].mxu1  ;;  %v3634_v53 = vadd.f32 %v3626_v19, %v3547_v61  ;;  %v8258_v8 = vld [vmem:[#allocation86_spill] sm:$0xff]  ;;  %v3640_v61 = vld [vmem:[%s3639_s9] sm:$0xff] }
 0x50d   : > { %v4870_v2 = vmul.f32 -1.442695, %v3631_v11  ;;  %v3588_v20 = vpop.f32.mrb[11].mxu0  ;;  %v3629_v58 = vpop.f32.mrb[11].mxu1  ;;  %v4872_v47 = vmul.f32 -1.442695, %v3633_v51 }
 0x50e   : > { %v4871_v1 = vmul.f32 -1.442695, %v3632_v30  ;;  %v3526_v58 = vsub.f32 %v7527_v55, %v8258_v8  ;;  %v3788_v55 = vpop.permute.xlu1 %3787 }
 0x50f   : > { %5548 = vpow2.f32 %v4870_v2 }
 0x510   : > { %5550 = vpow2.f32 %v4871_v1  ;;  %v3527_v1 = vmul.f32 %v3526_v58, %v7531_v10 }
 0x511   : > { %5552 = vtanh.f32 %v3634_v53 }
 0x512   : > { %5554 = vpow2.f32 %v4872_v47  ;;  %v3528_v53 = vadd.f32 %v8258_v8, %v3527_v1 }
 0x519   : > { %v5549_v41 = vpop.eup %5548 }
 0x51a   : > { %v3740_v59 = vadd.f32 1.0, %v5549_v41  ;;  %v5551_v21 = vpop.eup %5550 }
 0x51b   : > { %v3741_v6 = vadd.f32 1.0, %v5551_v21  ;;  %v5553_v2 = vpop.eup %5552 }
 0x51c   : > { %5556 = vrcp.f32 %v3740_v59  ;;  %v5555_v3 = vpop.eup %5554 }
 0x51d   : > { %5558 = vrcp.f32 %v3741_v6  ;;  %v3742_v51 = vadd.f32 1.0, %v5555_v3 }
 0x51f   : > { %5560 = vrcp.f32 %v3742_v51 }
 0x526   : > { %v5557_v41 = vpop.eup %5556 }
 0x527   : > { %v3770_v47 = vmul.f32 %v5557_v41, %v5553_v2  ;;  %v5559_v59 = vpop.eup %5558 }
 0x528   : > { %v3769_v30 = vmul.f32 %v5559_v59, %v3528_v53 }
 0x529   : > { %v5561_v54 = vpop.eup %5560 }
 0x52a   : > { %v3679_v45 = vpop.f32.mrb[12].mxu0  ;;  %v3720_v20 = vpop.f32.mrb[12].mxu1  ;;  %v3771_v10 = vadd.f32 %v3770_v47, %v3769_v30 }
 0x52b   : > { %v3727_v44 = vadd.f32 %v3679_v45, %v3640_v61  ;;  %v3681_v19 = vpop.f32.mrb[13].mxu0  ;;  %v3722_v11 = vpop.f32.mrb[13].mxu1  ;;  %v3729_v61 = vadd.f32 %v3720_v20, %v3642_v56  ;;  %v3643_v45 = vld [vmem:[%s3639_s9 + $0x18] sm:$0xff] }
 0x52c   : > { %v3728_v15 = vadd.f32 %v3681_v19, %v3641_v57  ;;  %v3683_v21 = vpop.f32.mrb[14].mxu0  ;;  %v3724_v6 = vpop.f32.mrb[14].mxu1  ;;  %5562 = vtanh.f32 %v3771_v10  ;;  %v3808_v58 = vsub.f32 %v3771_v10, %v3528_v53  ;;  %v3730_v47 = vadd.f32 %v3722_v11, %v3643_v45 }
 0x52d   : > { %v4873_v8 = vmul.f32 -1.442695, %v3727_v44  ;;  %v3684_v1 = vpop.f32.mrb[15].mxu0  ;;  %v3725_v2 = vpop.f32.mrb[15].mxu1  ;;  %v4875_v57 = vmul.f32 -1.442695, %v3729_v61 }
 0x52e   : > { %v4874_v3 = vmul.f32 -1.442695, %v3728_v15  ;;  %v3809_v41 = vmul.f32 %v3808_v58, %v3788_v55  ;;  %v3798_v61 = vpop.permute.xlu1 %3797 }
 0x52f   : > { %5564 = vpow2.f32 %v4873_v8 }
 0x530   : > { %5566 = vpow2.f32 %v4874_v3  ;;  %v7644_v59 = vadd.f32 %v3809_v41, %v3528_v53 }
 0x531   : > { %5568 = vtanh.f32 %v3730_v47 }
 0x532   : > { %5570 = vpow2.f32 %v4875_v57 }
 0x536   : > { %v5563_v51 = vpop.eup %5562 }
 0x537   : > { %v3776_v30 = vmul.f32 %v5563_v51, %v5561_v54  ;;  %v3532_v54 = vsub.f32 %v7555_v9, %v8234_v7 }
 0x539   : > { %v5565_v44 = vpop.eup %5564  ;;  %v3790_v10 = vmul.f32 %v3788_v55, %v3776_v30  ;;  %v3805_v15 = vsub.f32 %v3776_v30, %v7540_v60  ;;  %v3533_v11 = vmul.f32 %v3532_v54, %v7576_v17  ;;  %v8263_v54 = vld [vmem:[#allocation88_spill] sm:$0xff] }
 0x53a   : > { %v3758_v19 = vadd.f32 1.0, %v5565_v44  ;;  %v5567_v21 = vpop.eup %5566  ;;  %v8260_v44 = vld [vmem:[#allocation125_spill] sm:$0xff] }
 0x53b   : > { %v3759_v6 = vadd.f32 1.0, %v5567_v21  ;;  %v3791_v53 = vpack.c.bf16 %v3790_v10, %v3790_v10  ;;  %v3806_v8 = vmul.f32 %v3805_v15, %v3788_v55  ;;  %v5569_v55 = vpop.eup %5568  ;;  %v3534_v58 = vadd.f32 %v8234_v7, %v3533_v11  ;;  %v8267_v11 = vld [vmem:[#allocation92_spill] sm:$0xff] }
 0x53c   : > { %5572 = vrcp.f32 %v3758_v19  ;;  %v8261_v19 = vld [vmem:[#allocation126_spill] sm:$0xff] }
 0x53d   : > { %5574 = vrcp.f32 %v3759_v6  ;;  %4882 = vst [vmem:[%s7536_s24 + $0x4] sm:$0xf] %v3791_v53  ;;  %v7649_v56 = vadd.f32 %v3806_v8, %v7540_v60  ;;  %v5571_v60 = vpop.eup %5570 }
 0x53e   : > { %v3760_v2 = vadd.f32 1.0, %v5571_v60  ;;  %v8272_v60 = vld [vmem:[#allocation98_spill] sm:$0xff] }
 0x53f   : > { %v3825_v20 = vpack.c.bf16 %v7649_v56, %v7649_v56 }
 0x540   : > { %5576 = vrcp.f32 %v3760_v2  ;;  %v8277_v2 = vld [vmem:[#allocation101_spill] sm:$0xff] }
 0x541   : > { %3859 = vmatmul.mubr.bf16.vlgmr.msra.gmra.mrb[16].mxu0 %v3825_v20  ;;  %3900 = vmatmul.mubr.bf16.vlgmr.msra.gmra.mrb[16].mxu1 %v3825_v20  ;;  %v8264_v20 = vld [vmem:[#allocation90_spill] sm:$0xff] }
 0x542   : > { %3920 = vmatpush1.bf16.msra.mxu0 %v7301_v23  ;;  %3961 = vmatpush1.bf16.msra.mxu1 %v7311_v18 }
 0x543   : > { %3921 = vmatprep.subr.bf16.mxu0 %v7306_v24  ;;  %3962 = vmatprep.subr.bf16.mxu1 %v7316_v25 }
 0x544   : > { %3951 = vmatprep.mubr.bf16.mxu0 %v8182_v4  ;;  %3992 = vmatprep.mubr.bf16.mxu1 %v8182_v4 }
 0x546   : > { %v5573_v9 = vpop.eup %5572  ;;  %3922 = vmatpush1.bf16.msra.mxu0 %v7321_v26  ;;  %3963 = vmatpush1.bf16.msra.mxu1 %v7331_v29 }
 0x547   : > { %v3773_v1 = vmul.f32 %v5573_v9, %v5569_v55  ;;  %v5575_v17 = vpop.eup %5574  ;;  %3923 = vmatprep.subr.bf16.mxu0 %v7326_v28  ;;  %3964 = vmatprep.subr.bf16.mxu1 %v7336_v32  ;;  %v8271_v55 = vld [vmem:[#allocation96_spill] sm:$0xff]  ;;  %v8273_v9 = vld [vmem:[#allocation97_spill] sm:$0xff] }
 0x548   : > { %v3772_v3 = vmul.f32 %v5575_v17, %v3534_v58  ;;  %v8276_v17 = vld [vmem:[#allocation102_spill] sm:$0xff] }
 0x54a   : > { %v3774_v41 = vadd.f32 %v3773_v1, %v3772_v3  ;;  %3924 = vmatpush1.bf16.msra.mxu0 %v7343_v22  ;;  %3965 = vmatpush1.bf16.msra.mxu1 %v7353_v36  ;;  %v5577_v51 = vpop.eup %5576  ;;  %v8275_v1 = vld [vmem:[#allocation100_spill] sm:$0xff]  ;;  %v8278_v3 = vld [vmem:[#allocation103_spill] sm:$0xff] }
 0x54b   : > { %3925 = vmatprep.subr.bf16.mxu0 %v7348_v35  ;;  %3966 = vmatprep.subr.bf16.mxu1 %v7358_v39 }
 0x54c   : > { %5578 = vtanh.f32 %v3774_v41  ;;  %v3814_v7 = vsub.f32 %v3774_v41, %v3534_v58  ;;  %v8279_v41 = vld [vmem:[#allocation104_spill] sm:$0xff] }
 0x54e   : > { %v3815_v45 = vmul.f32 %v3814_v7, %v3798_v61  ;;  %3926 = vmatpush1.bf16.msra.mxu0 %v8235_v46  ;;  %3967 = vmatpush1.bf16.msra.mxu1 %v8236_v5  ;;  %v8280_v7 = vld [vmem:[#allocation106_spill] sm:$0xff] }
 0x54f   : > { %3927 = vmatprep.subr.bf16.mxu0 %v8237_v62  ;;  %3968 = vmatprep.subr.bf16.mxu1 %v8238_v48 }
 0x550   : > { %v7675_v47 = vadd.f32 %v3815_v45, %v3534_v58  ;;  %v8274_v58 = vld [vmem:[#allocation99_spill] sm:$0xff] }
 0x551   : > { %v8282_v45 = vld [vmem:[#allocation107_spill] sm:$0xff] }
 0x552   : > { %3928 = vmatpush1.bf16.msra.mxu0 %v8239_v13  ;;  %3969 = vmatpush1.bf16.msra.mxu1 %v8240_v40 }
 0x553   : > { %3929 = vmatprep.subr.bf16.mxu0 %v8241_v14  ;;  %3970 = vmatprep.subr.bf16.mxu1 %v8242_v16 }
 0x556   : > { %v5579_v57 = vpop.eup %5578  ;;  %3930 = vmatpush1.bf16.msra.mxu0 %v8243_v12  ;;  %3971 = vmatpush1.bf16.msra.mxu1 %v7413_v31 }
 0x557   : > { %v3778_v30 = vmul.f32 %v5579_v57, %v5577_v51  ;;  %3931 = vmatprep.subr.bf16.mxu0 %v8260_v44  ;;  %3972 = vmatprep.subr.bf16.mxu1 %v8261_v19  ;;  %v8283_v51 = vld [vmem:[#allocation108_spill] sm:$0xff]  ;;  %v8284_v57 = vld [vmem:[#allocation110_spill] sm:$0xff] }
 0x559   : > { %v3800_v10 = vmul.f32 %v3798_v61, %v3778_v30  ;;  %v3811_v15 = vsub.f32 %v3778_v30, %v7586_v49  ;;  %v8285_v30 = vld [vmem:[#allocation109_spill] sm:$0xff] }
 0x55a   : > { %3932 = vmatpush1.bf16.msra.mxu0 %v7423_v34  ;;  %3973 = vmatpush1.bf16.msra.mxu1 %v7433_v38 }
 0x55b   : > { %v3801_v21 = vpack.c.bf16 %v3800_v10, %v3800_v10  ;;  %v3812_v6 = vmul.f32 %v3811_v15, %v3798_v61  ;;  %3933 = vmatprep.subr.bf16.mxu0 %v7428_v37  ;;  %3974 = vmatprep.subr.bf16.mxu1 %v7438_v27  ;;  %v8281_v61 = vld [vmem:[#allocation105_spill] sm:$0xff]  ;;  %v8286_v10 = vld [vmem:[#allocation111_spill] sm:$0xff]  ;;  %v8287_v15 = vld [vmem:[#allocation112_spill] sm:$0xff] }
 0x55d   : > { %3804 = vst [vmem:[%s3803_s10] sm:$0xf] %v3801_v21  ;;  %v7693_v53 = vadd.f32 %v3812_v6, %v7586_v49  ;;  %v8262_v49 = vld [vmem:[#allocation87_spill] sm:$0xff]  ;;  %v8288_v21 = vld [vmem:[#allocation114_spill] sm:$0xff]  ;;  %v8289_v6 = vld [vmem:[#allocation113_spill] sm:$0xff]  ;;  %s8294_s10 = smov %s6587_s27 }
 0x55e   : > { %3934 = vmatpush1.bf16.msra.mxu0 %v7443_v43  ;;  %3975 = vmatpush1.bf16.msra.mxu1 %v7449_v33 }
 0x55f   : > { %v3918_v8 = vpack.c.bf16 %v7693_v53, %v7693_v53  ;;  %4100 = vmatprep.subr.bf16.mxu0 %v7110_v63  ;;  %4141 = vmatprep.subr.bf16.mxu1 %v7122_v52  ;;  %v8265_v63 = vld [vmem:[#allocation89_spill] sm:$0xff]  ;;  %v8266_v52 = vld [vmem:[#allocation91_spill] sm:$0xff] }
 0x561   : > { %3952 = vmatmul.mubr.bf16.vlgmr.msra.gmra.mrb[20].mxu0 %v3918_v8  ;;  %3993 = vmatmul.mubr.bf16.vlgmr.msra.gmra.mrb[20].mxu1 %v3918_v8  ;;  %v8290_v8 = vld [vmem:[#allocation115_spill] sm:$0xff] }
 0x562   : > { %4101 = vmatpush1.bf16.msra.mxu0 %v7114_v0  ;;  %4142 = vmatpush1.bf16.msra.mxu1 %v7127_v42  ;;  %v8268_v0 = vld [vmem:[#allocation94_spill] sm:$0xff]  ;;  %v8269_v42 = vld [vmem:[#allocation93_spill] sm:$0xff] }
 0x563   : > { %4102 = vmatprep.subr.bf16.mxu0 %v7118_v50  ;;  %4143 = vmatprep.subr.bf16.mxu1 %v8262_v49  ;;  %v8270_v50 = vld [vmem:[#allocation95_spill] sm:$0xff]  ;;  %v3821_v49 = vld [vmem:[%s3820_s19] sm:$0xff] }
 0x564   : > { %4132 = vmatprep.mubr.bf16.mxu0 %v8182_v4  ;;  %4173 = vmatprep.mubr.bf16.mxu1 %v8182_v4 }
 0x566   : > { %4103 = vmatpush1.bf16.msra.mxu0 %v8263_v54  ;;  %4144 = vmatpush1.bf16.msra.mxu1 %v8264_v20  ;;  %v3822_v54 = vld [vmem:[%s3820_s19 + $0x8] sm:$0xff] }
 0x567   : > { %4104 = vmatprep.subr.bf16.mxu0 %v8265_v63  ;;  %4145 = vmatprep.subr.bf16.mxu1 %v8266_v52 }
 0x56a   : > { %4105 = vmatpush1.bf16.msra.mxu0 %v8267_v11  ;;  %4146 = vmatpush1.bf16.msra.mxu1 %v8268_v0 }
 0x56b   : > { %4106 = vmatprep.subr.bf16.mxu0 %v8269_v42  ;;  %4147 = vmatprep.subr.bf16.mxu1 %v8270_v50 }
 0x56e   : > { %4107 = vmatpush1.bf16.msra.mxu0 %v8271_v55  ;;  %4148 = vmatpush1.bf16.msra.mxu1 %v8272_v60 }
 0x56f   : > { %4108 = vmatprep.subr.bf16.mxu0 %v8273_v9  ;;  %4149 = vmatprep.subr.bf16.mxu1 %v8274_v58 }
 0x572   : > { %4109 = vmatpush1.bf16.msra.mxu0 %v8275_v1  ;;  %4150 = vmatpush1.bf16.msra.mxu1 %v8276_v17  ;;  %v3823_v17 = vld [vmem:[%s3820_s19 + $0x10] sm:$0xff] }
 0x573   : > { %4110 = vmatprep.subr.bf16.mxu0 %v8277_v2  ;;  %4151 = vmatprep.subr.bf16.mxu1 %v8278_v3  ;;  %v3824_v3 = vld [vmem:[%s3820_s19 + $0x18] sm:$0xff] }
 0x576   : > { %4111 = vmatpush1.bf16.msra.mxu0 %v8279_v41  ;;  %4152 = vmatpush1.bf16.msra.mxu1 %v8280_v7 }
 0x577   : > { %4112 = vmatprep.subr.bf16.mxu0 %v8281_v61  ;;  %4153 = vmatprep.subr.bf16.mxu1 %v8282_v45 }
 0x57a   : > { %4113 = vmatpush1.bf16.msra.mxu0 %v8283_v51  ;;  %4154 = vmatpush1.bf16.msra.mxu1 %v8284_v57 }
 0x57b   : > { %4114 = vmatprep.subr.bf16.mxu0 %v8285_v30  ;;  %4155 = vmatprep.subr.bf16.mxu1 %v8286_v10 }
 0x57e   : > { %4115 = vmatpush1.bf16.msra.mxu0 %v8287_v15  ;;  %4156 = vmatpush1.bf16.msra.mxu1 %v8288_v21 }
 0x57f   : > { %4193 = vmatprep.subr.bf16.mxu0 %v8289_v6  ;;  %4234 = vmatprep.subr.bf16.mxu1 %v8290_v8 }
 0x614   : > { %v3860_v20 = vpop.f32.mrb[16].mxu0  ;;  %v3901_v63 = vpop.f32.mrb[16].mxu1 }
 0x615   : > { %v3908_v52 = vadd.f32 %v3860_v20, %v3821_v49  ;;  %v3862_v11 = vpop.f32.mrb[17].mxu0  ;;  %v3903_v0 = vpop.f32.mrb[17].mxu1  ;;  %v3910_v2 = vadd.f32 %v3901_v63, %v3823_v17  ;;  %v3914_v49 = vld [vmem:[%s3913_s23] sm:$0xff]  ;;  %v3915_v20 = vld [vmem:[%s3913_s23 + $0x8] sm:$0xff] }
 0x616   : > { %v3909_v42 = vadd.f32 %v3862_v11, %v3822_v54  ;;  %v3864_v50 = vpop.f32.mrb[18].mxu0  ;;  %v3905_v55 = vpop.f32.mrb[18].mxu1  ;;  %v3911_v41 = vadd.f32 %v3903_v0, %v3824_v3 }
 0x617   : > { %v4886_v60 = vmul.f32 -1.442695, %v3908_v52  ;;  %v3865_v9 = vpop.f32.mrb[19].mxu0  ;;  %v3906_v58 = vpop.f32.mrb[19].mxu1  ;;  %v4888_v7 = vmul.f32 -1.442695, %v3910_v2 }
 0x618   : > { %v4887_v1 = vmul.f32 -1.442695, %v3909_v42  ;;  %v4062_v3 = vpop.permute.xlu0 %4061 }
 0x619   : > { %5580 = vpow2.f32 %v4886_v60 }
 0x61a   : > { %5582 = vpow2.f32 %v4887_v1 }
 0x61b   : > { %5584 = vtanh.f32 %v3911_v41 }
 0x61c   : > { %5586 = vpow2.f32 %v4888_v7 }
 0x623   : > { %v5581_v61 = vpop.eup %5580 }
 0x624   : > { %v4014_v45 = vadd.f32 1.0, %v5581_v61  ;;  %v5583_v51 = vpop.eup %5582  ;;  %v3916_v61 = vld [vmem:[%s3913_s23 + $0x10] sm:$0xff] }
 0x625   : > { %v4015_v57 = vadd.f32 1.0, %v5583_v51  ;;  %v5585_v30 = vpop.eup %5584 }
 0x626   : > { %5588 = vrcp.f32 %v4014_v45  ;;  %v5587_v10 = vpop.eup %5586 }
 0x627   : > { %5590 = vrcp.f32 %v4015_v57  ;;  %v4016_v8 = vadd.f32 1.0, %v5587_v10  ;;  %v3917_v57 = vld [vmem:[%s3913_s23 + $0x18] sm:$0xff] }
 0x629   : > { %5592 = vrcp.f32 %v4016_v8 }
 0x630   : > { %v5589_v15 = vpop.eup %5588 }
 0x631   : > { %v4044_v21 = vmul.f32 %v5589_v15, %v5585_v30  ;;  %v5591_v6 = vpop.eup %5590 }
 0x632   : > { %v4043_v54 = vmul.f32 %v5591_v6, %v7644_v59 }
 0x633   : > { %v5593_v30 = vpop.eup %5592 }
 0x634   : > { %v3953_v63 = vpop.f32.mrb[20].mxu0  ;;  %v3994_v52 = vpop.f32.mrb[20].mxu1  ;;  %v4045_v11 = vadd.f32 %v4044_v21, %v4043_v54 }
 0x635   : > { %v4001_v0 = vadd.f32 %v3953_v63, %v3914_v49  ;;  %v3955_v42 = vpop.f32.mrb[21].mxu0  ;;  %v3996_v50 = vpop.f32.mrb[21].mxu1  ;;  %v4003_v51 = vadd.f32 %v3994_v52, %v3916_v61 }
 0x636   : > { %v4002_v55 = vadd.f32 %v3955_v42, %v3915_v20  ;;  %v3957_v60 = vpop.f32.mrb[22].mxu0  ;;  %v3998_v9 = vpop.f32.mrb[22].mxu1  ;;  %5594 = vtanh.f32 %v4045_v11  ;;  %v4082_v58 = vsub.f32 %v4045_v11, %v7644_v59  ;;  %v4004_v10 = vadd.f32 %v3996_v50, %v3917_v57 }
 0x637   : > { %v4889_v1 = vmul.f32 -1.442695, %v4001_v0  ;;  %v3958_v17 = vpop.f32.mrb[23].mxu0  ;;  %v3999_v2 = vpop.f32.mrb[23].mxu1  ;;  %v4891_v21 = vmul.f32 -1.442695, %v4003_v51 }
 0x638   : > { %v4890_v41 = vmul.f32 -1.442695, %v4002_v55  ;;  %v4083_v7 = vmul.f32 %v4082_v58, %v4062_v3 }
 0x639   : > { %5596 = vpow2.f32 %v4889_v1 }
 0x63a   : > { %v7742_v45 = vadd.f32 %v4083_v7, %v7644_v59  ;;  %5598 = vpow2.f32 %v4890_v41 }
 0x63b   : > { %5600 = vtanh.f32 %v4004_v10 }
 0x63c   : > { %5602 = vpow2.f32 %v4891_v21 }
 0x640   : > { %v5595_v15 = vpop.eup %5594 }
 0x641   : > { %v4050_v6 = vmul.f32 %v5595_v15, %v5593_v30  ;;  %v4188_v15 = vld [vmem:[%s4187_s18] sm:$0xff] }
 0x643   : > { %v5597_v8 = vpop.eup %5596  ;;  %v4064_v54 = vmul.f32 %v4062_v3, %v4050_v6  ;;  %v4079_v20 = vsub.f32 %v4050_v6, %v7649_v56  ;;  %v4189_v6 = vld [vmem:[%s4187_s18 + $0x8] sm:$0xff] }
 0x644   : > { %v4032_v49 = vadd.f32 1.0, %v5597_v8  ;;  %v5599_v63 = vpop.eup %5598 }
 0x645   : > { %v4033_v59 = vadd.f32 1.0, %v5599_v63  ;;  %v4065_v11 = vpack.c.bf16 %v4064_v54, %v4064_v54  ;;  %v4080_v0 = vmul.f32 %v4079_v20, %v4062_v3  ;;  %v5601_v50 = vpop.eup %5600 }
 0x646   : > { %5604 = vrcp.f32 %v4032_v49  ;;  %v5603_v55 = vpop.eup %5602 }
 0x647   : > { %5606 = vrcp.f32 %v4033_v59  ;;  %4898 = vst [vmem:[%s7536_s24 + $0x8] sm:$0xf] %v4065_v11  ;;  %v7747_v52 = vadd.f32 %v4080_v0, %v7649_v56 }
 0x649   : > { %v4099_v42 = vpack.c.bf16 %v7747_v52, %v7747_v52 }
 0x64b   : > { %4133 = vmatmul.mubr.bf16.vlgmr.msra.gmra.mrb[24].mxu0 %v4099_v42  ;;  %4174 = vmatmul.mubr.bf16.vlgmr.msra.gmra.mrb[24].mxu1 %v4099_v42 }
 0x64c   : > { %4194 = vmatpush1.bf16.msra.mxu0 %v7301_v23  ;;  %4235 = vmatpush1.bf16.msra.mxu1 %v7311_v18  ;;  %v4034_v23 = vadd.f32 1.0, %v5603_v55 }
 0x64d   : > { %4195 = vmatprep.subr.bf16.mxu0 %v7306_v24  ;;  %4236 = vmatprep.subr.bf16.mxu1 %v7316_v25 }
 0x64e   : > { %4225 = vmatprep.mubr.bf16.mxu0 %v8182_v4  ;;  %4266 = vmatprep.mubr.bf16.mxu1 %v8182_v4  ;;  %5608 = vrcp.f32 %v4034_v23 }
 0x650   : > { %v5605_v56 = vpop.eup %5604  ;;  %4196 = vmatpush1.bf16.msra.mxu0 %v7321_v26  ;;  %4237 = vmatpush1.bf16.msra.mxu1 %v7331_v29  ;;  %v4072_v26 = vpop.permute.xlu1 %4071 }
 0x651   : > { %v4047_v60 = vmul.f32 %v5605_v56, %v5601_v50  ;;  %v5607_v9 = vpop.eup %5606  ;;  %4197 = vmatprep.subr.bf16.mxu0 %v7326_v28  ;;  %4238 = vmatprep.subr.bf16.mxu1 %v7336_v32 }
 0x652   : > { %v4046_v24 = vmul.f32 %v5607_v9, %v7675_v47  ;;  %v4336_v9 = vpop.permute.xlu0 %4335 }
 0x654   : > { %v4048_v25 = vadd.f32 %v4047_v60, %v4046_v24  ;;  %4198 = vmatpush1.bf16.msra.mxu0 %v7343_v22  ;;  %4239 = vmatpush1.bf16.msra.mxu1 %v7353_v36 }
 0x655   : > { %4199 = vmatprep.subr.bf16.mxu0 %v7348_v35  ;;  %4240 = vmatprep.subr.bf16.mxu1 %v7358_v39 }
 0x656   : > { %5610 = vtanh.f32 %v4048_v25  ;;  %v4088_v4 = vsub.f32 %v4048_v25, %v7675_v47  ;;  %v4190_v25 = vld [vmem:[%s4187_s18 + $0x10] sm:$0xff] }
 0x658   : > { %v4089_v28 = vmul.f32 %v4088_v4, %v4072_v26  ;;  %4200 = vmatpush1.bf16.msra.mxu0 %v8235_v46  ;;  %4241 = vmatpush1.bf16.msra.mxu1 %v8236_v5  ;;  %v5609_v32 = vpop.eup %5608 }
 0x659   : > { %4201 = vmatprep.subr.bf16.mxu0 %v8237_v62  ;;  %4242 = vmatprep.subr.bf16.mxu1 %v8238_v48 }
 0x65a   : > { %v7772_v29 = vadd.f32 %v4089_v28, %v7675_v47  ;;  %v4191_v28 = vld [vmem:[%s4187_s18 + $0x18] sm:$0xff] }
 0x65c   : > { %4202 = vmatpush1.bf16.msra.mxu0 %v8239_v13  ;;  %4243 = vmatpush1.bf16.msra.mxu1 %v8240_v40 }
 0x65d   : > { %4203 = vmatprep.subr.bf16.mxu0 %v8241_v14  ;;  %4244 = vmatprep.subr.bf16.mxu1 %v8242_v16 }
 0x660   : > { %v5611_v35 = vpop.eup %5610  ;;  %4204 = vmatpush1.bf16.msra.mxu0 %v8243_v12  ;;  %4245 = vmatpush1.bf16.msra.mxu1 %v7413_v31 }
 0x661   : > { %4205 = vmatprep.subr.bf16.mxu0 %v8260_v44  ;;  %4246 = vmatprep.subr.bf16.mxu1 %v8261_v19  ;;  %v4052_v36 = vmul.f32 %v5611_v35, %v5609_v32  ;;  %v4097_v44 = vld [vmem:[%s4094_s28 + $0x10] sm:$0xff] }
 0x663   : > { %v4074_v39 = vmul.f32 %v4072_v26, %v4052_v36  ;;  %v4085_v18 = vsub.f32 %v4052_v36, %v7693_v53 }
 0x664   : > { %4206 = vmatpush1.bf16.msra.mxu0 %v7423_v34  ;;  %4247 = vmatpush1.bf16.msra.mxu1 %v7433_v38 }
 0x665   : > { %4207 = vmatprep.subr.bf16.mxu0 %v7428_v37  ;;  %4248 = vmatprep.subr.bf16.mxu1 %v7438_v27  ;;  %v4075_v31 = vpack.c.bf16 %v4074_v39, %v4074_v39  ;;  %v4086_v22 = vmul.f32 %v4085_v18, %v4072_v26  ;;  %v4095_v37 = vld [vmem:[%s4094_s28] sm:$0xff]  ;;  %v4096_v27 = vld [vmem:[%s4094_s28 + $0x8] sm:$0xff] }
 0x667   : > { %4078 = vst [vmem:[%s4077_s25] sm:$0xf] %v4075_v31  ;;  %v7790_v46 = vadd.f32 %v4086_v22, %v7693_v53  ;;  %v4098_v53 = vld [vmem:[%s4094_s28 + $0x18] sm:$0xff] }
 0x668   : > { %4208 = vmatpush1.bf16.msra.mxu0 %v7443_v43  ;;  %4249 = vmatpush1.bf16.msra.mxu1 %v7449_v33 }
 0x669   : > { %v4192_v34 = vpack.c.bf16 %v7790_v46, %v7790_v46 }
 0x66b   : > { %4226 = vmatmul.mubr.bf16.vlgmr.msra.gmra.mrb[28].mxu0 %v4192_v34  ;;  %4267 = vmatmul.mubr.bf16.vlgmr.msra.gmra.mrb[28].mxu1 %v4192_v34 }
 0x71e   : > { %v4134_v38 = vpop.f32.mrb[24].mxu0  ;;  %v4175_v5 = vpop.f32.mrb[24].mxu1 }
 0x71f   : > { %v4182_v62 = vadd.f32 %v4134_v38, %v4095_v37  ;;  %v4136_v48 = vpop.f32.mrb[25].mxu0  ;;  %v4177_v13 = vpop.f32.mrb[25].mxu1  ;;  %v4184_v19 = vadd.f32 %v4175_v5, %v4097_v44 }
 0x720   : > { %v4183_v40 = vadd.f32 %v4136_v48, %v4096_v27  ;;  %v4138_v14 = vpop.f32.mrb[26].mxu0  ;;  %v4179_v16 = vpop.f32.mrb[26].mxu1  ;;  %v4185_v58 = vadd.f32 %v4177_v13, %v4098_v53 }
 0x721   : > { %v4902_v43 = vmul.f32 -1.442695, %v4182_v62  ;;  %v4139_v12 = vpop.f32.mrb[27].mxu0  ;;  %v4180_v33 = vpop.f32.mrb[27].mxu1  ;;  %v4904_v1 = vmul.f32 -1.442695, %v4184_v19 }
 0x722   : > { %v4903_v47 = vmul.f32 -1.442695, %v4183_v40  ;;  %v4346_v44 = vpop.permute.xlu1 %4345 }
 0x723   : > { %5612 = vpow2.f32 %v4902_v43 }
 0x724   : > { %5614 = vpow2.f32 %v4903_v47 }
 0x725   : > { %5616 = vtanh.f32 %v4185_v58 }
 0x726   : > { %5618 = vpow2.f32 %v4904_v1 }
 0x72d   : > { %v5613_v17 = vpop.eup %5612 }
 0x72e   : > { %v4288_v2 = vadd.f32 1.0, %v5613_v17  ;;  %v5615_v3 = vpop.eup %5614 }
 0x72f   : > { %v4289_v41 = vadd.f32 1.0, %v5615_v3  ;;  %v5617_v7 = vpop.eup %5616 }
 0x730   : > { %5620 = vrcp.f32 %v4288_v2  ;;  %v5619_v61 = vpop.eup %5618 }
 0x731   : > { %5622 = vrcp.f32 %v4289_v41  ;;  %v4290_v10 = vadd.f32 1.0, %v5619_v61 }
 0x733   : > { %5624 = vrcp.f32 %v4290_v10 }
 0x73a   : > { %v5621_v51 = vpop.eup %5620 }
 0x73b   : > { %v4318_v57 = vmul.f32 %v5621_v51, %v5617_v7  ;;  %v5623_v30 = vpop.eup %5622 }
 0x73c   : > { %v4317_v21 = vmul.f32 %v5623_v30, %v7742_v45 }
 0x73d   : > { %v5625_v32 = vpop.eup %5624 }
 0x73e   : > { %v4227_v8 = vpop.f32.mrb[28].mxu0  ;;  %v4268_v49 = vpop.f32.mrb[28].mxu1  ;;  %v4319_v54 = vadd.f32 %v4318_v57, %v4317_v21 }
 0x73f   : > { %v4275_v20 = vadd.f32 %v4227_v8, %v4188_v15  ;;  %v4229_v63 = vpop.f32.mrb[29].mxu0  ;;  %v4270_v59 = vpop.f32.mrb[29].mxu1  ;;  %v4277_v26 = vadd.f32 %v4268_v49, %v4190_v25 }
 0x740   : > { %v4276_v11 = vadd.f32 %v4229_v63, %v4189_v6  ;;  %v4231_v0 = vpop.f32.mrb[30].mxu0  ;;  %v4272_v42 = vpop.f32.mrb[30].mxu1  ;;  %5626 = vtanh.f32 %v4319_v54  ;;  %v4356_v50 = vsub.f32 %v4319_v54, %v7742_v45  ;;  %v4278_v35 = vadd.f32 %v4270_v59, %v4191_v28 }
 0x741   : > { %v4905_v55 = vmul.f32 -1.442695, %v4275_v20  ;;  %v4232_v56 = vpop.f32.mrb[31].mxu0  ;;  %v4273_v60 = vpop.f32.mrb[31].mxu1  ;;  %v4907_v39 = vmul.f32 -1.442695, %v4277_v26 }
 0x742   : > { %v4906_v23 = vmul.f32 -1.442695, %v4276_v11  ;;  %v4357_v24 = vmul.f32 %v4356_v50, %v4336_v9 }
 0x743   : > { %5628 = vpow2.f32 %v4905_v55 }
 0x744   : > { %v4358_v4 = vadd.f32 %v4357_v24, %v7742_v45   ;;  %5630 = vpow2.f32 %v4906_v23 }
 0x745   : > { %5632 = vtanh.f32 %v4278_v35 }
 0x746   : > { %5634 = vpow2.f32 %v4907_v39  ;;  %v8292_v59 = vmov %v4358_v4 }
 0x74a   : > { %v5627_v36 = vpop.eup %5626 }
 0x74b   : > { %v4324_v18 = vmul.f32 %v5627_v36, %v5625_v32 }
 0x74d   : > { %v5629_v31 = vpop.eup %5628  ;;  %v4338_v22 = vmul.f32 %v4336_v9, %v4324_v18  ;;  %v4353_v34 = vsub.f32 %v4324_v18, %v7747_v52 }
 0x74e   : > { %v4306_v37 = vadd.f32 1.0, %v5629_v31  ;;  %v5631_v27 = vpop.eup %5630 }
 0x74f   : > { %v4339_v38 = vpack.c.bf16 %v4338_v22, %v4338_v22  ;;  %v4354_v5 = vmul.f32 %v4353_v34, %v4336_v9  ;;  %v4307_v45 = vadd.f32 1.0, %v5631_v27  ;;  %v5633_v48 = vpop.eup %5632 }
 0x750   : > { %5636 = vrcp.f32 %v4306_v37  ;;  %v5635_v13 = vpop.eup %5634 }
 0x751   : > { %4914 = vst [vmem:[%s7536_s24 + $0xc] sm:$0xf] %v4339_v38  ;;  %v4355_v62 = vadd.f32 %v4354_v5, %v7747_v52   ;;  %5638 = vrcp.f32 %v4307_v45  ;;  %v4308_v43 = vadd.f32 1.0, %v5635_v13 }
 0x753   : > { %5640 = vrcp.f32 %v4308_v43  ;;  %4365 = vst [vmem:[%s7868_s13] sm:$0xff] (%p4633_p8), %v4355_v62 }
 0x75a   : > { %v5637_v40 = vpop.eup %5636 }
 0x75b   : > { %v4321_v14 = vmul.f32 %v5637_v40, %v5633_v48  ;;  %v5639_v16 = vpop.eup %5638 }
 0x75c   : > { %v4320_v12 = vmul.f32 %v5639_v16, %v7772_v29 }
 0x75d   : > { %v5641_v52 = vpop.eup %5640 }
 0x75e   : > { %v4322_v33 = vadd.f32 %v4321_v14, %v4320_v12 }
 0x760   : > { %5642 = vtanh.f32 %v4322_v33  ;;  %v4362_v47 = vsub.f32 %v4322_v33, %v7772_v29 }
 0x762   : > { %v4363_v19 = vmul.f32 %v4362_v47, %v4346_v44 }
 0x764   : > { %v4364_v42 = vadd.f32 %v4363_v19, %v7772_v29  }
 0x76a   : > { %v5643_v53 = vpop.eup %5642 }
 0x76b   : > { %v4326_v58 = vmul.f32 %v5643_v53, %v5641_v52 }
 0x76d   : > { %v4348_v1 = vmul.f32 %v4346_v44, %v4326_v58  ;;  %v4359_v17 = vsub.f32 %v4326_v58, %v7790_v46  ;;  %1523 = sbr.rel (!%p4633_p8) target bundleno = 407 (0x197), region = 133 }
 0x76f   : > { %v4349_v2 = vpack.c.bf16 %v4348_v1, %v4348_v1  ;;  %v4360_v3 = vmul.f32 %v4359_v17, %v4346_v44  ;;  %v8293_v44 = vmov %v4355_v62 }
 0x771   : > { %4352 = vst [vmem:[%s4351_s21] sm:$0xf] %v4349_v2  ;;  %v4361_v41 = vadd.f32 %v4360_v3, %v7790_v46  }
 0x773   : > { %v8291_v45 = vmov %v4361_v41  ;;  %4366 = vst [vmem:[%s7869_s14] sm:$0xff] (%p4633_p8), %v4361_v41 }
 0x774   :  { %5677 = shalt.err (!%p5674_p3)
}
 0x775   :  { %s5678_s0 = scalar_lea.hbm %s7866_s11, 512 }
 0x776   :  { %p5679_p4 = scmp.ne.s32.totalorder %s7866_s11, %s5678_s0  ;;  %p5682_p5 = scmp.lt.u32.totalorder %s5678_s0, %s7866_s11 }
 0x778   :  { %p5684_p6 = pnand %p5682_p5, %p5679_p4 }
 0x77a   :  { %5687 = shalt.err (!%p5684_p6)
}
 0x77b   :  { %s5763_s5 = smov 64   ;;  %s5764_s6 = smov 4  }
 0x77c   :  { %4378 = dma.vmem_to_hbm [thread:$0]  %s4373_s8, 512, %s7866_s11, [#allocation6], %s5763_s5, %s5763_s5, %s5764_s6  }
 0x77d   :  { %s5765_s30 = smov [#allocation8]  }
 0x77e   :  { %s4384_s7 = sshll.u32 %s5765_s30, 4  ;;  %s4385_s7 = int_to_ptr.vmem [resolvable:$true] %s4384_s7 }
 0x77f   :  { %s5688_s10 = scalar_lea.vmem %s4385_s7, 512  ;;  %p5693_p8 = scmp.lt.s32.totalorder %s4385_s7, %s4385_s7 }
 0x780   :  { %p5689_p7 = scmp.ne.s32.totalorder %s4385_s7, %s5688_s10  ;;  %p5694_p9 = scmp.lt.s32.totalorder %s5688_s10, %s5688_s10 }
 0x782   :  { %p5695_p10 = por %p5694_p9, %p5693_p8 }
 0x784   :  { %p5696_p11 = pnand %p5695_p10, %p5689_p7 }
 0x786   :  { %5699 = shalt.err (!%p5696_p11)
}
 0x787   :  { %s5700_s29 = scalar_lea.hbm %s7867_s12, 512 }
 0x788   :  { %p5701_p12 = scmp.ne.s32.totalorder %s7867_s12, %s5700_s29  ;;  %p5704_p13 = scmp.lt.u32.totalorder %s5700_s29, %s7867_s12 }
 0x78a   :  { %p5706_p0 = pnand %p5704_p13, %p5701_p12 }
 0x78c   :  { %5709 = shalt.err (!%p5706_p0)
}
 0x78d   :  { %4390 = dma.vmem_to_hbm [thread:$0]  %s4385_s7, 512, %s7867_s12, [#allocation9], %s5763_s5, %s5763_s5, %s5764_s6  }
 0x78e   :  { %5732 = dma.done.wait [#allocation6], 512  }
 0x78f   :  { %5733 = vsyncadd [#allocation6], 4294966784 }
 0x790   :  { %5734 = dma.done.wait [#allocation9], 512  }
 0x791   :  { %5735 = vsyncadd [#allocation9], 4294966784 }
 0x792   :  { %4405 = vsyncpa [#allocation5], 1 }
 0x793   :  { %4406 = vsyncpa [#allocation6], 1 }
 0x794   :  { %4407 = vsyncpa [#allocation9], 1 }

</bundles_post_ra>
